<compile_context>
chip_gen: v6e
topology: v6e:2x2x1
jax: 0.10.0
libtpu: 0.0.40
codegen_flags: <defaults>
</compile_context>

<pallas_src>
import functools

import jax
import jax.numpy as jnp
import numpy as np
from jax import lax
from jax.experimental import pallas as pl
from jax.experimental.pallas import tpu as pltpu


def _round_up(x, m):
    return ((x + m - 1) // m) * m


def _largest_divisor(n, candidates):
    for c in candidates:
        if n % c == 0:
            return c
    return None


# ----------------------------------------------------------------------------
# cv1: 1x1 conv (pointwise matmul) + folded-BN bias + SiLU  ->  bf16, MXU
# ----------------------------------------------------------------------------
def _pointwise_silu_kernel(x_ref, w_ref, b_ref, o_ref):
    # Cast activations to bf16 right before the MXU dot; accumulate in f32.
    acc = jnp.dot(x_ref[...].astype(jnp.bfloat16), w_ref[...],
                  preferred_element_type=jnp.float32)
    acc = acc + b_ref[...]
    o_ref[...] = (acc * jax.nn.sigmoid(acc)).astype(o_ref.dtype)


def conv1x1_silu(x_nhwc, w, b, cp):
    """SiLU(x @ w + b) with the output channel dim padded up to `cp` (lane dense).

    Returns (N, H, W, cp) bf16.  w: (Cin, Cout), b: (Cout,).  Padded output
    channels are exactly zero (zero-padded weights/bias -> SiLU(0) = 0)."""
    N, H, W, C = x_nhwc.shape
    Cout = w.shape[1]
    M, K = N * H * W, C
    x2 = x_nhwc.reshape(M, K)                      # metadata only, no HBM copy

    tm = _largest_divisor(M, (1024, 512, 256, 128, 64, 32, 16, 8))
    if tm is None:
        # Rare fallback (M not a multiple of 8): pad rows, slice them off after.
        Mp = _round_up(M, 8)
        x2 = jnp.pad(x2, ((0, Mp - M), (0, 0)))
        tm = _largest_divisor(Mp, (1024, 512, 256, 128, 64, 32, 16, 8))
    else:
        Mp = M
    tn = 256 if cp % 256 == 0 else 128

    # Only the (tiny) weights/bias are padded; x is fed straight from HBM.
    wp = jnp.pad(w.astype(jnp.bfloat16), ((0, 0), (0, cp - Cout)))
    bp = jnp.pad(b.astype(jnp.float32), (0, cp - Cout)).reshape(1, cp)

    # TODO(synk): K is loaded as one full-extent block (fine for conv channel
    # counts); a huge K would need a K-tiled accumulator variant.
    out = pl.pallas_call(
        _pointwise_silu_kernel,
        out_shape=jax.ShapeDtypeStruct((Mp, cp), jnp.bfloat16),
        grid=(Mp // tm, cp // tn),
        in_specs=[
            pl.BlockSpec((tm, K), lambda i, j: (i, 0)),   # full-K activation block
            pl.BlockSpec((K, tn), lambda i, j: (0, j)),
            pl.BlockSpec((1, tn), lambda i, j: (0, j)),
        ],
        out_specs=pl.BlockSpec((tm, tn), lambda i, j: (i, j)),
        compiler_params=pltpu.CompilerParams(
            dimension_semantics=("parallel", "parallel")),
        cost_estimate=pl.CostEstimate(
            flops=2 * Mp * K * cp,
            transcendentals=Mp * cp,
            bytes_accessed=Mp * K * 4 + K * cp * 2 + Mp * cp * 2),
    )(x2, wp, bp)
    if Mp != M:
        out = out[:M]
    return out.reshape(N, H, W, cp)


# ----------------------------------------------------------------------------
# cv2: depthwise 5x5 (stride 1, pad 2) + bias + SiLU, fused with ghost concat
# ----------------------------------------------------------------------------
def _ghost_dw_kernel(yc_ref, ya_ref, yb_ref, w_ref, b_ref, o_ref, *, th, W):
    i = pl.program_id(1)
    nh = pl.num_programs(1)
    f32 = jnp.float32

    center = yc_ref[...].astype(f32)                       # (1, th, W, C)
    # Halo rows from the neighbouring row-blocks; zeroed at the image edges.
    top_mask = (i > 0).astype(f32)
    bot_mask = (i < nh - 1).astype(f32)
    above = ya_ref[...].astype(f32) * top_mask             # (1, 2, W, C)
    below = yb_ref[...].astype(f32) * bot_mask             # (1, 2, W, C)

    x = jnp.concatenate([above, center, below], axis=1)    # (1, th+4, W, C)
    C = x.shape[-1]
    zpad = jnp.zeros((1, th + 4, 2, C), f32)
    x = jnp.concatenate([zpad, x, zpad], axis=2)           # (1, th+4, W+4, C)

    w = w_ref[...].astype(f32)                             # (5, 5, C)
    # TODO(synk): on v6e/v7x a bf16 tap loop (f32 accumulator) would ~double VPU
    # throughput; kept in f32 so the same kernel is exact/safe on v5e.
    acc = jnp.zeros(center.shape, f32)
    for dx in range(5):                                    # 5 hoisted W (sublane) shifts
        xs = x[:, :, dx:dx + W, :]                         # (1, th+4, W, C)
        for dy in range(5):
            acc = acc + xs[:, dy:dy + th, :, :] * w[dy, dx]
    acc = acc + b_ref[...]
    z = acc * jax.nn.sigmoid(acc)

    # Fused ghost concat: half 0 = y (already resident in VMEM), half 1 = z.
    o_ref[...] = jnp.concatenate([center[:, None], z[:, None]],
                                 axis=1).astype(o_ref.dtype)


def ghost_dwconv5x5_silu(y_nhwc, w_hwc, b, cp):
    """Returns (N, 2, H, W, cp) f32 with [:,0]=y and [:,1]=SiLU(dwconv5x5(y)+b)."""
    N, H, W, C = y_nhwc.shape
    assert C == cp and cp % 128 == 0
    Cout = w_hwc.shape[-1]
    wp = jnp.pad(w_hwc.astype(jnp.float32), ((0, 0), (0, 0), (0, cp - Cout)))
    bp = jnp.pad(b.astype(jnp.float32), (0, cp - Cout)).reshape(1, cp)

    # Output-row tile height (even, divides H); whole image as a fallback.
    th = _largest_divisor(H, (64, 48, 40, 32, 24, 16, 8, 4, 2)) or H
    nh = H // th
    hb = max(th // 2, 1)                      # halo blocks are 2 rows wide
    max_hblk = max(H // 2 - 1, 0)

    kern = functools.partial(_ghost_dw_kernel, th=th, W=W)
    return pl.pallas_call(
        kern,
        out_shape=jax.ShapeDtypeStruct((N, 2, H, W, cp), jnp.float32),
        grid=(N, nh, cp // 128),
        in_specs=[
            # center rows of this tile
            pl.BlockSpec((1, th, W, 128), lambda n, i, c: (n, i, 0, c)),
            # 2-row halo above (clamped; masked to zero in-kernel when i == 0)
            pl.BlockSpec((1, 2, W, 128),
                         lambda n, i, c: (n, jnp.maximum(i * hb - 1, 0), 0, c)),
            # 2-row halo below (clamped; masked to zero when i == nh-1)
            pl.BlockSpec((1, 2, W, 128),
                         lambda n, i, c: (n, jnp.minimum((i + 1) * hb, max_hblk), 0, c)),
            pl.BlockSpec((5, 5, 128), lambda n, i, c: (0, 0, c)),
            pl.BlockSpec((1, 128), lambda n, i, c: (0, c)),
        ],
        out_specs=pl.BlockSpec((1, 2, th, W, 128),
                               lambda n, i, c: (n, 0, i, 0, c)),
        compiler_params=pltpu.CompilerParams(
            dimension_semantics=("parallel", "parallel", "parallel"),
            vmem_limit_bytes=48 * 1024 * 1024),
        cost_estimate=pl.CostEstimate(
            flops=2 * 25 * N * H * W * cp,
            transcendentals=N * H * W * cp,
            bytes_accessed=N * H * W * cp * 2 + 2 * N * H * W * cp * 4),
    )(y_nhwc, y_nhwc, y_nhwc, wp, bp)


# ----------------------------------------------------------------------------
# GhostConv module
# ----------------------------------------------------------------------------
def init_ghostconv_params(key, c1, c2):
    """Deterministic synthetic parameters (BN folded into weight/bias)."""
    c_ = c2 // 2
    k1, k2, k3, k4 = jax.random.split(key, 4)
    params = {
        "cv1_w": 0.1 * jax.random.normal(k1, (c1, c_), jnp.float32),    # 1x1
        "cv1_b": 0.1 * jax.random.normal(k2, (c_,), jnp.float32),
        "cv2_w": 0.1 * jax.random.normal(k3, (5, 5, c_), jnp.float32),  # depthwise
        "cv2_b": 0.1 * jax.random.normal(k4, (c_,), jnp.float32),
    }
    return params, c_


def ghostconv_forward(x_nchw, params):
    # TODO(synk): only the default GhostConv config (cv1 with k=1, s=1, g=1) is
    # implemented; non-default k/s/groups for cv1 would need a strided conv kernel.
    c_ = params["cv1_w"].shape[1]
    cp = _round_up(c_, 128)                                 # lane-dense channel pad
    N, _, H, W = x_nchw.shape

    x = jnp.transpose(x_nchw, (0, 2, 3, 1)).astype(jnp.float32)          # NHWC
    y = conv1x1_silu(x, params["cv1_w"], params["cv1_b"], cp)            # MXU, bf16
    out5 = ghost_dwconv5x5_silu(y, params["cv2_w"], params["cv2_b"], cp) # VPU + concat

    # TODO(synk): the final transpose is the NCHW module-boundary layout cost;
    # an NHWC-consuming caller could skip it (and the slice if c_ % 128 == 0).
    out = out5[..., :c_] if cp != c_ else out5              # (N, 2, H, W, c_)
    return jnp.transpose(out, (0, 1, 4, 2, 3)).reshape(N, 2 * c_, H, W)


# ----------------------------------------------------------------------------
# Pure-JAX reference (for correctness check)
# ----------------------------------------------------------------------------
def _silu(v):
    return v * jax.nn.sigmoid(v)


def ghostconv_reference(x_nchw, params):
    x = jnp.transpose(x_nchw, (0, 2, 3, 1)).astype(jnp.float32)
    c_ = params["cv1_w"].shape[1]
    y = lax.conv_general_dilated(
        x, params["cv1_w"][None, None], (1, 1), [(0, 0), (0, 0)],
        dimension_numbers=("NHWC", "HWIO", "NHWC"),
        precision=lax.Precision.HIGHEST)
    y = _silu(y + params["cv1_b"])
    z = lax.conv_general_dilated(
        y, params["cv2_w"][:, :, None, :], (1, 1), [(2, 2), (2, 2)],
        dimension_numbers=("NHWC", "HWIO", "NHWC"),
        feature_group_count=c_,
        precision=lax.Precision.HIGHEST)
    z = _silu(z + params["cv2_b"])
    out = jnp.concatenate([y, z], axis=-1)
    return jnp.transpose(out, (0, 3, 1, 2))


# ----------------------------------------------------------------------------
if __name__ == "__main__":
    key = jax.random.PRNGKey(0)
    kx, kp = jax.random.split(key)

    N, c1, c2, H, W = 2, 4, 4, 16, 16
    x = jax.random.normal(kx, (N, c1, H, W), jnp.float32)   # NCHW input
    params, c_ = init_ghostconv_params(kp, c1, c2)

    out = jax.block_until_ready(jax.jit(ghostconv_forward)(x, params))
    assert out.shape == (N, c2, H, W), out.shape

    ref = jax.block_until_ready(ghostconv_reference(x, params))
    np.testing.assert_allclose(np.asarray(out), np.asarray(ref),
                               rtol=2e-2, atol=1e-2)

    print("KERNEL_OK")
</pallas_src>

<mosaic_0001>
module attributes {stable_mosaic.version = 11 : i64} {
  func.func @_pointwise_silu_kernel(%arg0: i32, %arg1: i32, %arg2: memref<512x4xf32, #tpu.memory_space<vmem>>, %arg3: memref<4x128xbf16, #tpu.memory_space<vmem>>, %arg4: memref<1x128xf32, #tpu.memory_space<vmem>>, %arg5: memref<512x128xbf16, #tpu.memory_space<vmem>>) attributes {dimension_semantics = [#tpu.dimension_semantics<parallel>, #tpu.dimension_semantics<parallel>], iteration_bounds = array<i64: 1, 1>, scalar_prefetch = 0 : i64, scratch_operands = 0 : i64, tpu.core_type = #tpu.core_type<tc>, window_params = [{transform_indices = @transform_0, window_bounds = array<i64: 512, 4>}, {transform_indices = @transform_1, window_bounds = array<i64: 4, 128>}, {transform_indices = @transform_2, window_bounds = array<i64: 1, 128>}, {transform_indices = @transform_3, window_bounds = array<i64: 512, 128>}]} {
    %c0 = arith.constant 0 : index
    %c0_0 = arith.constant 0 : index
    %0 = vector.load %arg2[%c0, %c0_0] : memref<512x4xf32, #tpu.memory_space<vmem>>, vector<512x4xf32>
    %1 = arith.truncf %0 : vector<512x4xf32> to vector<512x4xbf16>
    %c0_1 = arith.constant 0 : index
    %c0_2 = arith.constant 0 : index
    %2 = vector.load %arg3[%c0_1, %c0_2] : memref<4x128xbf16, #tpu.memory_space<vmem>>, vector<4x128xbf16>
    %cst = arith.constant dense<0.000000e+00> : vector<512x128xf32>
    %3 = tpu.matmul %1, %2, %cst {dimension_numbers = #tpu.dot_dimension_numbers<[1], [0], [0], [1], [0, 0, 1, 1], [], []>} : vector<512x4xbf16>, vector<4x128xbf16>, vector<512x128xf32> -> vector<512x128xf32>
    %c0_3 = arith.constant 0 : index
    %c0_4 = arith.constant 0 : index
    %4 = vector.load %arg4[%c0_3, %c0_4] : memref<1x128xf32, #tpu.memory_space<vmem>>, vector<1x128xf32>
    %5 = vector.broadcast %4 : vector<1x128xf32> to vector<512x128xf32>
    %6 = arith.addf %3, %5 : vector<512x128xf32>
    %7 = arith.negf %6 : vector<512x128xf32>
    %8 = math.exp %7 : vector<512x128xf32>
    %cst_5 = arith.constant 1.000000e+00 : f32
    %9 = vector.broadcast %cst_5 : f32 to vector<512x128xf32>
    %10 = arith.addf %9, %8 : vector<512x128xf32>
    %11 = arith.divf %9, %10 : vector<512x128xf32>
    %12 = arith.mulf %6, %11 : vector<512x128xf32>
    %13 = arith.truncf %12 : vector<512x128xf32> to vector<512x128xbf16>
    %c0_6 = arith.constant 0 : index
    %c0_7 = arith.constant 0 : index
    %14 = vector.load %arg5[%c0_6, %c0_7] : memref<512x128xbf16, #tpu.memory_space<vmem>>, vector<512x128xbf16>
    tpu.vector_store %arg5[%c0_6, %c0_7], %13 {strides = array<i32>} : memref<512x128xbf16, #tpu.memory_space<vmem>>, vector<512x128xbf16>,
    return
  }
  func.func @transform_0(%arg0: i32, %arg1: i32) -> (i32, i32) {
    %c0_i32 = arith.constant 0 : i32
    %c0_i32_0 = arith.constant 0 : i32
    return %arg0, %c0_i32 : i32, i32
  }
  func.func @transform_1(%arg0: i32, %arg1: i32) -> (i32, i32) {
    %c0_i32 = arith.constant 0 : i32
    %c0_i32_0 = arith.constant 0 : i32
    return %c0_i32, %arg1 : i32, i32
  }
  func.func @transform_2(%arg0: i32, %arg1: i32) -> (i32, i32) {
    %c0_i32 = arith.constant 0 : i32
    %c0_i32_0 = arith.constant 0 : i32
    return %c0_i32, %arg1 : i32, i32
  }
  func.func @transform_3(%arg0: i32, %arg1: i32) -> (i32, i32) {
    %c0_i32 = arith.constant 0 : i32
    return %arg0, %arg1 : i32, i32
  }
}

module attributes {stable_mosaic.version = 11 : i64} {
  func.func @_ghost_dw_kernel(%arg0: i32, %arg1: i32, %arg2: i32, %arg3: memref<1x16x16x128xbf16, #tpu.memory_space<vmem>>, %arg4: memref<1x2x16x128xbf16, #tpu.memory_space<vmem>>, %arg5: memref<1x2x16x128xbf16, #tpu.memory_space<vmem>>, %arg6: memref<5x5x128xf32, #tpu.memory_space<vmem>>, %arg7: memref<1x128xf32, #tpu.memory_space<vmem>>, %arg8: memref<1x2x16x16x128xf32, #tpu.memory_space<vmem>>) attributes {dimension_semantics = [#tpu.dimension_semantics<parallel>, #tpu.dimension_semantics<parallel>, #tpu.dimension_semantics<parallel>], iteration_bounds = array<i64: 2, 1, 1>, scalar_prefetch = 0 : i64, scratch_operands = 0 : i64, tpu.core_type = #tpu.core_type<tc>, window_params = [{transform_indices = @transform_0, window_bounds = array<i64: 1, 16, 16, 128>}, {transform_indices = @transform_1, window_bounds = array<i64: 1, 2, 16, 128>}, {transform_indices = @transform_2, window_bounds = array<i64: 1, 2, 16, 128>}, {transform_indices = @transform_3, window_bounds = array<i64: 5, 5, 128>}, {transform_indices = @transform_4, window_bounds = array<i64: 1, 128>}, {transform_indices = @transform_5, window_bounds = array<i64: 1, 2, 16, 16, 128>}]} {
    %c0 = arith.constant 0 : index
    %c0_0 = arith.constant 0 : index
    %c0_1 = arith.constant 0 : index
    %c0_2 = arith.constant 0 : index
    %0 = vector.load %arg3[%c0, %c0_0, %c0_1, %c0_2] : memref<1x16x16x128xbf16, #tpu.memory_space<vmem>>, vector<1x16x16x128xbf16>
    %1 = arith.extf %0 : vector<1x16x16x128xbf16> to vector<1x16x16x128xf32>
    %c0_i32 = arith.constant 0 : i32
    %2 = arith.cmpi sgt, %arg1, %c0_i32 : i32
    %3 = arith.extui %2 : i1 to i32
    %4 = arith.sitofp %3 : i32 to f32
    %c0_i32_3 = arith.constant 0 : i32
    %5 = arith.cmpi slt, %arg1, %c0_i32_3 : i32
    %6 = arith.extui %5 : i1 to i32
    %7 = arith.sitofp %6 : i32 to f32
    %c0_4 = arith.constant 0 : index
    %c0_5 = arith.constant 0 : index
    %c0_6 = arith.constant 0 : index
    %c0_7 = arith.constant 0 : index
    %8 = vector.load %arg4[%c0_4, %c0_5, %c0_6, %c0_7] : memref<1x2x16x128xbf16, #tpu.memory_space<vmem>>, vector<1x2x16x128xbf16>
    %9 = arith.extf %8 : vector<1x2x16x128xbf16> to vector<1x2x16x128xf32>
    %10 = vector.broadcast %4 : f32 to vector<1x2x16x128xf32>
    %11 = arith.mulf %9, %10 : vector<1x2x16x128xf32>
    %c0_8 = arith.constant 0 : index
    %c0_9 = arith.constant 0 : index
    %c0_10 = arith.constant 0 : index
    %c0_11 = arith.constant 0 : index
    %12 = vector.load %arg5[%c0_8, %c0_9, %c0_10, %c0_11] : memref<1x2x16x128xbf16, #tpu.memory_space<vmem>>, vector<1x2x16x128xbf16>
    %13 = arith.extf %12 : vector<1x2x16x128xbf16> to vector<1x2x16x128xf32>
    %14 = vector.broadcast %7 : f32 to vector<1x2x16x128xf32>
    %15 = arith.mulf %13, %14 : vector<1x2x16x128xf32>
    %16 = tpu.concatenate %11, %1, %15 in 1 : vector<1x2x16x128xf32>, vector<1x16x16x128xf32>, vector<1x2x16x128xf32> -> vector<1x20x16x128xf32>
    %cst = arith.constant 0.000000e+00 : f32
    %17 = vector.broadcast %cst : f32 to vector<1x20x2x128xf32>
    %18 = tpu.concatenate %17, %16, %17 in 2 : vector<1x20x2x128xf32>, vector<1x20x16x128xf32>, vector<1x20x2x128xf32> -> vector<1x20x20x128xf32>
    %c0_12 = arith.constant 0 : index
    %c0_13 = arith.constant 0 : index
    %c0_14 = arith.constant 0 : index
    %19 = vector.load %arg6[%c0_12, %c0_13, %c0_14] : memref<5x5x128xf32, #tpu.memory_space<vmem>>, vector<5x5x128xf32>
    %cst_15 = arith.constant 0.000000e+00 : f32
    %20 = vector.broadcast %cst_15 : f32 to vector<1x16x16x128xf32>
    %21 = vector.extract_strided_slice %18 {offsets = [0, 0, 0, 0], sizes = [1, 20, 16, 128], strides = [1, 1, 1, 1]} : vector<1x20x20x128xf32> to vector<1x20x16x128xf32>
    %22 = vector.extract_strided_slice %21 {offsets = [0, 0, 0, 0], sizes = [1, 16, 16, 128], strides = [1, 1, 1, 1]} : vector<1x20x16x128xf32> to vector<1x16x16x128xf32>
    %23 = vector.extract_strided_slice %19 {offsets = [0, 0, 0], sizes = [1, 1, 128], strides = [1, 1, 1]} : vector<5x5x128xf32> to vector<1x1x128xf32>
    %24 = vector.shape_cast %23 : vector<1x1x128xf32> to vector<128xf32>
    %25 = vector.shape_cast %24 : vector<128xf32> to vector<1x1x1x128xf32>
    %26 = vector.broadcast %25 : vector<1x1x1x128xf32> to vector<1x16x16x128xf32>
    %27 = arith.mulf %22, %26 : vector<1x16x16x128xf32>
    %28 = arith.addf %20, %27 : vector<1x16x16x128xf32>
    %29 = vector.extract_strided_slice %21 {offsets = [0, 1, 0, 0], sizes = [1, 16, 16, 128], strides = [1, 1, 1, 1]} : vector<1x20x16x128xf32> to vector<1x16x16x128xf32>
    %30 = vector.extract_strided_slice %19 {offsets = [1, 0, 0], sizes = [1, 1, 128], strides = [1, 1, 1]} : vector<5x5x128xf32> to vector<1x1x128xf32>
    %31 = vector.shape_cast %30 : vector<1x1x128xf32> to vector<128xf32>
    %32 = vector.shape_cast %31 : vector<128xf32> to vector<1x1x1x128xf32>
    %33 = vector.broadcast %32 : vector<1x1x1x128xf32> to vector<1x16x16x128xf32>
    %34 = arith.mulf %29, %33 : vector<1x16x16x128xf32>
    %35 = arith.addf %28, %34 : vector<1x16x16x128xf32>
    %36 = vector.extract_strided_slice %21 {offsets = [0, 2, 0, 0], sizes = [1, 16, 16, 128], strides = [1, 1, 1, 1]} : vector<1x20x16x128xf32> to vector<1x16x16x128xf32>
    %37 = vector.extract_strided_slice %19 {offsets = [2, 0, 0], sizes = [1, 1, 128], strides = [1, 1, 1]} : vector<5x5x128xf32> to vector<1x1x128xf32>
    %38 = vector.shape_cast %37 : vector<1x1x128xf32> to vector<128xf32>
    %39 = vector.shape_cast %38 : vector<128xf32> to vector<1x1x1x128xf32>
    %40 = vector.broadcast %39 : vector<1x1x1x128xf32> to vector<1x16x16x128xf32>
    %41 = arith.mulf %36, %40 : vector<1x16x16x128xf32>
    %42 = arith.addf %35, %41 : vector<1x16x16x128xf32>
    %43 = vector.extract_strided_slice %21 {offsets = [0, 3, 0, 0], sizes = [1, 16, 16, 128], strides = [1, 1, 1, 1]} : vector<1x20x16x128xf32> to vector<1x16x16x128xf32>
    %44 = vector.extract_strided_slice %19 {offsets = [3, 0, 0], sizes = [1, 1, 128], strides = [1, 1, 1]} : vector<5x5x128xf32> to vector<1x1x128xf32>
    %45 = vector.shape_cast %44 : vector<1x1x128xf32> to vector<128xf32>
    %46 = vector.shape_cast %45 : vector<128xf32> to vector<1x1x1x128xf32>
    %47 = vector.broadcast %46 : vector<1x1x1x128xf32> to vector<1x16x16x128xf32>
    %48 = arith.mulf %43, %47 : vector<1x16x16x128xf32>
    %49 = arith.addf %42, %48 : vector<1x16x16x128xf32>
    %50 = vector.extract_strided_slice %21 {offsets = [0, 4, 0, 0], sizes = [1, 16, 16, 128], strides = [1, 1, 1, 1]} : vector<1x20x16x128xf32> to vector<1x16x16x128xf32>
    %51 = vector.extract_strided_slice %19 {offsets = [4, 0, 0], sizes = [1, 1, 128], strides = [1, 1, 1]} : vector<5x5x128xf32> to vector<1x1x128xf32>
    %52 = vector.shape_cast %51 : vector<1x1x128xf32> to vector<128xf32>
    %53 = vector.shape_cast %52 : vector<128xf32> to vector<1x1x1x128xf32>
    %54 = vector.broadcast %53 : vector<1x1x1x128xf32> to vector<1x16x16x128xf32>
    %55 = arith.mulf %50, %54 : vector<1x16x16x128xf32>
    %56 = arith.addf %49, %55 : vector<1x16x16x128xf32>
    %57 = vector.extract_strided_slice %18 {offsets = [0, 0, 1, 0], sizes = [1, 20, 16, 128], strides = [1, 1, 1, 1]} : vector<1x20x20x128xf32> to vector<1x20x16x128xf32>
    %58 = vector.extract_strided_slice %57 {offsets = [0, 0, 0, 0], sizes = [1, 16, 16, 128], strides = [1, 1, 1, 1]} : vector<1x20x16x128xf32> to vector<1x16x16x128xf32>
    %59 = vector.extract_strided_slice %19 {offsets = [0, 1, 0], sizes = [1, 1, 128], strides = [1, 1, 1]} : vector<5x5x128xf32> to vector<1x1x128xf32>
    %60 = vector.shape_cast %59 : vector<1x1x128xf32> to vector<128xf32>
    %61 = vector.shape_cast %60 : vector<128xf32> to vector<1x1x1x128xf32>
    %62 = vector.broadcast %61 : vector<1x1x1x128xf32> to vector<1x16x16x128xf32>
    %63 = arith.mulf %58, %62 : vector<1x16x16x128xf32>
    %64 = arith.addf %56, %63 : vector<1x16x16x128xf32>
    %65 = vector.extract_strided_slice %57 {offsets = [0, 1, 0, 0], sizes = [1, 16, 16, 128], strides = [1, 1, 1, 1]} : vector<1x20x16x128xf32> to vector<1x16x16x128xf32>
    %66 = vector.extract_strided_slice %19 {offsets = [1, 1, 0], sizes = [1, 1, 128], strides = [1, 1, 1]} : vector<5x5x128xf32> to vector<1x1x128xf32>
    %67 = vector.shape_cast %66 : vector<1x1x128xf32> to vector<128xf32>
    %68 = vector.shape_cast %67 : vector<128xf32> to vector<1x1x1x128xf32>
    %69 = vector.broadcast %68 : vector<1x1x1x128xf32> to vector<1x16x16x128xf32>
    %70 = arith.mulf %65, %69 : vector<1x16x16x128xf32>
    %71 = arith.addf %64, %70 : vector<1x16x16x128xf32>
    %72 = vector.extract_strided_slice %57 {offsets = [0, 2, 0, 0], sizes = [1, 16, 16, 128], strides = [1, 1, 1, 1]} : vector<1x20x16x128xf32> to vector<1x16x16x128xf32>
    %73 = vector.extract_strided_slice %19 {offsets = [2, 1, 0], sizes = [1, 1, 128], strides = [1, 1, 1]} : vector<5x5x128xf32> to vector<1x1x128xf32>
    %74 = vector.shape_cast %73 : vector<1x1x128xf32> to vector<128xf32>
    %75 = vector.shape_cast %74 : vector<128xf32> to vector<1x1x1x128xf32>
    %76 = vector.broadcast %75 : vector<1x1x1x128xf32> to vector<1x16x16x128xf32>
    %77 = arith.mulf %72, %76 : vector<1x16x16x128xf32>
    %78 = arith.addf %71, %77 : vector<1x16x16x128xf32>
    %79 = vector.extract_strided_slice %57 {offsets = [0, 3, 0, 0], sizes = [1, 16, 16, 128], strides = [1, 1, 1, 1]} : vector<1x20x16x128xf32> to vector<1x16x16x128xf32>
    %80 = vector.extract_strided_slice %19 {offsets = [3, 1, 0], sizes = [1, 1, 128], strides = [1, 1, 1]} : vector<5x5x128xf32> to vector<1x1x128xf32>
    %81 = vector.shape_cast %80 : vector<1x1x128xf32> to vector<128xf32>
    %82 = vector.shape_cast %81 : vector<128xf32> to vector<1x1x1x128xf32>
    %83 = vector.broadcast %82 : vector<1x1x1x128xf32> to vector<1x16x16x128xf32>
    %84 = arith.mulf %79, %83 : vector<1x16x16x128xf32>
    %85 = arith.addf %78, %84 : vector<1x16x16x128xf32>
    %86 = vector.extract_strided_slice %57 {offsets = [0, 4, 0, 0], sizes = [1, 16, 16, 128], strides = [1, 1, 1, 1]} : vector<1x20x16x128xf32> to vector<1x16x16x128xf32>
    %87 = vector.extract_strided_slice %19 {offsets = [4, 1, 0], sizes = [1, 1, 128], strides = [1, 1, 1]} : vector<5x5x128xf32> to vector<1x1x128xf32>
    %88 = vector.shape_cast %87 : vector<1x1x128xf32> to vector<128xf32>
    %89 = vector.shape_cast %88 : vector<128xf32> to vector<1x1x1x128xf32>
    %90 = vector.broadcast %89 : vector<1x1x1x128xf32> to vector<1x16x16x128xf32>
    %91 = arith.mulf %86, %90 : vector<1x16x16x128xf32>
    %92 = arith.addf %85, %91 : vector<1x16x16x128xf32>
    %93 = vector.extract_strided_slice %18 {offsets = [0, 0, 2, 0], sizes = [1, 20, 16, 128], strides = [1, 1, 1, 1]} : vector<1x20x20x128xf32> to vector<1x20x16x128xf32>
    %94 = vector.extract_strided_slice %93 {offsets = [0, 0, 0, 0], sizes = [1, 16, 16, 128], strides = [1, 1, 1, 1]} : vector<1x20x16x128xf32> to vector<1x16x16x128xf32>
    %95 = vector.extract_strided_slice %19 {offsets = [0, 2, 0], sizes = [1, 1, 128], strides = [1, 1, 1]} : vector<5x5x128xf32> to vector<1x1x128xf32>
    %96 = vector.shape_cast %95 : vector<1x1x128xf32> to vector<128xf32>
    %97 = vector.shape_cast %96 : vector<128xf32> to vector<1x1x1x128xf32>
    %98 = vector.broadcast %97 : vector<1x1x1x128xf32> to vector<1x16x16x128xf32>
    %99 = arith.mulf %94, %98 : vector<1x16x16x128xf32>
    %100 = arith.addf %92, %99 : vector<1x16x16x128xf32>
    %101 = vector.extract_strided_slice %93 {offsets = [0, 1, 0, 0], sizes = [1, 16, 16, 128], strides = [1, 1, 1, 1]} : vector<1x20x16x128xf32> to vector<1x16x16x128xf32>
    %102 = vector.extract_strided_slice %19 {offsets = [1, 2, 0], sizes = [1, 1, 128], strides = [1, 1, 1]} : vector<5x5x128xf32> to vector<1x1x128xf32>
    %103 = vector.shape_cast %102 : vector<1x1x128xf32> to vector<128xf32>
    %104 = vector.shape_cast %103 : vector<128xf32> to vector<1x1x1x128xf32>
    %105 = vector.broadcast %104 : vector<1x1x1x128xf32> to vector<1x16x16x128xf32>
    %106 = arith.mulf %101, %105 : vector<1x16x16x128xf32>
    %107 = arith.addf %100, %106 : vector<1x16x16x128xf32>
    %108 = vector.extract_strided_slice %93 {offsets = [0, 2, 0, 0], sizes = [1, 16, 16, 128], strides = [1, 1, 1, 1]} : vector<1x20x16x128xf32> to vector<1x16x16x128xf32>
    %109 = vector.extract_strided_slice %19 {offsets = [2, 2, 0], sizes = [1, 1, 128], strides = [1, 1, 1]} : vector<5x5x128xf32> to vector<1x1x128xf32>
    %110 = vector.shape_cast %109 : vector<1x1x128xf32> to vector<128xf32>
    %111 = vector.shape_cast %110 : vector<128xf32> to vector<1x1x1x128xf32>
    %112 = vector.broadcast %111 : vector<1x1x1x128xf32> to vector<1x16x16x128xf32>
    %113 = arith.mulf %108, %112 : vector<1x16x16x128xf32>
    %114 = arith.addf %107, %113 : vector<1x16x16x128xf32>
    %115 = vector.extract_strided_slice %93 {offsets = [0, 3, 0, 0], sizes = [1, 16, 16, 128], strides = [1, 1, 1, 1]} : vector<1x20x16x128xf32> to vector<1x16x16x128xf32>
    %116 = vector.extract_strided_slice %19 {offsets = [3, 2, 0], sizes = [1, 1, 128], strides = [1, 1, 1]} : vector<5x5x128xf32> to vector<1x1x128xf32>
    %117 = vector.shape_cast %116 : vector<1x1x128xf32> to vector<128xf32>
    %118 = vector.shape_cast %117 : vector<128xf32> to vector<1x1x1x128xf32>
    %119 = vector.broadcast %118 : vector<1x1x1x128xf32> to vector<1x16x16x128xf32>
    %120 = arith.mulf %115, %119 : vector<1x16x16x128xf32>
    %121 = arith.addf %114, %120 : vector<1x16x16x128xf32>
    %122 = vector.extract_strided_slice %93 {offsets = [0, 4, 0, 0], sizes = [1, 16, 16, 128], strides = [1, 1, 1, 1]} : vector<1x20x16x128xf32> to vector<1x16x16x128xf32>
    %123 = vector.extract_strided_slice %19 {offsets = [4, 2, 0], sizes = [1, 1, 128], strides = [1, 1, 1]} : vector<5x5x128xf32> to vector<1x1x128xf32>
    %124 = vector.shape_cast %123 : vector<1x1x128xf32> to vector<128xf32>
    %125 = vector.shape_cast %124 : vector<128xf32> to vector<1x1x1x128xf32>
    %126 = vector.broadcast %125 : vector<1x1x1x128xf32> to vector<1x16x16x128xf32>
    %127 = arith.mulf %122, %126 : vector<1x16x16x128xf32>
    %128 = arith.addf %121, %127 : vector<1x16x16x128xf32>
    %129 = vector.extract_strided_slice %18 {offsets = [0, 0, 3, 0], sizes = [1, 20, 16, 128], strides = [1, 1, 1, 1]} : vector<1x20x20x128xf32> to vector<1x20x16x128xf32>
    %130 = vector.extract_strided_slice %129 {offsets = [0, 0, 0, 0], sizes = [1, 16, 16, 128], strides = [1, 1, 1, 1]} : vector<1x20x16x128xf32> to vector<1x16x16x128xf32>
    %131 = vector.extract_strided_slice %19 {offsets = [0, 3, 0], sizes = [1, 1, 128], strides = [1, 1, 1]} : vector<5x5x128xf32> to vector<1x1x128xf32>
    %132 = vector.shape_cast %131 : vector<1x1x128xf32> to vector<128xf32>
    %133 = vector.shape_cast %132 : vector<128xf32> to vector<1x1x1x128xf32>
    %134 = vector.broadcast %133 : vector<1x1x1x128xf32> to vector<1x16x16x128xf32>
    %135 = arith.mulf %130, %134 : vector<1x16x16x128xf32>
    %136 = arith.addf %128, %135 : vector<1x16x16x128xf32>
    %137 = vector.extract_strided_slice %129 {offsets = [0, 1, 0, 0], sizes = [1, 16, 16, 128], strides = [1, 1, 1, 1]} : vector<1x20x16x128xf32> to vector<1x16x16x128xf32>
    %138 = vector.extract_strided_slice %19 {offsets = [1, 3, 0], sizes = [1, 1, 128], strides = [1, 1, 1]} : vector<5x5x128xf32> to vector<1x1x128xf32>
    %139 = vector.shape_cast %138 : vector<1x1x128xf32> to vector<128xf32>
    %140 = vector.shape_cast %139 : vector<128xf32> to vector<1x1x1x128xf32>
    %141 = vector.broadcast %140 : vector<1x1x1x128xf32> to vector<1x16x16x128xf32>
    %142 = arith.mulf %137, %141 : vector<1x16x16x128xf32>
    %143 = arith.addf %136, %142 : vector<1x16x16x128xf32>
    %144 = vector.extract_strided_slice %129 {offsets = [0, 2, 0, 0], sizes = [1, 16, 16, 128], strides = [1, 1, 1, 1]} : vector<1x20x16x128xf32> to vector<1x16x16x128xf32>
    %145 = vector.extract_strided_slice %19 {offsets = [2, 3, 0], sizes = [1, 1, 128], strides = [1, 1, 1]} : vector<5x5x128xf32> to vector<1x1x128xf32>
    %146 = vector.shape_cast %145 : vector<1x1x128xf32> to vector<128xf32>
    %147 = vector.shape_cast %146 : vector<128xf32> to vector<1x1x1x128xf32>
    %148 = vector.broadcast %147 : vector<1x1x1x128xf32> to vector<1x16x16x128xf32>
    %149 = arith.mulf %144, %148 : vector<1x16x16x128xf32>
    %150 = arith.addf %143, %149 : vector<1x16x16x128xf32>
    %151 = vector.extract_strided_slice %129 {offsets = [0, 3, 0, 0], sizes = [1, 16, 16, 128], strides = [1, 1, 1, 1]} : vector<1x20x16x128xf32> to vector<1x16x16x128xf32>
    %152 = vector.extract_strided_slice %19 {offsets = [3, 3, 0], sizes = [1, 1, 128], strides = [1, 1, 1]} : vector<5x5x128xf32> to vector<1x1x128xf32>
    %153 = vector.shape_cast %152 : vector<1x1x128xf32> to vector<128xf32>
    %154 = vector.shape_cast %153 : vector<128xf32> to vector<1x1x1x128xf32>
    %155 = vector.broadcast %154 : vector<1x1x1x128xf32> to vector<1x16x16x128xf32>
    %156 = arith.mulf %151, %155 : vector<1x16x16x128xf32>
    %157 = arith.addf %150, %156 : vector<1x16x16x128xf32>
    %158 = vector.extract_strided_slice %129 {offsets = [0, 4, 0, 0], sizes = [1, 16, 16, 128], strides = [1, 1, 1, 1]} : vector<1x20x16x128xf32> to vector<1x16x16x128xf32>
    %159 = vector.extract_strided_slice %19 {offsets = [4, 3, 0], sizes = [1, 1, 128], strides = [1, 1, 1]} : vector<5x5x128xf32> to vector<1x1x128xf32>
    %160 = vector.shape_cast %159 : vector<1x1x128xf32> to vector<128xf32>
    %161 = vector.shape_cast %160 : vector<128xf32> to vector<1x1x1x128xf32>
    %162 = vector.broadcast %161 : vector<1x1x1x128xf32> to vector<1x16x16x128xf32>
    %163 = arith.mulf %158, %162 : vector<1x16x16x128xf32>
    %164 = arith.addf %157, %163 : vector<1x16x16x128xf32>
    %165 = vector.extract_strided_slice %18 {offsets = [0, 0, 4, 0], sizes = [1, 20, 16, 128], strides = [1, 1, 1, 1]} : vector<1x20x20x128xf32> to vector<1x20x16x128xf32>
    %166 = vector.extract_strided_slice %165 {offsets = [0, 0, 0, 0], sizes = [1, 16, 16, 128], strides = [1, 1, 1, 1]} : vector<1x20x16x128xf32> to vector<1x16x16x128xf32>
    %167 = vector.extract_strided_slice %19 {offsets = [0, 4, 0], sizes = [1, 1, 128], strides = [1, 1, 1]} : vector<5x5x128xf32> to vector<1x1x128xf32>
    %168 = vector.shape_cast %167 : vector<1x1x128xf32> to vector<128xf32>
    %169 = vector.shape_cast %168 : vector<128xf32> to vector<1x1x1x128xf32>
    %170 = vector.broadcast %169 : vector<1x1x1x128xf32> to vector<1x16x16x128xf32>
    %171 = arith.mulf %166, %170 : vector<1x16x16x128xf32>
    %172 = arith.addf %164, %171 : vector<1x16x16x128xf32>
    %173 = vector.extract_strided_slice %165 {offsets = [0, 1, 0, 0], sizes = [1, 16, 16, 128], strides = [1, 1, 1, 1]} : vector<1x20x16x128xf32> to vector<1x16x16x128xf32>
    %174 = vector.extract_strided_slice %19 {offsets = [1, 4, 0], sizes = [1, 1, 128], strides = [1, 1, 1]} : vector<5x5x128xf32> to vector<1x1x128xf32>
    %175 = vector.shape_cast %174 : vector<1x1x128xf32> to vector<128xf32>
    %176 = vector.shape_cast %175 : vector<128xf32> to vector<1x1x1x128xf32>
    %177 = vector.broadcast %176 : vector<1x1x1x128xf32> to vector<1x16x16x128xf32>
    %178 = arith.mulf %173, %177 : vector<1x16x16x128xf32>
    %179 = arith.addf %172, %178 : vector<1x16x16x128xf32>
    %180 = vector.extract_strided_slice %165 {offsets = [0, 2, 0, 0], sizes = [1, 16, 16, 128], strides = [1, 1, 1, 1]} : vector<1x20x16x128xf32> to vector<1x16x16x128xf32>
    %181 = vector.extract_strided_slice %19 {offsets = [2, 4, 0], sizes = [1, 1, 128], strides = [1, 1, 1]} : vector<5x5x128xf32> to vector<1x1x128xf32>
    %182 = vector.shape_cast %181 : vector<1x1x128xf32> to vector<128xf32>
    %183 = vector.shape_cast %182 : vector<128xf32> to vector<1x1x1x128xf32>
    %184 = vector.broadcast %183 : vector<1x1x1x128xf32> to vector<1x16x16x128xf32>
    %185 = arith.mulf %180, %184 : vector<1x16x16x128xf32>
    %186 = arith.addf %179, %185 : vector<1x16x16x128xf32>
    %187 = vector.extract_strided_slice %165 {offsets = [0, 3, 0, 0], sizes = [1, 16, 16, 128], strides = [1, 1, 1, 1]} : vector<1x20x16x128xf32> to vector<1x16x16x128xf32>
    %188 = vector.extract_strided_slice %19 {offsets = [3, 4, 0], sizes = [1, 1, 128], strides = [1, 1, 1]} : vector<5x5x128xf32> to vector<1x1x128xf32>
    %189 = vector.shape_cast %188 : vector<1x1x128xf32> to vector<128xf32>
    %190 = vector.shape_cast %189 : vector<128xf32> to vector<1x1x1x128xf32>
    %191 = vector.broadcast %190 : vector<1x1x1x128xf32> to vector<1x16x16x128xf32>
    %192 = arith.mulf %187, %191 : vector<1x16x16x128xf32>
    %193 = arith.addf %186, %192 : vector<1x16x16x128xf32>
    %194 = vector.extract_strided_slice %165 {offsets = [0, 4, 0, 0], sizes = [1, 16, 16, 128], strides = [1, 1, 1, 1]} : vector<1x20x16x128xf32> to vector<1x16x16x128xf32>
    %195 = vector.extract_strided_slice %19 {offsets = [4, 4, 0], sizes = [1, 1, 128], strides = [1, 1, 1]} : vector<5x5x128xf32> to vector<1x1x128xf32>
    %196 = vector.shape_cast %195 : vector<1x1x128xf32> to vector<128xf32>
    %197 = vector.shape_cast %196 : vector<128xf32> to vector<1x1x1x128xf32>
    %198 = vector.broadcast %197 : vector<1x1x1x128xf32> to vector<1x16x16x128xf32>
    %199 = arith.mulf %194, %198 : vector<1x16x16x128xf32>
    %200 = arith.addf %193, %199 : vector<1x16x16x128xf32>
    %c0_16 = arith.constant 0 : index
    %c0_17 = arith.constant 0 : index
    %201 = vector.load %arg7[%c0_16, %c0_17] : memref<1x128xf32, #tpu.memory_space<vmem>>, vector<1x128xf32>
    %202 = vector.shape_cast %201 : vector<1x128xf32> to vector<1x1x1x128xf32>
    %203 = vector.broadcast %202 : vector<1x1x1x128xf32> to vector<1x16x16x128xf32>
    %204 = arith.addf %200, %203 : vector<1x16x16x128xf32>
    %205 = arith.negf %204 : vector<1x16x16x128xf32>
    %206 = math.exp %205 : vector<1x16x16x128xf32>
    %cst_18 = arith.constant 1.000000e+00 : f32
    %207 = vector.broadcast %cst_18 : f32 to vector<1x16x16x128xf32>
    %208 = arith.addf %207, %206 : vector<1x16x16x128xf32>
    %209 = arith.divf %207, %208 : vector<1x16x16x128xf32>
    %210 = arith.mulf %204, %209 : vector<1x16x16x128xf32>
    %211 = vector.shape_cast %1 : vector<1x16x16x128xf32> to vector<1x1x16x16x128xf32>
    %212 = vector.shape_cast %210 : vector<1x16x16x128xf32> to vector<1x1x16x16x128xf32>
    %213 = tpu.concatenate %211, %212 in 1 : vector<1x1x16x16x128xf32>, vector<1x1x16x16x128xf32> -> vector<1x2x16x16x128xf32>
    %c0_19 = arith.constant 0 : index
    %c0_20 = arith.constant 0 : index
    %c0_21 = arith.constant 0 : index
    %c0_22 = arith.constant 0 : index
    %c0_23 = arith.constant 0 : index
    %214 = vector.load %arg8[%c0_19, %c0_20, %c0_21, %c0_22, %c0_23] : memref<1x2x16x16x128xf32, #tpu.memory_space<vmem>>, vector<1x2x16x16x128xf32>
    tpu.vector_store %arg8[%c0_19, %c0_20, %c0_21, %c0_22, %c0_23], %213 {strides = array<i32>} : memref<1x2x16x16x128xf32, #tpu.memory_space<vmem>>, vector<1x2x16x16x128xf32>,
    return
  }
  func.func @transform_0(%arg0: i32, %arg1: i32, %arg2: i32) -> (i32, i32, i32, i32) {
    %c0_i32 = arith.constant 0 : i32
    %c0_i32_0 = arith.constant 0 : i32
    return %arg0, %arg1, %c0_i32, %arg2 : i32, i32, i32, i32
  }
  func.func @transform_1(%arg0: i32, %arg1: i32, %arg2: i32) -> (i32, i32, i32, i32) {
    %c8_i32 = arith.constant 8 : i32
    %0 = arith.muli %arg1, %c8_i32 : i32
    %c1_i32 = arith.constant 1 : i32
    %1 = arith.subi %0, %c1_i32 : i32
    %c0_i32 = arith.constant 0 : i32
    %2 = arith.maxsi %1, %c0_i32 : i32
    %c0_i32_0 = arith.constant 0 : i32
    %c0_i32_1 = arith.constant 0 : i32
    return %arg0, %2, %c0_i32_0, %arg2 : i32, i32, i32, i32
  }
  func.func @transform_2(%arg0: i32, %arg1: i32, %arg2: i32) -> (i32, i32, i32, i32) {
    %c1_i32 = arith.constant 1 : i32
    %0 = arith.addi %arg1, %c1_i32 : i32
    %c8_i32 = arith.constant 8 : i32
    %1 = arith.muli %0, %c8_i32 : i32
    %c7_i32 = arith.constant 7 : i32
    %2 = arith.minsi %1, %c7_i32 : i32
    %c0_i32 = arith.constant 0 : i32
    %c0_i32_0 = arith.constant 0 : i32
    return %arg0, %2, %c0_i32, %arg2 : i32, i32, i32, i32
  }
  func.func @transform_3(%arg0: i32, %arg1: i32, %arg2: i32) -> (i32, i32, i32) {
    %c0_i32 = arith.constant 0 : i32
    %c0_i32_0 = arith.constant 0 : i32
    %c0_i32_1 = arith.constant 0 : i32
    return %c0_i32, %c0_i32_0, %arg2 : i32, i32, i32
  }
  func.func @transform_4(%arg0: i32, %arg1: i32, %arg2: i32) -> (i32, i32) {
    %c0_i32 = arith.constant 0 : i32
    %c0_i32_0 = arith.constant 0 : i32
    return %c0_i32, %arg2 : i32, i32
  }
  func.func @transform_5(%arg0: i32, %arg1: i32, %arg2: i32) -> (i32, i32, i32, i32, i32) {
    %c0_i32 = arith.constant 0 : i32
    %c0_i32_0 = arith.constant 0 : i32
    %c0_i32_1 = arith.constant 0 : i32
    return %arg0, %c0_i32, %arg1, %c0_i32_0, %arg2 : i32, i32, i32, i32, i32
  }
}

</mosaic_0001>

<bundles_post_ra>
// kernel: ghostconv_forward.2
= control target key start
LH: loop header
LB: loop body
LE: loop exit
PB: predicated region body
PF: predicated region fallthrough
CT: control target
= control target key end

     0   :  { %vm216_vm0 = vcmask 1041408   ;;  %vm119_vm1 = vcmask 31744   ;;  %s2742_s1 = inlined_call_operand.vmem [shape: bf16[4,128], index: 1, kind: input, shape index: {}]   ;;  %s2743_s0 = inlined_call_operand.vmem [shape: f32[512,4], index: 0, kind: input, shape index: {}]   ;;  %s2744_s2 = inlined_call_operand.vmem [shape: f32[1,128], index: 2, kind: input, shape index: {}]   ;;  %s2745_s3 = inlined_call_operand.vmem [shape: bf16[512,128], index: 3, kind: output, shape index: {}]  }
   0x1   :  { %v111_v0 = vld [vmem:[%s2742_s1] sm:$0x3]  ;;  %v16_v2 = vld [vmem:[%s2743_s0 + $0x8] sm:$0xff]  ;;  %v17_v7 = vld [vmem:[%s2743_s0 + $0x10] sm:$0xff] }
   0x2   :  { %v15_v1 = vld [vmem:[%s2743_s0] sm:$0xff]  ;;  %1798 = vmatprep.subr.msk.bf16.mxu0 %vm216_vm0, %v111_v0  ;;  %1799 = vmatprep.subr.msk.bf16.mxu1 %vm216_vm0, %v111_v0  ;;  %v218_v3 = vsel %vm216_vm0, %v111_v0, 0  ;;  %v48_v6 = vld [vmem:[%s2743_s0 + $0x108] sm:$0xff]  ;;  %v18_v9 = vld [vmem:[%s2743_s0 + $0x18] sm:$0xff] }
   0x3   :  { %v79_v4 = vpack.c.bf16 %v16_v2, %v15_v1  ;;  %v47_v5 = vld [vmem:[%s2743_s0 + $0x100] sm:$0xff]  ;;  %1731 = vmatpush3.bf16.msra.mxu0 %v218_v3  ;;  %1797 = vmatpush3.bf16.msra.mxu1 %v218_v3  ;;  %v49_v10 = vld [vmem:[%s2743_s0 + $0x110] sm:$0xff]  ;;  %v50_v11 = vld [vmem:[%s2743_s0 + $0x118] sm:$0xff]  ;;  %v80_v12 = vpack.c.bf16 %v18_v9, %v17_v7 }
   0x4   :  { %v95_v8 = vpack.c.bf16 %v48_v6, %v47_v5  ;;  %v96_v13 = vpack.c.bf16 %v50_v11, %v49_v10  ;;  %v19_v14 = vld [vmem:[%s2743_s0 + $0x20] sm:$0xff]  ;;  %v20_v15 = vld [vmem:[%s2743_s0 + $0x28] sm:$0xff]  ;;  %v21_v20 = vld [vmem:[%s2743_s0 + $0x30] sm:$0xff] }
   0x5   :  { %1732 = vmatprep.mubr.msk.bf16.mxu0 %vm119_vm1, %v79_v4  ;;  %v51_v16 = vld [vmem:[%s2743_s0 + $0x120] sm:$0xff]  ;;  %v81_v17 = vpack.c.bf16 %v20_v15, %v19_v14  ;;  %v52_v18 = vld [vmem:[%s2743_s0 + $0x128] sm:$0xff]  ;;  %v22_v21 = vld [vmem:[%s2743_s0 + $0x38] sm:$0xff] }
   0x6   :  { %1764 = vmatprep.mubr.msk.bf16.mxu1 %vm119_vm1, %v95_v8  ;;  %1733 = vmatmul.mubr.msk.bf16.vlgmr.msra.gmra.mxu0 %vm119_vm1, %v80_v12  ;;  %v97_v19 = vpack.c.bf16 %v52_v18, %v51_v16  ;;  %v53_v22 = vld [vmem:[%s2743_s0 + $0x130] sm:$0xff]  ;;  %v54_v23 = vld [vmem:[%s2743_s0 + $0x138] sm:$0xff]  ;;  %v23_v24 = vld [vmem:[%s2743_s0 + $0x40] sm:$0xff]  ;;  %v82_v28 = vpack.c.bf16 %v22_v21, %v21_v20 }
   0x7   :  { %1765 = vmatmul.mubr.msk.bf16.vlgmr.msra.gmra.mxu1 %vm119_vm1, %v96_v13  ;;  %1736 = vmatprep.mubr.msk.bf16.mxu0 %vm119_vm1, %v81_v17  ;;  %v24_v25 = vld [vmem:[%s2743_s0 + $0x48] sm:$0xff]  ;;  %v55_v26 = vld [vmem:[%s2743_s0 + $0x140] sm:$0xff]  ;;  %v98_v29 = vpack.c.bf16 %v54_v23, %v53_v22  ;;  %v25_v32 = vld [vmem:[%s2743_s0 + $0x50] sm:$0xff] }
   0x8   :  { %1768 = vmatprep.mubr.msk.bf16.mxu1 %vm119_vm1, %v97_v19  ;;  %v56_v27 = vld [vmem:[%s2743_s0 + $0x148] sm:$0xff]  ;;  %v83_v30 = vpack.c.bf16 %v24_v25, %v23_v24  ;;  %v26_v33 = vld [vmem:[%s2743_s0 + $0x58] sm:$0xff]  ;;  %v57_v34 = vld [vmem:[%s2743_s0 + $0x150] sm:$0xff] }
   0x9   :  { %v99_v31 = vpack.c.bf16 %v56_v27, %v55_v26  ;;  %v58_v35 = vld [vmem:[%s2743_s0 + $0x158] sm:$0xff]  ;;  %v27_v36 = vld [vmem:[%s2743_s0 + $0x60] sm:$0xff]  ;;  %v28_v37 = vld [vmem:[%s2743_s0 + $0x68] sm:$0xff]  ;;  %v84_v40 = vpack.c.bf16 %v26_v33, %v25_v32 }
   0xa   :  { %v59_v38 = vld [vmem:[%s2743_s0 + $0x160] sm:$0xff]  ;;  %v60_v39 = vld [vmem:[%s2743_s0 + $0x168] sm:$0xff]  ;;  %v100_v41 = vpack.c.bf16 %v58_v35, %v57_v34  ;;  %v85_v42 = vpack.c.bf16 %v28_v37, %v27_v36  ;;  %v29_v44 = vld [vmem:[%s2743_s0 + $0x70] sm:$0xff] }
   0xb   :  { %v101_v43 = vpack.c.bf16 %v60_v39, %v59_v38  ;;  %v30_v45 = vld [vmem:[%s2743_s0 + $0x78] sm:$0xff]  ;;  %v61_v46 = vld [vmem:[%s2743_s0 + $0x170] sm:$0xff]  ;;  %v31_v48 = vld [vmem:[%s2743_s0 + $0x80] sm:$0xff] }
   0xc   :  { %v62_v47 = vld [vmem:[%s2743_s0 + $0x178] sm:$0xff]  ;;  %v32_v49 = vld [vmem:[%s2743_s0 + $0x88] sm:$0xff]  ;;  %v63_v50 = vld [vmem:[%s2743_s0 + $0x180] sm:$0xff]  ;;  %v86_v52 = vpack.c.bf16 %v30_v45, %v29_v44 }
   0xd   :  { %v64_v51 = vld [vmem:[%s2743_s0 + $0x188] sm:$0xff]  ;;  %v102_v53 = vpack.c.bf16 %v62_v47, %v61_v46  ;;  %v87_v54 = vpack.c.bf16 %v32_v49, %v31_v48  ;;  %v33_v56 = vld [vmem:[%s2743_s0 + $0x90] sm:$0xff]  ;;  %v34_v57 = vld [vmem:[%s2743_s0 + $0x98] sm:$0xff] }
   0xe   :  { %1737 = vmatmul.mubr.msk.bf16.gmra.mxu0 %vm119_vm1, %v82_v28  ;;  %v103_v55 = vpack.c.bf16 %v64_v51, %v63_v50  ;;  %v65_v58 = vld [vmem:[%s2743_s0 + $0x190] sm:$0xff]  ;;  %v66_v59 = vld [vmem:[%s2743_s0 + $0x198] sm:$0xff]  ;;  %v35_v60 = vld [vmem:[%s2743_s0 + $0xa0] sm:$0xff]  ;;  %v88_v0 = vpack.c.bf16 %v34_v57, %v33_v56 }
   0xf   :  { %1769 = vmatmul.mubr.msk.bf16.gmra.mxu1 %vm119_vm1, %v98_v29  ;;  %1740 = vmatprep.mubr.msk.bf16.mxu0 %vm119_vm1, %v83_v30  ;;  %v36_v61 = vld [vmem:[%s2743_s0 + $0xa8] sm:$0xff]  ;;  %v67_v62 = vld [vmem:[%s2743_s0 + $0x1a0] sm:$0xff]  ;;  %v104_v1 = vpack.c.bf16 %v66_v59, %v65_v58  ;;  %v37_v4 = vld [vmem:[%s2743_s0 + $0xb0] sm:$0xff] }
  0x10   :  { %1772 = vmatprep.mubr.msk.bf16.mxu1 %vm119_vm1, %v99_v31  ;;  %v68_v63 = vld [vmem:[%s2743_s0 + $0x1a8] sm:$0xff]  ;;  %v89_v2 = vpack.c.bf16 %v36_v61, %v35_v60  ;;  %v38_v5 = vld [vmem:[%s2743_s0 + $0xb8] sm:$0xff]  ;;  %v69_v6 = vld [vmem:[%s2743_s0 + $0x1b0] sm:$0xff] }
  0x11   :  { %v105_v3 = vpack.c.bf16 %v68_v63, %v67_v62  ;;  %v70_v7 = vld [vmem:[%s2743_s0 + $0x1b8] sm:$0xff]  ;;  %v39_v8 = vld [vmem:[%s2743_s0 + $0xc0] sm:$0xff]  ;;  %v40_v9 = vld [vmem:[%s2743_s0 + $0xc8] sm:$0xff]  ;;  %v90_v12 = vpack.c.bf16 %v38_v5, %v37_v4 }
  0x12   :  { %v71_v10 = vld [vmem:[%s2743_s0 + $0x1c0] sm:$0xff]  ;;  %v72_v11 = vld [vmem:[%s2743_s0 + $0x1c8] sm:$0xff]  ;;  %v106_v13 = vpack.c.bf16 %v70_v7, %v69_v6  ;;  %v91_v14 = vpack.c.bf16 %v40_v9, %v39_v8  ;;  %v41_v16 = vld [vmem:[%s2743_s0 + $0xd0] sm:$0xff] }
  0x13   :  { %v107_v15 = vpack.c.bf16 %v72_v11, %v71_v10  ;;  %v42_v17 = vld [vmem:[%s2743_s0 + $0xd8] sm:$0xff]  ;;  %v73_v18 = vld [vmem:[%s2743_s0 + $0x1d0] sm:$0xff]  ;;  %v43_v20 = vld [vmem:[%s2743_s0 + $0xe0] sm:$0xff] }
  0x14   :  { %v74_v19 = vld [vmem:[%s2743_s0 + $0x1d8] sm:$0xff]  ;;  %v44_v21 = vld [vmem:[%s2743_s0 + $0xe8] sm:$0xff]  ;;  %v75_v22 = vld [vmem:[%s2743_s0 + $0x1e0] sm:$0xff]  ;;  %v92_v24 = vpack.c.bf16 %v42_v17, %v41_v16 }
  0x15   :  { %v76_v23 = vld [vmem:[%s2743_s0 + $0x1e8] sm:$0xff]  ;;  %v108_v25 = vpack.c.bf16 %v74_v19, %v73_v18  ;;  %v93_v26 = vpack.c.bf16 %v44_v21, %v43_v20  ;;  %v45_v28 = vld [vmem:[%s2743_s0 + $0xf0] sm:$0xff]  ;;  %v46_v29 = vld [vmem:[%s2743_s0 + $0xf8] sm:$0xff] }
  0x16   :  { %1741 = vmatmul.mubr.msk.bf16.gmra.mxu0 %vm119_vm1, %v84_v40  ;;  %v109_v27 = vpack.c.bf16 %v76_v23, %v75_v22  ;;  %v77_v30 = vld [vmem:[%s2743_s0 + $0x1f0] sm:$0xff]  ;;  %v78_v31 = vld [vmem:[%s2743_s0 + $0x1f8] sm:$0xff]  ;;  %v94_v32 = vpack.c.bf16 %v46_v29, %v45_v28  ;;  %v2306_v34 = vld [vmem:[%s2744_s2] ss:$0 sm:$0xff] }
  0x17   :  { %1773 = vmatmul.mubr.msk.bf16.gmra.mxu1 %vm119_vm1, %v100_v41  ;;  %1744 = vmatprep.mubr.msk.bf16.mxu0 %vm119_vm1, %v85_v42  ;;  %v110_v33 = vpack.c.bf16 %v78_v31, %v77_v30 }
  0x18   :  { %1776 = vmatprep.mubr.msk.bf16.mxu1 %vm119_vm1, %v101_v43 }
  0x1e   :  { %1745 = vmatmul.mubr.msk.bf16.gmra.mxu0 %vm119_vm1, %v86_v52 }
  0x1f   :  { %1777 = vmatmul.mubr.msk.bf16.gmra.mxu1 %vm119_vm1, %v102_v53  ;;  %1748 = vmatprep.mubr.msk.bf16.mxu0 %vm119_vm1, %v87_v54 }
  0x20   :  { %1780 = vmatprep.mubr.msk.bf16.mxu1 %vm119_vm1, %v103_v55 }
  0x26   :  { %1749 = vmatmul.mubr.msk.bf16.gmra.mxu0 %vm119_vm1, %v88_v0 }
  0x27   :  { %1781 = vmatmul.mubr.msk.bf16.gmra.mxu1 %vm119_vm1, %v104_v1  ;;  %1752 = vmatprep.mubr.msk.bf16.mxu0 %vm119_vm1, %v89_v2 }
  0x28   :  { %1784 = vmatprep.mubr.msk.bf16.mxu1 %vm119_vm1, %v105_v3 }
  0x2e   :  { %1753 = vmatmul.mubr.msk.bf16.gmra.mxu0 %vm119_vm1, %v90_v12 }
  0x2f   :  { %1785 = vmatmul.mubr.msk.bf16.gmra.mxu1 %vm119_vm1, %v106_v13  ;;  %1756 = vmatprep.mubr.msk.bf16.mxu0 %vm119_vm1, %v91_v14 }
  0x30   :  { %1788 = vmatprep.mubr.msk.bf16.mxu1 %vm119_vm1, %v107_v15 }
  0x36   :  { %1757 = vmatmul.mubr.msk.bf16.gmra.mxu0 %vm119_vm1, %v92_v24 }
  0x37   :  { %1789 = vmatmul.mubr.msk.bf16.gmra.mxu1 %vm119_vm1, %v108_v25  ;;  %1760 = vmatprep.mubr.msk.bf16.mxu0 %vm119_vm1, %v93_v26 }
  0x38   :  { %1792 = vmatprep.mubr.msk.bf16.mxu1 %vm119_vm1, %v109_v27 }
  0x3e   :  { %1761 = vmatmul.mubr.msk.bf16.gmra.mxu0 %vm119_vm1, %v94_v32 }
  0x3f   :  { %1793 = vmatmul.mubr.msk.bf16.gmra.mxu1 %vm119_vm1, %v110_v33 }
  0xc6   :  { %v1734_v35 = vpop.f32.mrf.mxu0 }
  0xc7   :  { %v1766_v36 = vpop.f32.mrf.mxu1  ;;  %v2309_v37 = vadd.f32 %v1734_v35, %v2306_v34 }
  0xc8   :  { %v2312_v38 = vadd.f32 %v1766_v36, %v2306_v34  ;;  %v254_v39 = vpop.f32.mrf.mxu0 }
  0xc9   :  { %v382_v40 = vpop.f32.mrf.mxu1  ;;  %v1316_v41 = vmul.f32 -1.442695, %v2309_v37  ;;  %v2317_v43 = vadd.f32 %v2306_v34, %v254_v39 }
  0xca   :  { %v1348_v42 = vmul.f32 -1.442695, %v2312_v38  ;;  %v2320_v44 = vadd.f32 %v2306_v34, %v382_v40  ;;  %v1735_v45 = vpop.f32.mrf.mxu0 }
  0xcb   :  { %v1767_v46 = vpop.f32.mrf.mxu1  ;;  %1800 = vpow2.f32 %v1316_v41  ;;  %v1314_v47 = vmul.f32 -1.442695, %v2317_v43  ;;  %v2325_v49 = vadd.f32 %v1735_v45, %v2306_v34 }
  0xcc   :  { %v1346_v48 = vmul.f32 -1.442695, %v2320_v44  ;;  %1802 = vpow2.f32 %v1348_v42  ;;  %v2328_v50 = vadd.f32 %v1767_v46, %v2306_v34  ;;  %v257_v51 = vpop.f32.mrf.mxu0 }
  0xcd   :  { %v385_v52 = vpop.f32.mrf.mxu1  ;;  %1804 = vpow2.f32 %v1314_v47  ;;  %v1317_v53 = vmul.f32 -1.442695, %v2325_v49  ;;  %v2332_v54 = vadd.f32 %v2306_v34, %v257_v51 }
  0xce   :  { %v2335_v55 = vadd.f32 %v2306_v34, %v385_v52  ;;  %1806 = vpow2.f32 %v1346_v48  ;;  %v1349_v56 = vmul.f32 -1.442695, %v2328_v50  ;;  %v1738_v57 = vpop.f32.mrf.mxu0 }
  0xcf   :  { %v1770_v58 = vpop.f32.mrf.mxu1  ;;  %1808 = vpow2.f32 %v1317_v53  ;;  %v1315_v59 = vmul.f32 -1.442695, %v2332_v54  ;;  %v2341_v61 = vadd.f32 %v1738_v57, %v2306_v34 }
  0xd0   :  { %v1347_v60 = vmul.f32 -1.442695, %v2335_v55  ;;  %1810 = vpow2.f32 %v1349_v56  ;;  %v2344_v62 = vadd.f32 %v1770_v58, %v2306_v34  ;;  %v270_v63 = vpop.f32.mrf.mxu0 }
  0xd1   :  { %v398_v0 = vpop.f32.mrf.mxu1  ;;  %1812 = vpow2.f32 %v1315_v59  ;;  %v1320_v1 = vmul.f32 -1.442695, %v2341_v61  ;;  %v2348_v2 = vadd.f32 %v2306_v34, %v270_v63 }
  0xd2   :  { %v2351_v3 = vadd.f32 %v2306_v34, %v398_v0  ;;  %1814 = vpow2.f32 %v1347_v60  ;;  %v1352_v4 = vmul.f32 -1.442695, %v2344_v62  ;;  %v1739_v5 = vpop.f32.mrf.mxu0 }
  0xd3   :  { %v1771_v6 = vpop.f32.mrf.mxu1  ;;  %1816 = vpow2.f32 %v1320_v1  ;;  %v1318_v7 = vmul.f32 -1.442695, %v2348_v2  ;;  %v2357_v9 = vadd.f32 %v1739_v5, %v2306_v34 }
  0xd4   :  { %v1350_v8 = vmul.f32 -1.442695, %v2351_v3  ;;  %1818 = vpow2.f32 %v1352_v4  ;;  %v2360_v10 = vadd.f32 %v1771_v6, %v2306_v34  ;;  %v273_v11 = vpop.f32.mrf.mxu0 }
  0xd5   :  { %v401_v12 = vpop.f32.mrf.mxu1  ;;  %1820 = vpow2.f32 %v1318_v7  ;;  %v1321_v13 = vmul.f32 -1.442695, %v2357_v9  ;;  %v2364_v14 = vadd.f32 %v2306_v34, %v273_v11 }
  0xd6   :  { %v2367_v15 = vadd.f32 %v2306_v34, %v401_v12  ;;  %1822 = vpow2.f32 %v1350_v8  ;;  %v1353_v16 = vmul.f32 -1.442695, %v2360_v10  ;;  %v1742_v17 = vpop.f32.mrf.mxu0 }
  0xd7   :  { %v1774_v18 = vpop.f32.mrf.mxu1  ;;  %1824 = vpow2.f32 %v1321_v13  ;;  %v1319_v19 = vmul.f32 -1.442695, %v2364_v14  ;;  %v2373_v51 = vadd.f32 %v1742_v17, %v2306_v34 }
  0xd8   :  { %v1351_v20 = vmul.f32 -1.442695, %v2367_v15  ;;  %v1801_v21 = vpop.eup %1800  ;;  %1826 = vpow2.f32 %v1353_v16  ;;  %v286_v22 = vpop.f32.mrf.mxu0  ;;  %v2376_v63 = vadd.f32 %v1774_v18, %v2306_v34 }
  0xd9   :  { %v414_v23 = vpop.f32.mrf.mxu1  ;;  %v1803_v24 = vpop.eup %1802  ;;  %v703_v25 = vadd.f32 1.0, %v1801_v21  ;;  %1828 = vpow2.f32 %v1319_v19  ;;  %v1324_v5 = vmul.f32 -1.442695, %v2373_v51  ;;  %v2380_v6 = vadd.f32 %v2306_v34, %v286_v22 }
  0xda   :  { %v1805_v26 = vpop.eup %1804  ;;  %v735_v27 = vadd.f32 1.0, %v1803_v24  ;;  %1830 = vpow2.f32 %v1351_v20  ;;  %v1743_v28 = vpop.f32.mrf.mxu0  ;;  %v2383_v11 = vadd.f32 %v2306_v34, %v414_v23 }
  0xdb   :  { %v1807_v29 = vpop.eup %1806  ;;  %1832 = vrcp.f32 %v703_v25  ;;  %v701_v30 = vadd.f32 1.0, %v1805_v26  ;;  %v1775_v31 = vpop.f32.mrf.mxu1  ;;  %v2386_v12 = vadd.f32 %v1743_v28, %v2306_v34 }
  0xdc   :  { %v1809_v32 = vpop.eup %1808  ;;  %1834 = vrcp.f32 %v735_v27  ;;  %v733_v33 = vadd.f32 1.0, %v1807_v29  ;;  %v289_v41 = vpop.f32.mrf.mxu0  ;;  %v2389_v17 = vadd.f32 %v1775_v31, %v2306_v34  ;;  %v1356_v27 = vmul.f32 -1.442695, %v2376_v63 }
  0xdd   :  { %v1811_v35 = vpop.eup %1810  ;;  %1836 = vrcp.f32 %v701_v30  ;;  %v704_v36 = vadd.f32 1.0, %v1809_v32  ;;  %v417_v46 = vpop.f32.mrf.mxu1  ;;  %v2392_v18 = vadd.f32 %v2306_v34, %v289_v41  ;;  %v1322_v30 = vmul.f32 -1.442695, %v2380_v6 }
  0xde   :  { %v1813_v39 = vpop.eup %1812  ;;  %1838 = vrcp.f32 %v733_v33  ;;  %v736_v40 = vadd.f32 1.0, %v1811_v35  ;;  %v1746_v58 = vpop.f32.mrf.mxu0  ;;  %v2395_v22 = vadd.f32 %v2306_v34, %v417_v46  ;;  %v1354_v32 = vmul.f32 -1.442695, %v2383_v11 }
  0xdf   :  { %v1815_v42 = vpop.eup %1814  ;;  %1840 = vrcp.f32 %v704_v36  ;;  %v702_v45 = vadd.f32 1.0, %v1813_v39  ;;  %v1778_v0 = vpop.f32.mrf.mxu1  ;;  %v2398_v23 = vadd.f32 %v1746_v58, %v2306_v34  ;;  %v1325_v33 = vmul.f32 -1.442695, %v2386_v12 }
  0xe0   :  { %v1817_v47 = vpop.eup %1816  ;;  %1842 = vrcp.f32 %v736_v40  ;;  %v734_v48 = vadd.f32 1.0, %v1815_v42  ;;  %v302_v19 = vpop.f32.mrf.mxu0  ;;  %v2402_v28 = vadd.f32 %v1778_v0, %v2306_v34  ;;  %v1357_v35 = vmul.f32 -1.442695, %v2389_v17 }
  0xe1   :  { %v1819_v52 = vpop.eup %1818  ;;  %1844 = vrcp.f32 %v702_v45  ;;  %v707_v53 = vadd.f32 1.0, %v1817_v47  ;;  %v430_v24 = vpop.f32.mrf.mxu1  ;;  %v1323_v40 = vmul.f32 -1.442695, %v2392_v18  ;;  %v1355_v41 = vmul.f32 -1.442695, %v2395_v22 }
  0xe2   :  { %v1821_v56 = vpop.eup %1820  ;;  %1846 = vrcp.f32 %v734_v48  ;;  %v739_v57 = vadd.f32 1.0, %v1819_v52  ;;  %v1747_v36 = vpop.f32.mrf.mxu0  ;;  %v1328_v42 = vmul.f32 -1.442695, %v2398_v23  ;;  %v1360_v47 = vmul.f32 -1.442695, %v2402_v28 }
  0xe3   :  { %v1823_v59 = vpop.eup %1822  ;;  %1848 = vrcp.f32 %v707_v53  ;;  %v705_v60 = vadd.f32 1.0, %v1821_v56  ;;  %v1779_v45 = vpop.f32.mrf.mxu1  ;;  %v2413_v48 = vadd.f32 %v2306_v34, %v302_v19  ;;  %v2416_v52 = vadd.f32 %v2306_v34, %v430_v24 }
  0xe4   :  { %v1825_v1 = vpop.eup %1824  ;;  %1850 = vrcp.f32 %v739_v57  ;;  %v737_v4 = vadd.f32 1.0, %v1823_v59  ;;  %v2421_v58 = vadd.f32 %v1747_v36, %v2306_v34 }
  0xe5   :  { %v1827_v7 = vpop.eup %1826  ;;  %1852 = vrcp.f32 %v705_v60  ;;  %v708_v8 = vadd.f32 1.0, %v1825_v1  ;;  %v2426_v1 = vadd.f32 %v1779_v45, %v2306_v34 }
  0xe6   :  { %v1829_v13 = vpop.eup %1828  ;;  %1854 = vrcp.f32 %v737_v4  ;;  %v740_v16 = vadd.f32 1.0, %v1827_v7  ;;  %v305_v4 = vpop.f32.mrf.mxu0 }
  0xe7   :  { %v1831_v20 = vpop.eup %1830  ;;  %1856 = vrcp.f32 %v708_v8  ;;  %v706_v21 = vadd.f32 1.0, %v1829_v13  ;;  %v433_v8 = vpop.f32.mrf.mxu1 }
  0xe8   :  { %v1833_v25 = vpop.eup %1832  ;;  %1858 = vrcp.f32 %v740_v16  ;;  %v738_v26 = vadd.f32 1.0, %v1831_v20  ;;  %v2444_v24 = vadd.f32 %v2306_v34, %v433_v8 }
  0xe9   :  { %v1835_v29 = vpop.eup %1834  ;;  %1860 = vrcp.f32 %v706_v21  ;;  %v895_v56 = vmul.f32 %v1833_v25, %v2309_v37  ;;  %v2446_v25 = vpop.f32.mrf.mxu0 }
  0xea   :  { %v1837_v31 = vpop.eup %1836  ;;  %1862 = vrcp.f32 %v738_v26  ;;  %v927_v60 = vmul.f32 %v1835_v29, %v2312_v38  ;;  %v2452_v29 = vpop.f32.mrf.mxu1 }
  0xeb   :  { %v1839_v39 = vpop.eup %1838  ;;  %1864 = vpow2.f32 %v1324_v5  ;;  %v893_v7 = vmul.f32 %v1837_v31, %v2317_v43  ;;  %v1326_v43 = vmul.f32 -1.442695, %v2413_v48  ;;  %v1361_v31 = vmul.f32 -1.442695, %v2426_v1  ;;  %v2464_v45 = vpop.f32.mrf.mxu0 }
  0xec   :  { %v1841_v46 = vpop.eup %1840  ;;  %1866 = vpow2.f32 %v1356_v27  ;;  %v925_v16 = vmul.f32 %v1839_v39, %v2320_v44  ;;  %v1329_v27 = vmul.f32 -1.442695, %v2421_v58 }
  0xed   :  { %v1843_v53 = vpop.eup %1842  ;;  %v896_v57 = vmul.f32 %v1841_v46, %v2325_v49  ;;  %1868 = vpow2.f32 %v1322_v30 }
  0xee   :  { %v1845_v59 = vpop.eup %1844  ;;  %v928_v0 = vmul.f32 %v1843_v53, %v2328_v50  ;;  %1870 = vpow2.f32 %v1354_v32 }
  0xef   :  { %v1847_v5 = vpop.eup %1846  ;;  %v1514_v37 = vpack.c.bf16 %v896_v57, %v895_v56  ;;  %v894_v49 = vmul.f32 %v1845_v59, %v2332_v54  ;;  %1872 = vpow2.f32 %v1325_v33  ;;  %v2437_v54 = vadd.f32 %v2306_v34, %v305_v4 }
  0xf0   :  { %v1849_v13 = vpop.eup %1848  ;;  %v1594_v19 = vpack.c.bf16 %v928_v0, %v927_v60  ;;  %v926_v38 = vmul.f32 %v1847_v5, %v2335_v55  ;;  %1874 = vpow2.f32 %v1357_v35  ;;  %v1358_v55 = vmul.f32 -1.442695, %v2416_v52 }
  0xf1   :  { %v1851_v50 = vpop.eup %1850  ;;  %1666 = vst [vmem:[%s2745_s3 + $0x8] sm:$0xff] %v1514_v37   ;;  %v1509_v20 = vpack.c.bf16 %v894_v49, %v893_v7  ;;  %1876 = vpow2.f32 %v1323_v40  ;;  %v899_v33 = vmul.f32 %v1849_v13, %v2341_v61  ;;  %v1327_v36 = vmul.f32 -1.442695, %v2437_v54 }
  0xf2   :  { %v1853_v21 = vpop.eup %1852  ;;  %1682 = vst [vmem:[%s2745_s3 + $0x88] sm:$0xff] %v1594_v19   ;;  %v1589_v44 = vpack.c.bf16 %v926_v38, %v925_v16  ;;  %1878 = vpow2.f32 %v1355_v41  ;;  %v931_v40 = vmul.f32 %v1851_v50, %v2344_v62 }
  0xf3   :  { %v1855_v26 = vpop.eup %1854  ;;  %1510 = vst [vmem:[%s2745_s3] sm:$0xff] %v1509_v20   ;;  %1880 = vpow2.f32 %v1328_v42  ;;  %v1359_v42 = vmul.f32 -1.442695, %v2444_v24 }
  0xf4   :  { %v1857_v30 = vpop.eup %1856  ;;  %1681 = vst [vmem:[%s2745_s3 + $0x80] sm:$0xff] %v1589_v44   ;;  %1882 = vpow2.f32 %v1360_v47  ;;  %v897_v47 = vmul.f32 %v1853_v21, %v2348_v2  ;;  %v929_v57 = vmul.f32 %v1855_v26, %v2351_v3  ;;  %v1751_v3 = vpop.f32.mrf.mxu0 }
  0xf5   :  { %v1859_v32 = vpop.eup %1858  ;;  %v900_v35 = vmul.f32 %v1857_v30, %v2357_v9  ;;  %1884 = vpow2.f32 %v1326_v43  ;;  %v446_v9 = vpop.f32.mrf.mxu1 }
  0xf6   :  { %v1861_v39 = vpop.eup %1860  ;;  %v932_v41 = vmul.f32 %v1859_v32, %v2360_v10  ;;  %1886 = vpow2.f32 %v1358_v55  ;;  %v321_v38 = vpop.f32.mrf.mxu0  ;;  %v2484_v55 = vadd.f32 %v2446_v25, %v2306_v34 }
  0xf7   :  { %v1863_v46 = vpop.eup %1862  ;;  %v1524_v53 = vpack.c.bf16 %v900_v35, %v899_v33  ;;  %v898_v61 = vmul.f32 %v1861_v39, %v2364_v14  ;;  %1888 = vpow2.f32 %v1329_v27  ;;  %v1783_v7 = vpop.f32.mrf.mxu1 }
  0xf8   :  { %v1865_v56 = vpop.eup %1864  ;;  %v1604_v59 = vpack.c.bf16 %v932_v41, %v931_v40  ;;  %v930_v62 = vmul.f32 %v1863_v46, %v2367_v15  ;;  %1890 = vpow2.f32 %v1361_v31  ;;  %v1754_v32 = vpop.f32.mrf.mxu0  ;;  %v1332_v25 = vmul.f32 -1.442695, %v2484_v55 }
  0xf9   :  { %v1867_v10 = vpop.eup %1866  ;;  %1668 = vst [vmem:[%s2745_s3 + $0x18] sm:$0xff] %v1524_v53   ;;  %v1519_v60 = vpack.c.bf16 %v898_v61, %v897_v47  ;;  %v711_v0 = vadd.f32 1.0, %v1865_v56  ;;  %1892 = vpow2.f32 %v1327_v36  ;;  %v449_v43 = vpop.f32.mrf.mxu1  ;;  %v2488_v36 = vadd.f32 %v2452_v29, %v2306_v34 }
  0xfa   :  { %v1869_v2 = vpop.eup %1868  ;;  %1684 = vst [vmem:[%s2745_s3 + $0x98] sm:$0xff] %v1604_v59   ;;  %v1599_v14 = vpack.c.bf16 %v930_v62, %v929_v57  ;;  %v743_v4 = vadd.f32 1.0, %v1867_v10  ;;  %1894 = vpow2.f32 %v1359_v42  ;;  %v2493_v42 = vadd.f32 %v2306_v34, %v2464_v45  ;;  %v334_v45 = vpop.f32.mrf.mxu0 }
  0xfb   :  { %v1871_v5 = vpop.eup %1870  ;;  %1667 = vst [vmem:[%s2745_s3 + $0x10] sm:$0xff] %v1519_v60   ;;  %1896 = vrcp.f32 %v711_v0  ;;  %v709_v15 = vadd.f32 1.0, %v1869_v2  ;;  %v1786_v39 = vpop.f32.mrf.mxu1  ;;  %v2496_v53 = vadd.f32 %v2306_v34, %v446_v9  ;;  %v2499_v61 = vadd.f32 %v1751_v3, %v2306_v34 }
  0xfc   :  { %v1873_v37 = vpop.eup %1872  ;;  %1683 = vst [vmem:[%s2745_s3 + $0x90] sm:$0xff] %v1599_v14   ;;  %1898 = vrcp.f32 %v743_v4  ;;  %v741_v49 = vadd.f32 1.0, %v1871_v5  ;;  %v2502_v57 = vadd.f32 %v1783_v7, %v2306_v34  ;;  %v2505_v59 = vadd.f32 %v2306_v34, %v321_v38 }
  0xfd   :  { %v1875_v8 = vpop.eup %1874  ;;  %1900 = vrcp.f32 %v709_v15  ;;  %v712_v13 = vadd.f32 1.0, %v1873_v37  ;;  %v2508_v60 = vadd.f32 %v2306_v34, %v449_v43  ;;  %v2511_v9 = vadd.f32 %v1754_v32, %v2306_v34  ;;  %v462_v0 = vpop.f32.mrf.mxu1 }
  0xfe   :  { %v1877_v16 = vpop.eup %1876  ;;  %1902 = vrcp.f32 %v741_v49  ;;  %v744_v19 = vadd.f32 1.0, %v1875_v8  ;;  %v1364_v4 = vmul.f32 -1.442695, %v2488_v36  ;;  %v2515_v3 = vadd.f32 %v1786_v39, %v2306_v34 }
  0xff   :  { %v1879_v50 = vpop.eup %1878  ;;  %1904 = vrcp.f32 %v712_v13  ;;  %v710_v20 = vadd.f32 1.0, %v1877_v16  ;;  %v1330_v15 = vmul.f32 -1.442695, %v2493_v42  ;;  %v1362_v37 = vmul.f32 -1.442695, %v2496_v53  ;;  %v1755_v13 = vpop.f32.mrf.mxu0 }
 0x100   :  { %v1881_v21 = vpop.eup %1880  ;;  %1906 = vrcp.f32 %v744_v19  ;;  %v742_v44 = vadd.f32 1.0, %v1879_v50  ;;  %v1333_v49 = vmul.f32 -1.442695, %v2499_v61  ;;  %v1365_v8 = vmul.f32 -1.442695, %v2502_v57 }
 0x101   :  { %v1883_v26 = vpop.eup %1882  ;;  %1908 = vrcp.f32 %v710_v20  ;;  %v715_v27 = vadd.f32 1.0, %v1881_v21  ;;  %v1331_v19 = vmul.f32 -1.442695, %v2505_v59  ;;  %v1363_v38 = vmul.f32 -1.442695, %v2508_v60  ;;  %v1787_v20 = vpop.f32.mrf.mxu1 }
 0x102   :  { %v1885_v30 = vpop.eup %1884  ;;  %1910 = vrcp.f32 %v742_v44  ;;  %v747_v31 = vadd.f32 1.0, %v1883_v26  ;;  %v1336_v50 = vmul.f32 -1.442695, %v2511_v9  ;;  %v1368_v21 = vmul.f32 -1.442695, %v2515_v3 }
 0x103   :  { %v1887_v33 = vpop.eup %1886  ;;  %1912 = vrcp.f32 %v715_v27  ;;  %v713_v35 = vadd.f32 1.0, %v1885_v30  ;;  %v2526_v44 = vadd.f32 %v2306_v34, %v334_v45  ;;  %v2529_v26 = vadd.f32 %v2306_v34, %v462_v0 }
 0x104   :  { %v1889_v40 = vpop.eup %1888  ;;  %1914 = vrcp.f32 %v747_v31  ;;  %v745_v41 = vadd.f32 1.0, %v1887_v33  ;;  %v2534_v32 = vadd.f32 %v1755_v13, %v2306_v34 }
 0x105   :  { %v1891_v46 = vpop.eup %1890  ;;  %1916 = vrcp.f32 %v713_v35  ;;  %v716_v47 = vadd.f32 1.0, %v1889_v40  ;;  %v2539_v40 = vadd.f32 %v1787_v20, %v2306_v34 }
 0x106   :  { %v1893_v29 = vpop.eup %1892  ;;  %1918 = vrcp.f32 %v745_v41  ;;  %v748_v56 = vadd.f32 1.0, %v1891_v46  ;;  %v337_v41 = vpop.f32.mrf.mxu0 }
 0x107   :  { %v1895_v62 = vpop.eup %1894  ;;  %1920 = vrcp.f32 %v716_v47  ;;  %v714_v10 = vadd.f32 1.0, %v1893_v29  ;;  %v465_v47 = vpop.f32.mrf.mxu1 }
 0x108   :  { %v1897_v2 = vpop.eup %1896  ;;  %1922 = vrcp.f32 %v748_v56  ;;  %v746_v14 = vadd.f32 1.0, %v1895_v62  ;;  %v2557_v0 = vadd.f32 %v2306_v34, %v465_v47 }
 0x109   :  { %v1899_v5 = vpop.eup %1898  ;;  %1924 = vrcp.f32 %v714_v10  ;;  %v903_v30 = vmul.f32 %v1897_v2, %v2373_v51  ;;  %v2559_v2 = vpop.f32.mrf.mxu0 }
 0x10a   :  { %v1901_v7 = vpop.eup %1900  ;;  %1926 = vrcp.f32 %v746_v14  ;;  %v935_v35 = vmul.f32 %v1899_v5, %v2376_v63  ;;  %v2565_v5 = vpop.f32.mrf.mxu1 }
 0x10b   :  { %v1903_v16 = vpop.eup %1902  ;;  %1928 = vpow2.f32 %v1332_v25  ;;  %v901_v46 = vmul.f32 %v1901_v7, %v2380_v6  ;;  %v1334_v6 = vmul.f32 -1.442695, %v2526_v44  ;;  %v1369_v7 = vmul.f32 -1.442695, %v2539_v40  ;;  %v2577_v20 = vpop.f32.mrf.mxu0 }
 0x10c   :  { %v1905_v43 = vpop.eup %1904  ;;  %1930 = vpow2.f32 %v1364_v4  ;;  %v933_v56 = vmul.f32 %v1903_v16, %v2383_v11  ;;  %v1337_v4 = vmul.f32 -1.442695, %v2534_v32 }
 0x10d   :  { %v1907_v27 = vpop.eup %1906  ;;  %v904_v31 = vmul.f32 %v1905_v43, %v2386_v12  ;;  %1932 = vpow2.f32 %v1330_v15 }
 0x10e   :  { %v1909_v33 = vpop.eup %1908  ;;  %v936_v39 = vmul.f32 %v1907_v27, %v2389_v17  ;;  %1934 = vpow2.f32 %v1362_v37 }
 0x10f   :  { %v1911_v25 = vpop.eup %1910  ;;  %v1534_v51 = vpack.c.bf16 %v904_v31, %v903_v30  ;;  %v902_v12 = vmul.f32 %v1909_v33, %v2392_v18  ;;  %1936 = vpow2.f32 %v1333_v49  ;;  %v2550_v18 = vadd.f32 %v2306_v34, %v337_v41 }
 0x110   :  { %v1913_v29 = vpop.eup %1912  ;;  %v1614_v45 = vpack.c.bf16 %v936_v39, %v935_v35  ;;  %v934_v63 = vmul.f32 %v1911_v25, %v2395_v22  ;;  %1938 = vpow2.f32 %v1365_v8  ;;  %v1366_v22 = vmul.f32 -1.442695, %v2529_v26 }
 0x111   :  { %v1915_v17 = vpop.eup %1914  ;;  %1670 = vst [vmem:[%s2745_s3 + $0x28] sm:$0xff] %v1534_v51   ;;  %v1529_v62 = vpack.c.bf16 %v902_v12, %v901_v46  ;;  %1940 = vpow2.f32 %v1331_v19  ;;  %v907_v49 = vmul.f32 %v1913_v29, %v2398_v23  ;;  %v1335_v13 = vmul.f32 -1.442695, %v2550_v18 }
 0x112   :  { %v1917_v10 = vpop.eup %1916  ;;  %1686 = vst [vmem:[%s2745_s3 + $0xa8] sm:$0xff] %v1614_v45   ;;  %v1609_v11 = vpack.c.bf16 %v934_v63, %v933_v56  ;;  %1942 = vpow2.f32 %v1363_v38  ;;  %v939_v19 = vmul.f32 %v1915_v17, %v2402_v28 }
 0x113   :  { %v1919_v14 = vpop.eup %1918  ;;  %1669 = vst [vmem:[%s2745_s3 + $0x20] sm:$0xff] %v1529_v62   ;;  %1944 = vpow2.f32 %v1336_v50  ;;  %v1367_v50 = vmul.f32 -1.442695, %v2557_v0 }
 0x114   :  { %v1921_v15 = vpop.eup %1920  ;;  %1685 = vst [vmem:[%s2745_s3 + $0xa0] sm:$0xff] %v1609_v11   ;;  %1946 = vpow2.f32 %v1368_v21  ;;  %v905_v21 = vmul.f32 %v1917_v10, %v2413_v48  ;;  %v937_v31 = vmul.f32 %v1919_v14, %v2416_v52  ;;  %v1759_v52 = vpop.f32.mrf.mxu0 }
 0x115   :  { %v1923_v37 = vpop.eup %1922  ;;  %v908_v8 = vmul.f32 %v1921_v15, %v2421_v58  ;;  %1948 = vpow2.f32 %v1334_v6  ;;  %v478_v58 = vpop.f32.mrf.mxu1 }
 0x116   :  { %v1925_v16 = vpop.eup %1924  ;;  %v940_v38 = vmul.f32 %v1923_v37, %v2426_v1  ;;  %1950 = vpow2.f32 %v1366_v22  ;;  %v353_v63 = vpop.f32.mrf.mxu0  ;;  %v2597_v22 = vadd.f32 %v2559_v2, %v2306_v34 }
 0x117   :  { %v1927_v43 = vpop.eup %1926  ;;  %v1544_v27 = vpack.c.bf16 %v908_v8, %v907_v49  ;;  %v906_v23 = vmul.f32 %v1925_v16, %v2437_v54  ;;  %1952 = vpow2.f32 %v1337_v4  ;;  %v1791_v46 = vpop.f32.mrf.mxu1 }
 0x118   :  { %v1929_v30 = vpop.eup %1928  ;;  %v1624_v33 = vpack.c.bf16 %v940_v38, %v939_v19  ;;  %v938_v28 = vmul.f32 %v1927_v43, %v2444_v24  ;;  %1954 = vpow2.f32 %v1369_v7  ;;  %v1762_v37 = vpop.f32.mrf.mxu0  ;;  %v1340_v2 = vmul.f32 -1.442695, %v2597_v22 }
 0x119   :  { %v1931_v1 = vpop.eup %1930  ;;  %1672 = vst [vmem:[%s2745_s3 + $0x38] sm:$0xff] %v1544_v27   ;;  %v1539_v35 = vpack.c.bf16 %v906_v23, %v905_v21  ;;  %v719_v39 = vadd.f32 1.0, %v1929_v30  ;;  %1956 = vpow2.f32 %v1335_v13  ;;  %v481_v6 = vpop.f32.mrf.mxu1  ;;  %v2601_v13 = vadd.f32 %v2565_v5, %v2306_v34 }
 0x11a   :  { %v1933_v48 = vpop.eup %1932  ;;  %1688 = vst [vmem:[%s2745_s3 + $0xb8] sm:$0xff] %v1624_v33   ;;  %v1619_v54 = vpack.c.bf16 %v938_v28, %v937_v31  ;;  %v751_v41 = vadd.f32 1.0, %v1931_v1  ;;  %1958 = vpow2.f32 %v1367_v50  ;;  %v2606_v50 = vadd.f32 %v2306_v34, %v2577_v20  ;;  %v366_v20 = vpop.f32.mrf.mxu0 }
 0x11b   :  { %v1935_v25 = vpop.eup %1934  ;;  %1671 = vst [vmem:[%s2745_s3 + $0x30] sm:$0xff] %v1539_v35   ;;  %1960 = vrcp.f32 %v719_v39  ;;  %v717_v24 = vadd.f32 1.0, %v1933_v48  ;;  %v1794_v16 = vpop.f32.mrf.mxu1  ;;  %v2609_v27 = vadd.f32 %v2306_v34, %v478_v58  ;;  %v2612_v23 = vadd.f32 %v1759_v52, %v2306_v34 }
 0x11c   :  { %v1937_v51 = vpop.eup %1936  ;;  %1687 = vst [vmem:[%s2745_s3 + $0xb0] sm:$0xff] %v1619_v54   ;;  %1962 = vrcp.f32 %v751_v41  ;;  %v749_v12 = vadd.f32 1.0, %v1935_v25  ;;  %v2615_v31 = vadd.f32 %v1791_v46, %v2306_v34  ;;  %v2618_v33 = vadd.f32 %v2306_v34, %v353_v63 }
 0x11d   :  { %v1939_v47 = vpop.eup %1938  ;;  %1964 = vrcp.f32 %v717_v24  ;;  %v720_v29 = vadd.f32 1.0, %v1937_v51  ;;  %v2621_v35 = vadd.f32 %v2306_v34, %v481_v6  ;;  %v2624_v58 = vadd.f32 %v1762_v37, %v2306_v34  ;;  %v494_v39 = vpop.f32.mrf.mxu1 }
 0x11e   :  { %v1941_v56 = vpop.eup %1940  ;;  %1966 = vrcp.f32 %v749_v12  ;;  %v752_v45 = vadd.f32 1.0, %v1939_v47  ;;  %v1372_v41 = vmul.f32 -1.442695, %v2601_v13  ;;  %v2628_v52 = vadd.f32 %v1794_v16, %v2306_v34 }
 0x11f   :  { %v1943_v17 = vpop.eup %1942  ;;  %1968 = vrcp.f32 %v720_v29  ;;  %v718_v62 = vadd.f32 1.0, %v1941_v56  ;;  %v1338_v24 = vmul.f32 -1.442695, %v2606_v50  ;;  %v1370_v51 = vmul.f32 -1.442695, %v2609_v27  ;;  %v1763_v29 = vpop.f32.mrf.mxu0 }
 0x120   :  { %v1945_v10 = vpop.eup %1944  ;;  %1970 = vrcp.f32 %v752_v45  ;;  %v750_v11 = vadd.f32 1.0, %v1943_v17  ;;  %v1341_v12 = vmul.f32 -1.442695, %v2612_v23  ;;  %v1373_v47 = vmul.f32 -1.442695, %v2615_v31 }
 0x121   :  { %v1947_v14 = vpop.eup %1946  ;;  %1972 = vrcp.f32 %v718_v62  ;;  %v723_v4 = vadd.f32 1.0, %v1945_v10  ;;  %v1339_v45 = vmul.f32 -1.442695, %v2618_v33  ;;  %v1371_v63 = vmul.f32 -1.442695, %v2621_v35  ;;  %v1795_v62 = vpop.f32.mrf.mxu1 }
 0x122   :  { %v1949_v15 = vpop.eup %1948  ;;  %1974 = vrcp.f32 %v750_v11  ;;  %v755_v7 = vadd.f32 1.0, %v1947_v14  ;;  %v1344_v17 = vmul.f32 -1.442695, %v2624_v58  ;;  %v1376_v10 = vmul.f32 -1.442695, %v2628_v52 }
 0x123   :  { %v1951_v49 = vpop.eup %1950  ;;  %1976 = vrcp.f32 %v723_v4  ;;  %v721_v8 = vadd.f32 1.0, %v1949_v15  ;;  %v2639_v11 = vadd.f32 %v2306_v34, %v366_v20  ;;  %v2642_v14 = vadd.f32 %v2306_v34, %v494_v39 }
 0x124   :  { %v1953_v19 = vpop.eup %1952  ;;  %1978 = vrcp.f32 %v755_v7  ;;  %v753_v38 = vadd.f32 1.0, %v1951_v49  ;;  %v2647_v37 = vadd.f32 %v1763_v29, %v2306_v34 }
 0x125   :  { %v1955_v43 = vpop.eup %1954  ;;  %1980 = vrcp.f32 %v721_v8  ;;  %v724_v21 = vadd.f32 1.0, %v1953_v19  ;;  %v2652_v19 = vadd.f32 %v1795_v62, %v2306_v34 }
 0x126   :  { %v1957_v5 = vpop.eup %1956  ;;  %1982 = vrcp.f32 %v753_v38  ;;  %v756_v30 = vadd.f32 1.0, %v1955_v43  ;;  %v369_v38 = vpop.f32.mrf.mxu0 }
 0x127   :  { %v1959_v28 = vpop.eup %1958  ;;  %1984 = vrcp.f32 %v724_v21  ;;  %v722_v1 = vadd.f32 1.0, %v1957_v5  ;;  %v497_v21 = vpop.f32.mrf.mxu1 }
 0x128   :  { %v1961_v48 = vpop.eup %1960  ;;  %1986 = vrcp.f32 %v756_v30  ;;  %v754_v54 = vadd.f32 1.0, %v1959_v28  ;;  %v2670_v39 = vadd.f32 %v2306_v34, %v497_v21 }
 0x129   :  { %v1963_v25 = vpop.eup %1962  ;;  %1988 = vrcp.f32 %v722_v1  ;;  %v911_v15 = vmul.f32 %v1961_v48, %v2484_v55 }
 0x12a   :  { %v1965_v46 = vpop.eup %1964  ;;  %1990 = vrcp.f32 %v754_v54  ;;  %v943_v8 = vmul.f32 %v1963_v25, %v2488_v36  ;;  %v1345_v54 = vmul.f32 -1.442695, %v2647_v37  ;;  %v1377_v25 = vmul.f32 -1.442695, %v2652_v19 }
 0x12b   :  { %v1967_v56 = vpop.eup %1966  ;;  %1992 = vpow2.f32 %v1340_v2  ;;  %v909_v43 = vmul.f32 %v1965_v46, %v2493_v42  ;;  %v1342_v42 = vmul.f32 -1.442695, %v2639_v11 }
 0x12c   :  { %v1969_v6 = vpop.eup %1968  ;;  %1994 = vpow2.f32 %v1372_v41  ;;  %v941_v30 = vmul.f32 %v1967_v56, %v2496_v53  ;;  %v1375_v56 = vmul.f32 -1.442695, %v2670_v39 }
 0x12d   :  { %v1971_v4 = vpop.eup %1970  ;;  %v912_v7 = vmul.f32 %v1969_v6, %v2499_v61  ;;  %1996 = vpow2.f32 %v1338_v24 }
 0x12e   :  { %v1973_v49 = vpop.eup %1972  ;;  %v944_v16 = vmul.f32 %v1971_v4, %v2502_v57  ;;  %1998 = vpow2.f32 %v1370_v51 }
 0x12f   :  { %v1975_v2 = vpop.eup %1974  ;;  %v1554_v55 = vpack.c.bf16 %v912_v7, %v911_v15  ;;  %v910_v61 = vmul.f32 %v1973_v49, %v2505_v59  ;;  %2000 = vpow2.f32 %v1341_v12  ;;  %v2663_v59 = vadd.f32 %v2306_v34, %v369_v38 }
 0x130   :  { %v1977_v5 = vpop.eup %1976  ;;  %v1634_v20 = vpack.c.bf16 %v944_v16, %v943_v8  ;;  %v942_v36 = vmul.f32 %v1975_v2, %v2508_v60  ;;  %2002 = vpow2.f32 %v1373_v47  ;;  %v1374_v60 = vmul.f32 -1.442695, %v2642_v14 }
 0x131   :  { %v1979_v57 = vpop.eup %1978  ;;  %1674 = vst [vmem:[%s2745_s3 + $0x48] sm:$0xff] %v1554_v55   ;;  %v1549_v28 = vpack.c.bf16 %v910_v61, %v909_v43  ;;  %2004 = vpow2.f32 %v1339_v45  ;;  %v915_v34 = vmul.f32 %v1977_v5, %v2511_v9  ;;  %v1343_v51 = vmul.f32 -1.442695, %v2663_v59 }
 0x132   :  { %v1981_v1 = vpop.eup %1980  ;;  %1690 = vst [vmem:[%s2745_s3 + $0xc8] sm:$0xff] %v1634_v20   ;;  %v1629_v53 = vpack.c.bf16 %v942_v36, %v941_v30  ;;  %2006 = vpow2.f32 %v1371_v63  ;;  %v947_v47 = vmul.f32 %v1979_v57, %v2515_v3 }
 0x133   :  { %v1983_v48 = vpop.eup %1982  ;;  %1673 = vst [vmem:[%s2745_s3 + $0x40] sm:$0xff] %v1549_v28   ;;  %2008 = vpow2.f32 %v1344_v17  ;;  %v913_v63 = vmul.f32 %v1981_v1, %v2526_v44 }
 0x134   :  { %v1985_v41 = vpop.eup %1984  ;;  %1689 = vst [vmem:[%s2745_s3 + $0xc0] sm:$0xff] %v1629_v53   ;;  %2010 = vpow2.f32 %v1376_v10 }
 0x135   :  { %v1987_v24 = vpop.eup %1986  ;;  %v916_v46 = vmul.f32 %v1985_v41, %v2534_v32  ;;  %2012 = vpow2.f32 %v1342_v42  ;;  %v945_v32 = vmul.f32 %v1983_v48, %v2529_v26 }
 0x136   :  { %v1989_v12 = vpop.eup %1988  ;;  %v948_v29 = vmul.f32 %v1987_v24, %v2539_v40  ;;  %2014 = vpow2.f32 %v1374_v60 }
 0x137   :  { %v1991_v45 = vpop.eup %1990  ;;  %v1564_v17 = vpack.c.bf16 %v916_v46, %v915_v34  ;;  %v914_v62 = vmul.f32 %v1989_v12, %v2550_v18  ;;  %2016 = vpow2.f32 %v1345_v54 }
 0x138   :  { %v1993_v9 = vpop.eup %1992  ;;  %v1644_v6 = vpack.c.bf16 %v948_v29, %v947_v47  ;;  %v946_v10 = vmul.f32 %v1991_v45, %v2557_v0  ;;  %2018 = vpow2.f32 %v1377_v25 }
 0x139   :  { %v1995_v3 = vpop.eup %1994  ;;  %1676 = vst [vmem:[%s2745_s3 + $0x58] sm:$0xff] %v1564_v17   ;;  %v1559_v40 = vpack.c.bf16 %v914_v62, %v913_v63  ;;  %v727_v4 = vadd.f32 1.0, %v1993_v9  ;;  %2020 = vpow2.f32 %v1343_v51 }
 0x13a   :  { %v1997_v44 = vpop.eup %1996  ;;  %1692 = vst [vmem:[%s2745_s3 + $0xd8] sm:$0xff] %v1644_v6   ;;  %v1639_v18 = vpack.c.bf16 %v946_v10, %v945_v32  ;;  %v759_v15 = vadd.f32 1.0, %v1995_v3  ;;  %2022 = vpow2.f32 %v1375_v56 }
 0x13b   :  { %v1999_v26 = vpop.eup %1998  ;;  %1675 = vst [vmem:[%s2745_s3 + $0x50] sm:$0xff] %v1559_v40   ;;  %2024 = vrcp.f32 %v727_v4  ;;  %v725_v0 = vadd.f32 1.0, %v1997_v44 }
 0x13c   :  { %v2001_v7 = vpop.eup %2000  ;;  %1691 = vst [vmem:[%s2745_s3 + $0xd0] sm:$0xff] %v1639_v18   ;;  %2026 = vrcp.f32 %v759_v15  ;;  %v757_v49 = vadd.f32 1.0, %v1999_v26 }
 0x13d   :  { %v2003_v8 = vpop.eup %2002  ;;  %2028 = vrcp.f32 %v725_v0  ;;  %v728_v16 = vadd.f32 1.0, %v2001_v7 }
 0x13e   :  { %v2005_v38 = vpop.eup %2004  ;;  %2030 = vrcp.f32 %v757_v49  ;;  %v760_v2 = vadd.f32 1.0, %v2003_v8 }
 0x13f   :  { %v2007_v43 = vpop.eup %2006  ;;  %2032 = vrcp.f32 %v728_v16  ;;  %v726_v55 = vadd.f32 1.0, %v2005_v38 }
 0x140   :  { %v2009_v61 = vpop.eup %2008  ;;  %2034 = vrcp.f32 %v760_v2  ;;  %v758_v21 = vadd.f32 1.0, %v2007_v43 }
 0x141   :  { %v2011_v5 = vpop.eup %2010  ;;  %2036 = vrcp.f32 %v726_v55  ;;  %v731_v30 = vadd.f32 1.0, %v2009_v61 }
 0x142   :  { %v2013_v20 = vpop.eup %2012  ;;  %2038 = vrcp.f32 %v758_v21  ;;  %v763_v36 = vadd.f32 1.0, %v2011_v5 }
 0x143   :  { %v2015_v57 = vpop.eup %2014  ;;  %2040 = vrcp.f32 %v731_v30  ;;  %v729_v28 = vadd.f32 1.0, %v2013_v20 }
 0x144   :  { %v2017_v42 = vpop.eup %2016  ;;  %2042 = vrcp.f32 %v763_v36  ;;  %v761_v1 = vadd.f32 1.0, %v2015_v57 }
 0x145   :  { %v2019_v53 = vpop.eup %2018  ;;  %2044 = vrcp.f32 %v729_v28  ;;  %v732_v60 = vadd.f32 1.0, %v2017_v42 }
 0x146   :  { %v2021_v48 = vpop.eup %2020  ;;  %2046 = vrcp.f32 %v761_v1  ;;  %v764_v54 = vadd.f32 1.0, %v2019_v53 }
 0x147   :  { %v2023_v41 = vpop.eup %2022  ;;  %2048 = vrcp.f32 %v732_v60  ;;  %v730_v25 = vadd.f32 1.0, %v2021_v48 }
 0x148   :  { %v2025_v24 = vpop.eup %2024  ;;  %2050 = vrcp.f32 %v764_v54  ;;  %v762_v34 = vadd.f32 1.0, %v2023_v41 }
 0x149   :  { %v2027_v46 = vpop.eup %2026  ;;  %2052 = vrcp.f32 %v730_v25  ;;  %v919_v56 = vmul.f32 %v2025_v24, %v2597_v22 }
 0x14a   :  { %v2029_v51 = vpop.eup %2028  ;;  %2054 = vrcp.f32 %v762_v34  ;;  %v951_v17 = vmul.f32 %v2027_v46, %v2601_v13 }
 0x14b   :  { %v2031_v12 = vpop.eup %2030  ;;  %v917_v32 = vmul.f32 %v2029_v51, %v2606_v50 }
 0x14c   :  { %v2033_v47 = vpop.eup %2032  ;;  %v949_v40 = vmul.f32 %v2031_v12, %v2609_v27 }
 0x14d   :  { %v2035_v29 = vpop.eup %2034  ;;  %v920_v45 = vmul.f32 %v2033_v47, %v2612_v23 }
 0x14e   :  { %v2037_v63 = vpop.eup %2036  ;;  %v952_v62 = vmul.f32 %v2035_v29, %v2615_v31 }
 0x14f   :  { %v2039_v9 = vpop.eup %2038  ;;  %v1574_v6 = vpack.c.bf16 %v920_v45, %v919_v56  ;;  %v918_v10 = vmul.f32 %v2037_v63, %v2618_v33 }
 0x150   :  { %v2041_v3 = vpop.eup %2040  ;;  %v1654_v4 = vpack.c.bf16 %v952_v62, %v951_v17  ;;  %v950_v44 = vmul.f32 %v2039_v9, %v2621_v35 }
 0x151   :  { %v2043_v22 = vpop.eup %2042  ;;  %1678 = vst [vmem:[%s2745_s3 + $0x68] sm:$0xff] %v1574_v6   ;;  %v1569_v13 = vpack.c.bf16 %v918_v10, %v917_v32  ;;  %v923_v35 = vmul.f32 %v2041_v3, %v2624_v58 }
 0x152   :  { %v2045_v23 = vpop.eup %2044  ;;  %1694 = vst [vmem:[%s2745_s3 + $0xe8] sm:$0xff] %v1654_v4   ;;  %v1649_v50 = vpack.c.bf16 %v950_v44, %v949_v40  ;;  %v955_v26 = vmul.f32 %v2043_v22, %v2628_v52 }
 0x153   :  { %v2047_v31 = vpop.eup %2046  ;;  %1677 = vst [vmem:[%s2745_s3 + $0x60] sm:$0xff] %v1569_v13   ;;  %v921_v49 = vmul.f32 %v2045_v23, %v2639_v11 }
 0x154   :  { %v2049_v27 = vpop.eup %2048  ;;  %1693 = vst [vmem:[%s2745_s3 + $0xe0] sm:$0xff] %v1649_v50   ;;  %v953_v38 = vmul.f32 %v2047_v31, %v2642_v14 }
 0x155   :  { %v2051_v33 = vpop.eup %2050  ;;  %v924_v18 = vmul.f32 %v2049_v27, %v2647_v37 }
 0x156   :  { %v2053_v15 = vpop.eup %2052  ;;  %v956_v0 = vmul.f32 %v2051_v33, %v2652_v19 }
 0x157   :  { %v2055_v7 = vpop.eup %2054  ;;  %v1584_v8 = vpack.c.bf16 %v924_v18, %v923_v35  ;;  %v922_v16 = vmul.f32 %v2053_v15, %v2663_v59 }
 0x158   :  { %v1664_v2 = vpack.c.bf16 %v956_v0, %v955_v26  ;;  %v954_v43 = vmul.f32 %v2055_v7, %v2670_v39 }
 0x159   :  { %1680 = vst [vmem:[%s2745_s3 + $0x78] sm:$0xff] %v1584_v8   ;;  %v1579_v58 = vpack.c.bf16 %v922_v16, %v921_v49 }
 0x15a   :  { %1696 = vst [vmem:[%s2745_s3 + $0xf8] sm:$0xff] %v1664_v2   ;;  %v1659_v52 = vpack.c.bf16 %v954_v43, %v953_v38 }
 0x15b   :  { %1679 = vst [vmem:[%s2745_s3 + $0x70] sm:$0xff] %v1579_v58  }
 0x15c   :  { %1695 = vst [vmem:[%s2745_s3 + $0xf0] sm:$0xff] %v1659_v52  }

// kernel: ghostconv_forward.3
= control target key start
LH: loop header
LB: loop body
LE: loop exit
PB: predicated region body
PF: predicated region fallthrough
CT: control target
= control target key end

     0   :  { %s6887_s18 = smov 0   ;;  %s6889_s19 = smov 0   ;;  %s13042_s0 = inlined_call_operand.vmem [shape: bf16[2,16,16,128], index: 0, kind: input, shape index: {}, may-alias: {0,1,2}]   ;;  %s13043_s1 = inlined_call_operand.vmem [shape: bf16[2,16,16,128], index: 1, kind: input, shape index: {}, may-alias: {0,1,2}]   ;;  %s13044_s2 = inlined_call_operand.vmem [shape: bf16[2,16,16,128], index: 2, kind: input, shape index: {}, may-alias: {0,1,2}]   ;;  %s13045_s3 = inlined_call_operand.vmem [shape: f32[5,5,128], index: 3, kind: input, shape index: {}]   ;;  %s13046_s4 = inlined_call_operand.vmem [shape: f32[1,128], index: 4, kind: input, shape index: {}]   ;;  %s13047_s5 = inlined_call_operand.vmem [shape: f32[2,2,16,16,128], index: 5, kind: output, shape index: {}]  }
   0x1   :  { %s6891_s20 = smov 0  }
   0x2 LB: > { %s34_s21 = sadd.s32 1, %s6851_s19  ;;  %p6528_p0 = scmp.ge.s32.totalorder %s6855_s20, 1  ;;  %s6855_s20 = sphi %s6891_s20, %s15_s20   ;;  %s6851_s19 = sphi %s6889_s19, %s14898_s19   ;;  %s6847_s18 = sphi %s6887_s18, %s14897_s18  }
   0x3   : > { %p36_p1 = scmp.ge.s32.totalorder %s34_s21, 2  ;;  %p318_p2 = scmp.lt.s32.totalorder %s6855_s20, 3 }
   0x5   : > { %s14900_s21 = smov (%p36_p1, %s34_s21), 0  ;;  %p319_p3 = pnand %p6528_p0, %p318_p2 }
   0x7   : > { %322 = sbr.rel (%p319_p3) target bundleno = 1124 (0x464), region = 40 }
   0xc   : > { %p404_p4 = scmp.lt.s32.totalorder %s6847_s18, 1  ;;  %v784_v0 = vlaneseq  ;;  %vm618_vm0 = vcmask 1041408   ;;  %v6910_v2 = vld [vmem:[%s13045_s3] sm:$0x1f]  ;;  %v6923_v4 = vld [vmem:[%s13045_s3 + $0x8] sm:$0x1f] }
   0xd   : > { %v6928_v5 = vld [vmem:[%s13045_s3 + $0x10] sm:$0x1f]  ;;  %v6964_v28 = vld [vmem:[%s13045_s3 + $0x18] sm:$0x1f]  ;;  %vm1224_vm1 = vcmask 1046528   ;;  %vm2445_vm2 = vcmask 1045504  }
   0xe   : > { %s14902_s18 = smov (!%p404_p4, %s6847_s18), 1  ;;  %v785_v1 = vshrl.u32 %v784_v0, 7  ;;  %vm3666_vm3 = vcmask 1044480   ;;  %vm4887_vm4 = vcmask 1043456  }
   0xf   : > { %s6905_s22 = sshll.u32 %s14902_s18, 7  ;;  %s6576_s23 = sshll.u32 %s14902_s18, 9 }
  0x10   : > { %v6912_v3 = vsub.s32 1, %v785_v1  ;;  %s6918_s28 = scalar_lea.vmem %s13042_s0, %s6905_s22  ;;  %v6930_v6 = vsub.s32 0, %v785_v1  ;;  %v6932_v7 = vsub.s32 2, %v785_v1  ;;  %s6937_s10 = scalar_lea.vmem %s13047_s5, %s6576_s23  ;;  %v6954_v14 = vsub.s32 3, %v785_v1 }
  0x11   : > { %v6578_v8 = vld [vmem:[%s6918_s28] sm:$0xff]   ;;  %v6658_v12 = vld [vmem:[%s6918_s28 + $0x8] sm:$0xff]   ;;  %v6659_v13 = vld [vmem:[%s6918_s28 + $0x10] sm:$0xff]   ;;  %v6974_v32 = vsub.s32 4, %v785_v1  ;;  %s433_s15 = scalar_lea.vmem %s13043_s1, %s6905_s22  ;;  %s6575_s9 = sadd.s32 112, %s6905_s22 }
  0x12   : > { %v6942_v9 = vrot.slane %v6910_v2, %v6912_v3  ;;  %v6946_v10 = vrot.slane %v6923_v4, %v6912_v3  ;;  %v6950_v11 = vrot.slane %v6928_v5, %v6912_v3  ;;  %v6579_v15 = vunpack.c.l.bf16 %v6578_v8  ;;  %v6660_v19 = vld [vmem:[%s6918_s28 + $0x18] sm:$0xff]   ;;  %v6661_v41 = vld [vmem:[%s6918_s28 + $0x20] sm:$0xff]   ;;  %v6662_v46 = vld [vmem:[%s6918_s28 + $0x28] sm:$0xff]   ;;  %s12248_s12 = scalar_lea.vmem %s13044_s2, %s6575_s9 }
  0x13   : > { %v6580_v16 = vunpack.c.h.bf16 %v6578_v8  ;;  %v6583_v17 = vunpack.c.l.bf16 %v6658_v12  ;;  %v6584_v18 = vunpack.c.h.bf16 %v6658_v12  ;;  %v6587_v20 = vunpack.c.l.bf16 %v6659_v13  ;;  %v6663_v47 = vld [vmem:[%s6918_s28 + $0x30] sm:$0xff]   ;;  %v6664_v52 = vld [vmem:[%s6918_s28 + $0x38] sm:$0xff]  }
  0x14   : > { %13870 = vst [vmem:[#allocation2_spill] sm:$0xff] %v6942_v9  ;;  %13871 = vst [vmem:[#allocation3_spill] sm:$0xff] %v6946_v10  ;;  %v6588_v21 = vunpack.c.h.bf16 %v6659_v13  ;;  %v6591_v22 = vunpack.c.l.bf16 %v6660_v19  ;;  %v6592_v23 = vunpack.c.h.bf16 %v6660_v19  ;;  %v625_v24 = vrot.slane %v6579_v15, 6  ;;  %v6665_v19 = vld [vmem:[%s6918_s28 + $0x40] sm:$0xff]   ;;  %v6672_v49 = vld [vmem:[%s6918_s28 + $0x78] sm:$0xff]  }
  0x15   : > { %13872 = vst [vmem:[#allocation4_spill] sm:$0xff] %v6950_v11  ;;  %6271 = vst [vmem:[%s6937_s10] sm:$0xff] %v6579_v15  ;;  %v626_v25 = vrot.slane %v6580_v16, 6  ;;  %v628_v26 = vrot.slane %v6583_v17, 6  ;;  %v629_v27 = vrot.slane %v6584_v18, 6  ;;  %v631_v29 = vrot.slane %v6587_v20, 6 }
  0x16   : > { %6272 = vst [vmem:[%s6937_s10 + $0x8] sm:$0xff] %v6580_v16  ;;  %6273 = vst [vmem:[%s6937_s10 + $0x10] sm:$0xff] %v6583_v17  ;;  %v632_v30 = vrot.slane %v6588_v21, 6  ;;  %v6972_v31 = vrot.slane %v6964_v28, %v6912_v3  ;;  %v6977_v33 = vsel %vm618_vm0, 0.0, %v625_v24  ;;  %v634_v35 = vrot.slane %v6591_v22, 6 }
  0x17   : > { %6274 = vst [vmem:[%s6937_s10 + $0x18] sm:$0xff] %v6584_v18  ;;  %6275 = vst [vmem:[%s6937_s10 + $0x20] sm:$0xff] %v6587_v20  ;;  %v6980_v34 = vsel %vm618_vm0, %v626_v25, 0.0  ;;  %v635_v36 = vrot.slane %v6592_v23, 6  ;;  %v6983_v37 = vsel %vm618_vm0, %v625_v24, %v626_v25  ;;  %v6999_v42 = vsel %vm618_vm0, 0.0, %v628_v26  ;;  %v6666_v20 = vld [vmem:[%s6918_s28 + $0x48] sm:$0xff]  }
  0x18   : > { %6276 = vst [vmem:[%s6937_s10 + $0x28] sm:$0xff] %v6588_v21  ;;  %6277 = vst [vmem:[%s6937_s10 + $0x30] sm:$0xff] %v6591_v22  ;;  %v6987_v38 = vmul.f32 %v6942_v9, %v6980_v34  ;;  %v6991_v39 = vmul.f32 %v6946_v10, %v6980_v34  ;;  %v6995_v40 = vmul.f32 %v6950_v11, %v6980_v34  ;;  %v7005_v44 = vsel %vm618_vm0, %v629_v27, 0.0  ;;  %v6667_v25 = vld [vmem:[%s6918_s28 + $0x50] sm:$0xff]  }
  0x19   : > { %6278 = vst [vmem:[%s6937_s10 + $0x38] sm:$0xff] %v6592_v23  ;;  %13873 = vst [vmem:[#allocation5_spill] sm:$0xff] %v6972_v31  ;;  %v7002_v43 = vsel %vm618_vm0, %v628_v26, %v629_v27  ;;  %v7008_v45 = vsel %vm618_vm0, 0.0, %v631_v29  ;;  %v7015_v50 = vsel %vm618_vm0, %v631_v29, %v632_v30  ;;  %v7018_v51 = vsel %vm618_vm0, %v632_v30, 0.0 }
  0x1a   : > { %13874 = vst [vmem:[#allocation6_spill] sm:$0xff] %v6977_v33  ;;  %13875 = vst [vmem:[#allocation7_spill] sm:$0xff] %v6980_v34  ;;  %v7023_v54 = vsel %vm618_vm0, %v634_v35, %v635_v36  ;;  %v6595_v55 = vunpack.c.l.bf16 %v6661_v41  ;;  %v6596_v56 = vunpack.c.h.bf16 %v6661_v41  ;;  %v6599_v57 = vunpack.c.l.bf16 %v6662_v46 }
  0x1b   : > { %13876 = vst [vmem:[#allocation8_spill] sm:$0xff] %v6983_v37  ;;  %13877 = vst [vmem:[#allocation9_spill] sm:$0xff] %v6987_v38  ;;  %v6600_v58 = vunpack.c.h.bf16 %v6662_v46  ;;  %v6603_v59 = vunpack.c.l.bf16 %v6663_v47  ;;  %v6604_v60 = vunpack.c.h.bf16 %v6663_v47  ;;  %v6607_v63 = vunpack.c.l.bf16 %v6664_v52  ;;  %v6668_v47 = vld [vmem:[%s6918_s28 + $0x58] sm:$0xff]  }
  0x1c   : > { %13878 = vst [vmem:[#allocation10_spill] sm:$0xff] %v6991_v39  ;;  %13879 = vst [vmem:[#allocation11_spill] sm:$0xff] %v6999_v42  ;;  %v637_v61 = vrot.slane %v6595_v55, 6  ;;  %v638_v62 = vrot.slane %v6596_v56, 6  ;;  %v6608_v0 = vunpack.c.h.bf16 %v6664_v52  ;;  %v640_v1 = vrot.slane %v6599_v57, 6 }
  0x1d   : > { %13880 = vst [vmem:[#allocation12_spill] sm:$0xff] %v7002_v43  ;;  %13881 = vst [vmem:[#allocation13_spill] sm:$0xff] %v7005_v44  ;;  %v641_v8 = vrot.slane %v6600_v58, 6  ;;  %v643_v12 = vrot.slane %v6603_v59, 6  ;;  %v644_v13 = vrot.slane %v6604_v60, 6  ;;  %v7032_v15 = vsel %vm618_vm0, 0.0, %v634_v35 }
  0x1e   : > { %13882 = vst [vmem:[#allocation14_spill] sm:$0xff] %v7008_v45  ;;  %13883 = vst [vmem:[#allocation15_spill] sm:$0xff] %v7015_v50  ;;  %v7035_v16 = vsel %vm618_vm0, %v635_v36, 0.0  ;;  %v7038_v17 = vsel %vm618_vm0, %v637_v61, %v638_v62  ;;  %v646_v18 = vrot.slane %v6607_v63, 6  ;;  %v7045_v21 = vsel %vm618_vm0, 0.0, %v637_v61 }
  0x1f   : > { %13884 = vst [vmem:[#allocation16_spill] sm:$0xff] %v7018_v51  ;;  %13885 = vst [vmem:[#allocation17_spill] sm:$0xff] %v7023_v54  ;;  %v7048_v22 = vsel %vm618_vm0, %v638_v62, 0.0  ;;  %v7051_v23 = vsel %vm618_vm0, 0.0, %v640_v1  ;;  %v7054_v24 = vsel %vm618_vm0, %v640_v1, %v641_v8  ;;  %v7058_v26 = vsel %vm618_vm0, %v641_v8, 0.0  ;;  %v6669_v8 = vld [vmem:[%s6918_s28 + $0x60] sm:$0xff]  }
  0x20   : > { %6279 = vst [vmem:[%s6937_s10 + $0x40] sm:$0xff] %v6595_v55  ;;  %6280 = vst [vmem:[%s6937_s10 + $0x48] sm:$0xff] %v6596_v56  ;;  %v7061_v27 = vsel %vm618_vm0, 0.0, %v643_v12  ;;  %v7064_v29 = vsel %vm618_vm0, %v643_v12, %v644_v13  ;;  %v647_v30 = vrot.slane %v6608_v0, 6  ;;  %v6611_v35 = vunpack.c.l.bf16 %v6665_v19 }
  0x21   : > { %6281 = vst [vmem:[%s6937_s10 + $0x50] sm:$0xff] %v6599_v57  ;;  %6282 = vst [vmem:[%s6937_s10 + $0x58] sm:$0xff] %v6600_v58  ;;  %v6612_v36 = vunpack.c.h.bf16 %v6665_v19  ;;  %v6615_v41 = vunpack.c.l.bf16 %v6666_v20  ;;  %v6616_v46 = vunpack.c.h.bf16 %v6666_v20  ;;  %v7068_v52 = vsel %vm618_vm0, %v644_v13, 0.0 }
  0x22   : > { %6283 = vst [vmem:[%s6937_s10 + $0x60] sm:$0xff] %v6603_v59  ;;  %6284 = vst [vmem:[%s6937_s10 + $0x68] sm:$0xff] %v6604_v60  ;;  %v7071_v55 = vsel %vm618_vm0, %v646_v18, %v647_v30  ;;  %v6619_v56 = vunpack.c.l.bf16 %v6667_v25  ;;  %v6620_v57 = vunpack.c.h.bf16 %v6667_v25  ;;  %v649_v58 = vrot.slane %v6611_v35, 6  ;;  %v6670_v25 = vld [vmem:[%s6918_s28 + $0x68] sm:$0xff]  }
  0x23   : > { %13886 = vst [vmem:[#allocation18_spill] sm:$0xff] %v7032_v15  ;;  %13887 = vst [vmem:[#allocation19_spill] sm:$0xff] %v7035_v16  ;;  %v650_v59 = vrot.slane %v6612_v36, 6  ;;  %v652_v60 = vrot.slane %v6615_v41, 6  ;;  %v653_v61 = vrot.slane %v6616_v46, 6  ;;  %v6624_v1 = vunpack.c.h.bf16 %v6668_v47 }
  0x24   : > { %13888 = vst [vmem:[#allocation20_spill] sm:$0xff] %v7038_v17  ;;  %6285 = vst [vmem:[%s6937_s10 + $0x70] sm:$0xff] %v6607_v63  ;;  %v655_v62 = vrot.slane %v6619_v56, 6  ;;  %v656_v63 = vrot.slane %v6620_v57, 6  ;;  %v7081_v12 = vsel %vm618_vm0, 0.0, %v646_v18  ;;  %v7084_v13 = vsel %vm618_vm0, %v647_v30, 0.0 }
  0x25   : > { %6286 = vst [vmem:[%s6937_s10 + $0x78] sm:$0xff] %v6608_v0  ;;  %13889 = vst [vmem:[#allocation21_spill] sm:$0xff] %v7045_v21  ;;  %v6623_v0 = vunpack.c.l.bf16 %v6668_v47  ;;  %v7087_v19 = vsel %vm618_vm0, 0.0, %v649_v58  ;;  %v7090_v20 = vsel %vm618_vm0, %v649_v58, %v650_v59  ;;  %v7101_v18 = vsel %vm618_vm0, %v652_v60, %v653_v61 }
  0x26   : > { %13890 = vst [vmem:[#allocation22_spill] sm:$0xff] %v7048_v22  ;;  %13891 = vst [vmem:[#allocation23_spill] sm:$0xff] %v7051_v23  ;;  %v7104_v30 = vsel %vm618_vm0, %v655_v62, %v656_v63  ;;  %v6628_v58 = vunpack.c.h.bf16 %v6669_v8  ;;  %v6632_v48 = vunpack.c.h.bf16 %v6670_v25  ;;  %v7117_v53 = vsel %vm618_vm0, 0.0, %v655_v62 }
  0x27   : > { %13892 = vst [vmem:[#allocation24_spill] sm:$0xff] %v7054_v24  ;;  %13893 = vst [vmem:[#allocation25_spill] sm:$0xff] %v7058_v26  ;;  %v658_v47 = vrot.slane %v6623_v0, 6  ;;  %v7343_v54 = vrot.slane %v6910_v2, %v6954_v14 }
  0x28   : > { %13894 = vst [vmem:[#allocation26_spill] sm:$0xff] %v7061_v27  ;;  %13895 = vst [vmem:[#allocation27_spill] sm:$0xff] %v7064_v29 }
  0x29   : > { %13896 = vst [vmem:[#allocation28_spill] sm:$0xff] %v7068_v52  ;;  %13897 = vst [vmem:[#allocation29_spill] sm:$0xff] %v7071_v55  ;;  %v1617_v55 = vmul.f32 %v6950_v11, %v6977_v33 }
  0x2a   : > { %6287 = vst [vmem:[%s6937_s10 + $0x80] sm:$0xff] %v6611_v35  ;;  %6288 = vst [vmem:[%s6937_s10 + $0x88] sm:$0xff] %v6612_v36  ;;  %v6671_v35 = vld [vmem:[%s6918_s28 + $0x70] sm:$0xff]   ;;  %v7095_v36 = vsel %vm618_vm0, %v650_v59, 0.0  ;;  %v6631_v59 = vunpack.c.l.bf16 %v6670_v25  ;;  %v662_v25 = vrot.slane %v6628_v58, 6 }
  0x2b   : > { %6289 = vst [vmem:[%s6937_s10 + $0x90] sm:$0xff] %v6615_v41  ;;  %6290 = vst [vmem:[%s6937_s10 + $0x98] sm:$0xff] %v6616_v46  ;;  %v7098_v41 = vsel %vm618_vm0, 0.0, %v652_v60  ;;  %v7109_v46 = vsel %vm618_vm0, %v653_v61, 0.0  ;;  %v6635_v60 = vunpack.c.l.bf16 %v6671_v35  ;;  %v7120_v61 = vsel %vm618_vm0, %v656_v63, 0.0 }
  0x2c   : > { %6291 = vst [vmem:[%s6937_s10 + $0xa0] sm:$0xff] %v6619_v56  ;;  %6292 = vst [vmem:[%s6937_s10 + $0xa8] sm:$0xff] %v6620_v57  ;;  %v659_v56 = vrot.slane %v6624_v1, 6  ;;  %v6627_v57 = vunpack.c.l.bf16 %v6669_v8  ;;  %v7127_v8 = vsel %vm618_vm0, 0.0, %v658_v47  ;;  %v6636_v63 = vunpack.c.h.bf16 %v6671_v35 }
  0x2d   : > { %13898 = vst [vmem:[#allocation30_spill] sm:$0xff] %v7081_v12  ;;  %13899 = vst [vmem:[#allocation31_spill] sm:$0xff] %v7084_v13  ;;  %v667_v62 = vrot.slane %v6635_v60, 6 }
  0x2e   : > { %13900 = vst [vmem:[#allocation32_spill] sm:$0xff] %v7087_v19  ;;  %13901 = vst [vmem:[#allocation33_spill] sm:$0xff] %v7090_v20 }
  0x2f   : > { %13902 = vst [vmem:[#allocation34_spill] sm:$0xff] %v7095_v36  ;;  %13903 = vst [vmem:[#allocation35_spill] sm:$0xff] %v7098_v41 }
  0x30   : > { %13904 = vst [vmem:[#allocation36_spill] sm:$0xff] %v7101_v18  ;;  %13905 = vst [vmem:[#allocation37_spill] sm:$0xff] %v7104_v30  ;;  %v664_v30 = vrot.slane %v6631_v59, 6  ;;  %v6673_v18 = vld [vmem:[%s433_s15 + $0x8] sm:$0xff]  }
  0x31   : > { %6293 = vst [vmem:[%s6937_s10 + $0xb0] sm:$0xff] %v6623_v0  ;;  %6294 = vst [vmem:[%s6937_s10 + $0xb8] sm:$0xff] %v6624_v1  ;;  %v7123_v0 = vsel %vm618_vm0, %v658_v47, %v659_v56  ;;  %v661_v1 = vrot.slane %v6627_v57, 6 }
  0x32   : > { %13906 = vst [vmem:[#allocation38_spill] sm:$0xff] %v7109_v46  ;;  %13907 = vst [vmem:[#allocation39_spill] sm:$0xff] %v7117_v53  ;;  %v665_v46 = vrot.slane %v6632_v48, 6  ;;  %v6640_v53 = vunpack.c.h.bf16 %v6672_v49  ;;  %v7149_v35 = vsel %vm618_vm0, 0.0, %v664_v30 }
  0x33   : > { %13908 = vst [vmem:[#allocation40_spill] sm:$0xff] %v7120_v61  ;;  %13909 = vst [vmem:[#allocation41_spill] sm:$0xff] %v7123_v0  ;;  %v6639_v61 = vunpack.c.l.bf16 %v6672_v49  ;;  %v6642_v0 = vld [vmem:[%s433_s15] sm:$0xff]   ;;  %v7137_v47 = vsel %vm618_vm0, 0.0, %v661_v1  ;;  %v668_v49 = vrot.slane %v6636_v63, 6 }
  0x34   : > { %6295 = vst [vmem:[%s6937_s10 + $0xc0] sm:$0xff] %v6627_v57  ;;  %13910 = vst [vmem:[#allocation42_spill] sm:$0xff] %v7127_v8  ;;  %v7134_v57 = vsel %vm618_vm0, %v659_v56, 0.0  ;;  %v671_v56 = vrot.slane %v6640_v53, 6  ;;  %v6647_v8 = vunpack.c.l.bf16 %v6673_v18 }
  0x35   : > { %6296 = vst [vmem:[%s6937_s10 + $0xc8] sm:$0xff] %v6628_v58  ;;  %6297 = vst [vmem:[%s6937_s10 + $0xd0] sm:$0xff] %v6631_v59  ;;  %v7140_v58 = vsel %vm618_vm0, %v661_v1, %v662_v25  ;;  %v7146_v59 = vsel %vm618_vm0, %v662_v25, 0.0  ;;  %v7155_v1 = vsel %vm618_vm0, %v665_v46, 0.0  ;;  %v7161_v25 = vsel %vm618_vm0, %v667_v62, %v668_v49 }
  0x36   : > { %6298 = vst [vmem:[%s6937_s10 + $0xd8] sm:$0xff] %v6632_v48  ;;  %6299 = vst [vmem:[%s6937_s10 + $0xe0] sm:$0xff] %v6635_v60  ;;  %v7143_v48 = vsel %vm618_vm0, %v664_v30, %v665_v46  ;;  %v670_v60 = vrot.slane %v6639_v61, 6  ;;  %v6648_v30 = vunpack.c.h.bf16 %v6673_v18 }
  0x37   : > { %13911 = vst [vmem:[#allocation43_spill] sm:$0xff] %v7134_v57  ;;  %13912 = vst [vmem:[#allocation44_spill] sm:$0xff] %v7137_v47  ;;  %v6643_v57 = vunpack.c.l.bf16 %v6642_v0  ;;  %v6644_v47 = vunpack.c.h.bf16 %v6642_v0  ;;  %v563_v0 = vmul.f32 0.0, %v6647_v8 }
  0x38   : > { %13913 = vst [vmem:[#allocation45_spill] sm:$0xff] %v7140_v58  ;;  %13914 = vst [vmem:[#allocation46_spill] sm:$0xff] %v7143_v48  ;;  %v7158_v48 = vsel %vm618_vm0, 0.0, %v667_v62  ;;  %v7172_v46 = vsel %vm618_vm0, 0.0, %v670_v60  ;;  %v7178_v62 = vrot.slane %v6910_v2, %v6930_v6 }
  0x39   : > { %13915 = vst [vmem:[#allocation47_spill] sm:$0xff] %v7146_v59  ;;  %13916 = vst [vmem:[#allocation48_spill] sm:$0xff] %v7149_v35  ;;  %v7164_v35 = vsel %vm618_vm0, %v668_v49, 0.0  ;;  %v622_v8 = vrot.slane %v563_v0, 6 }
  0x3a   : > { %6300 = vst [vmem:[%s6937_s10 + $0xe8] sm:$0xff] %v6636_v63  ;;  %6301 = vst [vmem:[%s6937_s10 + $0xf0] sm:$0xff] %v6639_v61  ;;  %v7167_v61 = vsel %vm618_vm0, %v670_v60, %v671_v56  ;;  %v7169_v63 = vmul.f32 0.0, %v6644_v47  ;;  %v7190_v47 = vsel %vm618_vm0, %v671_v56, 0.0 }
  0x3b   : > { %6302 = vst [vmem:[%s6937_s10 + $0xf8] sm:$0xff] %v6640_v53  ;;  %13917 = vst [vmem:[#allocation49_spill] sm:$0xff] %v7155_v1  ;;  %v561_v53 = vmul.f32 0.0, %v6643_v57  ;;  %v7174_v1 = vmul.f32 0.0, %v6648_v30  ;;  %v7187_v57 = vrot.slane %v6928_v5, %v6930_v6  ;;  %v7196_v30 = vld [vmem:[%s13045_s3 + $0x20] sm:$0x1f] }
  0x3c   : > { %13918 = vst [vmem:[#allocation50_spill] sm:$0xff] %v7158_v48  ;;  %13919 = vst [vmem:[#allocation51_spill] sm:$0xff] %v7161_v25  ;;  %v13065_v49 = vrot.slane %v7169_v63, 6  ;;  %v7220_v25 = vsel %vm618_vm0, 0.0, %v622_v8 }
  0x3d   : > { %13920 = vst [vmem:[#allocation52_spill] sm:$0xff] %v7164_v35  ;;  %13921 = vst [vmem:[#allocation53_spill] sm:$0xff] %v7167_v61  ;;  %v619_v18 = vrot.slane %v561_v53, 6  ;;  %v7183_v61 = vrot.slane %v6923_v4, %v6930_v6  ;;  %v7200_v53 = vrot.slane %v6964_v28, %v6930_v6  ;;  %v924_v0 = vmul.f32 %v7187_v57, %v6977_v33 }
  0x3e   : > { %13922 = vst [vmem:[#allocation54_spill] sm:$0xff] %v7172_v46  ;;  %13923 = vst [vmem:[#allocation55_spill] sm:$0xff] %v7178_v62  ;;  %v925_v60 = vmul.f32 %v7187_v57, %v6983_v37  ;;  %v1373_v36 = vmul.f32 %v6946_v10, %v7220_v25 }
  0x3f   : > { %13924 = vst [vmem:[#allocation56_spill] sm:$0xff] %v7183_v61  ;;  %13925 = vst [vmem:[#allocation57_spill] sm:$0xff] %v7187_v57  ;;  %v7205_v46 = vsel %vm618_vm0, %v619_v18, %v13065_v49  ;;  %v7208_v56 = vsel %vm618_vm0, 0.0, %v619_v18  ;;  %v856_v48 = vmul.f32 %v7183_v61, %v7220_v25  ;;  %v992_v58 = vmul.f32 %v7200_v53, %v6999_v42 }
  0x40   : > { %13926 = vst [vmem:[#allocation58_spill] sm:$0xff] %v7190_v47  ;;  %13927 = vst [vmem:[#allocation59_spill] sm:$0xff] %v7200_v53  ;;  %v13928_v47 = vrot.slane %v7174_v1, 6  ;;  %v788_v49 = vmul.f32 %v7178_v62, %v7208_v56  ;;  %v789_v18 = vmul.f32 %v7178_v62, %v7205_v46  ;;  %v7240_v41 = vmul.f32 %v6942_v9, %v7205_v46 }
  0x41   : > { %13930 = vst [vmem:[#allocation61_spill] sm:$0xff] %v7220_v25  ;;  %v1469_v29 = vrot.slane %v1373_v36, 1  ;;  %v1861_v36 = vmul.f32 %v6972_v31, %v6999_v42  ;;  %13938 = vst [vmem:[#allocation69_spill] sm:$0xff] %v7343_v54 }
  0x42   : > { %v7217_v35 = vsel %vm618_vm0, %v622_v8, %v13928_v47  ;;  %v7234_v47 = vrot.slane %v7196_v30, %v6930_v6  ;;  %v1128_v8 = vmul.f32 %v6942_v9, %v7208_v56  ;;  %v888_v19 = vadd.f32 %v856_v48, %v788_v49 }
  0x43   : > { %13929 = vst [vmem:[#allocation60_spill] sm:$0xff] %v7217_v35  ;;  %v857_v59 = vmul.f32 %v7183_v61, %v7217_v35  ;;  %v7246_v20 = vmul.f32 %v6946_v10, %v7217_v35  ;;  %v13082_v52 = vrot.slane %v7240_v41, 1  ;;  %v7258_v48 = vmul.f32 %v6950_v11, %v6983_v37 }
  0x44   : > { %13931 = vst [vmem:[#allocation62_spill] sm:$0xff] %v7234_v47  ;;  %v1060_v6 = vmul.f32 %v7234_v47, %v7008_v45  ;;  %v1225_v12 = vrot.slane %v1128_v8, 1  ;;  %v956_v26 = vadd.f32 %v924_v0, %v888_v19  ;;  %v1957_v0 = vrot.slane %v1861_v36, 1 }
  0x45   : > { %v889_v13 = vadd.f32 %v857_v59, %v789_v18  ;;  %v13081_v27 = vrot.slane %v7246_v20, 1  ;;  %v1713_v59 = vrot.slane %v1617_v55, 1  ;;  %v7275_v55 = vrot.slane %v7196_v30, %v6912_v3 }
  0x46   : > { %v1227_v49 = vsel %vm1224_vm1, %v1225_v12, %v13082_v52  ;;  %v1024_v19 = vadd.f32 %v992_v58, %v956_v26  ;;  %v7279_v12 = vrot.slane %v6910_v2, %v6932_v7  ;;  %v7284_v8 = vrot.slane %v6923_v4, %v6932_v7 }
  0x47   : > { %v7254_v24 = vadd.f32 %v925_v60, %v889_v13  ;;  %v1471_v18 = vsel %vm1224_vm1, %v1469_v29, %v13081_v27  ;;  %v7270_v13 = vmul.f32 %v6972_v31, %v7002_v43  ;;  %v13084_v60 = vrot.slane %v7258_v48, 1  ;;  %13932 = vst [vmem:[#allocation63_spill] sm:$0xff] %v7275_v55 }
  0x48   : > { %13933 = vst [vmem:[#allocation64_spill] sm:$0xff] %v7279_v12  ;;  %13934 = vst [vmem:[#allocation65_spill] sm:$0xff] %v7284_v8  ;;  %v7288_v26 = vrot.slane %v6928_v5, %v6932_v7  ;;  %v1092_v58 = vadd.f32 %v1060_v6, %v1024_v19  ;;  %v2105_v27 = vmul.f32 %v7275_v55, %v7008_v45 }
  0x49   : > { %v13087_v29 = vrot.slane %v7270_v13, 1  ;;  %v1715_v3 = vsel %vm1224_vm1, %v1713_v59, %v13084_v60  ;;  %v7297_v36 = vmul.f32 %v7275_v55, %v7015_v50  ;;  %v2349_v23 = vmul.f32 %v7279_v12, %v7208_v56 }
  0x4a   : > { %13935 = vst [vmem:[#allocation66_spill] sm:$0xff] %v7288_v26  ;;  %v7306_v6 = vmul.f32 %v7279_v12, %v7205_v46  ;;  %v2594_v59 = vmul.f32 %v7284_v8, %v7220_v25  ;;  %v1337_v19 = vadd.f32 %v1227_v49, %v1092_v58  ;;  %v2201_v60 = vrot.slane %v2105_v27, 1 }
  0x4b   : > { %v1959_v52 = vsel %vm1224_vm1, %v1957_v0, %v13087_v29  ;;  %v13092_v22 = vrot.slane %v7297_v36, 1  ;;  %v7313_v38 = vmul.f32 %v7284_v8, %v7217_v35  ;;  %v2446_v0 = vrot.slane %v2349_v23, 2 }
  0x4c   : > { %v13095_v29 = vrot.slane %v7306_v6, 2  ;;  %v2690_v17 = vrot.slane %v2594_v59, 2  ;;  %v2838_v21 = vmul.f32 %v7288_v26, %v6977_v33  ;;  %v1581_v16 = vadd.f32 %v1471_v18, %v1337_v19 }
  0x4d   : > { %v2203_v39 = vsel %vm1224_vm1, %v2201_v60, %v13092_v22  ;;  %v13094_v27 = vrot.slane %v7313_v38, 2  ;;  %v7324_v49 = vmul.f32 %v7288_v26, %v6983_v37  ;;  %v7331_v59 = vrot.slane %v6964_v28, %v6932_v7 }
  0x4e   : > { %v2448_v23 = vsel %vm2445_vm2, %v2446_v0, %v13095_v29  ;;  %v2934_v58 = vrot.slane %v2838_v21, 2  ;;  %v7335_v18 = vrot.slane %v7196_v30, %v6932_v7  ;;  %v1825_v60 = vadd.f32 %v1715_v3, %v1581_v16 }
  0x4f   : > { %13936 = vst [vmem:[#allocation67_spill] sm:$0xff] %v7331_v59  ;;  %v2692_v19 = vsel %vm2445_vm2, %v2690_v17, %v13094_v27  ;;  %v13110_v22 = vrot.slane %v7324_v49, 2  ;;  %v3082_v21 = vmul.f32 %v7331_v59, %v6999_v42  ;;  %v7349_v0 = vmul.f32 %v7331_v59, %v7002_v43 }
  0x50   : > { %13937 = vst [vmem:[#allocation68_spill] sm:$0xff] %v7335_v18  ;;  %v3326_v7 = vmul.f32 %v7335_v18, %v7008_v45  ;;  %v7355_v16 = vmul.f32 %v7335_v18, %v7015_v50  ;;  %v2069_v17 = vadd.f32 %v1959_v52, %v1825_v60  ;;  %v3570_v27 = vmul.f32 %v7343_v54, %v7208_v56 }
  0x51   : > { %13939 = vst [vmem:[#allocation70_spill] sm:$0xff] %v7349_v0  ;;  %v2936_v3 = vsel %vm2445_vm2, %v2934_v58, %v13110_v22  ;;  %v7364_v29 = vmul.f32 %v7343_v54, %v7205_v46  ;;  %v3178_v11 = vrot.slane %v3082_v21, 2  ;;  %v13107_v15 = vrot.slane %v7349_v0, 2 }
  0x52   : > { %13940 = vst [vmem:[#allocation71_spill] sm:$0xff] %v7355_v16  ;;  %v3422_v57 = vrot.slane %v3326_v7, 2  ;;  %v13108_v61 = vrot.slane %v7355_v16, 2  ;;  %v2313_v62 = vadd.f32 %v2203_v39, %v2069_v17  ;;  %v3667_v18 = vrot.slane %v3570_v27, 3 }
  0x53   : > { %13941 = vst [vmem:[#allocation72_spill] sm:$0xff] %v7364_v29  ;;  %v13109_v52 = vrot.slane %v7364_v29, 3  ;;  %v7371_v58 = vrot.slane %v6923_v4, %v6954_v14  ;;  %v3180_v60 = vsel %vm2445_vm2, %v3178_v11, %v13107_v15  ;;  %v7381_v7 = vrot.slane %v6928_v5, %v6954_v14 }
  0x54   : > { %v3424_v21 = vsel %vm2445_vm2, %v3422_v57, %v13108_v61  ;;  %v7385_v39 = vrot.slane %v6964_v28, %v6954_v14  ;;  %v2558_v27 = vadd.f32 %v2448_v23, %v2313_v62  ;;  %v7411_v29 = vrot.slane %v7196_v30, %v6954_v14 }
  0x55   : > { %13942 = vst [vmem:[#allocation73_spill] sm:$0xff] %v7371_v58  ;;  %13943 = vst [vmem:[#allocation74_spill] sm:$0xff] %v7381_v7  ;;  %v3669_v17 = vsel %vm3666_vm3, %v3667_v18, %v13109_v52  ;;  %v3815_v11 = vmul.f32 %v7371_v58, %v7220_v25  ;;  %v7394_v15 = vmul.f32 %v7371_v58, %v7217_v35 }
  0x56   : > { %13944 = vst [vmem:[#allocation75_spill] sm:$0xff] %v7385_v39  ;;  %v4059_v57 = vmul.f32 %v7381_v7, %v6977_v33  ;;  %v7400_v61 = vmul.f32 %v7381_v7, %v6983_v37  ;;  %v4303_v62 = vmul.f32 %v7385_v39, %v6999_v42  ;;  %v7406_v23 = vmul.f32 %v7385_v39, %v7002_v43 }
  0x57   : > { %v2802_v18 = vadd.f32 %v2692_v19, %v2558_v27  ;;  %v3911_v52 = vrot.slane %v3815_v11, 3  ;;  %v13122_v22 = vrot.slane %v7394_v15, 3  ;;  %13945 = vst [vmem:[#allocation76_spill] sm:$0xff] %v7411_v29  ;;  %v4547_v19 = vmul.f32 %v7411_v29, %v7008_v45 }
  0x58   : > { %v4155_v16 = vrot.slane %v4059_v57, 3  ;;  %v13124_v0 = vrot.slane %v7400_v61, 3  ;;  %v4399_v7 = vrot.slane %v4303_v62, 3  ;;  %v13123_v58 = vrot.slane %v7406_v23, 3 }
  0x59   : > { %v3046_v54 = vadd.f32 %v2936_v3, %v2802_v18  ;;  %v3913_v39 = vsel %vm3666_vm3, %v3911_v52, %v13122_v22  ;;  %v7422_v27 = vmul.f32 %v7411_v29, %v7015_v50  ;;  %v7432_v3 = vrot.slane %v6910_v2, %v6974_v32 }
  0x5a   : > { %v4157_v14 = vsel %vm3666_vm3, %v4155_v16, %v13124_v0  ;;  %v4401_v11 = vsel %vm3666_vm3, %v4399_v7, %v13123_v58  ;;  %v7436_v52 = vrot.slane %v6923_v4, %v6974_v32  ;;  %v4643_v62 = vrot.slane %v4547_v19, 3 }
  0x5b   : > { %13946 = vst [vmem:[#allocation77_spill] sm:$0xff] %v7432_v3  ;;  %v3290_v57 = vadd.f32 %v3180_v60, %v3046_v54  ;;  %v13132_v18 = vrot.slane %v7422_v27, 3  ;;  %v7441_v22 = vrot.slane %v6928_v5, %v6974_v32  ;;  %v4791_v16 = vmul.f32 %v7432_v3, %v7208_v56 }
  0x5c   : > { %v7447_v7 = vmul.f32 %v7432_v3, %v7205_v46  ;;  %v5036_v2 = vmul.f32 %v7436_v52, %v7220_v25  ;;  %v7453_v4 = vmul.f32 %v7436_v52, %v7217_v35 }
  0x5d   : > { %v3534_v54 = vadd.f32 %v3424_v21, %v3290_v57  ;;  %v4645_v5 = vsel %vm3666_vm3, %v4643_v62, %v13132_v18  ;;  %v5280_v60 = vmul.f32 %v7441_v22, %v6977_v33  ;;  %v7462_v56 = vmul.f32 %v7441_v22, %v6983_v37 }
  0x5e   : > { %v4888_v46 = vrot.slane %v4791_v16, 4  ;;  %v13131_v19 = vrot.slane %v7447_v7, 4  ;;  %v5132_v58 = vrot.slane %v5036_v2, 4  ;;  %v13130_v0 = vrot.slane %v7453_v4, 4 }
  0x5f   : > { %v3779_v35 = vadd.f32 %v3669_v17, %v3534_v54  ;;  %v5376_v25 = vrot.slane %v5280_v60, 4  ;;  %v13129_v21 = vrot.slane %v7462_v56, 4  ;;  %v7469_v57 = vrot.slane %v6964_v28, %v6974_v32 }
  0x60   : > { %v4890_v62 = vsel %vm4887_vm4, %v4888_v46, %v13131_v19  ;;  %v5134_v16 = vsel %vm4887_vm4, %v5132_v58, %v13130_v0  ;;  %v7479_v2 = vrot.slane %v7196_v30, %v6974_v32  ;;  %v13949_v17 = vrot.slane %v7169_v63, 6 }
  0x61   : > { %13947 = vst [vmem:[#allocation78_spill] sm:$0xff] %v7469_v57  ;;  %v4023_v60 = vadd.f32 %v3913_v39, %v3779_v35  ;;  %v5378_v28 = vsel %vm4887_vm4, %v5376_v25, %v13129_v21  ;;  %v5524_v46 = vmul.f32 %v7469_v57, %v6999_v42  ;;  %v7493_v58 = vmul.f32 %v7469_v57, %v7002_v43 }
  0x62   : > { %13948 = vst [vmem:[#allocation79_spill] sm:$0xff] %v7479_v2  ;;  %v7484_v54 = vsel %vm618_vm0, %v13949_v17, 0.0  ;;  %v5768_v32 = vmul.f32 %v7479_v2, %v7008_v45  ;;  %v7499_v63 = vmul.f32 %v7479_v2, %v7015_v50  ;;  %v13950_v35 = vrot.slane %v7174_v1, 6 }
  0x63   : > { %v993_v25 = vmul.f32 %v7200_v53, %v7002_v43  ;;  %v4267_v39 = vadd.f32 %v4157_v14, %v4023_v60  ;;  %v5620_v17 = vrot.slane %v5524_v46, 4  ;;  %v13139_v21 = vrot.slane %v7493_v58, 4 }
  0x64   : > { %v7504_v30 = vsel %vm618_vm0, %v13950_v35, 0.0  ;;  %v1061_v0 = vmul.f32 %v7234_v47, %v7015_v50  ;;  %v5864_v19 = vrot.slane %v5768_v32, 4  ;;  %v13140_v18 = vrot.slane %v7499_v63, 4 }
  0x65   : > { %v1025_v37 = vadd.f32 %v993_v25, %v7254_v24  ;;  %v1130_v1 = vmul.f32 %v6942_v9, %v7484_v54  ;;  %v4511_v35 = vadd.f32 %v4401_v11, %v4267_v39  ;;  %v5622_v43 = vsel %vm4887_vm4, %v5620_v17, %v13139_v21 }
  0x66   : > { %v1375_v14 = vmul.f32 %v6946_v10, %v7504_v30  ;;  %v13951_v60 = vrot.slane %v6995_v40, 1  ;;  %v13952_v46 = vrot.slane %v7258_v48, 1  ;;  %v5866_v24 = vsel %vm4887_vm4, %v5864_v19, %v13140_v18 }
  0x67   : > { %v1093_v25 = vadd.f32 %v1061_v0, %v1025_v37  ;;  %v1228_v50 = vrot.slane %v1130_v1, 1  ;;  %v1863_v11 = vmul.f32 %v6972_v31, %v7005_v44  ;;  %v4755_v39 = vadd.f32 %v4645_v5, %v4511_v35 }
  0x68   : > { %v1717_v32 = vsel %vm1224_vm1, %v13952_v46, %v13951_v60  ;;  %v1472_v17 = vrot.slane %v1375_v14, 1  ;;  %v2107_v21 = vmul.f32 %v7275_v55, %v7018_v51  ;;  %v2351_v40 = vmul.f32 %v7279_v12, %v7484_v54 }
  0x69   : > { %v13953_v48 = vrot.slane %v7240_v41, 1  ;;  %v1960_v46 = vrot.slane %v1863_v11, 1  ;;  %v2596_v37 = vmul.f32 %v7284_v8, %v7504_v30  ;;  %v2840_v0 = vmul.f32 %v7288_v26, %v6980_v34 }
  0x6a   : > { %v5000_v19 = vadd.f32 %v4890_v62, %v4755_v39  ;;  %v13954_v1 = vrot.slane %v7246_v20, 1  ;;  %v2204_v14 = vrot.slane %v2107_v21, 1  ;;  %v13955_v18 = vrot.slane %v7270_v13, 1  ;;  %v13960_v39 = vld [vmem:[#allocation68_spill] sm:$0xff] }
  0x6b   : > { %v1229_v60 = vsel %vm1224_vm1, %v13953_v48, %v1228_v50  ;;  %v2449_v12 = vrot.slane %v2351_v40, 2  ;;  %v2693_v50 = vrot.slane %v2596_v37, 2  ;;  %v2937_v11 = vrot.slane %v2840_v0, 2 }
  0x6c   : > { %v1338_v5 = vadd.f32 %v1229_v60, %v1093_v25  ;;  %v1473_v35 = vsel %vm1224_vm1, %v13954_v1, %v1472_v17  ;;  %v1961_v41 = vsel %vm1224_vm1, %v13955_v18, %v1960_v46  ;;  %v5244_v48 = vadd.f32 %v5134_v16, %v5000_v19  ;;  %v13961_v60 = vld [vmem:[#allocation69_spill] sm:$0xff] }
  0x6d   : > { %v13956_v8 = vrot.slane %v7297_v36, 1  ;;  %v3084_v62 = vmul.f32 %v7331_v59, %v7005_v44  ;;  %v13957_v20 = vrot.slane %v7306_v6, 2  ;;  %v13958_v13 = vrot.slane %v7313_v38, 2  ;;  %v13963_v38 = vld [vmem:[#allocation74_spill] sm:$0xff] }
  0x6e   : > { %v1582_v55 = vadd.f32 %v1473_v35, %v1338_v5  ;;  %v13959_v25 = vrot.slane %v7324_v49, 2  ;;  %v3328_v36 = vmul.f32 %v13960_v39, %v7018_v51  ;;  %v5488_v17 = vadd.f32 %v5378_v28, %v5244_v48  ;;  %v13964_v49 = vld [vmem:[#allocation75_spill] sm:$0xff]  ;;  %v13965_v35 = vld [vmem:[#allocation70_spill] sm:$0xff] }
  0x6f   : > { %v2205_v26 = vsel %vm1224_vm1, %v13956_v8, %v2204_v14  ;;  %v2450_v21 = vsel %vm2445_vm2, %v13957_v20, %v2449_v12  ;;  %v2694_v18 = vsel %vm2445_vm2, %v13958_v13, %v2693_v50  ;;  %v3181_v40 = vrot.slane %v3084_v62, 2  ;;  %v13962_v12 = vld [vmem:[#allocation73_spill] sm:$0xff]  ;;  %v13967_v50 = vld [vmem:[#allocation71_spill] sm:$0xff] }
  0x70   : > { %v2938_v16 = vsel %vm2445_vm2, %v13959_v25, %v2937_v11  ;;  %v1826_v8 = vadd.f32 %v1717_v32, %v1582_v55  ;;  %v3572_v46 = vmul.f32 %v13961_v60, %v7484_v54  ;;  %v3425_v6 = vrot.slane %v3328_v36, 2  ;;  %v7577_v32 = vld [vmem:[%s13046_s4] ss:$0 sm:$0xff] }
  0x71   : > { %v3817_v37 = vmul.f32 %v13962_v12, %v7504_v30  ;;  %v4061_v0 = vmul.f32 %v13963_v38, %v6980_v34  ;;  %v4305_v19 = vmul.f32 %v13964_v49, %v7005_v44  ;;  %v5732_v5 = vadd.f32 %v5622_v43, %v5488_v17 }
  0x72   : > { %v2070_v1 = vadd.f32 %v1961_v41, %v1826_v8  ;;  %v13966_v14 = vrot.slane %v13965_v35, 2  ;;  %v3670_v28 = vrot.slane %v3572_v46, 3  ;;  %v13968_v11 = vrot.slane %v13967_v50, 2  ;;  %v13969_v41 = vld [vmem:[#allocation72_spill] sm:$0xff] }
  0x73   : > { %v3914_v62 = vrot.slane %v3817_v37, 3  ;;  %v4158_v20 = vrot.slane %v4061_v0, 3  ;;  %v4402_v13 = vrot.slane %v4305_v19, 3  ;;  %v5976_v25 = vadd.f32 %v5866_v24, %v5732_v5 }
  0x74   : > { %v3182_v55 = vsel %vm2445_vm2, %v13966_v14, %v3181_v40  ;;  %v3426_v48 = vsel %vm2445_vm2, %v13968_v11, %v3425_v6  ;;  %v2314_v43 = vadd.f32 %v2205_v26, %v2070_v1  ;;  %v13970_v36 = vrot.slane %v13969_v41, 3 }
  0x75   : > { %v4549_v8 = vmul.f32 %v7411_v29, %v7018_v51  ;;  %v13971_v40 = vrot.slane %v7394_v15, 3  ;;  %v13972_v35 = vrot.slane %v7400_v61, 3  ;;  %v13973_v37 = vrot.slane %v7406_v23, 3 }
  0x76   : > { %v3671_v17 = vsel %vm3666_vm3, %v13970_v36, %v3670_v28  ;;  %v4793_v26 = vmul.f32 %v7432_v3, %v7484_v54  ;;  %v7601_v0 = vadd.f32 %v7577_v32, %v5976_v25  ;;  %v2559_v19 = vadd.f32 %v2450_v21, %v2314_v43 }
  0x77   : > { %v3915_v46 = vsel %vm3666_vm3, %v13971_v40, %v3914_v62  ;;  %v4159_v6 = vsel %vm3666_vm3, %v13972_v35, %v4158_v20  ;;  %v7596_v24 = vsel %vm3666_vm3, %v13973_v37, %v4402_v13  ;;  %v4646_v5 = vrot.slane %v4549_v8, 3  ;;  %v13978_v8 = vld [vmem:[#allocation55_spill] sm:$0xff] }
  0x78   : > { %v5038_v15 = vmul.f32 %v7436_v52, %v7504_v30  ;;  %v4891_v1 = vrot.slane %v4793_v26, 4  ;;  %v5282_v61 = vmul.f32 %v7441_v22, %v6980_v34  ;;  %v5526_v23 = vmul.f32 %v7469_v57, %v7005_v44 }
  0x79   : > { %v5770_v14 = vmul.f32 %v7479_v2, %v7018_v51  ;;  %v6538_v54 = vmul.f32 -1.442695, %v7601_v0  ;;  %v2803_v28 = vadd.f32 %v2694_v18, %v2559_v19  ;;  %v13974_v50 = vrot.slane %v7422_v27, 3  ;;  %v13977_v27 = vld [vmem:[#allocation61_spill] sm:$0xff]  ;;  %v13982_v19 = vld [vmem:[#allocation56_spill] sm:$0xff] }
  0x7a   : > { %v5135_v11 = vrot.slane %v5038_v15, 4  ;;  %v13975_v62 = vrot.slane %v7447_v7, 4  ;;  %v5379_v13 = vrot.slane %v5282_v61, 4  ;;  %v5623_v25 = vrot.slane %v5526_v23, 4  ;;  %v13984_v23 = vld [vmem:[#allocation18_spill] sm:$0xff] }
  0x7b   : > { %v7615_v21 = vsel %vm3666_vm3, %v13974_v50, %v4646_v5  ;;  %v5867_v43 = vrot.slane %v5770_v14, 4  ;;  %6699 = vpow2.f32 %v6538_v54  ;;  %v3047_v41 = vadd.f32 %v2938_v16, %v2803_v28  ;;  %v13985_v54 = vld [vmem:[#allocation60_spill] sm:$0xff] }
  0x7c   : > { %v7620_v20 = vsel %vm4887_vm4, %v13975_v62, %v4891_v1  ;;  %v13976_v36 = vrot.slane %v7453_v4, 4  ;;  %v790_v40 = vmul.f32 %v13978_v8, %v13977_v27  ;;  %v13979_v35 = vrot.slane %v7462_v56, 4  ;;  %v13983_v1 = vld [vmem:[#allocation57_spill] sm:$0xff] }
  0x7d   : > { %v13980_v37 = vrot.slane %v7493_v58, 4  ;;  %v13981_v16 = vrot.slane %v7499_v63, 4  ;;  %v858_v5 = vmul.f32 %v13982_v19, %v6977_v33  ;;  %v3291_v15 = vadd.f32 %v3182_v55, %v3047_v41 }
  0x7e   : > { %v7625_v18 = vsel %vm4887_vm4, %v13976_v36, %v5135_v11  ;;  %v7632_v7 = vsel %vm4887_vm4, %v13979_v35, %v5379_v13  ;;  %v926_v56 = vmul.f32 %v13983_v1, %v6999_v42  ;;  %v994_v61 = vmul.f32 %v7200_v53, %v7008_v45  ;;  %v13987_v11 = vld [vmem:[#allocation8_spill] sm:$0xff] }
  0x7f   : > { %v7637_v26 = vsel %vm4887_vm4, %v13980_v37, %v5623_v25  ;;  %v7642_v4 = vsel %vm4887_vm4, %v13981_v16, %v5867_v43  ;;  %v1062_v58 = vmul.f32 %v7234_v47, %v13984_v23  ;;  %v890_v14 = vadd.f32 %v858_v5, %v790_v40  ;;  %v13988_v13 = vld [vmem:[#allocation4_spill] sm:$0xff] }
  0x80   : > { %v1131_v63 = vmul.f32 %v6942_v9, %v13977_v27  ;;  %v7656_v28 = vmul.f32 %v6942_v9, %v13985_v54  ;;  %v1376_v55 = vmul.f32 %v6946_v10, %v6977_v33  ;;  %v3535_v50 = vadd.f32 %v3426_v48, %v3291_v15  ;;  %v13989_v43 = vld [vmem:[#allocation12_spill] sm:$0xff] }
  0x81   : > { %v7662_v62 = vmul.f32 %v6946_v10, %v13987_v11  ;;  %v1620_v25 = vmul.f32 %v13988_v13, %v6999_v42  ;;  %v7668_v41 = vmul.f32 %v13988_v13, %v13989_v43  ;;  %v958_v36 = vadd.f32 %v926_v56, %v890_v14  ;;  %v13991_v13 = vld [vmem:[#allocation15_spill] sm:$0xff] }
  0x82   : > { %13986 = vst [vmem:[#allocation68_spill] sm:$0xff] %v7656_v28  ;;  %v1230_v40 = vrot.slane %v1131_v63, 1  ;;  %v13156_v35 = vrot.slane %v7656_v28, 1  ;;  %v1474_v37 = vrot.slane %v1376_v55, 1  ;;  %v3780_v16 = vadd.f32 %v3671_v17, %v3535_v50  ;;  %v13993_v63 = vld [vmem:[#allocation63_spill] sm:$0xff]  ;;  %v13995_v28 = vld [vmem:[#allocation64_spill] sm:$0xff] }
  0x83   : > { %13990 = vst [vmem:[#allocation69_spill] sm:$0xff] %v7668_v41  ;;  %v13158_v5 = vrot.slane %v7662_v62, 1  ;;  %v1718_v48 = vrot.slane %v1620_v25, 1  ;;  %v13159_v15 = vrot.slane %v7668_v41, 1  ;;  %v1026_v10 = vadd.f32 %v994_v61, %v958_v36 }
  0x84   : > { %v1232_v34 = vsel %vm1224_vm1, %v1230_v40, %v13156_v35  ;;  %v1864_v51 = vmul.f32 %v6972_v31, %v7008_v45  ;;  %v7680_v56 = vmul.f32 %v6972_v31, %v13991_v13  ;;  %v4024_v14 = vadd.f32 %v3915_v46, %v3780_v16  ;;  %v13994_v40 = vld [vmem:[#allocation17_spill] sm:$0xff] }
  0x85   : > { %v1476_v17 = vsel %vm1224_vm1, %v1474_v37, %v13158_v5  ;;  %v1720_v61 = vsel %vm1224_vm1, %v1718_v48, %v13159_v15  ;;  %v2108_v55 = vmul.f32 %v13993_v63, %v13984_v23  ;;  %v1094_v50 = vadd.f32 %v1062_v58, %v1026_v10  ;;  %v13996_v58 = vld [vmem:[#allocation65_spill] sm:$0xff] }
  0x86   : > { %13992 = vst [vmem:[#allocation73_spill] sm:$0xff] %v7680_v56  ;;  %v1962_v25 = vrot.slane %v1864_v51, 1  ;;  %v13162_v36 = vrot.slane %v7680_v56, 1  ;;  %v7693_v35 = vmul.f32 %v13993_v63, %v13994_v40  ;;  %v4268_v46 = vadd.f32 %v4159_v6, %v4024_v14 }
  0x87   : > { %v2206_v16 = vrot.slane %v2108_v55, 1  ;;  %v2352_v37 = vmul.f32 %v13995_v28, %v13977_v27  ;;  %v7699_v5 = vmul.f32 %v13995_v28, %v13985_v54  ;;  %v1339_v48 = vadd.f32 %v1232_v34, %v1094_v50 }
  0x88   : > { %v1964_v10 = vsel %vm1224_vm1, %v1962_v25, %v13162_v36  ;;  %v13168_v51 = vrot.slane %v7693_v35, 1  ;;  %v2597_v15 = vmul.f32 %v13996_v58, %v6977_v33  ;;  %v4512_v6 = vadd.f32 %v7596_v24, %v4268_v46  ;;  %v6700_v28 = vpop.eup %6699  ;;  %v13997_v36 = vld [vmem:[#allocation66_spill] sm:$0xff] }
  0x89   : > { %v2451_v14 = vrot.slane %v2352_v37, 2  ;;  %v13167_v55 = vrot.slane %v7699_v5, 2  ;;  %v7711_v41 = vmul.f32 %v13996_v58, %v13987_v11  ;;  %v1583_v34 = vadd.f32 %v1476_v17, %v1339_v48 }
  0x8a   : > { %v2208_v50 = vsel %vm1224_vm1, %v2206_v16, %v13168_v51  ;;  %v2695_v25 = vrot.slane %v2597_v15, 2  ;;  %v2841_v56 = vmul.f32 %v13997_v36, %v6999_v42  ;;  %v6143_v63 = vadd.f32 1.0, %v6700_v28 }
  0x8b   : > { %v4756_v24 = vadd.f32 %v7615_v21, %v4512_v6  ;;  %v2453_v46 = vsel %vm2445_vm2, %v2451_v14, %v13167_v55  ;;  %v13166_v37 = vrot.slane %v7711_v41, 2  ;;  %v1827_v58 = vadd.f32 %v1720_v61, %v1583_v34 }
  0x8c   : > { %v7725_v17 = vmul.f32 %v13997_v36, %v13989_v43  ;;  %v2939_v48 = vrot.slane %v2841_v56, 2  ;;  %v3085_v15 = vmul.f32 %v7331_v59, %v7008_v45  ;;  %6701 = vrcp.f32 %v6143_v63 }
  0x8d   : > { %v5001_v28 = vadd.f32 %v7620_v20, %v4756_v24  ;;  %v2697_v21 = vsel %vm2445_vm2, %v2695_v25, %v13166_v37  ;;  %v7735_v16 = vmul.f32 %v7331_v59, %v13991_v13  ;;  %v2071_v61 = vadd.f32 %v1964_v10, %v1827_v58 }
  0x8e   : > { %v13171_v6 = vrot.slane %v7725_v17, 2  ;;  %v3183_v14 = vrot.slane %v3085_v15, 2  ;;  %v3329_v56 = vmul.f32 %v13960_v39, %v13984_v23  ;;  %v7744_v20 = vmul.f32 %v13960_v39, %v13994_v40 }
  0x8f   : > { %v5245_v34 = vadd.f32 %v7625_v18, %v5001_v28  ;;  %v13169_v63 = vrot.slane %v7735_v16, 2  ;;  %v3573_v25 = vmul.f32 %v13961_v60, %v13977_v27  ;;  %v2315_v24 = vadd.f32 %v2208_v50, %v2071_v61 }
  0x90   : > { %v2941_v10 = vsel %vm2445_vm2, %v2939_v48, %v13171_v6  ;;  %v3427_v58 = vrot.slane %v3329_v56, 2  ;;  %v7753_v15 = vmul.f32 %v13961_v60, %v13985_v54  ;;  %v13170_v37 = vrot.slane %v7744_v20, 2 }
  0x91   : > { %v5489_v18 = vadd.f32 %v7632_v7, %v5245_v34  ;;  %v3185_v28 = vsel %vm2445_vm2, %v3183_v14, %v13169_v63  ;;  %v3672_v55 = vrot.slane %v3573_v25, 3  ;;  %v2560_v51 = vadd.f32 %v2453_v46, %v2315_v24 }
  0x92   : > { %v13173_v50 = vrot.slane %v7753_v15, 3  ;;  %v3818_v48 = vmul.f32 %v13962_v12, %v6977_v33  ;;  %v7765_v61 = vmul.f32 %v13962_v12, %v13987_v11  ;;  %v3429_v7 = vsel %vm2445_vm2, %v3427_v58, %v13170_v37 }
  0x93   : > { %v5733_v56 = vadd.f32 %v7637_v26, %v5489_v18  ;;  %v4062_v14 = vmul.f32 %v13963_v38, %v6999_v42  ;;  %v7775_v46 = vmul.f32 %v13963_v38, %v13989_v43  ;;  %v2804_v34 = vadd.f32 %v2697_v21, %v2560_v51 }
  0x94   : > { %v3674_v25 = vsel %vm3666_vm3, %v3672_v55, %v13173_v50  ;;  %v3916_v24 = vrot.slane %v3818_v48, 3  ;;  %v13172_v63 = vrot.slane %v7765_v61, 3  ;;  %v4306_v37 = vmul.f32 %v13964_v49, %v7008_v45 }
  0x95   : > { %13998 = vst [vmem:[#allocation70_spill] sm:$0xff] %v7775_v46  ;;  %v5977_v26 = vadd.f32 %v7642_v4, %v5733_v56  ;;  %v4160_v18 = vrot.slane %v4062_v14, 3  ;;  %v13174_v58 = vrot.slane %v7775_v46, 3  ;;  %v3048_v6 = vadd.f32 %v2941_v10, %v2804_v34 }
  0x96   : > { %v3918_v51 = vsel %vm3666_vm3, %v3916_v24, %v13172_v63  ;;  %v7790_v21 = vmul.f32 %v13964_v49, %v13991_v13  ;;  %v4550_v55 = vmul.f32 %v7411_v29, %v13984_v23  ;;  %v4404_v56 = vrot.slane %v4306_v37, 3 }
  0x97   : > { %v7795_v4 = vadd.f32 %v7577_v32, %v5977_v26  ;;  %v4162_v48 = vsel %vm3666_vm3, %v4160_v18, %v13174_v58  ;;  %v7802_v10 = vmul.f32 %v7411_v29, %v13994_v40  ;;  %v3292_v14 = vadd.f32 %v3185_v28, %v3048_v6 }
  0x98   : > { %v13182_v34 = vrot.slane %v7790_v21, 3  ;;  %v4648_v24 = vrot.slane %v4550_v55, 3  ;;  %v4794_v63 = vmul.f32 %v7432_v3, %v13977_v27  ;;  %v7811_v18 = vmul.f32 %v7432_v3, %v13985_v54 }
  0x99   : > { %13999 = vst [vmem:[#allocation71_spill] sm:$0xff] %v7795_v4  ;;  %v6539_v50 = vmul.f32 -1.442695, %v7795_v4  ;;  %v5039_v37 = vmul.f32 %v7436_v52, %v6977_v33  ;;  %v6702_v58 = vpop.eup %6701  ;;  %v3536_v6 = vadd.f32 %v3429_v7, %v3292_v14  ;;  %v7820_v27 = vmul.f32 %v7436_v52, %v13987_v11 }
  0x9a   : > { %v4406_v28 = vsel %vm3666_vm3, %v4404_v56, %v13182_v34  ;;  %v4893_v55 = vrot.slane %v4794_v63, 4  ;;  %v6239_v26 = vmul.f32 %v6702_v58, %v7601_v0  ;;  %v14000_v4 = vrot.slane %v7802_v10, 3 }
  0x9b   : > { %6703 = vpow2.f32 %v6539_v50  ;;  %v13181_v33 = vrot.slane %v7811_v18, 4  ;;  %v3781_v3 = vadd.f32 %v3674_v25, %v3536_v6  ;;  %v5137_v7 = vrot.slane %v5039_v37, 4 }
  0x9c   : > { %v4650_v46 = vsel %vm3666_vm3, %v4648_v24, %v14000_v4  ;;  %v13185_v14 = vrot.slane %v7820_v27, 4  ;;  %v5283_v63 = vmul.f32 %v7441_v22, %v6999_v42  ;;  %6303 = vst [vmem:[%s6937_s10 + $0x100] sm:$0xff] %v6239_v26  ;;  %v7836_v0 = vmul.f32 %v7441_v22, %v13989_v43 }
  0x9d   : > { %v4895_v56 = vsel %vm4887_vm4, %v4893_v55, %v13181_v33  ;;  %v5527_v50 = vmul.f32 %v7469_v57, %v7008_v45  ;;  %v7842_v25 = vmul.f32 %v7469_v57, %v13991_v13  ;;  %v4025_v58 = vadd.f32 %v3918_v51, %v3781_v3 }
  0x9e   : > { %v5139_v4 = vsel %vm4887_vm4, %v5137_v7, %v13185_v14  ;;  %v5381_v24 = vrot.slane %v5283_v63, 4  ;;  %v5771_v26 = vmul.f32 %v7479_v2, %v13984_v23  ;;  %v13187_v37 = vrot.slane %v7836_v0, 4  ;;  %v14011_v23 = vld [vmem:[#allocation7_spill] sm:$0xff] }
  0x9f   : > { %14001 = vst [vmem:[#allocation72_spill] sm:$0xff] %v7842_v25  ;;  %v5625_v6 = vrot.slane %v5527_v50, 4  ;;  %v13186_v55 = vrot.slane %v7842_v25, 4  ;;  %v7853_v33 = vmul.f32 %v7479_v2, %v13994_v40  ;;  %v4269_v34 = vadd.f32 %v4162_v48, %v4025_v58 }
  0xa0   : > { %v5869_v45 = vrot.slane %v5771_v26, 4  ;;  %v791_v3 = vmul.f32 %v13978_v8, %v13985_v54  ;;  %v859_v51 = vmul.f32 %v13982_v19, %v13987_v11  ;;  %v5383_v7 = vsel %vm4887_vm4, %v5381_v24, %v13187_v37  ;;  %v14017_v8 = vld [vmem:[#allocation73_spill] sm:$0xff] }
  0xa1   : > { %14002 = vst [vmem:[#allocation61_spill] sm:$0xff] %v7853_v33  ;;  %v5627_v63 = vsel %vm4887_vm4, %v5625_v6, %v13186_v55  ;;  %v13195_v50 = vrot.slane %v7853_v33, 4  ;;  %v927_v48 = vmul.f32 %v13983_v1, %v13989_v43  ;;  %v4513_v58 = vadd.f32 %v4406_v28, %v4269_v34  ;;  %v14003_v55 = vld [vmem:[#allocation10_spill] sm:$0xff]  ;;  %v14006_v28 = vld [vmem:[#allocation4_spill] sm:$0xff]  ;;  %v14008_v33 = vld [vmem:[#allocation19_spill] sm:$0xff] }
  0xa2   : > { %v891_v26 = vadd.f32 %v859_v51, %v791_v3  ;;  %v995_v54 = vmul.f32 %v7200_v53, %v13991_v13  ;;  %v1063_v14 = vmul.f32 %v7234_v47, %v13994_v40  ;;  %v1133_v6 = vmul.f32 %v6942_v9, %v7504_v30  ;;  %v14007_v43 = vld [vmem:[#allocation16_spill] sm:$0xff]  ;;  %v14009_v47 = vld [vmem:[#allocation63_spill] sm:$0xff] }
  0xa3   : > { %v5871_v24 = vsel %vm4887_vm4, %v5869_v45, %v13195_v50  ;;  %v14004_v37 = vrot.slane %v14003_v55, 1  ;;  %v14005_v11 = vrot.slane %v7662_v62, 1  ;;  %v1622_v3 = vmul.f32 %v14006_v28, %v7005_v44  ;;  %v14010_v9 = vld [vmem:[#allocation64_spill] sm:$0xff]  ;;  %v14012_v62 = vld [vmem:[#allocation65_spill] sm:$0xff] }
  0xa4   : > { %v4757_v51 = vadd.f32 %v4650_v46, %v4513_v58  ;;  %v959_v13 = vadd.f32 %v927_v48, %v891_v26  ;;  %v1866_v40 = vmul.f32 %v6972_v31, %v14007_v43  ;;  %v2110_v45 = vmul.f32 %v14009_v47, %v14008_v33  ;;  %v14013_v46 = vld [vmem:[#allocation68_spill] sm:$0xff]  ;;  %v14015_v26 = vld [vmem:[#allocation69_spill] sm:$0xff] }
  0xa5   : > { %v1478_v34 = vsel %vm1224_vm1, %v14005_v11, %v14004_v37  ;;  %v1233_v50 = vrot.slane %v1133_v6, 1  ;;  %v1721_v53 = vrot.slane %v1622_v3, 1  ;;  %v2354_v55 = vmul.f32 %v14010_v9, %v7504_v30 }
  0xa6   : > { %v2599_v25 = vmul.f32 %v14012_v62, %v14011_v23  ;;  %v5002_v11 = vadd.f32 %v4895_v56, %v4757_v51  ;;  %v1027_v37 = vadd.f32 %v995_v54, %v959_v13  ;;  %v1965_v1 = vrot.slane %v1866_v40, 1 }
  0xa7   : > { %v2209_v28 = vrot.slane %v2110_v45, 1  ;;  %v14014_v48 = vrot.slane %v14013_v46, 1  ;;  %v14016_v31 = vrot.slane %v14015_v26, 1  ;;  %v2454_v6 = vrot.slane %v2354_v55, 2 }
  0xa8   : > { %v2698_v3 = vrot.slane %v2599_v25, 2  ;;  %v6704_v19 = vpop.eup %6703  ;;  %v5246_v42 = vadd.f32 %v5139_v4, %v5002_v11  ;;  %v1095_v9 = vadd.f32 %v1063_v14, %v1027_v37  ;;  %v14018_v2 = vrot.slane %v14017_v8, 1 }
  0xa9   : > { %v1234_v58 = vsel %vm1224_vm1, %v14014_v48, %v1233_v50  ;;  %v1722_v47 = vsel %vm1224_vm1, %v14016_v31, %v1721_v53  ;;  %v14019_v13 = vrot.slane %v7693_v35, 1  ;;  %v6144_v54 = vadd.f32 1.0, %v6704_v19 }
  0xaa   : > { %v1966_v56 = vsel %vm1224_vm1, %v14018_v2, %v1965_v1  ;;  %v14020_v50 = vrot.slane %v7699_v5, 2  ;;  %v14021_v31 = vrot.slane %v7711_v41, 2  ;;  %v2843_v14 = vmul.f32 %v13997_v36, %v7005_v44 }
  0xab   : > { %v2210_v40 = vsel %vm1224_vm1, %v14019_v13, %v2209_v28  ;;  %v5490_v25 = vadd.f32 %v5383_v7, %v5246_v42  ;;  %v1340_v8 = vadd.f32 %v1234_v58, %v1095_v9  ;;  %v3087_v2 = vmul.f32 %v7331_v59, %v14007_v43 }
  0xac   : > { %v2455_v51 = vsel %vm2445_vm2, %v14020_v50, %v2454_v6  ;;  %v2699_v53 = vsel %vm2445_vm2, %v14021_v31, %v2698_v3  ;;  %v3331_v1 = vmul.f32 %v13960_v39, %v14008_v33  ;;  %6705 = vrcp.f32 %v6144_v54  ;;  %v14028_v50 = vld [vmem:[#allocation70_spill] sm:$0xff] }
  0xad   : > { %v2942_v19 = vrot.slane %v2843_v14, 2  ;;  %v3575_v35 = vmul.f32 %v13961_v60, %v7504_v30  ;;  %v3820_v41 = vmul.f32 %v13962_v12, %v14011_v23  ;;  %v5734_v5 = vadd.f32 %v5627_v63, %v5490_v25 }
  0xae   : > { %v1584_v4 = vadd.f32 %v1478_v34, %v1340_v8  ;;  %v3186_v28 = vrot.slane %v3087_v2, 2  ;;  %v3430_v45 = vrot.slane %v3331_v1, 2  ;;  %v14022_v9 = vrot.slane %v7725_v17, 2 }
  0xaf   : > { %v3675_v7 = vrot.slane %v3575_v35, 3  ;;  %v3919_v55 = vrot.slane %v3820_v41, 3  ;;  %v4064_v11 = vmul.f32 %v13963_v38, %v7005_v44  ;;  %v5978_v37 = vadd.f32 %v5871_v24, %v5734_v5 }
  0xb0   : > { %v2943_v42 = vsel %vm2445_vm2, %v14022_v9, %v2942_v19  ;;  %v1828_v46 = vadd.f32 %v1722_v47, %v1584_v4  ;;  %v14023_v48 = vrot.slane %v7735_v16, 2  ;;  %v14024_v63 = vrot.slane %v7744_v20, 2 }
  0xb1   : > { %v14025_v26 = vrot.slane %v7753_v15, 3  ;;  %v14026_v6 = vrot.slane %v7765_v61, 3  ;;  %v4163_v13 = vrot.slane %v4064_v11, 3  ;;  %v4308_v47 = vmul.f32 %v13964_v49, %v14007_v43  ;;  %v14027_v15 = vld [vmem:[#allocation77_spill] sm:$0xff] }
  0xb2   : > { %v3187_v58 = vsel %vm2445_vm2, %v14023_v48, %v3186_v28  ;;  %v3431_v34 = vsel %vm2445_vm2, %v14024_v63, %v3430_v45  ;;  %v7942_v16 = vadd.f32 %v7577_v32, %v5978_v37  ;;  %v2072_v24 = vadd.f32 %v1966_v56, %v1828_v46  ;;  %v14036_v63 = vld [vmem:[#allocation6_spill] sm:$0xff] }
  0xb3   : > { %v3676_v17 = vsel %vm3666_vm3, %v14025_v26, %v3675_v7  ;;  %v7937_v3 = vsel %vm3666_vm3, %v14026_v6, %v3919_v55  ;;  %v4552_v20 = vmul.f32 %v7411_v29, %v14008_v33  ;;  %v4796_v54 = vmul.f32 %v14027_v15, %v7504_v30  ;;  %v14038_v6 = vld [vmem:[#allocation11_spill] sm:$0xff] }
  0xb4   : > { %v14029_v31 = vrot.slane %v14028_v50, 3  ;;  %v4407_v14 = vrot.slane %v4308_v47, 3  ;;  %v5041_v25 = vmul.f32 %v7436_v52, %v14011_v23  ;;  %v5285_v8 = vmul.f32 %v7441_v22, %v7005_v44 }
  0xb5   : > { %v6540_v56 = vmul.f32 -1.442695, %v7942_v16  ;;  %v2316_v2 = vadd.f32 %v2210_v40, %v2072_v24  ;;  %v4651_v1 = vrot.slane %v4552_v20, 3  ;;  %v4896_v19 = vrot.slane %v4796_v54, 4  ;;  %v14041_v24 = vld [vmem:[#allocation57_spill] sm:$0xff]  ;;  %v14042_v54 = vld [vmem:[#allocation72_spill] sm:$0xff] }
  0xb6   : > { %v7951_v61 = vsel %vm3666_vm3, %v14029_v31, %v4163_v13  ;;  %v14030_v35 = vrot.slane %v7790_v21, 3  ;;  %v5140_v41 = vrot.slane %v5041_v25, 4  ;;  %v5384_v5 = vrot.slane %v5285_v8, 4  ;;  %v14039_v13 = vld [vmem:[#allocation56_spill] sm:$0xff]  ;;  %v14045_v25 = vld [vmem:[#allocation59_spill] sm:$0xff] }
  0xb7   : > { %v5529_v4 = vmul.f32 %v7469_v57, %v14007_v43  ;;  %6707 = vpow2.f32 %v6540_v56  ;;  %v2561_v28 = vadd.f32 %v2455_v51, %v2316_v2  ;;  %v14031_v45 = vrot.slane %v7802_v10, 3  ;;  %v14035_v10 = vld [vmem:[#allocation79_spill] sm:$0xff]  ;;  %v14047_v56 = vld [vmem:[#allocation62_spill] sm:$0xff] }
  0xb8   : > { %v7961_v30 = vsel %vm3666_vm3, %v14030_v35, %v4407_v14  ;;  %v14032_v40 = vrot.slane %v7811_v18, 4  ;;  %v14033_v21 = vrot.slane %v7820_v27, 4  ;;  %v14034_v11 = vrot.slane %v7836_v0, 4  ;;  %v14037_v18 = vld [vmem:[#allocation55_spill] sm:$0xff]  ;;  %v14040_v27 = vld [vmem:[#allocation14_spill] sm:$0xff] }
  0xb9   : > { %v7968_v9 = vsel %vm3666_vm3, %v14031_v45, %v4651_v1  ;;  %v5628_v51 = vrot.slane %v5529_v4, 4  ;;  %v5773_v46 = vmul.f32 %v14035_v10, %v14008_v33  ;;  %v2805_v48 = vadd.f32 %v2699_v53, %v2561_v28  ;;  %v14044_v14 = vld [vmem:[#allocation18_spill] sm:$0xff]  ;;  %v14046_v53 = vld [vmem:[#allocation21_spill] sm:$0xff]  ;;  %v6706_v1 = vpop.eup %6705  ;;  %v14049_v4 = vld [vmem:[#allocation8_spill] sm:$0xff] }
  0xba   : > { %v7973_v7 = vsel %vm4887_vm4, %v14032_v40, %v4896_v19  ;;  %v7978_v55 = vsel %vm4887_vm4, %v14033_v21, %v5140_v41  ;;  %v7983_v37 = vsel %vm4887_vm4, %v14034_v11, %v5384_v5  ;;  %v792_v26 = vmul.f32 %v14037_v18, %v14036_v63  ;;  %v14048_v41 = vld [vmem:[#allocation2_spill] sm:$0xff]  ;;  %v14050_v45 = vld [vmem:[#allocation71_spill] sm:$0xff]  ;;  %v14051_v21 = vld [vmem:[#allocation61_spill] sm:$0xff] }
  0xbb   : > { %v860_v47 = vmul.f32 %v14039_v13, %v14038_v6  ;;  %v928_v20 = vmul.f32 %v14041_v24, %v14040_v27  ;;  %v14043_v50 = vrot.slane %v14042_v54, 4  ;;  %v5872_v31 = vrot.slane %v5773_v46, 4  ;;  %v14053_v46 = vld [vmem:[#allocation3_spill] sm:$0xff] }
  0xbc   : > { %v996_v8 = vmul.f32 %v14045_v25, %v14044_v14  ;;  %v1064_v2 = vmul.f32 %v14047_v56, %v14046_v53  ;;  %v3049_v19 = vadd.f32 %v2943_v42, %v2805_v48  ;;  %v1134_v5 = vmul.f32 %v14048_v41, %v14036_v63 }
  0xbd   : > { %v7996_v0 = vsel %vm4887_vm4, %v14043_v50, %v5628_v51  ;;  %v892_v35 = vadd.f32 %v860_v47, %v792_v26  ;;  %v8006_v28 = vmul.f32 %v14048_v41, %v14049_v4  ;;  %v6240_v40 = vmul.f32 %v6706_v1, %v14050_v45  ;;  %v14054_v50 = vld [vmem:[#allocation12_spill] sm:$0xff] }
  0xbe   : > { %v14052_v11 = vrot.slane %v14051_v21, 4  ;;  %v1379_v54 = vmul.f32 %v14053_v46, %v14038_v6  ;;  %v8018_v42 = vmul.f32 %v14053_v46, %v14054_v50  ;;  %v3293_v48 = vadd.f32 %v3187_v58, %v3049_v19  ;;  %v14056_v45 = vld [vmem:[#allocation4_spill] sm:$0xff]  ;;  %v14057_v21 = vld [vmem:[#allocation15_spill] sm:$0xff] }
  0xbf   : > { %v960_v26 = vadd.f32 %v928_v20, %v892_v35  ;;  %v1235_v47 = vrot.slane %v1134_v5, 1  ;;  %v13216_v41 = vrot.slane %v8006_v28, 1  ;;  %6304 = vst [vmem:[%s6937_s10 + $0x108] sm:$0xff] %v6240_v40  ;;  %v14059_v20 = vld [vmem:[#allocation5_spill] sm:$0xff] }
  0xc0   : > { %v8012_v51 = vsel %vm4887_vm4, %v14052_v11, %v5872_v31  ;;  %14055 = vst [vmem:[#allocation60_spill] sm:$0xff] %v8018_v42  ;;  %v1479_v23 = vrot.slane %v1379_v54, 1  ;;  %v13218_v1 = vrot.slane %v8018_v42, 1  ;;  %v1623_v31 = vmul.f32 %v14056_v45, %v14040_v27  ;;  %v14060_v54 = vld [vmem:[#allocation17_spill] sm:$0xff] }
  0xc1   : > { %v8027_v11 = vmul.f32 %v14056_v45, %v14057_v21  ;;  %v3537_v33 = vadd.f32 %v3431_v34, %v3293_v48  ;;  %v1028_v43 = vadd.f32 %v996_v8, %v960_v26  ;;  %v1237_v58 = vsel %vm1224_vm1, %v1235_v47, %v13216_v41  ;;  %v14061_v26 = vld [vmem:[#allocation63_spill] sm:$0xff] }
  0xc2   : > { %v1867_v19 = vmul.f32 %v14059_v20, %v14044_v14  ;;  %v1481_v35 = vsel %vm1224_vm1, %v1479_v23, %v13218_v1  ;;  %v1723_v5 = vrot.slane %v1623_v31, 1  ;;  %v8040_v45 = vmul.f32 %v14059_v20, %v14060_v54  ;;  %v14062_v23 = vld [vmem:[#allocation20_spill] sm:$0xff] }
  0xc3   : > { %14058 = vst [vmem:[#allocation66_spill] sm:$0xff] %v8027_v11  ;;  %v13220_v40 = vrot.slane %v8027_v11, 1  ;;  %v3782_v34 = vadd.f32 %v3676_v17, %v3537_v33  ;;  %v1096_v8 = vadd.f32 %v1064_v2, %v1028_v43  ;;  %v2111_v47 = vmul.f32 %v14061_v26, %v14046_v53  ;;  %v14063_v1 = vld [vmem:[#allocation64_spill] sm:$0xff] }
  0xc4   : > { %v1967_v48 = vrot.slane %v1867_v19, 1  ;;  %v13224_v42 = vrot.slane %v8040_v45, 1  ;;  %v8050_v31 = vmul.f32 %v14061_v26, %v14062_v23  ;;  %v2355_v20 = vmul.f32 %v14063_v1, %v14036_v63  ;;  %v6708_v19 = vpop.eup %6707 }
  0xc5   : > { %v1725_v41 = vsel %vm1224_vm1, %v1723_v5, %v13220_v40  ;;  %v4026_v33 = vadd.f32 %v7937_v3, %v3782_v34  ;;  %v1341_v43 = vadd.f32 %v1237_v58, %v1096_v8  ;;  %v2211_v17 = vrot.slane %v2111_v47, 1 }
  0xc6   : > { %v8057_v2 = vmul.f32 %v14063_v1, %v14049_v4  ;;  %v1969_v5 = vsel %vm1224_vm1, %v1967_v48, %v13224_v42  ;;  %v13226_v40 = vrot.slane %v8050_v31, 1  ;;  %v2456_v11 = vrot.slane %v2355_v20, 2 }
  0xc7   : > { %v2600_v26 = vmul.f32 %v14012_v62, %v14038_v6  ;;  %v6145_v46 = vadd.f32 1.0, %v6708_v19  ;;  %v4270_v3 = vadd.f32 %v7951_v61, %v4026_v33  ;;  %v1585_v58 = vadd.f32 %v1481_v35, %v1341_v43 }
  0xc8   : > { %v13225_v34 = vrot.slane %v8057_v2, 2  ;;  %v2213_v8 = vsel %vm1224_vm1, %v2211_v17, %v13226_v40  ;;  %v8072_v47 = vmul.f32 %v14012_v62, %v14054_v50  ;;  %v2844_v20 = vmul.f32 %v13997_v36, %v14040_v27 }
  0xc9   : > { %v2700_v48 = vrot.slane %v2600_v26, 2  ;;  %6709 = vrcp.f32 %v6145_v46  ;;  %v4514_v19 = vadd.f32 %v7961_v30, %v4270_v3  ;;  %v1829_v42 = vadd.f32 %v1725_v41, %v1585_v58 }
  0xca   : > { %v2458_v61 = vsel %vm2445_vm2, %v2456_v11, %v13225_v34  ;;  %v13227_v35 = vrot.slane %v8072_v47, 2  ;;  %v8083_v33 = vmul.f32 %v13997_v36, %v14057_v21  ;;  %v2944_v43 = vrot.slane %v2844_v20, 2 }
  0xcb   : > { %v3088_v26 = vmul.f32 %v7331_v59, %v14044_v14  ;;  %v4758_v17 = vadd.f32 %v7968_v9, %v4514_v19  ;;  %v2073_v46 = vadd.f32 %v1969_v5, %v1829_v42  ;;  %v8090_v30 = vmul.f32 %v7331_v59, %v14060_v54 }
  0xcc   : > { %v3332_v41 = vmul.f32 %v13960_v39, %v14046_v53  ;;  %v2702_v11 = vsel %vm2445_vm2, %v2700_v48, %v13227_v35  ;;  %v13228_v3 = vrot.slane %v8083_v33, 2  ;;  %v8100_v20 = vmul.f32 %v13960_v39, %v14062_v23 }
  0xcd   : > { %v3188_v58 = vrot.slane %v3088_v26, 2  ;;  %v5003_v9 = vadd.f32 %v7973_v7, %v4758_v17  ;;  %v2317_v42 = vadd.f32 %v2213_v8, %v2073_v46  ;;  %v13231_v5 = vrot.slane %v8090_v30, 2 }
  0xce   : > { %v3432_v19 = vrot.slane %v3332_v41, 2  ;;  %v2946_v34 = vsel %vm2445_vm2, %v2944_v43, %v13228_v3  ;;  %v13229_v40 = vrot.slane %v8100_v20, 2  ;;  %v3576_v48 = vmul.f32 %v13961_v60, %v14036_v63 }
  0xcf   : > { %v8112_v26 = vmul.f32 %v13961_v60, %v14049_v4  ;;  %v5247_v35 = vadd.f32 %v7978_v55, %v5003_v9  ;;  %v2562_v7 = vadd.f32 %v2458_v61, %v2317_v42  ;;  %v3190_v8 = vsel %vm2445_vm2, %v3188_v58, %v13231_v5 }
  0xd0   : > { %v3821_v17 = vmul.f32 %v13962_v12, %v14038_v6  ;;  %v3434_v43 = vsel %vm2445_vm2, %v3432_v19, %v13229_v40  ;;  %v3677_v46 = vrot.slane %v3576_v48, 3  ;;  %v8126_v3 = vmul.f32 %v13962_v12, %v14054_v50 }
  0xd1   : > { %14064 = vst [vmem:[#allocation10_spill] sm:$0xff] %v8112_v26  ;;  %v13230_v41 = vrot.slane %v8112_v26, 3  ;;  %v5491_v55 = vadd.f32 %v7983_v37, %v5247_v35  ;;  %v2806_v61 = vadd.f32 %v2702_v11, %v2562_v7  ;;  %v4065_v58 = vmul.f32 %v13963_v38, %v14040_v27 }
  0xd2   : > { %v3921_v9 = vrot.slane %v3821_v17, 3  ;;  %v13235_v19 = vrot.slane %v8126_v3, 3  ;;  %v8137_v48 = vmul.f32 %v13963_v38, %v14057_v21  ;;  %v4309_v40 = vmul.f32 %v13964_v49, %v14044_v14 }
  0xd3   : > { %v3679_v42 = vsel %vm3666_vm3, %v3677_v46, %v13230_v41  ;;  %v5735_v37 = vadd.f32 %v7996_v0, %v5491_v55  ;;  %v3050_v35 = vadd.f32 %v2946_v34, %v2806_v61  ;;  %v4165_v11 = vrot.slane %v4065_v58, 3 }
  0xd4   : > { %v8144_v7 = vmul.f32 %v13964_v49, %v14060_v54  ;;  %v3923_v17 = vsel %vm3666_vm3, %v3921_v9, %v13235_v19  ;;  %v13234_v46 = vrot.slane %v8137_v48, 3  ;;  %v4409_v41 = vrot.slane %v4309_v40, 3 }
  0xd5   : > { %v4553_v5 = vmul.f32 %v7411_v29, %v14046_v53  ;;  %v5979_v38 = vadd.f32 %v8012_v51, %v5735_v37  ;;  %v3294_v26 = vadd.f32 %v3190_v8, %v3050_v35  ;;  %v8156_v34 = vmul.f32 %v7411_v29, %v14062_v23 }
  0xd6   : > { %v13236_v0 = vrot.slane %v8144_v7, 3  ;;  %v6710_v55 = vpop.eup %6709  ;;  %v4167_v61 = vsel %vm3666_vm3, %v4165_v11, %v13234_v46  ;;  %v4797_v40 = vmul.f32 %v14027_v15, %v14036_v63  ;;  %v8165_v51 = vmul.f32 %v14027_v15, %v14049_v4 }
  0xd7   : > { %v4653_v9 = vrot.slane %v4553_v5, 3  ;;  %v6241_v8 = vmul.f32 %v6710_v55, %v7942_v16  ;;  %v8169_v58 = vadd.f32 %v7577_v32, %v5979_v38  ;;  %v3538_v37 = vadd.f32 %v3434_v43, %v3294_v26 }
  0xd8   : > { %v4411_v35 = vsel %vm3666_vm3, %v4409_v41, %v13236_v0  ;;  %v13239_v11 = vrot.slane %v8156_v34, 3  ;;  %v4898_v5 = vrot.slane %v4797_v40, 4  ;;  %v13238_v46 = vrot.slane %v8165_v51, 4 }
  0xd9   : > { %14065 = vst [vmem:[#allocation68_spill] sm:$0xff] %v8169_v58  ;;  %v5042_v63 = vmul.f32 %v7436_v52, %v14038_v6  ;;  %6305 = vst [vmem:[%s6937_s10 + $0x110] sm:$0xff] %v6241_v8  ;;  %v6541_v19 = vmul.f32 -1.442695, %v8169_v58  ;;  %v3783_v16 = vadd.f32 %v3679_v42, %v3538_v37  ;;  %v8182_v38 = vmul.f32 %v7436_v52, %v14054_v50 }
  0xda   : > { %v5286_v26 = vmul.f32 %v7441_v22, %v14040_v27  ;;  %v4655_v43 = vsel %vm3666_vm3, %v4653_v9, %v13239_v11  ;;  %v4900_v41 = vsel %vm4887_vm4, %v4898_v5, %v13238_v46  ;;  %v8194_v40 = vmul.f32 %v7441_v22, %v14057_v21  ;;  %v14079_v27 = vld [vmem:[#allocation7_spill] sm:$0xff] }
  0xdb   : > { %v5142_v55 = vrot.slane %v5042_v63, 4  ;;  %6711 = vpow2.f32 %v6541_v19  ;;  %v4027_v42 = vadd.f32 %v3923_v17, %v3783_v16  ;;  %v13241_v8 = vrot.slane %v8182_v38, 4 }
  0xdc   : > { %v5386_v37 = vrot.slane %v5286_v26, 4  ;;  %v13242_v0 = vrot.slane %v8194_v40, 4  ;;  %v5530_v58 = vmul.f32 %v7469_v57, %v14044_v14  ;;  %v8202_v9 = vmul.f32 %v7469_v57, %v14060_v54  ;;  %v14075_v14 = vld [vmem:[#allocation19_spill] sm:$0xff] }
  0xdd   : > { %v5774_v5 = vmul.f32 %v14035_v10, %v14046_v53  ;;  %v4271_v63 = vadd.f32 %v4167_v61, %v4027_v42  ;;  %v5144_v19 = vsel %vm4887_vm4, %v5142_v55, %v13241_v8  ;;  %v8211_v17 = vmul.f32 %v14035_v10, %v14062_v23  ;;  %v14082_v10 = vld [vmem:[#allocation66_spill] sm:$0xff] }
  0xde   : > { %14066 = vst [vmem:[#allocation69_spill] sm:$0xff] %v8202_v9  ;;  %v793_v16 = vmul.f32 %v14037_v18, %v14049_v4  ;;  %v5388_v26 = vsel %vm4887_vm4, %v5386_v37, %v13242_v0  ;;  %v5630_v46 = vrot.slane %v5530_v58, 4  ;;  %v13246_v11 = vrot.slane %v8202_v9, 4  ;;  %v14080_v18 = vld [vmem:[#allocation60_spill] sm:$0xff] }
  0xdf   : > { %14067 = vst [vmem:[#allocation73_spill] sm:$0xff] %v8211_v17  ;;  %v5874_v53 = vrot.slane %v5774_v5, 4  ;;  %v4515_v61 = vadd.f32 %v4411_v35, %v4271_v63  ;;  %v861_v55 = vmul.f32 %v14039_v13, %v14054_v50  ;;  %v929_v8 = vmul.f32 %v14041_v24, %v14057_v21  ;;  %v14068_v5 = vld [vmem:[#allocation9_spill] sm:$0xff]  ;;  %v14073_v24 = vld [vmem:[#allocation16_spill] sm:$0xff]  ;;  %v14078_v13 = vld [vmem:[#allocation63_spill] sm:$0xff] }
  0xe0   : > { %v5632_v4 = vsel %vm4887_vm4, %v5630_v46, %v13246_v11  ;;  %v997_v37 = vmul.f32 %v14045_v25, %v14060_v54  ;;  %v1065_v58 = vmul.f32 %v14047_v56, %v14062_v23  ;;  %v14069_v35 = vrot.slane %v14068_v5, 1  ;;  %v14072_v46 = vld [vmem:[#allocation3_spill] sm:$0xff]  ;;  %v14074_v54 = vld [vmem:[#allocation4_spill] sm:$0xff]  ;;  %v14076_v23 = vld [vmem:[#allocation5_spill] sm:$0xff] }
  0xe1   : > { %v14070_v63 = vrot.slane %v8006_v28, 1  ;;  %v4759_v42 = vadd.f32 %v4655_v43, %v4515_v61  ;;  %v14071_v50 = vrot.slane %v8211_v17, 4  ;;  %v893_v9 = vadd.f32 %v861_v55, %v793_v16  ;;  %v14077_v5 = vld [vmem:[#allocation22_spill] sm:$0xff] }
  0xe2   : > { %v1381_v11 = vmul.f32 %v14072_v46, %v7005_v44  ;;  %v1625_v25 = vmul.f32 %v14074_v54, %v14073_v24  ;;  %v1869_v56 = vmul.f32 %v14076_v23, %v14075_v14  ;;  %v2113_v28 = vmul.f32 %v14078_v13, %v14077_v5 }
  0xe3   : > { %v1239_v0 = vsel %vm1224_vm1, %v14070_v63, %v14069_v35  ;;  %v5876_v21 = vsel %vm4887_vm4, %v5874_v53, %v14071_v50  ;;  %v2357_v43 = vmul.f32 %v14063_v1, %v14079_v27  ;;  %v5004_v61 = vadd.f32 %v4900_v41, %v4759_v42 }
  0xe4   : > { %v961_v35 = vadd.f32 %v929_v8, %v893_v9  ;;  %v1482_v63 = vrot.slane %v1381_v11, 1  ;;  %v2602_v53 = vmul.f32 %v14012_v62, %v7005_v44  ;;  %v1726_v50 = vrot.slane %v1625_v25, 1 }
  0xe5   : > { %v1970_v16 = vrot.slane %v1869_v56, 1  ;;  %v2214_v55 = vrot.slane %v2113_v28, 1  ;;  %v2459_v17 = vrot.slane %v2357_v43, 2  ;;  %v5248_v54 = vadd.f32 %v5144_v19, %v5004_v61 }
  0xe6   : > { %v1029_v46 = vadd.f32 %v997_v37, %v961_v35  ;;  %v14081_v23 = vrot.slane %v14080_v18, 1  ;;  %v2703_v13 = vrot.slane %v2602_v53, 2  ;;  %v14083_v57 = vrot.slane %v14082_v10, 1 }
  0xe7   : > { %v14084_v11 = vrot.slane %v8040_v45, 1  ;;  %v14085_v25 = vrot.slane %v8050_v31, 1  ;;  %v14086_v9 = vrot.slane %v8057_v2, 2  ;;  %v5492_v18 = vadd.f32 %v5388_v26, %v5248_v54 }
  0xe8   : > { %v1483_v6 = vsel %vm1224_vm1, %v14081_v23, %v1482_v63  ;;  %v1727_v41 = vsel %vm1224_vm1, %v14083_v57, %v1726_v50  ;;  %v1097_v42 = vadd.f32 %v1065_v58, %v1029_v46  ;;  %v14087_v23 = vrot.slane %v8072_v47, 2  ;;  %v6712_v45 = vpop.eup %6711 }
  0xe9   : > { %v1971_v8 = vsel %vm1224_vm1, %v14084_v11, %v1970_v16  ;;  %v2215_v56 = vsel %vm1224_vm1, %v14085_v25, %v2214_v55  ;;  %v2460_v19 = vsel %vm2445_vm2, %v14086_v9, %v2459_v17  ;;  %v2846_v57 = vmul.f32 %v13997_v36, %v14073_v24  ;;  %v14094_v9 = vld [vmem:[#allocation74_spill] sm:$0xff] }
  0xea   : > { %v2704_v10 = vsel %vm2445_vm2, %v14087_v23, %v2703_v13  ;;  %v3090_v37 = vmul.f32 %v7331_v59, %v14075_v14  ;;  %v3334_v31 = vmul.f32 %v13960_v39, %v14077_v5  ;;  %v3578_v2 = vmul.f32 %v13961_v60, %v14079_v27 }
  0xeb   : > { %v3823_v54 = vmul.f32 %v13962_v12, %v7005_v44  ;;  %v6146_v17 = vadd.f32 1.0, %v6712_v45  ;;  %v5736_v47 = vadd.f32 %v5632_v4, %v5492_v18  ;;  %v1342_v26 = vadd.f32 %v1239_v0, %v1097_v42  ;;  %v14091_v4 = vld [vmem:[#allocation10_spill] sm:$0xff] }
  0xec   : > { %v2947_v13 = vrot.slane %v2846_v57, 2  ;;  %v3191_v58 = vrot.slane %v3090_v37, 2  ;;  %v3435_v46 = vrot.slane %v3334_v31, 2  ;;  %v3680_v28 = vrot.slane %v3578_v2, 3 }
  0xed   : > { %v3924_v43 = vrot.slane %v3823_v54, 3  ;;  %6713 = vrcp.f32 %v6146_v17  ;;  %v5980_v61 = vadd.f32 %v5876_v21, %v5736_v47  ;;  %v1586_v35 = vadd.f32 %v1483_v6, %v1342_v26 }
  0xee   : > { %v14088_v63 = vrot.slane %v8083_v33, 2  ;;  %v14089_v50 = vrot.slane %v8090_v30, 2  ;;  %v14090_v55 = vrot.slane %v8100_v20, 2  ;;  %v14092_v11 = vrot.slane %v14091_v4, 3  ;;  %v14104_v4 = vld [vmem:[#allocation55_spill] sm:$0xff] }
  0xef   : > { %v14093_v21 = vrot.slane %v8126_v3, 3  ;;  %v8299_v33 = vadd.f32 %v7577_v32, %v5980_v61  ;;  %v1830_v30 = vadd.f32 %v1727_v41, %v1586_v35  ;;  %v4067_v18 = vmul.f32 %v14094_v9, %v14073_v24 }
  0xf0   : > { %v2948_v53 = vsel %vm2445_vm2, %v14088_v63, %v2947_v13  ;;  %v3192_v16 = vsel %vm2445_vm2, %v14089_v50, %v3191_v58  ;;  %v3436_v0 = vsel %vm2445_vm2, %v14090_v55, %v3435_v46  ;;  %v8291_v25 = vsel %vm3666_vm3, %v14092_v11, %v3680_v28  ;;  %v14102_v50 = vld [vmem:[#allocation79_spill] sm:$0xff] }
  0xf1   : > { %v8296_v6 = vsel %vm3666_vm3, %v14093_v21, %v3924_v43  ;;  %v4311_v20 = vmul.f32 %v13964_v49, %v14075_v14  ;;  %v4555_v42 = vmul.f32 %v7411_v29, %v14077_v5  ;;  %v4799_v23 = vmul.f32 %v14027_v15, %v14079_v27  ;;  %v14103_v55 = vld [vmem:[#allocation11_spill] sm:$0xff]  ;;  %v14105_v21 = vld [vmem:[#allocation14_spill] sm:$0xff] }
  0xf2   : > { %v5044_v3 = vmul.f32 %v7436_v52, %v7005_v44  ;;  %v5288_v32 = vmul.f32 %v7441_v22, %v14073_v24  ;;  %v6542_v41 = vmul.f32 -1.442695, %v8299_v33  ;;  %v2074_v57 = vadd.f32 %v1971_v8, %v1830_v30  ;;  %v14125_v44 = vld [vmem:[#allocation17_spill] sm:$0xff] }
  0xf3   : > { %v4168_v45 = vrot.slane %v4067_v18, 3  ;;  %v4412_v37 = vrot.slane %v4311_v20, 3  ;;  %v4656_v31 = vrot.slane %v4555_v42, 3  ;;  %v4901_v2 = vrot.slane %v4799_v23, 4  ;;  %v14107_v18 = vld [vmem:[#allocation18_spill] sm:$0xff]  ;;  %v14108_v20 = vld [vmem:[#allocation57_spill] sm:$0xff] }
  0xf4   : > { %v5145_v54 = vrot.slane %v5044_v3, 4  ;;  %v5389_v17 = vrot.slane %v5288_v32, 4  ;;  %6715 = vpow2.f32 %v6542_v41  ;;  %v2318_v47 = vadd.f32 %v2215_v56, %v2074_v57  ;;  %v14110_v23 = vld [vmem:[#allocation59_spill] sm:$0xff] }
  0xf5   : > { %v14095_v26 = vrot.slane %v8137_v48, 3  ;;  %v14096_v13 = vrot.slane %v8144_v7, 3  ;;  %v14097_v8 = vrot.slane %v8156_v34, 3  ;;  %v14098_v28 = vrot.slane %v8165_v51, 4  ;;  %v14101_v34 = vld [vmem:[#allocation78_spill] sm:$0xff]  ;;  %v14111_v32 = vld [vmem:[#allocation23_spill] sm:$0xff] }
  0xf6   : > { %v14099_v48 = vrot.slane %v8182_v38, 4  ;;  %v14100_v7 = vrot.slane %v8194_v40, 4  ;;  %v2563_v35 = vadd.f32 %v2460_v19, %v2318_v47  ;;  %v5532_v63 = vmul.f32 %v14101_v34, %v14075_v14  ;;  %v14106_v38 = vld [vmem:[#allocation56_spill] sm:$0xff]  ;;  %v14109_v40 = vld [vmem:[#allocation21_spill] sm:$0xff]  ;;  %v14112_v19 = vld [vmem:[#allocation62_spill] sm:$0xff] }
  0xf7   : > { %v8317_v27 = vsel %vm3666_vm3, %v14095_v26, %v4168_v45  ;;  %v8322_v58 = vsel %vm3666_vm3, %v14096_v13, %v4412_v37  ;;  %v8327_v46 = vsel %vm3666_vm3, %v14097_v8, %v4656_v31  ;;  %v8332_v43 = vsel %vm4887_vm4, %v14098_v28, %v4901_v2  ;;  %v14113_v31 = vld [vmem:[#allocation2_spill] sm:$0xff]  ;;  %v14116_v26 = vld [vmem:[#allocation3_spill] sm:$0xff] }
  0xf8   : > { %v8337_v56 = vsel %vm4887_vm4, %v14099_v48, %v5145_v54  ;;  %v8342_v61 = vsel %vm4887_vm4, %v14100_v7, %v5389_v17  ;;  %v5776_v51 = vmul.f32 %v14102_v50, %v14077_v5  ;;  %v794_v11 = vmul.f32 %v14104_v4, %v14103_v55  ;;  %v14114_v17 = vld [vmem:[#allocation12_spill] sm:$0xff]  ;;  %v14117_v8 = vld [vmem:[#allocation15_spill] sm:$0xff]  ;;  %v14119_v7 = vld [vmem:[#allocation69_spill] sm:$0xff] }
  0xf9   : > { %v862_v30 = vmul.f32 %v14106_v38, %v14105_v21  ;;  %v930_v42 = vmul.f32 %v14108_v20, %v14107_v18  ;;  %v998_v3 = vmul.f32 %v14110_v23, %v14109_v40  ;;  %v1066_v41 = vmul.f32 %v14112_v19, %v14111_v32 }
  0xfa   : > { %v2807_v57 = vadd.f32 %v2704_v10, %v2563_v35  ;;  %v5633_v45 = vrot.slane %v5532_v63, 4  ;;  %v5877_v37 = vrot.slane %v5776_v51, 4  ;;  %v1137_v2 = vmul.f32 %v14113_v31, %v14103_v55  ;;  %v14121_v63 = vld [vmem:[#allocation73_spill] sm:$0xff]  ;;  %v6714_v5 = vpop.eup %6713 }
  0xfb   : > { %v894_v54 = vadd.f32 %v862_v30, %v794_v11  ;;  %v8362_v47 = vmul.f32 %v14113_v31, %v14114_v17  ;;  %v1382_v13 = vmul.f32 %v14116_v26, %v14105_v21  ;;  %v8368_v28 = vmul.f32 %v14116_v26, %v14117_v8 }
  0xfc   : > { %v3051_v48 = vadd.f32 %v2948_v53, %v2807_v57  ;;  %v14120_v10 = vrot.slane %v14119_v7, 4  ;;  %v14122_v51 = vrot.slane %v14121_v63, 4  ;;  %v1240_v30 = vrot.slane %v1137_v2, 1  ;;  %v14123_v53 = vld [vmem:[#allocation68_spill] sm:$0xff] }
  0xfd   : > { %14115 = vst [vmem:[#allocation77_spill] sm:$0xff] %v8362_v47  ;;  %14118 = vst [vmem:[#allocation70_spill] sm:$0xff] %v8368_v28  ;;  %v962_v14 = vadd.f32 %v930_v42, %v894_v54  ;;  %v13268_v24 = vrot.slane %v8362_v47, 1  ;;  %v1484_v31 = vrot.slane %v1382_v13, 1  ;;  %v13270_v26 = vrot.slane %v8368_v28, 1  ;;  %v14126_v54 = vld [vmem:[#allocation5_spill] sm:$0xff] }
  0xfe   : > { %v8373_v35 = vsel %vm4887_vm4, %v14120_v10, %v5633_v45  ;;  %v8378_v11 = vsel %vm4887_vm4, %v14122_v51, %v5877_v37  ;;  %v6242_v57 = vmul.f32 %v6714_v5, %v14123_v53  ;;  %v3295_v7 = vadd.f32 %v3192_v16, %v3051_v48  ;;  %v14124_v45 = vld [vmem:[#allocation4_spill] sm:$0xff] }
  0xff   : > { %v1626_v10 = vmul.f32 %v14124_v45, %v14107_v18  ;;  %v8387_v63 = vmul.f32 %v14124_v45, %v14125_v44  ;;  %v1030_v37 = vadd.f32 %v998_v3, %v962_v14  ;;  %v1242_v42 = vsel %vm1224_vm1, %v1240_v30, %v13268_v24  ;;  %v14127_v51 = vld [vmem:[#allocation20_spill] sm:$0xff]  ;;  %v14128_v30 = vld [vmem:[#allocation63_spill] sm:$0xff] }
 0x100   : > { %v1486_v2 = vsel %vm1224_vm1, %v1484_v31, %v13270_v26  ;;  %v1870_v5 = vmul.f32 %v14126_v54, %v14109_v40  ;;  %6306 = vst [vmem:[%s6937_s10 + $0x118] sm:$0xff] %v6242_v57  ;;  %v3539_v16 = vadd.f32 %v3436_v0, %v3295_v7  ;;  %v8401_v53 = vmul.f32 %v14126_v54, %v14127_v51  ;;  %v14129_v28 = vld [vmem:[#allocation24_spill] sm:$0xff] }
 0x101   : > { %v1728_v13 = vrot.slane %v1626_v10, 1  ;;  %v13273_v48 = vrot.slane %v8387_v63, 1  ;;  %v1098_v14 = vadd.f32 %v1066_v41, %v1030_v37  ;;  %v2114_v24 = vmul.f32 %v14128_v30, %v14111_v32  ;;  %v6716_v41 = vpop.eup %6715 }
 0x102   : > { %v1972_v3 = vrot.slane %v1870_v5, 1  ;;  %v8407_v31 = vmul.f32 %v14128_v30, %v14129_v28  ;;  %v3784_v26 = vadd.f32 %v8291_v25, %v3539_v16  ;;  %v13276_v57 = vrot.slane %v8401_v53, 1 }
 0x103   : > { %v1730_v0 = vsel %vm1224_vm1, %v1728_v13, %v13273_v48  ;;  %v2358_v7 = vmul.f32 %v14063_v1, %v14103_v55  ;;  %v1343_v10 = vadd.f32 %v1242_v42, %v1098_v14  ;;  %v2216_v37 = vrot.slane %v2114_v24, 1 }
 0x104   : > { %v13274_v5 = vrot.slane %v8407_v31, 1  ;;  %v8419_v47 = vmul.f32 %v14063_v1, %v14114_v17  ;;  %v6147_v30 = vadd.f32 1.0, %v6716_v41  ;;  %v4028_v25 = vadd.f32 %v8296_v6, %v3784_v26 }
 0x105   : > { %v1974_v16 = vsel %vm1224_vm1, %v1972_v3, %v13276_v57  ;;  %v2461_v13 = vrot.slane %v2358_v7, 2  ;;  %v1587_v48 = vadd.f32 %v1486_v2, %v1343_v10  ;;  %v2603_v14 = vmul.f32 %v14012_v62, %v14105_v21 }
 0x106   : > { %v2218_v42 = vsel %vm1224_vm1, %v2216_v37, %v13274_v5  ;;  %v13275_v24 = vrot.slane %v8419_v47, 2  ;;  %6717 = vrcp.f32 %v6147_v30  ;;  %v4272_v41 = vadd.f32 %v8317_v27, %v4028_v25 }
 0x107   : > { %v8434_v6 = vmul.f32 %v14012_v62, %v14117_v8  ;;  %v2847_v26 = vmul.f32 %v13997_v36, %v14107_v18  ;;  %v1831_v2 = vadd.f32 %v1730_v0, %v1587_v48  ;;  %v2705_v7 = vrot.slane %v2603_v14, 2 }
 0x108   : > { %v2463_v3 = vsel %vm2445_vm2, %v2461_v13, %v13275_v24  ;;  %v8443_v10 = vmul.f32 %v13997_v36, %v14125_v44  ;;  %v4516_v30 = vadd.f32 %v8322_v58, %v4272_v41  ;;  %v3091_v25 = vmul.f32 %v7331_v59, %v14109_v40 }
 0x109   : > { %v13281_v27 = vrot.slane %v8434_v6, 2  ;;  %v2949_v37 = vrot.slane %v2847_v26, 2  ;;  %v2075_v5 = vadd.f32 %v1974_v16, %v1831_v2  ;;  %v8452_v0 = vmul.f32 %v7331_v59, %v14127_v51 }
 0x10a   : > { %v13279_v48 = vrot.slane %v8443_v10, 2  ;;  %v3335_v13 = vmul.f32 %v13960_v39, %v14111_v32  ;;  %v4760_v14 = vadd.f32 %v8327_v46, %v4516_v30  ;;  %v3193_v41 = vrot.slane %v3091_v25, 2 }
 0x10b   : > { %v2707_v58 = vsel %vm2445_vm2, %v2705_v7, %v13281_v27  ;;  %v8462_v26 = vmul.f32 %v13960_v39, %v14129_v28  ;;  %v2319_v16 = vadd.f32 %v2218_v42, %v2075_v5  ;;  %v13280_v24 = vrot.slane %v8452_v0, 2 }
 0x10c   : > { %v2951_v2 = vsel %vm2445_vm2, %v2949_v37, %v13279_v48  ;;  %v3437_v57 = vrot.slane %v3335_v13, 2  ;;  %v5005_v59 = vadd.f32 %v8332_v43, %v4760_v14  ;;  %v3579_v7 = vmul.f32 %v13961_v60, %v14103_v55 }
 0x10d   : > { %v13283_v46 = vrot.slane %v8462_v26, 2  ;;  %v8474_v30 = vmul.f32 %v13961_v60, %v14114_v17  ;;  %v2564_v25 = vadd.f32 %v2463_v3, %v2319_v16  ;;  %v3195_v5 = vsel %vm2445_vm2, %v3193_v41, %v13280_v24 }
 0x10e   : > { %v3824_v42 = vmul.f32 %v13962_v12, %v14105_v21  ;;  %v8483_v43 = vmul.f32 %v13962_v12, %v14117_v8  ;;  %v5249_v37 = vadd.f32 %v8337_v56, %v5005_v59  ;;  %v3682_v14 = vrot.slane %v3579_v7, 3 }
 0x10f   : > { %v3439_v13 = vsel %vm2445_vm2, %v3437_v57, %v13283_v46  ;;  %v13282_v3 = vrot.slane %v8474_v30, 3  ;;  %v2808_v16 = vadd.f32 %v2707_v58, %v2564_v25  ;;  %v4068_v24 = vmul.f32 %v14094_v9, %v14107_v18 }
 0x110   : > { %14130 = vst [vmem:[#allocation6_spill] sm:$0xff] %v8483_v43  ;;  %v3926_v48 = vrot.slane %v3824_v42, 3  ;;  %v13284_v41 = vrot.slane %v8483_v43, 3  ;;  %v5493_v27 = vadd.f32 %v8342_v61, %v5249_v37  ;;  %v8499_v56 = vmul.f32 %v14094_v9, %v14125_v44 }
 0x111   : > { %v3684_v59 = vsel %vm3666_vm3, %v3682_v14, %v13282_v3  ;;  %v4312_v57 = vmul.f32 %v13964_v49, %v14109_v40  ;;  %v3052_v58 = vadd.f32 %v2951_v2, %v2808_v16  ;;  %v4170_v25 = vrot.slane %v4068_v24, 3 }
 0x112   : > { %v3928_v7 = vsel %vm3666_vm3, %v3926_v48, %v13284_v41  ;;  %v8508_v61 = vmul.f32 %v13964_v49, %v14127_v51  ;;  %v5737_v42 = vadd.f32 %v8373_v35, %v5493_v27  ;;  %v13290_v37 = vrot.slane %v8499_v56, 3 }
 0x113   : > { %v4414_v14 = vrot.slane %v4312_v57, 3  ;;  %v4556_v3 = vmul.f32 %v7411_v29, %v14111_v32  ;;  %v6718_v46 = vpop.eup %6717  ;;  %v3296_v2 = vadd.f32 %v3195_v5, %v3052_v58  ;;  %v8517_v24 = vmul.f32 %v7411_v29, %v14129_v28 }
 0x114   : > { %v13288_v16 = vrot.slane %v8508_v61, 3  ;;  %v4800_v48 = vmul.f32 %v14027_v15, %v14103_v55  ;;  %v6243_v35 = vmul.f32 %v6718_v46, %v8299_v33  ;;  %v5981_v27 = vadd.f32 %v8378_v11, %v5737_v42  ;;  %v8538_v33 = vld [vmem:[%s13046_s4] ss:$0 sm:$0xff] }
 0x115   : > { %v4172_v57 = vsel %vm3666_vm3, %v4170_v25, %v13290_v37  ;;  %v4658_v41 = vrot.slane %v4556_v3, 3  ;;  %v3540_v43 = vadd.f32 %v3439_v13, %v3296_v2  ;;  %v13289_v58 = vrot.slane %v8517_v24, 3 }
 0x116   : > { %v4416_v5 = vsel %vm3666_vm3, %v4414_v14, %v13288_v16  ;;  %v8532_v29 = vmul.f32 %v14027_v15, %v14114_v17  ;;  %6307 = vst [vmem:[%s6937_s10 + $0x120] sm:$0xff] %v6243_v35  ;;  %v8541_v55 = vadd.f32 %v8538_v33, %v5981_v27  ;;  %v4903_v11 = vrot.slane %v4800_v48, 4 }
 0x117   : > { %v5045_v46 = vmul.f32 %v7436_v52, %v14105_v21  ;;  %v8547_v13 = vmul.f32 %v7436_v52, %v14117_v8  ;;  %v3785_v3 = vadd.f32 %v3684_v59, %v3540_v43  ;;  %v4660_v25 = vsel %vm3666_vm3, %v4658_v41, %v13289_v58 }
 0x118   : > { %14131 = vst [vmem:[#allocation72_spill] sm:$0xff] %v8541_v55  ;;  %v13292_v42 = vrot.slane %v8532_v29, 4  ;;  %v5289_v14 = vmul.f32 %v7441_v22, %v14107_v18  ;;  %v6543_v2 = vmul.f32 -1.442695, %v8541_v55  ;;  %v8559_v27 = vmul.f32 %v7441_v22, %v14125_v44  ;;  %v14145_v18 = vld [vmem:[#allocation70_spill] sm:$0xff] }
 0x119   : > { %v5147_v48 = vrot.slane %v5045_v46, 4  ;;  %v13291_v35 = vrot.slane %v8547_v13, 4  ;;  %v4029_v16 = vadd.f32 %v3928_v7, %v3785_v3  ;;  %v5533_v59 = vmul.f32 %v14101_v34, %v14109_v40 }
 0x11a   : > { %14132 = vst [vmem:[#allocation8_spill] sm:$0xff] %v8559_v27  ;;  %v4905_v43 = vsel %vm4887_vm4, %v4903_v11, %v13292_v42  ;;  %v5391_v41 = vrot.slane %v5289_v14, 4  ;;  %6719 = vpow2.f32 %v6543_v2  ;;  %v13295_v58 = vrot.slane %v8559_v27, 4 }
 0x11b   : > { %v5149_v46 = vsel %vm4887_vm4, %v5147_v48, %v13291_v35  ;;  %v8572_v37 = vmul.f32 %v14101_v34, %v14127_v51  ;;  %v4273_v7 = vadd.f32 %v4172_v57, %v4029_v16  ;;  %v5635_v3 = vrot.slane %v5533_v59, 4 }
 0x11c   : > { %v5777_v11 = vmul.f32 %v14102_v50, %v14111_v32  ;;  %v8578_v14 = vmul.f32 %v14102_v50, %v14129_v28  ;;  %v5393_v2 = vsel %vm4887_vm4, %v5391_v41, %v13295_v58  ;;  %v795_v35 = vmul.f32 %v14104_v4, %v14114_v17 }
 0x11d   : > { %14133 = vst [vmem:[#allocation71_spill] sm:$0xff] %v8572_v37  ;;  %v13302_v48 = vrot.slane %v8572_v37, 4  ;;  %v863_v16 = vmul.f32 %v14106_v38, %v14117_v8  ;;  %v4517_v57 = vadd.f32 %v4416_v5, %v4273_v7  ;;  %v931_v55 = vmul.f32 %v14108_v20, %v14125_v44  ;;  %v14135_v7 = vld [vmem:[#allocation13_spill] sm:$0xff]  ;;  %v14137_v44 = vld [vmem:[#allocation16_spill] sm:$0xff]  ;;  %v14138_v20 = vld [vmem:[#allocation3_spill] sm:$0xff] }
 0x11e   : > { %14134 = vst [vmem:[#allocation61_spill] sm:$0xff] %v8578_v14  ;;  %v5879_v59 = vrot.slane %v5777_v11, 4  ;;  %v13307_v42 = vrot.slane %v8578_v14, 4  ;;  %v999_v58 = vmul.f32 %v14110_v23, %v14127_v51  ;;  %v1067_v17 = vmul.f32 %v14112_v19, %v14129_v28  ;;  %v14136_v11 = vld [vmem:[#allocation2_spill] sm:$0xff]  ;;  %v14141_v51 = vld [vmem:[#allocation25_spill] sm:$0xff]  ;;  %v14142_v28 = vld [vmem:[#allocation63_spill] sm:$0xff] }
 0x11f   : > { %v5637_v32 = vsel %vm4887_vm4, %v5635_v3, %v13302_v48  ;;  %v895_v41 = vadd.f32 %v863_v16, %v795_v35  ;;  %v4761_v27 = vadd.f32 %v4660_v25, %v4517_v57  ;;  %v1139_v8 = vmul.f32 %v14136_v11, %v14135_v7  ;;  %v14139_v3 = vld [vmem:[#allocation19_spill] sm:$0xff]  ;;  %v14140_v16 = vld [vmem:[#allocation22_spill] sm:$0xff] }
 0x120   : > { %v5881_v5 = vsel %vm4887_vm4, %v5879_v59, %v13307_v42  ;;  %v1384_v37 = vmul.f32 %v14138_v20, %v14137_v44  ;;  %v1628_v35 = vmul.f32 %v14124_v45, %v14139_v3  ;;  %v1872_v48 = vmul.f32 %v14126_v54, %v14140_v16 }
 0x121   : > { %v963_v40 = vadd.f32 %v931_v55, %v895_v41  ;;  %v2116_v25 = vmul.f32 %v14142_v28, %v14141_v51  ;;  %v5006_v57 = vadd.f32 %v4905_v43, %v4761_v27  ;;  %v1243_v14 = vrot.slane %v1139_v8, 1  ;;  %v14143_v41 = vld [vmem:[#allocation77_spill] sm:$0xff] }
 0x122   : > { %v1487_v19 = vrot.slane %v1384_v37, 1  ;;  %v2360_v59 = vmul.f32 %v14063_v1, %v14135_v7  ;;  %v1731_v11 = vrot.slane %v1628_v35, 1  ;;  %v1975_v23 = vrot.slane %v1872_v48, 1 }
 0x123   : > { %v1031_v42 = vadd.f32 %v999_v58, %v963_v40  ;;  %v2219_v20 = vrot.slane %v2116_v25, 1  ;;  %v5250_v55 = vadd.f32 %v5149_v46, %v5006_v57  ;;  %v14144_v38 = vrot.slane %v14143_v41, 1 }
 0x124   : > { %v14146_v54 = vrot.slane %v14145_v18, 1  ;;  %v2464_v28 = vrot.slane %v2360_v59, 2  ;;  %v14147_v8 = vrot.slane %v8387_v63, 1  ;;  %v14148_v40 = vrot.slane %v8401_v53, 1  ;;  %v14151_v53 = vld [vmem:[#allocation67_spill] sm:$0xff] }
 0x125   : > { %v1244_v45 = vsel %vm1224_vm1, %v14144_v38, %v1243_v14  ;;  %v1099_v27 = vadd.f32 %v1067_v17, %v1031_v42  ;;  %v14149_v43 = vrot.slane %v8407_v31, 1  ;;  %v5494_v48 = vadd.f32 %v5393_v2, %v5250_v55 }
 0x126   : > { %v1488_v4 = vsel %vm1224_vm1, %v14146_v54, %v1487_v19  ;;  %v1732_v37 = vsel %vm1224_vm1, %v14147_v8, %v1731_v11  ;;  %v1976_v58 = vsel %vm1224_vm1, %v14148_v40, %v1975_v23  ;;  %v14150_v38 = vrot.slane %v8419_v47, 2 }
 0x127   : > { %v2220_v46 = vsel %vm1224_vm1, %v14149_v43, %v2219_v20  ;;  %v2605_v19 = vmul.f32 %v14012_v62, %v14137_v44  ;;  %v2849_v63 = vmul.f32 %v13997_v36, %v14139_v3  ;;  %v1344_v54 = vadd.f32 %v1244_v45, %v1099_v27  ;;  %v6720_v31 = vpop.eup %6719 }
 0x128   : > { %v2465_v18 = vsel %vm2445_vm2, %v14150_v38, %v2464_v28  ;;  %v3093_v42 = vmul.f32 %v14151_v53, %v14140_v16  ;;  %v3337_v23 = vmul.f32 %v13960_v39, %v14141_v51  ;;  %v3581_v20 = vmul.f32 %v13961_v60, %v14135_v7 }
 0x129   : > { %v5738_v47 = vadd.f32 %v5637_v32, %v5494_v48  ;;  %v2708_v14 = vrot.slane %v2605_v19, 2  ;;  %v2952_v28 = vrot.slane %v2849_v63, 2  ;;  %v3826_v2 = vmul.f32 %v13962_v12, %v14137_v44  ;;  %v14157_v19 = vld [vmem:[#allocation76_spill] sm:$0xff] }
 0x12a   : > { %v6148_v17 = vadd.f32 1.0, %v6720_v31  ;;  %v1588_v11 = vadd.f32 %v1488_v4, %v1344_v54  ;;  %v3196_v35 = vrot.slane %v3093_v42, 2  ;;  %v3440_v45 = vrot.slane %v3337_v23, 2  ;;  %v14158_v42 = vld [vmem:[#allocation6_spill] sm:$0xff] }
 0x12b   : > { %v5982_v25 = vadd.f32 %v5881_v5, %v5738_v47  ;;  %v14152_v57 = vrot.slane %v8434_v6, 2  ;;  %v14153_v55 = vrot.slane %v8443_v10, 2  ;;  %v3685_v27 = vrot.slane %v3581_v20, 3 }
 0x12c   : > { %6721 = vrcp.f32 %v6148_v17  ;;  %v1832_v32 = vadd.f32 %v1732_v37, %v1588_v11  ;;  %v14154_v8 = vrot.slane %v8452_v0, 2  ;;  %v14155_v4 = vrot.slane %v8462_v26, 2 }
 0x12d   : > { %v2709_v59 = vsel %vm2445_vm2, %v14152_v57, %v2708_v14  ;;  %v2953_v41 = vsel %vm2445_vm2, %v14153_v55, %v2952_v28  ;;  %v8656_v5 = vadd.f32 %v8538_v33, %v5982_v25  ;;  %v14156_v6 = vrot.slane %v8474_v30, 3 }
 0x12e   : > { %v3197_v40 = vsel %vm2445_vm2, %v14154_v8, %v3196_v35  ;;  %v3441_v43 = vsel %vm2445_vm2, %v14155_v4, %v3440_v45  ;;  %v3929_v48 = vrot.slane %v3826_v2, 3  ;;  %v4070_v38 = vmul.f32 %v14094_v9, %v14139_v3  ;;  %v14165_v4 = vld [vmem:[#allocation55_spill] sm:$0xff] }
 0x12f   : > { %v3686_v10 = vsel %vm3666_vm3, %v14156_v6, %v3685_v27  ;;  %v2076_v37 = vadd.f32 %v1976_v58, %v1832_v32  ;;  %v4314_v0 = vmul.f32 %v13964_v49, %v14140_v16  ;;  %v4558_v26 = vmul.f32 %v14157_v19, %v14141_v51 }
 0x130   : > { %v4802_v63 = vmul.f32 %v14027_v15, %v14135_v7  ;;  %v6544_v54 = vmul.f32 -1.442695, %v8656_v5  ;;  %v14159_v30 = vrot.slane %v14158_v42, 3  ;;  %v4173_v20 = vrot.slane %v4070_v38, 3 }
 0x131   : > { %v5047_v31 = vmul.f32 %v7436_v52, %v14137_v44  ;;  %v2320_v58 = vadd.f32 %v2220_v46, %v2076_v37  ;;  %v4417_v47 = vrot.slane %v4314_v0, 3  ;;  %v4661_v14 = vrot.slane %v4558_v26, 3  ;;  %v14168_v37 = vld [vmem:[#allocation21_spill] sm:$0xff]  ;;  %v14170_v26 = vld [vmem:[#allocation8_spill] sm:$0xff] }
 0x132   : > { %v3930_v23 = vsel %vm3666_vm3, %v14159_v30, %v3929_v48  ;;  %v4906_v28 = vrot.slane %v4802_v63, 4  ;;  %6723 = vpow2.f32 %v6544_v54  ;;  %v14160_v2 = vrot.slane %v8499_v56, 3  ;;  %v14167_v48 = vld [vmem:[#allocation56_spill] sm:$0xff]  ;;  %v14169_v0 = vld [vmem:[#allocation57_spill] sm:$0xff] }
 0x133   : > { %v5150_v7 = vrot.slane %v5047_v31, 4  ;;  %v5291_v11 = vmul.f32 %v7441_v22, %v14139_v3  ;;  %v2565_v35 = vadd.f32 %v2465_v18, %v2320_v58  ;;  %v14161_v45 = vrot.slane %v8508_v61, 3  ;;  %v14173_v31 = vld [vmem:[#allocation59_spill] sm:$0xff]  ;;  %v14188_v3 = vld [vmem:[#allocation72_spill] sm:$0xff] }
 0x134   : > { %v4174_v17 = vsel %vm3666_vm3, %v14160_v2, %v4173_v20  ;;  %v14162_v46 = vrot.slane %v8517_v24, 3  ;;  %v14163_v55 = vrot.slane %v8532_v29, 4  ;;  %v14164_v27 = vrot.slane %v8547_v13, 4  ;;  %v14166_v29 = vld [vmem:[#allocation18_spill] sm:$0xff]  ;;  %v14172_v20 = vld [vmem:[#allocation23_spill] sm:$0xff] }
 0x135   : > { %v8683_v25 = vsel %vm3666_vm3, %v14161_v45, %v4417_v47  ;;  %v5394_v18 = vrot.slane %v5291_v11, 4  ;;  %v5535_v61 = vmul.f32 %v14101_v34, %v14140_v16  ;;  %v5779_v24 = vmul.f32 %v14102_v50, %v14141_v51  ;;  %v14186_v51 = vld [vmem:[#allocation20_spill] sm:$0xff] }
 0x136   : > { %v8688_v57 = vsel %vm3666_vm3, %v14162_v46, %v4661_v14  ;;  %v8693_v56 = vsel %vm4887_vm4, %v14163_v55, %v4906_v28  ;;  %v8698_v32 = vsel %vm4887_vm4, %v14164_v27, %v5150_v7  ;;  %v2809_v8 = vadd.f32 %v2709_v59, %v2565_v35  ;;  %v14174_v14 = vld [vmem:[#allocation26_spill] sm:$0xff]  ;;  %v14177_v35 = vld [vmem:[#allocation71_spill] sm:$0xff]  ;;  %v14179_v55 = vld [vmem:[#allocation61_spill] sm:$0xff] }
 0x137   : > { %v796_v6 = vmul.f32 %v14165_v4, %v14105_v21  ;;  %v864_v38 = vmul.f32 %v14167_v48, %v14166_v29  ;;  %v932_v13 = vmul.f32 %v14169_v0, %v14168_v37  ;;  %v14171_v63 = vrot.slane %v14170_v26, 4  ;;  %v14175_v28 = vld [vmem:[#allocation62_spill] sm:$0xff] }
 0x138   : > { %v5638_v42 = vrot.slane %v5535_v61, 4  ;;  %v5882_v30 = vrot.slane %v5779_v24, 4  ;;  %v1000_v58 = vmul.f32 %v14173_v31, %v14172_v20  ;;  %v3053_v59 = vadd.f32 %v2953_v41, %v2809_v8  ;;  %v14176_v7 = vld [vmem:[#allocation2_spill] sm:$0xff]  ;;  %v14181_v61 = vld [vmem:[#allocation15_spill] sm:$0xff] }
 0x139   : > { %v8713_v54 = vsel %vm4887_vm4, %v14171_v63, %v5394_v18  ;;  %v896_v47 = vadd.f32 %v864_v38, %v796_v6  ;;  %v1068_v2 = vmul.f32 %v14175_v28, %v14174_v14  ;;  %v1140_v11 = vmul.f32 %v14176_v7, %v14105_v21  ;;  %v14182_v24 = vld [vmem:[#allocation3_spill] sm:$0xff]  ;;  %v14183_v63 = vld [vmem:[#allocation17_spill] sm:$0xff] }
 0x13a   : > { %v14178_v45 = vrot.slane %v14177_v35, 4  ;;  %v14180_v27 = vrot.slane %v14179_v55, 4  ;;  %v8733_v41 = vmul.f32 %v14176_v7, %v14181_v61  ;;  %v1385_v8 = vmul.f32 %v14182_v24, %v14166_v29  ;;  %v6722_v35 = vpop.eup %6721  ;;  %v14185_v55 = vld [vmem:[#allocation4_spill] sm:$0xff]  ;;  %v14189_v7 = vld [vmem:[#allocation5_spill] sm:$0xff] }
 0x13b   : > { %v3297_v6 = vadd.f32 %v3197_v40, %v3053_v59  ;;  %v964_v38 = vadd.f32 %v932_v13, %v896_v47  ;;  %v1245_v26 = vrot.slane %v1140_v11, 1  ;;  %v8746_v16 = vmul.f32 %v14185_v55, %v14186_v51 }
 0x13c   : > { %v8724_v46 = vsel %vm4887_vm4, %v14178_v45, %v5638_v42  ;;  %v8729_v18 = vsel %vm4887_vm4, %v14180_v27, %v5882_v30  ;;  %v8739_v42 = vmul.f32 %v14182_v24, %v14183_v63  ;;  %v13322_v45 = vrot.slane %v8733_v41, 1 }
 0x13d   : > { %v1489_v30 = vrot.slane %v1385_v8, 1  ;;  %v1629_v27 = vmul.f32 %v14185_v55, %v14168_v37  ;;  %14187 = vst [vmem:[#allocation7_spill] sm:$0xff] %v8746_v16  ;;  %v6244_v40 = vmul.f32 %v6722_v35, %v14188_v3  ;;  %v3541_v13 = vadd.f32 %v3441_v43, %v3297_v6  ;;  %v14190_v43 = vld [vmem:[#allocation24_spill] sm:$0xff] }
 0x13e   : > { %14184 = vst [vmem:[#allocation9_spill] sm:$0xff] %v8739_v42  ;;  %v1032_v59 = vadd.f32 %v1000_v58, %v964_v38  ;;  %v13321_v47 = vrot.slane %v8739_v42, 1  ;;  %v1247_v11 = vsel %vm1224_vm1, %v1245_v26, %v13322_v45  ;;  %v13323_v8 = vrot.slane %v8746_v16, 1  ;;  %v14191_v26 = vld [vmem:[#allocation63_spill] sm:$0xff] }
 0x13f   : > { %v1733_v24 = vrot.slane %v1629_v27, 1  ;;  %v1873_v44 = vmul.f32 %v14189_v7, %v14172_v20  ;;  %6308 = vst [vmem:[%s6937_s10 + $0x128] sm:$0xff] %v6244_v40  ;;  %v3786_v28 = vadd.f32 %v3686_v10, %v3541_v13  ;;  %v8762_v58 = vmul.f32 %v14189_v7, %v14190_v43  ;;  %v14192_v27 = vld [vmem:[#allocation27_spill] sm:$0xff] }
 0x140   : > { %v1100_v55 = vadd.f32 %v1068_v2, %v1032_v59  ;;  %v1491_v3 = vsel %vm1224_vm1, %v1489_v30, %v13321_v47  ;;  %v2117_v35 = vmul.f32 %v14191_v26, %v14174_v14  ;;  %v8771_v10 = vmul.f32 %v14191_v26, %v14192_v27  ;;  %v6724_v2 = vpop.eup %6723 }
 0x141   : > { %v1735_v6 = vsel %vm1224_vm1, %v1733_v24, %v13323_v8  ;;  %v1977_v38 = vrot.slane %v1873_v44, 1  ;;  %v4030_v40 = vadd.f32 %v3930_v23, %v3786_v28  ;;  %v13331_v30 = vrot.slane %v8762_v58, 1 }
 0x142   : > { %v1345_v13 = vadd.f32 %v1247_v11, %v1100_v55  ;;  %v2361_v59 = vmul.f32 %v14063_v1, %v14105_v21  ;;  %v6149_v47 = vadd.f32 1.0, %v6724_v2  ;;  %v2221_v45 = vrot.slane %v2117_v35, 1 }
 0x143   : > { %v13327_v24 = vrot.slane %v8771_v10, 1  ;;  %v8779_v44 = vmul.f32 %v14063_v1, %v14181_v61  ;;  %v4274_v8 = vadd.f32 %v4174_v17, %v4030_v40  ;;  %v1979_v23 = vsel %vm1224_vm1, %v1977_v38, %v13331_v30 }
 0x144   : > { %v1589_v16 = vadd.f32 %v1491_v3, %v1345_v13  ;;  %v2466_v28 = vrot.slane %v2361_v59, 2  ;;  %6725 = vrcp.f32 %v6149_v47  ;;  %v2606_v35 = vmul.f32 %v14012_v62, %v14166_v29 }
 0x145   : > { %v2223_v55 = vsel %vm1224_vm1, %v2221_v45, %v13327_v24  ;;  %v13326_v11 = vrot.slane %v8779_v44, 2  ;;  %v4518_v2 = vadd.f32 %v8683_v25, %v4274_v8  ;;  %v8793_v17 = vmul.f32 %v14012_v62, %v14183_v63 }
 0x146   : > { %v1833_v42 = vadd.f32 %v1735_v6, %v1589_v16  ;;  %v2850_v3 = vmul.f32 %v13997_v36, %v14168_v37  ;;  %v2710_v45 = vrot.slane %v2606_v35, 2  ;;  %v8802_v38 = vmul.f32 %v13997_v36, %v14186_v51 }
 0x147   : > { %v2468_v47 = vsel %vm2445_vm2, %v2466_v28, %v13326_v11  ;;  %v3094_v25 = vmul.f32 %v14151_v53, %v14172_v20  ;;  %v4762_v16 = vadd.f32 %v8688_v57, %v4518_v2  ;;  %v13329_v6 = vrot.slane %v8793_v17, 2 }
 0x148   : > { %v2077_v8 = vadd.f32 %v1979_v23, %v1833_v42  ;;  %v2954_v40 = vrot.slane %v2850_v3, 2  ;;  %v13328_v13 = vrot.slane %v8802_v38, 2  ;;  %v8811_v59 = vmul.f32 %v14151_v53, %v14190_v43 }
 0x149   : > { %v3198_v28 = vrot.slane %v3094_v25, 2  ;;  %v3338_v35 = vmul.f32 %v13960_v39, %v14174_v14  ;;  %v5007_v11 = vadd.f32 %v8693_v56, %v4762_v16  ;;  %v2712_v57 = vsel %vm2445_vm2, %v2710_v45, %v13329_v6 }
 0x14a   : > { %v2321_v24 = vadd.f32 %v2223_v55, %v2077_v8  ;;  %v8821_v42 = vmul.f32 %v13960_v39, %v14192_v27  ;;  %v2956_v23 = vsel %vm2445_vm2, %v2954_v40, %v13328_v13  ;;  %v13330_v2 = vrot.slane %v8811_v59, 2 }
 0x14b   : > { %v3442_v3 = vrot.slane %v3338_v35, 2  ;;  %v3582_v25 = vmul.f32 %v13961_v60, %v14105_v21  ;;  %v5251_v56 = vadd.f32 %v8698_v32, %v5007_v11  ;;  %v8833_v45 = vmul.f32 %v13961_v60, %v14181_v61 }
 0x14c   : > { %v2566_v55 = vadd.f32 %v2468_v47, %v2321_v24  ;;  %v13332_v16 = vrot.slane %v8821_v42, 2  ;;  %v3200_v8 = vsel %vm2445_vm2, %v3198_v28, %v13330_v2  ;;  %v3827_v35 = vmul.f32 %v13962_v12, %v14166_v29 }
 0x14d   : > { %v3687_v40 = vrot.slane %v3582_v25, 3  ;;  %v8842_v13 = vmul.f32 %v13962_v12, %v14183_v63  ;;  %v5495_v32 = vadd.f32 %v8713_v54, %v5251_v56  ;;  %v13333_v47 = vrot.slane %v8833_v45, 3 }
 0x14e   : > { %v2810_v24 = vadd.f32 %v2712_v57, %v2566_v55  ;;  %v3444_v11 = vsel %vm2445_vm2, %v3442_v3, %v13332_v16  ;;  %v3931_v6 = vrot.slane %v3827_v35, 3  ;;  %v4071_v25 = vmul.f32 %v14094_v9, %v14168_v37 }
 0x14f   : > { %14193 = vst [vmem:[#allocation60_spill] sm:$0xff] %v8842_v13  ;;  %v13334_v28 = vrot.slane %v8842_v13, 3  ;;  %v8854_v2 = vmul.f32 %v14094_v9, %v14186_v51  ;;  %v5739_v30 = vadd.f32 %v8724_v46, %v5495_v32  ;;  %v3689_v57 = vsel %vm3666_vm3, %v3687_v40, %v13333_v47 }
 0x150   : > { %v3054_v54 = vadd.f32 %v2956_v23, %v2810_v24  ;;  %v4315_v3 = vmul.f32 %v13964_v49, %v14172_v20  ;;  %v4175_v55 = vrot.slane %v4071_v25, 3  ;;  %v8868_v16 = vmul.f32 %v13964_v49, %v14190_v43 }
 0x151   : > { %v3933_v56 = vsel %vm3666_vm3, %v3931_v6, %v13334_v28  ;;  %v13337_v35 = vrot.slane %v8854_v2, 3  ;;  %v6726_v46 = vpop.eup %6725  ;;  %v5983_v23 = vadd.f32 %v8729_v18, %v5739_v30  ;;  %v4559_v24 = vmul.f32 %v14157_v19, %v14174_v14 }
 0x152   : > { %v3298_v32 = vadd.f32 %v3200_v8, %v3054_v54  ;;  %v4419_v40 = vrot.slane %v4315_v3, 3  ;;  %v6245_v47 = vmul.f32 %v6726_v46, %v8656_v5  ;;  %v13336_v25 = vrot.slane %v8868_v16, 3 }
 0x153   : > { %v4177_v6 = vsel %vm3666_vm3, %v4175_v55, %v13337_v35  ;;  %v8880_v28 = vmul.f32 %v14157_v19, %v14192_v27  ;;  %v8883_v13 = vadd.f32 %v8538_v33, %v5983_v23  ;;  %v4663_v30 = vrot.slane %v4559_v24, 3 }
 0x154   : > { %v3542_v18 = vadd.f32 %v3444_v11, %v3298_v32  ;;  %v4803_v8 = vmul.f32 %v14027_v15, %v14105_v21  ;;  %6309 = vst [vmem:[%s6937_s10 + $0x130] sm:$0xff] %v6245_v47  ;;  %v4421_v5 = vsel %vm3666_vm3, %v4419_v40, %v13336_v25  ;;  %v8894_v3 = vmul.f32 %v14027_v15, %v14181_v61 }
 0x155   : > { %14194 = vst [vmem:[#allocation66_spill] sm:$0xff] %v8883_v13  ;;  %v13338_v54 = vrot.slane %v8880_v28, 3  ;;  %v5048_v55 = vmul.f32 %v7436_v52, %v14166_v29  ;;  %v6545_v11 = vmul.f32 -1.442695, %v8883_v13  ;;  %v8901_v21 = vmul.f32 %v7436_v52, %v14183_v63 }
 0x156   : > { %v3787_v46 = vadd.f32 %v3689_v57, %v3542_v18  ;;  %v4908_v23 = vrot.slane %v4803_v8, 4  ;;  %v13340_v32 = vrot.slane %v8894_v3, 4  ;;  %v5292_v24 = vmul.f32 %v7441_v22, %v14168_v37  ;;  %v14203_v37 = vld [vmem:[#allocation22_spill] sm:$0xff] }
 0x157   : > { %v4665_v47 = vsel %vm3666_vm3, %v4663_v30, %v13338_v54  ;;  %v5152_v40 = vrot.slane %v5048_v55, 4  ;;  %6727 = vpow2.f32 %v6545_v11  ;;  %v13341_v35 = vrot.slane %v8901_v21, 4 }
 0x158   : > { %v4031_v25 = vadd.f32 %v3933_v56, %v3787_v46  ;;  %v8912_v57 = vmul.f32 %v7441_v22, %v14186_v51  ;;  %v4910_v18 = vsel %vm4887_vm4, %v4908_v23, %v13340_v32  ;;  %v5396_v8 = vrot.slane %v5292_v24, 4 }
 0x159   : > { %v5536_v30 = vmul.f32 %v14101_v34, %v14172_v20  ;;  %v8921_v55 = vmul.f32 %v14101_v34, %v14190_v43  ;;  %v5154_v56 = vsel %vm4887_vm4, %v5152_v40, %v13341_v35  ;;  %v5780_v54 = vmul.f32 %v14102_v50, %v14174_v14 }
 0x15a   : > { %14195 = vst [vmem:[#allocation10_spill] sm:$0xff] %v8912_v57  ;;  %v4275_v11 = vadd.f32 %v4177_v6, %v4031_v25  ;;  %v13344_v46 = vrot.slane %v8912_v57, 4  ;;  %v8932_v24 = vmul.f32 %v14102_v50, %v14192_v27  ;;  %v797_v32 = vmul.f32 %v14165_v4, %v14181_v61  ;;  %v14200_v57 = vld [vmem:[#allocation2_spill] sm:$0xff]  ;;  %v14205_v4 = vld [vmem:[#allocation25_spill] sm:$0xff] }
 0x15b   : > { %14196 = vst [vmem:[#allocation78_spill] sm:$0xff] %v8921_v55  ;;  %v5640_v13 = vrot.slane %v5536_v30, 4  ;;  %v13347_v23 = vrot.slane %v8921_v55, 4  ;;  %v5884_v40 = vrot.slane %v5780_v54, 4  ;;  %v865_v35 = vmul.f32 %v14167_v48, %v14183_v63  ;;  %v14202_v55 = vld [vmem:[#allocation3_spill] sm:$0xff] }
 0x15c   : > { %14197 = vst [vmem:[#allocation11_spill] sm:$0xff] %v8932_v24  ;;  %v4519_v6 = vadd.f32 %v4421_v5, %v4275_v11  ;;  %v5398_v25 = vsel %vm4887_vm4, %v5396_v8, %v13344_v46  ;;  %v13357_v14 = vrot.slane %v8932_v24, 4  ;;  %v933_v20 = vmul.f32 %v14169_v0, %v14186_v51  ;;  %v14198_v8 = vld [vmem:[#allocation62_spill] sm:$0xff]  ;;  %v14199_v46 = vld [vmem:[#allocation16_spill] sm:$0xff] }
 0x15d   : > { %v5642_v30 = vsel %vm4887_vm4, %v5640_v13, %v13347_v23  ;;  %v1001_v61 = vmul.f32 %v14173_v31, %v14190_v43  ;;  %v897_v11 = vadd.f32 %v865_v35, %v797_v32  ;;  %v1069_v54 = vmul.f32 %v14198_v8, %v14192_v27  ;;  %v14201_v23 = vld [vmem:[#allocation19_spill] sm:$0xff]  ;;  %v14204_v51 = vld [vmem:[#allocation4_spill] sm:$0xff] }
 0x15e   : > { %v4763_v5 = vadd.f32 %v4665_v47, %v4519_v6  ;;  %v1142_v63 = vmul.f32 %v14200_v57, %v14199_v46  ;;  %v5886_v13 = vsel %vm4887_vm4, %v5884_v40, %v13357_v14  ;;  %v1387_v48 = vmul.f32 %v14202_v55, %v14201_v23  ;;  %v14206_v27 = vld [vmem:[#allocation28_spill] sm:$0xff] }
 0x15f   : > { %v1631_v0 = vmul.f32 %v14204_v51, %v14203_v37  ;;  %v1875_v47 = vmul.f32 %v14189_v7, %v14205_v4  ;;  %v965_v32 = vadd.f32 %v933_v20, %v897_v11  ;;  %v2119_v43 = vmul.f32 %v14191_v26, %v14206_v27  ;;  %v14208_v7 = vld [vmem:[#allocation9_spill] sm:$0xff] }
 0x160   : > { %v5008_v35 = vadd.f32 %v4910_v18, %v4763_v5  ;;  %v1248_v6 = vrot.slane %v1142_v63, 1  ;;  %v1492_v57 = vrot.slane %v1387_v48, 1  ;;  %v2363_v40 = vmul.f32 %v14063_v1, %v14199_v46  ;;  %v14210_v63 = vld [vmem:[#allocation7_spill] sm:$0xff] }
 0x161   : > { %v1736_v8 = vrot.slane %v1631_v0, 1  ;;  %v1980_v24 = vrot.slane %v1875_v47, 1  ;;  %v1033_v55 = vadd.f32 %v1001_v61, %v965_v32  ;;  %v14207_v31 = vrot.slane %v8733_v41, 1 }
 0x162   : > { %v5252_v14 = vadd.f32 %v5154_v56, %v5008_v35  ;;  %v2224_v29 = vrot.slane %v2119_v43, 1  ;;  %v14209_v18 = vrot.slane %v14208_v7, 1  ;;  %v14211_v5 = vrot.slane %v14210_v63, 1 }
 0x163   : > { %v1249_v51 = vsel %vm1224_vm1, %v14207_v31, %v1248_v6  ;;  %v14212_v0 = vrot.slane %v8762_v58, 1  ;;  %v2469_v47 = vrot.slane %v2363_v40, 2  ;;  %v1101_v61 = vadd.f32 %v1069_v54, %v1033_v55 }
 0x164   : > { %v1493_v20 = vsel %vm1224_vm1, %v14209_v18, %v1492_v57  ;;  %v1737_v48 = vsel %vm1224_vm1, %v14211_v5, %v1736_v8  ;;  %v5496_v56 = vadd.f32 %v5398_v25, %v5252_v14  ;;  %v14213_v41 = vrot.slane %v8771_v10, 1  ;;  %v6728_v43 = vpop.eup %6727 }
 0x165   : > { %v1981_v11 = vsel %vm1224_vm1, %v14212_v0, %v1980_v24  ;;  %v2608_v7 = vmul.f32 %v14012_v62, %v14201_v23  ;;  %v14214_v57 = vrot.slane %v8779_v44, 2  ;;  %v2852_v58 = vmul.f32 %v13997_v36, %v14203_v37 }
 0x166   : > { %v2225_v31 = vsel %vm1224_vm1, %v14213_v41, %v2224_v29  ;;  %v3096_v24 = vmul.f32 %v14151_v53, %v14205_v4  ;;  %v3340_v14 = vmul.f32 %v13960_v39, %v14206_v27  ;;  %v6150_v10 = vadd.f32 1.0, %v6728_v43 }
 0x167   : > { %v2470_v35 = vsel %vm2445_vm2, %v14214_v57, %v2469_v47  ;;  %v5740_v55 = vadd.f32 %v5642_v30, %v5496_v56  ;;  %v1346_v29 = vadd.f32 %v1249_v51, %v1101_v61  ;;  %v2713_v25 = vrot.slane %v2608_v7, 2 }
 0x168   : > { %v2957_v8 = vrot.slane %v2852_v58, 2  ;;  %v3201_v54 = vrot.slane %v3096_v24, 2  ;;  %v3445_v32 = vrot.slane %v3340_v14, 2  ;;  %v3584_v44 = vmul.f32 %v13961_v60, %v14199_v46 }
 0x169   : > { %6729 = vrcp.f32 %v6150_v10  ;;  %v5984_v6 = vadd.f32 %v5886_v13, %v5740_v55  ;;  %v1590_v40 = vadd.f32 %v1493_v20, %v1346_v29  ;;  %v14215_v18 = vrot.slane %v8793_v17, 2 }
 0x16a   : > { %v14216_v5 = vrot.slane %v8802_v38, 2  ;;  %v14217_v51 = vrot.slane %v8811_v59, 2  ;;  %v14218_v47 = vrot.slane %v8821_v42, 2  ;;  %v3690_v61 = vrot.slane %v3584_v44, 3 }
 0x16b   : > { %v2714_v63 = vsel %vm2445_vm2, %v14215_v18, %v2713_v25  ;;  %v9007_v13 = vadd.f32 %v8538_v33, %v5984_v6  ;;  %v1834_v20 = vadd.f32 %v1737_v48, %v1590_v40  ;;  %v3829_v17 = vmul.f32 %v13962_v12, %v14201_v23  ;;  %v14220_v25 = vld [vmem:[#allocation60_spill] sm:$0xff] }
 0x16c   : > { %v2958_v0 = vsel %vm2445_vm2, %v14216_v5, %v2957_v8  ;;  %v3202_v30 = vsel %vm2445_vm2, %v14217_v51, %v3201_v54  ;;  %v3446_v56 = vsel %vm2445_vm2, %v14218_v47, %v3445_v32  ;;  %v4073_v38 = vmul.f32 %v14094_v9, %v14203_v37 }
 0x16d   : > { %v14219_v41 = vrot.slane %v8833_v45, 3  ;;  %v4317_v42 = vmul.f32 %v13964_v49, %v14205_v4  ;;  %v4561_v7 = vmul.f32 %v14157_v19, %v14206_v27  ;;  %v4805_v43 = vmul.f32 %v14027_v15, %v14199_v46 }
 0x16e   : > { %v6546_v48 = vmul.f32 -1.442695, %v9007_v13  ;;  %v2078_v57 = vadd.f32 %v1981_v11, %v1834_v20  ;;  %v3934_v58 = vrot.slane %v3829_v17, 3  ;;  %v4178_v24 = vrot.slane %v4073_v38, 3  ;;  %v14228_v20 = vld [vmem:[#allocation55_spill] sm:$0xff]  ;;  %v14229_v38 = vld [vmem:[#allocation21_spill] sm:$0xff] }
 0x16f   : > { %v3691_v59 = vsel %vm3666_vm3, %v14219_v41, %v3690_v61  ;;  %v4422_v14 = vrot.slane %v4317_v42, 3  ;;  %v4666_v10 = vrot.slane %v4561_v7, 3  ;;  %v4911_v55 = vrot.slane %v4805_v43, 4  ;;  %v14230_v41 = vld [vmem:[#allocation56_spill] sm:$0xff]  ;;  %v14231_v42 = vld [vmem:[#allocation23_spill] sm:$0xff]  ;;  %v14232_v7 = vld [vmem:[#allocation57_spill] sm:$0xff] }
 0x170   : > { %v5050_v45 = vmul.f32 %v7436_v52, %v14201_v23  ;;  %6731 = vpow2.f32 %v6546_v48  ;;  %v2322_v29 = vadd.f32 %v2225_v31, %v2078_v57  ;;  %v14221_v8 = vrot.slane %v14220_v25, 3 }
 0x171   : > { %v14222_v32 = vrot.slane %v8854_v2, 3  ;;  %v14223_v11 = vrot.slane %v8868_v16, 3  ;;  %v14224_v6 = vrot.slane %v8880_v28, 3  ;;  %v14225_v31 = vrot.slane %v8894_v3, 4  ;;  %v14227_v3 = vld [vmem:[#allocation18_spill] sm:$0xff] }
 0x172   : > { %v3935_v54 = vsel %vm3666_vm3, %v14221_v8, %v3934_v58  ;;  %v5155_v5 = vrot.slane %v5050_v45, 4  ;;  %v2567_v2 = vadd.f32 %v2470_v35, %v2322_v29  ;;  %v5294_v51 = vmul.f32 %v7441_v22, %v14203_v37  ;;  %v14235_v45 = vld [vmem:[#allocation30_spill] sm:$0xff]  ;;  %v14251_v37 = vld [vmem:[#allocation24_spill] sm:$0xff] }
 0x173   : > { %v9031_v46 = vsel %vm3666_vm3, %v14222_v32, %v4178_v24  ;;  %v9036_v44 = vsel %vm3666_vm3, %v14223_v11, %v4422_v14  ;;  %v9041_v40 = vsel %vm3666_vm3, %v14224_v6, %v4666_v10  ;;  %v9046_v18 = vsel %vm4887_vm4, %v14225_v31, %v4911_v55  ;;  %v14233_v10 = vld [vmem:[#allocation26_spill] sm:$0xff]  ;;  %v14234_v55 = vld [vmem:[#allocation59_spill] sm:$0xff] }
 0x174   : > { %v5538_v16 = vmul.f32 %v14101_v34, %v14205_v4  ;;  %v5782_v47 = vmul.f32 %v14102_v50, %v14206_v27  ;;  %v14226_v28 = vrot.slane %v8901_v21, 4  ;;  %v798_v17 = vmul.f32 %v14228_v20, %v14227_v3  ;;  %v14236_v29 = vld [vmem:[#allocation62_spill] sm:$0xff]  ;;  %v14244_v27 = vld [vmem:[#allocation17_spill] sm:$0xff] }
 0x175   : > { %v866_v35 = vmul.f32 %v14230_v41, %v14229_v38  ;;  %v934_v43 = vmul.f32 %v14232_v7, %v14231_v42  ;;  %v2811_v48 = vadd.f32 %v2714_v63, %v2567_v2  ;;  %v5399_v57 = vrot.slane %v5294_v51, 4  ;;  %v14237_v8 = vld [vmem:[#allocation2_spill] sm:$0xff] }
 0x176   : > { %v9057_v61 = vsel %vm4887_vm4, %v14226_v28, %v5155_v5  ;;  %v5643_v58 = vrot.slane %v5538_v16, 4  ;;  %v5887_v24 = vrot.slane %v5782_v47, 4  ;;  %v1002_v21 = vmul.f32 %v14234_v55, %v14233_v10  ;;  %v14238_v6 = vld [vmem:[#allocation10_spill] sm:$0xff]  ;;  %v14242_v16 = vld [vmem:[#allocation11_spill] sm:$0xff] }
 0x177   : > { %v898_v14 = vadd.f32 %v866_v35, %v798_v17  ;;  %v1070_v25 = vmul.f32 %v14236_v29, %v14235_v45  ;;  %v1143_v32 = vmul.f32 %v14237_v8, %v14227_v3  ;;  %v3055_v11 = vadd.f32 %v2958_v0, %v2811_v48  ;;  %v14240_v63 = vld [vmem:[#allocation78_spill] sm:$0xff]  ;;  %v6730_v17 = vpop.eup %6729 }
 0x178   : > { %v14239_v31 = vrot.slane %v14238_v6, 4  ;;  %v14241_v2 = vrot.slane %v14240_v63, 4  ;;  %v14243_v47 = vrot.slane %v14242_v16, 4  ;;  %v9088_v0 = vmul.f32 %v14237_v8, %v14244_v27 }
 0x179   : > { %v966_v35 = vadd.f32 %v934_v43, %v898_v14  ;;  %v1250_v48 = vrot.slane %v1143_v32, 1  ;;  %v3299_v4 = vadd.f32 %v3202_v30, %v3055_v11  ;;  %v14252_v11 = vld [vmem:[#allocation5_spill] sm:$0xff] }
 0x17a   : > { %v9074_v5 = vsel %vm4887_vm4, %v14239_v31, %v5399_v57  ;;  %v9079_v51 = vsel %vm4887_vm4, %v14241_v2, %v5643_v58  ;;  %v9084_v28 = vsel %vm4887_vm4, %v14243_v47, %v5887_v24  ;;  %14245 = vst [vmem:[#allocation14_spill] sm:$0xff] %v9088_v0  ;;  %v14246_v57 = vld [vmem:[#allocation3_spill] sm:$0xff]  ;;  %v14247_v31 = vld [vmem:[#allocation66_spill] sm:$0xff]  ;;  %v14248_v58 = vld [vmem:[#allocation20_spill] sm:$0xff]  ;;  %v13368_v43 = vrot.slane %v9088_v0, 1 }
 0x17b   : > { %v1388_v6 = vmul.f32 %v14246_v57, %v14229_v38  ;;  %v6246_v63 = vmul.f32 %v6730_v17, %v14247_v31  ;;  %v9095_v2 = vmul.f32 %v14246_v57, %v14248_v58  ;;  %v14250_v24 = vld [vmem:[#allocation4_spill] sm:$0xff]  ;;  %v1034_v47 = vadd.f32 %v1002_v21, %v966_v35 }
 0x17c   : > { %v1632_v16 = vmul.f32 %v14250_v24, %v14231_v42  ;;  %v9102_v32 = vmul.f32 %v14250_v24, %v14251_v37  ;;  %v3543_v8 = vadd.f32 %v3446_v56, %v3299_v4  ;;  %v1876_v31 = vmul.f32 %v14252_v11, %v14233_v10 }
 0x17d   : > { %14249 = vst [vmem:[#allocation12_spill] sm:$0xff] %v9095_v2  ;;  %v1494_v14 = vrot.slane %v1388_v6, 1  ;;  %6310 = vst [vmem:[%s6937_s10 + $0x138] sm:$0xff] %v6246_v63  ;;  %v13377_v17 = vrot.slane %v9095_v2, 1  ;;  %v1102_v57 = vadd.f32 %v1070_v25, %v1034_v47  ;;  %v1252_v21 = vsel %vm1224_vm1, %v1250_v48, %v13368_v43  ;;  %v14253_v6 = vld [vmem:[#allocation27_spill] sm:$0xff]  ;;  %v6732_v25 = vpop.eup %6731  ;;  %v14254_v43 = vld [vmem:[#allocation29_spill] sm:$0xff] }
 0x17e   : > { %v1738_v30 = vrot.slane %v1632_v16, 1  ;;  %v13371_v35 = vrot.slane %v9102_v32, 1  ;;  %v9114_v23 = vmul.f32 %v14252_v11, %v14253_v6  ;;  %v3788_v24 = vadd.f32 %v3691_v59, %v3543_v8 }
 0x17f   : > { %v1496_v4 = vsel %vm1224_vm1, %v1494_v14, %v13377_v17  ;;  %v1982_v56 = vrot.slane %v1876_v31, 1  ;;  %v2120_v63 = vmul.f32 %v14191_v26, %v14235_v45  ;;  %v1347_v16 = vadd.f32 %v1252_v21, %v1102_v57 }
 0x180   : > { %v1740_v48 = vsel %vm1224_vm1, %v1738_v30, %v13371_v35  ;;  %v13373_v47 = vrot.slane %v9114_v23, 1  ;;  %v9127_v0 = vmul.f32 %v14191_v26, %v14254_v43  ;;  %v6151_v59 = vadd.f32 1.0, %v6732_v25 }
 0x181   : > { %v4032_v8 = vadd.f32 %v3935_v54, %v3788_v24  ;;  %v2226_v2 = vrot.slane %v2120_v63, 1  ;;  %v2364_v14 = vmul.f32 %v14063_v1, %v14227_v3  ;;  %v1591_v31 = vadd.f32 %v1496_v4, %v1347_v16 }
 0x182   : > { %v1984_v57 = vsel %vm1224_vm1, %v1982_v56, %v13373_v47  ;;  %v13372_v21 = vrot.slane %v9127_v0, 1  ;;  %v9137_v30 = vmul.f32 %v14063_v1, %v14244_v27  ;;  %6733 = vrcp.f32 %v6151_v59 }
 0x183   : > { %v4276_v35 = vadd.f32 %v9031_v46, %v4032_v8  ;;  %v2471_v25 = vrot.slane %v2364_v14, 2  ;;  %v2609_v54 = vmul.f32 %v14012_v62, %v14229_v38  ;;  %v1835_v24 = vadd.f32 %v1740_v48, %v1591_v31 }
 0x184   : > { %v2228_v4 = vsel %vm1224_vm1, %v2226_v2, %v13372_v21  ;;  %v13374_v56 = vrot.slane %v9137_v30, 2  ;;  %v9148_v63 = vmul.f32 %v14012_v62, %v14248_v58  ;;  %v2853_v46 = vmul.f32 %v13997_v36, %v14231_v42 }
 0x185   : > { %v4520_v16 = vadd.f32 %v9036_v44, %v4276_v35  ;;  %v2715_v59 = vrot.slane %v2609_v54, 2  ;;  %v9155_v8 = vmul.f32 %v13997_v36, %v14251_v37  ;;  %v2079_v48 = vadd.f32 %v1984_v57, %v1835_v24 }
 0x186   : > { %v2473_v2 = vsel %vm2445_vm2, %v2471_v25, %v13374_v56  ;;  %v13376_v14 = vrot.slane %v9148_v63, 2  ;;  %v3097_v31 = vmul.f32 %v14151_v53, %v14233_v10  ;;  %v2959_v35 = vrot.slane %v2853_v46, 2 }
 0x187   : > { %v4764_v44 = vadd.f32 %v9041_v40, %v4520_v16  ;;  %v13375_v54 = vrot.slane %v9155_v8, 2  ;;  %v9167_v21 = vmul.f32 %v14151_v53, %v14253_v6  ;;  %v2323_v47 = vadd.f32 %v2228_v4, %v2079_v48 }
 0x188   : > { %v2717_v57 = vsel %vm2445_vm2, %v2715_v59, %v13376_v14  ;;  %v3203_v25 = vrot.slane %v3097_v31, 2  ;;  %v3341_v24 = vmul.f32 %v13960_v39, %v14235_v45  ;;  %v9181_v46 = vmul.f32 %v13960_v39, %v14254_v43 }
 0x189   : > { %v5009_v56 = vadd.f32 %v9046_v18, %v4764_v44  ;;  %v2961_v40 = vsel %vm2445_vm2, %v2959_v35, %v13375_v54  ;;  %v13378_v16 = vrot.slane %v9167_v21, 2  ;;  %v2568_v4 = vadd.f32 %v2473_v2, %v2323_v47 }
 0x18a   : > { %v3447_v48 = vrot.slane %v3341_v24, 2  ;;  %v3585_v59 = vmul.f32 %v13961_v60, %v14227_v3  ;;  %v9187_v31 = vmul.f32 %v13961_v60, %v14244_v27  ;;  %v13380_v35 = vrot.slane %v9181_v46, 2 }
 0x18b   : > { %v5253_v18 = vadd.f32 %v9057_v61, %v5009_v56  ;;  %v3205_v44 = vsel %vm2445_vm2, %v3203_v25, %v13378_v16  ;;  %v3830_v54 = vmul.f32 %v13962_v12, %v14229_v38  ;;  %v2812_v47 = vadd.f32 %v2717_v57, %v2568_v4 }
 0x18c   : > { %v3692_v2 = vrot.slane %v3585_v59, 3  ;;  %v13379_v24 = vrot.slane %v9187_v31, 3  ;;  %v9199_v14 = vmul.f32 %v13962_v12, %v14248_v58  ;;  %v3449_v61 = vsel %vm2445_vm2, %v3447_v48, %v13380_v35 }
 0x18d   : > { %v5497_v17 = vadd.f32 %v9074_v5, %v5253_v18  ;;  %v3936_v56 = vrot.slane %v3830_v54, 3  ;;  %v4074_v25 = vmul.f32 %v14094_v9, %v14231_v42  ;;  %v3056_v16 = vadd.f32 %v2961_v40, %v2812_v47 }
 0x18e   : > { %v3694_v57 = vsel %vm3666_vm3, %v3692_v2, %v13379_v24  ;;  %v13383_v4 = vrot.slane %v9199_v14, 3  ;;  %v9213_v59 = vmul.f32 %v14094_v9, %v14251_v37  ;;  %v4318_v54 = vmul.f32 %v13964_v49, %v14233_v10 }
 0x18f   : > { %v5741_v5 = vadd.f32 %v9079_v51, %v5497_v17  ;;  %v4180_v18 = vrot.slane %v4074_v25, 3  ;;  %v9220_v40 = vmul.f32 %v13964_v49, %v14253_v6  ;;  %v6734_v48 = vpop.eup %6733  ;;  %v3300_v47 = vadd.f32 %v3205_v44, %v3056_v16 }
 0x190   : > { %v3938_v2 = vsel %vm3666_vm3, %v3936_v56, %v13383_v4  ;;  %v13385_v24 = vrot.slane %v9213_v59, 3  ;;  %v4562_v51 = vmul.f32 %v14157_v19, %v14235_v45  ;;  %v6247_v17 = vmul.f32 %v6734_v48, %v9007_v13 }
 0x191   : > { %v5985_v25 = vadd.f32 %v9084_v28, %v5741_v5  ;;  %v4424_v35 = vrot.slane %v4318_v54, 3  ;;  %v13384_v9 = vrot.slane %v9220_v40, 3  ;;  %v3544_v49 = vadd.f32 %v3449_v61, %v3300_v47 }
 0x192   : > { %v4182_v16 = vsel %vm3666_vm3, %v4180_v18, %v13385_v24  ;;  %v9236_v44 = vmul.f32 %v14157_v19, %v14254_v43  ;;  %v4668_v56 = vrot.slane %v4562_v51, 3  ;;  %6311 = vst [vmem:[%s6937_s10 + $0x140] sm:$0xff] %v6247_v17  ;;  %v4806_v28 = vmul.f32 %v14027_v15, %v14227_v3 }
 0x193   : > { %v9240_v4 = vadd.f32 %v8538_v33, %v5985_v25  ;;  %v4426_v13 = vsel %vm3666_vm3, %v4424_v35, %v13384_v9  ;;  %v9249_v61 = vmul.f32 %v14027_v15, %v14244_v27  ;;  %v3789_v5 = vadd.f32 %v3694_v57, %v3544_v49 }
 0x194   : > { %v13388_v18 = vrot.slane %v9236_v44, 3  ;;  %v5051_v54 = vmul.f32 %v7436_v52, %v14229_v38  ;;  %v9256_v33 = vmul.f32 %v7436_v52, %v14248_v58  ;;  %v4913_v35 = vrot.slane %v4806_v28, 4 }
 0x195   : > { %14255 = vst [vmem:[#allocation69_spill] sm:$0xff] %v9240_v4  ;;  %v6547_v48 = vmul.f32 -1.442695, %v9240_v4  ;;  %v13387_v47 = vrot.slane %v9249_v61, 4  ;;  %v5295_v3 = vmul.f32 %v7441_v22, %v14231_v42  ;;  %v4033_v51 = vadd.f32 %v3938_v2, %v3789_v5 }
 0x196   : > { %v4670_v49 = vsel %vm3666_vm3, %v4668_v56, %v13388_v18  ;;  %v5157_v57 = vrot.slane %v5051_v54, 4  ;;  %v13386_v17 = vrot.slane %v9256_v33, 4  ;;  %v9271_v28 = vmul.f32 %v7441_v22, %v14251_v37 }
 0x197   : > { %6735 = vpow2.f32 %v6547_v48  ;;  %v4915_v25 = vsel %vm4887_vm4, %v4913_v35, %v13387_v47  ;;  %v5401_v9 = vrot.slane %v5295_v3, 4  ;;  %v4277_v24 = vadd.f32 %v4182_v16, %v4033_v51 }
 0x198   : > { %14256 = vst [vmem:[#allocation73_spill] sm:$0xff] %v9271_v28  ;;  %v5159_v2 = vsel %vm4887_vm4, %v5157_v57, %v13386_v17  ;;  %v5539_v56 = vmul.f32 %v14101_v34, %v14233_v10  ;;  %v9280_v5 = vmul.f32 %v14101_v34, %v14253_v6  ;;  %v13392_v54 = vrot.slane %v9271_v28, 4 }
 0x199   : > { %v5783_v48 = vmul.f32 %v14102_v50, %v14235_v45  ;;  %v9287_v35 = vmul.f32 %v14102_v50, %v14254_v43  ;;  %v799_v16 = vmul.f32 %v14228_v20, %v14244_v27  ;;  %v4521_v3 = vadd.f32 %v4426_v13, %v4277_v24 }
 0x19a   : > { %14257 = vst [vmem:[#allocation68_spill] sm:$0xff] %v9280_v5  ;;  %v5645_v51 = vrot.slane %v5539_v56, 4  ;;  %v13397_v57 = vrot.slane %v9280_v5, 4  ;;  %v867_v17 = vmul.f32 %v14230_v41, %v14248_v58  ;;  %v5403_v47 = vsel %vm4887_vm4, %v5401_v9, %v13392_v54  ;;  %v14260_v54 = vld [vmem:[#allocation2_spill] sm:$0xff] }
 0x19b   : > { %14258 = vst [vmem:[#allocation13_spill] sm:$0xff] %v9287_v35  ;;  %v5889_v18 = vrot.slane %v5783_v48, 4  ;;  %v13401_v4 = vrot.slane %v9287_v35, 4  ;;  %v935_v45 = vmul.f32 %v14232_v7, %v14251_v37  ;;  %v4765_v10 = vadd.f32 %v4670_v49, %v4521_v3  ;;  %v14259_v48 = vld [vmem:[#allocation19_spill] sm:$0xff]  ;;  %v14261_v37 = vld [vmem:[#allocation22_spill] sm:$0xff] }
 0x19c   : > { %v5647_v27 = vsel %vm4887_vm4, %v5645_v51, %v13397_v57  ;;  %v899_v24 = vadd.f32 %v867_v17, %v799_v16  ;;  %v1003_v13 = vmul.f32 %v14234_v55, %v14253_v6  ;;  %v1071_v9 = vmul.f32 %v14236_v29, %v14254_v43  ;;  %v14262_v49 = vld [vmem:[#allocation3_spill] sm:$0xff]  ;;  %v14263_v51 = vld [vmem:[#allocation25_spill] sm:$0xff]  ;;  %v14264_v17 = vld [vmem:[#allocation4_spill] sm:$0xff] }
 0x19d   : > { %v5891_v56 = vsel %vm4887_vm4, %v5889_v18, %v13401_v4  ;;  %v1145_v58 = vmul.f32 %v14260_v54, %v14259_v48  ;;  %v1390_v3 = vmul.f32 %v14262_v49, %v14261_v37  ;;  %v5010_v5 = vadd.f32 %v4915_v25, %v4765_v10  ;;  %v14265_v57 = vld [vmem:[#allocation28_spill] sm:$0xff]  ;;  %v14266_v18 = vld [vmem:[#allocation31_spill] sm:$0xff]  ;;  %v14267_v10 = vld [vmem:[#allocation14_spill] sm:$0xff] }
 0x19e   : > { %v967_v28 = vadd.f32 %v935_v45, %v899_v24  ;;  %v1634_v16 = vmul.f32 %v14264_v17, %v14263_v51  ;;  %v1878_v6 = vmul.f32 %v14252_v11, %v14265_v57  ;;  %v2122_v4 = vmul.f32 %v14191_v26, %v14266_v18  ;;  %v14269_v24 = vld [vmem:[#allocation12_spill] sm:$0xff] }
 0x19f   : > { %v1253_v35 = vrot.slane %v1145_v58, 1  ;;  %v1497_v55 = vrot.slane %v1390_v3, 1  ;;  %v2366_v43 = vmul.f32 %v14063_v1, %v14259_v48  ;;  %v5254_v54 = vadd.f32 %v5159_v2, %v5010_v5 }
 0x1a0   : > { %v1035_v29 = vadd.f32 %v1003_v13, %v967_v28  ;;  %v1741_v7 = vrot.slane %v1634_v16, 1  ;;  %v1985_v49 = vrot.slane %v1878_v6, 1  ;;  %v14268_v45 = vrot.slane %v14267_v10, 1 }
 0x1a1   : > { %v14270_v17 = vrot.slane %v14269_v24, 1  ;;  %v2229_v58 = vrot.slane %v2122_v4, 1  ;;  %v2474_v3 = vrot.slane %v2366_v43, 2  ;;  %v5498_v41 = vadd.f32 %v5403_v47, %v5254_v54 }
 0x1a2   : > { %v1254_v25 = vsel %vm1224_vm1, %v14268_v45, %v1253_v35  ;;  %v1103_v42 = vadd.f32 %v1071_v9, %v1035_v29  ;;  %v14271_v26 = vrot.slane %v9102_v32, 1  ;;  %v14272_v28 = vrot.slane %v9114_v23, 1  ;;  %v9359_v45 = vld [vmem:[%s13046_s4] ss:$0 sm:$0xff] }
 0x1a3   : > { %v1498_v11 = vsel %vm1224_vm1, %v14270_v17, %v1497_v55  ;;  %v14273_v2 = vrot.slane %v9127_v0, 1  ;;  %v14274_v35 = vrot.slane %v9137_v30, 2  ;;  %v2611_v43 = vmul.f32 %v14012_v62, %v14261_v37 }
 0x1a4   : > { %v1742_v1 = vsel %vm1224_vm1, %v14271_v26, %v1741_v7  ;;  %v1986_v6 = vsel %vm1224_vm1, %v14272_v28, %v1985_v49  ;;  %v2855_v29 = vmul.f32 %v13997_v36, %v14263_v51  ;;  %v6736_v32 = vpop.eup %6735  ;;  %v5742_v26 = vadd.f32 %v5647_v27, %v5498_v41 }
 0x1a5   : > { %v2230_v5 = vsel %vm1224_vm1, %v14273_v2, %v2229_v58  ;;  %v2475_v55 = vsel %vm2445_vm2, %v14274_v35, %v2474_v3  ;;  %v1348_v7 = vadd.f32 %v1254_v25, %v1103_v42  ;;  %v3099_v23 = vmul.f32 %v14151_v53, %v14265_v57  ;;  %v14280_v2 = vld [vmem:[#allocation74_spill] sm:$0xff] }
 0x1a6   : > { %v3343_v0 = vmul.f32 %v13960_v39, %v14266_v18  ;;  %v6152_v4 = vadd.f32 1.0, %v6736_v32  ;;  %v2718_v47 = vrot.slane %v2611_v43, 2  ;;  %v2962_v30 = vrot.slane %v2855_v29, 2 }
 0x1a7   : > { %v3587_v54 = vmul.f32 %v13961_v60, %v14259_v48  ;;  %v5986_v13 = vadd.f32 %v5891_v56, %v5742_v26  ;;  %v1592_v9 = vadd.f32 %v1498_v11, %v1348_v7  ;;  %v3206_v49 = vrot.slane %v3099_v23, 2 }
 0x1a8   : > { %v3450_v17 = vrot.slane %v3343_v0, 2  ;;  %6737 = vrcp.f32 %v6152_v4  ;;  %v14275_v41 = vrot.slane %v9148_v63, 2  ;;  %v14276_v27 = vrot.slane %v9155_v8, 2 }
 0x1a9   : > { %v3695_v10 = vrot.slane %v3587_v54, 3  ;;  %v9362_v56 = vadd.f32 %v9359_v45, %v5986_v13  ;;  %v1836_v11 = vadd.f32 %v1742_v1, %v1592_v9  ;;  %v14277_v25 = vrot.slane %v9167_v21, 2  ;;  %v14281_v1 = vld [vmem:[#allocation75_spill] sm:$0xff] }
 0x1aa   : > { %v2719_v42 = vsel %vm2445_vm2, %v14275_v41, %v2718_v47  ;;  %v2963_v16 = vsel %vm2445_vm2, %v14276_v27, %v2962_v30  ;;  %v14278_v24 = vrot.slane %v9181_v46, 2  ;;  %v14279_v58 = vrot.slane %v9187_v31, 3 }
 0x1ab   : > { %v3207_v63 = vsel %vm2445_vm2, %v14277_v25, %v3206_v49  ;;  %v3832_v28 = vmul.f32 %v13962_v12, %v14261_v37  ;;  %v4076_v35 = vmul.f32 %v14280_v2, %v14263_v51  ;;  %v4320_v43 = vmul.f32 %v14281_v1, %v14265_v57 }
 0x1ac   : > { %v3451_v8 = vsel %vm2445_vm2, %v14278_v24, %v3450_v17  ;;  %v3696_v3 = vsel %vm3666_vm3, %v14279_v58, %v3695_v10  ;;  %v6548_v21 = vmul.f32 -1.442695, %v9362_v56  ;;  %v2080_v29 = vadd.f32 %v1986_v6, %v1836_v11  ;;  %v14288_v24 = vld [vmem:[#allocation23_spill] sm:$0xff]  ;;  %v14289_v58 = vld [vmem:[#allocation56_spill] sm:$0xff] }
 0x1ad   : > { %v4564_v46 = vmul.f32 %v14157_v19, %v14266_v18  ;;  %v4808_v31 = vmul.f32 %v14027_v15, %v14259_v48  ;;  %v3939_v32 = vrot.slane %v3832_v28, 3  ;;  %v4183_v26 = vrot.slane %v4076_v35, 3  ;;  %v14290_v35 = vld [vmem:[#allocation26_spill] sm:$0xff] }
 0x1ae   : > { %v4427_v7 = vrot.slane %v4320_v43, 3  ;;  %v5053_v23 = vmul.f32 %v7436_v52, %v14261_v37  ;;  %6739 = vpow2.f32 %v6548_v21  ;;  %v2324_v0 = vadd.f32 %v2230_v5, %v2080_v29  ;;  %v14291_v43 = vld [vmem:[#allocation57_spill] sm:$0xff]  ;;  %v14310_v37 = vld [vmem:[#allocation27_spill] sm:$0xff] }
 0x1af   : > { %v4671_v4 = vrot.slane %v4564_v46, 3  ;;  %v4916_v47 = vrot.slane %v4808_v31, 4  ;;  %v14282_v30 = vrot.slane %v9199_v14, 3  ;;  %v14283_v54 = vrot.slane %v9213_v59, 3  ;;  %v14292_v46 = vld [vmem:[#allocation30_spill] sm:$0xff]  ;;  %v14293_v31 = vld [vmem:[#allocation59_spill] sm:$0xff] }
 0x1b0   : > { %v14284_v48 = vrot.slane %v9220_v40, 3  ;;  %v5160_v49 = vrot.slane %v5053_v23, 4  ;;  %v2569_v17 = vadd.f32 %v2475_v55, %v2324_v0  ;;  %v14285_v5 = vrot.slane %v9236_v44, 3 }
 0x1b1   : > { %v3940_v6 = vsel %vm3666_vm3, %v14282_v30, %v3939_v32  ;;  %v9392_v13 = vsel %vm3666_vm3, %v14283_v54, %v4183_v26  ;;  %v14286_v14 = vrot.slane %v9249_v61, 4  ;;  %v5297_v59 = vmul.f32 %v7441_v22, %v14263_v51  ;;  %v14294_v26 = vld [vmem:[#allocation32_spill] sm:$0xff]  ;;  %v14298_v54 = vld [vmem:[#allocation2_spill] sm:$0xff] }
 0x1b2   : > { %v9397_v9 = vsel %vm3666_vm3, %v14284_v48, %v4427_v7  ;;  %v9402_v41 = vsel %vm3666_vm3, %v14285_v5, %v4671_v4  ;;  %v14287_v40 = vrot.slane %v9256_v33, 4  ;;  %v5541_v55 = vmul.f32 %v14101_v34, %v14265_v57  ;;  %v14295_v7 = vld [vmem:[#allocation62_spill] sm:$0xff]  ;;  %v14296_v4 = vld [vmem:[#allocation73_spill] sm:$0xff] }
 0x1b3   : > { %v9407_v27 = vsel %vm4887_vm4, %v14286_v14, %v4916_v47  ;;  %v5785_v44 = vmul.f32 %v14102_v50, %v14266_v18  ;;  %v800_v61 = vmul.f32 %v14228_v20, %v14229_v38  ;;  %v2813_v11 = vadd.f32 %v2719_v42, %v2569_v17  ;;  %v14301_v14 = vld [vmem:[#allocation13_spill] sm:$0xff] }
 0x1b4   : > { %v9414_v10 = vsel %vm4887_vm4, %v14287_v40, %v5160_v49  ;;  %v5404_v25 = vrot.slane %v5297_v59, 4  ;;  %v868_v28 = vmul.f32 %v14289_v58, %v14288_v24  ;;  %v936_v33 = vmul.f32 %v14291_v43, %v14290_v35  ;;  %v14299_v49 = vld [vmem:[#allocation68_spill] sm:$0xff] }
 0x1b5   : > { %v5648_v21 = vrot.slane %v5541_v55, 4  ;;  %v5892_v29 = vrot.slane %v5785_v44, 4  ;;  %v1004_v32 = vmul.f32 %v14293_v31, %v14292_v46  ;;  %v1072_v23 = vmul.f32 %v14295_v7, %v14294_v26  ;;  %v14305_v44 = vld [vmem:[#allocation3_spill] sm:$0xff] }
 0x1b6   : > { %v3057_v0 = vadd.f32 %v2963_v16, %v2813_v11  ;;  %v14297_v47 = vrot.slane %v14296_v4, 4  ;;  %v900_v30 = vadd.f32 %v868_v28, %v800_v61  ;;  %v1146_v48 = vmul.f32 %v14298_v54, %v14229_v38  ;;  %v14303_v16 = vld [vmem:[#allocation20_spill] sm:$0xff]  ;;  %v6738_v11 = vpop.eup %6737 }
 0x1b7   : > { %v14300_v17 = vrot.slane %v14299_v49, 4  ;;  %v14302_v59 = vrot.slane %v14301_v14, 4  ;;  %v9449_v55 = vmul.f32 %v14298_v54, %v14303_v16  ;;  %v1391_v61 = vmul.f32 %v14305_v44, %v14288_v24  ;;  %v14308_v49 = vld [vmem:[#allocation69_spill] sm:$0xff] }
 0x1b8   : > { %v9433_v42 = vsel %vm4887_vm4, %v14297_v47, %v5404_v25  ;;  %v3301_v25 = vadd.f32 %v3207_v63, %v3057_v0  ;;  %v968_v28 = vadd.f32 %v936_v33, %v900_v30  ;;  %v1255_v4 = vrot.slane %v1146_v48, 1  ;;  %v14306_v47 = vld [vmem:[#allocation24_spill] sm:$0xff]  ;;  %v14311_v30 = vld [vmem:[#allocation5_spill] sm:$0xff] }
 0x1b9   : > { %v9440_v5 = vsel %vm4887_vm4, %v14300_v17, %v5648_v21  ;;  %v9445_v40 = vsel %vm4887_vm4, %v14302_v59, %v5892_v29  ;;  %14304 = vst [vmem:[#allocation77_spill] sm:$0xff] %v9449_v55  ;;  %v9455_v21 = vmul.f32 %v14305_v44, %v14306_v47  ;;  %v6248_v17 = vmul.f32 %v6738_v11, %v14308_v49  ;;  %v14309_v59 = vld [vmem:[#allocation4_spill] sm:$0xff] }
 0x1ba   : > { %v13415_v29 = vrot.slane %v9449_v55, 1  ;;  %v1499_v14 = vrot.slane %v1391_v61, 1  ;;  %v1635_v18 = vmul.f32 %v14309_v59, %v14290_v35  ;;  %v3545_v57 = vadd.f32 %v3451_v8, %v3301_v25  ;;  %v14312_v61 = vld [vmem:[#allocation29_spill] sm:$0xff] }
 0x1bb   : > { %14307 = vst [vmem:[#allocation70_spill] sm:$0xff] %v9455_v21  ;;  %v1036_v51 = vadd.f32 %v1004_v32, %v968_v28  ;;  %v13419_v54 = vrot.slane %v9455_v21, 1  ;;  %v9464_v63 = vmul.f32 %v14309_v59, %v14310_v37  ;;  %6312 = vst [vmem:[%s6937_s10 + $0x148] sm:$0xff] %v6248_v17  ;;  %v1879_v48 = vmul.f32 %v14311_v30, %v14292_v46  ;;  %v6740_v49 = vpop.eup %6739  ;;  %v14314_v55 = vld [vmem:[#allocation33_spill] sm:$0xff] }
 0x1bc   : > { %v1257_v33 = vsel %vm1224_vm1, %v1255_v4, %v13415_v29  ;;  %v1743_v0 = vrot.slane %v1635_v18, 1  ;;  %v9474_v11 = vmul.f32 %v14311_v30, %v14312_v61  ;;  %v3790_v8 = vadd.f32 %v3696_v3, %v3545_v57  ;;  %v14313_v18 = vld [vmem:[#allocation63_spill] sm:$0xff] }
 0x1bd   : > { %v1104_v32 = vadd.f32 %v1072_v23, %v1036_v51  ;;  %v1501_v25 = vsel %vm1224_vm1, %v1499_v14, %v13419_v54  ;;  %v13424_v28 = vrot.slane %v9464_v63, 1  ;;  %v1987_v17 = vrot.slane %v1879_v48, 1  ;;  %v14315_v54 = vld [vmem:[#allocation64_spill] sm:$0xff] }
 0x1be   : > { %v13423_v4 = vrot.slane %v9474_v11, 1  ;;  %v2123_v29 = vmul.f32 %v14313_v18, %v14294_v26  ;;  %v9485_v59 = vmul.f32 %v14313_v18, %v14314_v55  ;;  %v6153_v30 = vadd.f32 1.0, %v6740_v49 }
 0x1bf   : > { %v4034_v57 = vadd.f32 %v3940_v6, %v3790_v8  ;;  %v1349_v51 = vadd.f32 %v1257_v33, %v1104_v32  ;;  %v1745_v3 = vsel %vm1224_vm1, %v1743_v0, %v13424_v28  ;;  %v2367_v21 = vmul.f32 %v14315_v54, %v14229_v38 }
 0x1c0   : > { %v1989_v23 = vsel %vm1224_vm1, %v1987_v17, %v13423_v4  ;;  %v2231_v14 = vrot.slane %v2123_v29, 1  ;;  %v13422_v48 = vrot.slane %v9485_v59, 1  ;;  %6741 = vrcp.f32 %v6153_v30 }
 0x1c1   : > { %v4278_v18 = vadd.f32 %v9392_v13, %v4034_v57  ;;  %v1593_v49 = vadd.f32 %v1501_v25, %v1349_v51  ;;  %v9499_v6 = vmul.f32 %v14315_v54, %v14303_v16  ;;  %v2476_v0 = vrot.slane %v2367_v21, 2 }
 0x1c2   : > { %v2233_v33 = vsel %vm1224_vm1, %v2231_v14, %v13422_v48  ;;  %v2612_v29 = vmul.f32 %v14012_v62, %v14288_v24  ;;  %v9508_v8 = vmul.f32 %v14012_v62, %v14306_v47  ;;  %v2856_v25 = vmul.f32 %v13997_v36, %v14290_v35 }
 0x1c3   : > { %v4522_v30 = vadd.f32 %v9397_v9, %v4278_v18  ;;  %v1837_v13 = vadd.f32 %v1745_v3, %v1593_v49  ;;  %v13427_v32 = vrot.slane %v9499_v6, 2  ;;  %v9517_v21 = vmul.f32 %v13997_v36, %v14310_v37 }
 0x1c4   : > { %v2720_v17 = vrot.slane %v2612_v29, 2  ;;  %v13426_v57 = vrot.slane %v9508_v8, 2  ;;  %v3100_v51 = vmul.f32 %v14151_v53, %v14292_v46  ;;  %v2964_v18 = vrot.slane %v2856_v25, 2 }
 0x1c5   : > { %14316 = vst [vmem:[#allocation67_spill] sm:$0xff] %v9517_v21  ;;  %v4766_v14 = vadd.f32 %v9402_v41, %v4522_v30  ;;  %v2081_v48 = vadd.f32 %v1989_v23, %v1837_v13  ;;  %v2478_v9 = vsel %vm2445_vm2, %v2476_v0, %v13427_v32  ;;  %v13425_v49 = vrot.slane %v9517_v21, 2 }
 0x1c6   : > { %v2722_v3 = vsel %vm2445_vm2, %v2720_v17, %v13426_v57  ;;  %v9531_v29 = vmul.f32 %v14151_v53, %v14312_v61  ;;  %v3208_v4 = vrot.slane %v3100_v51, 2  ;;  %v3344_v23 = vmul.f32 %v13960_v39, %v14294_v26 }
 0x1c7   : > { %v5011_v28 = vadd.f32 %v9407_v27, %v4766_v14  ;;  %v2325_v41 = vadd.f32 %v2233_v33, %v2081_v48  ;;  %v9538_v0 = vmul.f32 %v13960_v39, %v14314_v55  ;;  %v2966_v30 = vsel %vm2445_vm2, %v2964_v18, %v13425_v49 }
 0x1c8   : > { %v13431_v13 = vrot.slane %v9531_v29, 2  ;;  %v3588_v25 = vmul.f32 %v13961_v60, %v14229_v38  ;;  %v9548_v27 = vmul.f32 %v13961_v60, %v14303_v16  ;;  %v3452_v17 = vrot.slane %v3344_v23, 2 }
 0x1c9   : > { %v5255_v48 = vadd.f32 %v9414_v10, %v5011_v28  ;;  %v2570_v33 = vadd.f32 %v2478_v9, %v2325_v41  ;;  %v13430_v51 = vrot.slane %v9538_v0, 2  ;;  %v3833_v57 = vmul.f32 %v13962_v12, %v14288_v24 }
 0x1ca   : > { %v3210_v14 = vsel %vm2445_vm2, %v3208_v4, %v13431_v13  ;;  %v3697_v18 = vrot.slane %v3588_v25, 3  ;;  %v13429_v49 = vrot.slane %v9548_v27, 3  ;;  %v9564_v28 = vmul.f32 %v13962_v12, %v14306_v47 }
 0x1cb   : > { %v5499_v32 = vadd.f32 %v9433_v42, %v5255_v48  ;;  %v2814_v21 = vadd.f32 %v2722_v3, %v2570_v33  ;;  %v3454_v10 = vsel %vm2445_vm2, %v3452_v17, %v13430_v51  ;;  %v3941_v9 = vrot.slane %v3833_v57, 3 }
 0x1cc   : > { %v3699_v4 = vsel %vm3666_vm3, %v3697_v18, %v13429_v49  ;;  %v4077_v41 = vmul.f32 %v14280_v2, %v14290_v35  ;;  %v9573_v42 = vmul.f32 %v14280_v2, %v14310_v37  ;;  %v13436_v25 = vrot.slane %v9564_v28, 3 }
 0x1cd   : > { %v5743_v3 = vadd.f32 %v9440_v5, %v5499_v32  ;;  %v3058_v23 = vadd.f32 %v2966_v30, %v2814_v21  ;;  %v4321_v48 = vmul.f32 %v14281_v1, %v14292_v46  ;;  %v6742_v33 = vpop.eup %6741  ;;  %v9582_v18 = vmul.f32 %v14281_v1, %v14312_v61 }
 0x1ce   : > { %v4185_v17 = vrot.slane %v4077_v41, 3  ;;  %v13434_v57 = vrot.slane %v9573_v42, 3  ;;  %v4565_v49 = vmul.f32 %v14157_v19, %v14294_v26  ;;  %v6249_v5 = vmul.f32 %v6742_v33, %v9362_v56 }
 0x1cf   : > { %v5987_v32 = vadd.f32 %v9445_v40, %v5743_v3  ;;  %v3302_v21 = vadd.f32 %v3210_v14, %v3058_v23  ;;  %v3943_v30 = vsel %vm3666_vm3, %v3941_v9, %v13436_v25  ;;  %v4429_v51 = vrot.slane %v4321_v48, 3 }
 0x1d0   : > { %v4187_v41 = vsel %vm3666_vm3, %v4185_v17, %v13434_v57  ;;  %v13433_v13 = vrot.slane %v9582_v18, 3  ;;  %v9597_v1 = vmul.f32 %v14157_v19, %v14314_v55  ;;  %6313 = vst [vmem:[%s6937_s10 + $0x150] sm:$0xff] %v6249_v5  ;;  %v4673_v14 = vrot.slane %v4565_v49, 3 }
 0x1d1   : > { %v9601_v56 = vadd.f32 %v9359_v45, %v5987_v32  ;;  %v3546_v40 = vadd.f32 %v3454_v10, %v3302_v21  ;;  %v4809_v9 = vmul.f32 %v14027_v15, %v14229_v38  ;;  %v9611_v48 = vmul.f32 %v14027_v15, %v14303_v16 }
 0x1d2   : > { %v4431_v3 = vsel %vm3666_vm3, %v4429_v51, %v13433_v13  ;;  %v13435_v23 = vrot.slane %v9597_v1, 3  ;;  %v5054_v33 = vmul.f32 %v7436_v52, %v14288_v24  ;;  %v9618_v38 = vmul.f32 %v7436_v52, %v14306_v47 }
 0x1d3   : > { %14317 = vst [vmem:[#allocation76_spill] sm:$0xff] %v9601_v56  ;;  %v6549_v17 = vmul.f32 -1.442695, %v9601_v56  ;;  %v3791_v10 = vadd.f32 %v3699_v4, %v3546_v40  ;;  %v4918_v49 = vrot.slane %v4809_v9, 4  ;;  %v13437_v5 = vrot.slane %v9611_v48, 4 }
 0x1d4   : > { %v4675_v51 = vsel %vm3666_vm3, %v4673_v14, %v13435_v23  ;;  %v5162_v32 = vrot.slane %v5054_v33, 4  ;;  %v5298_v21 = vmul.f32 %v7441_v22, %v14290_v35  ;;  %v13438_v57 = vrot.slane %v9618_v38, 4  ;;  %v14330_v35 = vld [vmem:[#allocation77_spill] sm:$0xff] }
 0x1d5   : > { %6743 = vpow2.f32 %v6549_v17  ;;  %v4035_v13 = vadd.f32 %v3943_v30, %v3791_v10  ;;  %v9629_v4 = vmul.f32 %v7441_v22, %v14310_v37  ;;  %v4920_v40 = vsel %vm4887_vm4, %v4918_v49, %v13437_v5 }
 0x1d6   : > { %v5406_v9 = vrot.slane %v5298_v21, 4  ;;  %v5542_v14 = vmul.f32 %v14101_v34, %v14292_v46  ;;  %v9638_v33 = vmul.f32 %v14101_v34, %v14312_v61  ;;  %v5164_v30 = vsel %vm4887_vm4, %v5162_v32, %v13438_v57  ;;  %v14326_v46 = vld [vmem:[#allocation31_spill] sm:$0xff] }
 0x1d7   : > { %14318 = vst [vmem:[#allocation6_spill] sm:$0xff] %v9629_v4  ;;  %v4279_v17 = vadd.f32 %v4187_v41, %v4035_v13  ;;  %v13441_v10 = vrot.slane %v9629_v4, 4  ;;  %v5786_v23 = vmul.f32 %v14102_v50, %v14294_v26  ;;  %v9649_v21 = vmul.f32 %v14102_v50, %v14314_v55  ;;  %v14324_v4 = vld [vmem:[#allocation28_spill] sm:$0xff] }
 0x1d8   : > { %14319 = vst [vmem:[#allocation8_spill] sm:$0xff] %v9638_v33  ;;  %v5650_v25 = vrot.slane %v5542_v14, 4  ;;  %v13443_v49 = vrot.slane %v9638_v33, 4  ;;  %v801_v5 = vmul.f32 %v14228_v20, %v14303_v16  ;;  %v869_v57 = vmul.f32 %v14289_v58, %v14306_v47 }
 0x1d9   : > { %14320 = vst [vmem:[#allocation71_spill] sm:$0xff] %v9649_v21  ;;  %v4523_v13 = vadd.f32 %v4431_v3, %v4279_v17  ;;  %v5408_v41 = vsel %vm4887_vm4, %v5406_v9, %v13441_v10  ;;  %v5894_v32 = vrot.slane %v5786_v23, 4  ;;  %v13455_v56 = vrot.slane %v9649_v21, 4  ;;  %v14321_v9 = vld [vmem:[#allocation22_spill] sm:$0xff] }
 0x1da   : > { %v5652_v14 = vsel %vm4887_vm4, %v5650_v25, %v13443_v49  ;;  %v937_v26 = vmul.f32 %v14291_v43, %v14310_v37  ;;  %v1005_v16 = vmul.f32 %v14293_v31, %v14312_v61  ;;  %v901_v17 = vadd.f32 %v869_v57, %v801_v5  ;;  %v14322_v10 = vld [vmem:[#allocation2_spill] sm:$0xff]  ;;  %v14323_v49 = vld [vmem:[#allocation25_spill] sm:$0xff]  ;;  %v14325_v37 = vld [vmem:[#allocation4_spill] sm:$0xff] }
 0x1db   : > { %v4767_v3 = vadd.f32 %v4675_v51, %v4523_v13  ;;  %v1073_v23 = vmul.f32 %v14295_v7, %v14314_v55  ;;  %v1148_v47 = vmul.f32 %v14322_v10, %v14321_v9  ;;  %v5896_v25 = vsel %vm4887_vm4, %v5894_v32, %v13455_v56  ;;  %v14327_v61 = vld [vmem:[#allocation5_spill] sm:$0xff]  ;;  %v14328_v55 = vld [vmem:[#allocation34_spill] sm:$0xff]  ;;  %v14329_v7 = vld [vmem:[#allocation63_spill] sm:$0xff] }
 0x1dc   : > { %v1393_v33 = vmul.f32 %v14305_v44, %v14323_v49  ;;  %v1637_v43 = vmul.f32 %v14325_v37, %v14324_v4  ;;  %v1881_v51 = vmul.f32 %v14327_v61, %v14326_v46  ;;  %v969_v5 = vadd.f32 %v937_v26, %v901_v17  ;;  %v14332_v61 = vld [vmem:[#allocation70_spill] sm:$0xff] }
 0x1dd   : > { %v5012_v57 = vadd.f32 %v4920_v40, %v4767_v3  ;;  %v1258_v13 = vrot.slane %v1148_v47, 1  ;;  %v2125_v31 = vmul.f32 %v14329_v7, %v14328_v55  ;;  %v2369_v32 = vmul.f32 %v14315_v54, %v14321_v9 }
 0x1de   : > { %v1502_v10 = vrot.slane %v1393_v33, 1  ;;  %v1746_v58 = vrot.slane %v1637_v43, 1  ;;  %v1990_v21 = vrot.slane %v1881_v51, 1  ;;  %v1037_v44 = vadd.f32 %v1005_v16, %v969_v5 }
 0x1df   : > { %v5256_v56 = vadd.f32 %v5164_v30, %v5012_v57  ;;  %v14331_v20 = vrot.slane %v14330_v35, 1  ;;  %v2234_v24 = vrot.slane %v2125_v31, 1  ;;  %v14333_v40 = vrot.slane %v14332_v61, 1 }
 0x1e0   : > { %v14334_v47 = vrot.slane %v9464_v63, 1  ;;  %v14335_v43 = vrot.slane %v9474_v11, 1  ;;  %v2479_v17 = vrot.slane %v2369_v32, 2  ;;  %v1105_v16 = vadd.f32 %v1073_v23, %v1037_v44 }
 0x1e1   : > { %v1259_v37 = vsel %vm1224_vm1, %v14331_v20, %v1258_v13  ;;  %v1503_v26 = vsel %vm1224_vm1, %v14333_v40, %v1502_v10  ;;  %v5500_v30 = vadd.f32 %v5408_v41, %v5256_v56  ;;  %v14336_v35 = vrot.slane %v9485_v59, 1  ;;  %v14339_v40 = vld [vmem:[#allocation67_spill] sm:$0xff] }
 0x1e2   : > { %v1747_v33 = vsel %vm1224_vm1, %v14334_v47, %v1746_v58  ;;  %v1991_v3 = vsel %vm1224_vm1, %v14335_v43, %v1990_v21  ;;  %v2614_v31 = vmul.f32 %v14012_v62, %v14323_v49  ;;  %v6744_v61 = vpop.eup %6743  ;;  %v14337_v10 = vrot.slane %v9499_v6, 2 }
 0x1e3   : > { %v2235_v20 = vsel %vm1224_vm1, %v14336_v35, %v2234_v24  ;;  %v2858_v58 = vmul.f32 %v13997_v36, %v14324_v4  ;;  %v3102_v11 = vmul.f32 %v14151_v53, %v14326_v46  ;;  %v3346_v44 = vmul.f32 %v13960_v39, %v14328_v55 }
 0x1e4   : > { %v2480_v63 = vsel %vm2445_vm2, %v14337_v10, %v2479_v17  ;;  %v6154_v59 = vadd.f32 1.0, %v6744_v61  ;;  %v5744_v56 = vadd.f32 %v5652_v14, %v5500_v30  ;;  %v1350_v24 = vadd.f32 %v1259_v37, %v1105_v16  ;;  %v14344_v61 = vld [vmem:[#allocation75_spill] sm:$0xff] }
 0x1e5   : > { %v2723_v21 = vrot.slane %v2614_v31, 2  ;;  %v2967_v41 = vrot.slane %v2858_v58, 2  ;;  %v3211_v23 = vrot.slane %v3102_v11, 2  ;;  %v3455_v51 = vrot.slane %v3346_v44, 2 }
 0x1e6   : > { %v3590_v6 = vmul.f32 %v13961_v60, %v14321_v9  ;;  %6745 = vrcp.f32 %v6154_v59  ;;  %v5988_v57 = vadd.f32 %v5896_v25, %v5744_v56  ;;  %v1594_v5 = vadd.f32 %v1503_v26, %v1350_v24 }
 0x1e7   : > { %v14338_v13 = vrot.slane %v9508_v8, 2  ;;  %v14340_v47 = vrot.slane %v14339_v40, 2  ;;  %v14341_v37 = vrot.slane %v9531_v29, 2  ;;  %v14342_v17 = vrot.slane %v9538_v0, 2 }
 0x1e8   : > { %v3700_v16 = vrot.slane %v3590_v6, 3  ;;  %v9724_v25 = vadd.f32 %v9359_v45, %v5988_v57  ;;  %v1838_v26 = vadd.f32 %v1747_v33, %v1594_v5  ;;  %v3835_v8 = vmul.f32 %v13962_v12, %v14323_v49 }
 0x1e9   : > { %v2724_v32 = vsel %vm2445_vm2, %v14338_v13, %v2723_v21  ;;  %v2968_v43 = vsel %vm2445_vm2, %v14340_v47, %v2967_v41  ;;  %v3212_v14 = vsel %vm2445_vm2, %v14341_v37, %v3211_v23  ;;  %v3456_v30 = vsel %vm2445_vm2, %v14342_v17, %v3455_v51 }
 0x1ea   : > { %v4079_v35 = vmul.f32 %v14280_v2, %v14324_v4  ;;  %v14343_v31 = vrot.slane %v9548_v27, 3  ;;  %v4323_v0 = vmul.f32 %v14344_v61, %v14326_v46  ;;  %v4567_v10 = vmul.f32 %v14157_v19, %v14328_v55 }
 0x1eb   : > { %v4811_v58 = vmul.f32 %v14027_v15, %v14321_v9  ;;  %v6550_v33 = vmul.f32 -1.442695, %v9724_v25  ;;  %v2082_v11 = vadd.f32 %v1991_v3, %v1838_v26  ;;  %v3944_v44 = vrot.slane %v3835_v8, 3  ;;  %v14353_v8 = vld [vmem:[#allocation26_spill] sm:$0xff] }
 0x1ec   : > { %v3701_v29 = vsel %vm3666_vm3, %v14343_v31, %v3700_v16  ;;  %v4188_v59 = vrot.slane %v4079_v35, 3  ;;  %v4432_v56 = vrot.slane %v4323_v0, 3  ;;  %v4676_v24 = vrot.slane %v4567_v10, 3  ;;  %v14352_v16 = vld [vmem:[#allocation55_spill] sm:$0xff]  ;;  %v14354_v35 = vld [vmem:[#allocation56_spill] sm:$0xff]  ;;  %v14355_v31 = vld [vmem:[#allocation30_spill] sm:$0xff] }
 0x1ed   : > { %v4921_v21 = vrot.slane %v4811_v58, 4  ;;  %v5056_v27 = vmul.f32 %v7436_v52, %v14323_v49  ;;  %6747 = vpow2.f32 %v6550_v33  ;;  %v2326_v41 = vadd.f32 %v2235_v20, %v2082_v11  ;;  %v14356_v0 = vld [vmem:[#allocation57_spill] sm:$0xff] }
 0x1ee   : > { %v14345_v23 = vrot.slane %v9564_v28, 3  ;;  %v14346_v6 = vrot.slane %v9573_v42, 3  ;;  %v14347_v3 = vrot.slane %v9582_v18, 3  ;;  %v14348_v5 = vrot.slane %v9597_v1, 3 }
 0x1ef   : > { %v14349_v20 = vrot.slane %v9611_v48, 4  ;;  %v5165_v40 = vrot.slane %v5056_v27, 4  ;;  %v2571_v42 = vadd.f32 %v2480_v63, %v2326_v41  ;;  %v5300_v47 = vmul.f32 %v7441_v22, %v14324_v4  ;;  %v14351_v48 = vld [vmem:[#allocation23_spill] sm:$0xff]  ;;  %v14360_v27 = vld [vmem:[#allocation62_spill] sm:$0xff]  ;;  %v14375_v4 = vld [vmem:[#allocation29_spill] sm:$0xff] }
 0x1f0   : > { %v3945_v51 = vsel %vm3666_vm3, %v14345_v23, %v3944_v44  ;;  %v9748_v9 = vsel %vm3666_vm3, %v14346_v6, %v4188_v59  ;;  %v9753_v57 = vsel %vm3666_vm3, %v14347_v3, %v4432_v56  ;;  %v9758_v13 = vsel %vm3666_vm3, %v14348_v5, %v4676_v24  ;;  %v14357_v56 = vld [vmem:[#allocation32_spill] sm:$0xff]  ;;  %v14358_v24 = vld [vmem:[#allocation59_spill] sm:$0xff]  ;;  %v14361_v23 = vld [vmem:[#allocation2_spill] sm:$0xff] }
 0x1f1   : > { %v9763_v28 = vsel %vm4887_vm4, %v14349_v20, %v4921_v21  ;;  %v5544_v18 = vmul.f32 %v14101_v34, %v14326_v46  ;;  %v5788_v37 = vmul.f32 %v14102_v50, %v14328_v55  ;;  %v14350_v1 = vrot.slane %v9618_v38, 4  ;;  %v14359_v21 = vld [vmem:[#allocation35_spill] sm:$0xff]  ;;  %v14362_v5 = vld [vmem:[#allocation6_spill] sm:$0xff]  ;;  %v14368_v55 = vld [vmem:[#allocation24_spill] sm:$0xff] }
 0x1f2   : > { %v802_v26 = vmul.f32 %v14352_v16, %v14351_v48  ;;  %v870_v63 = vmul.f32 %v14354_v35, %v14353_v8  ;;  %v938_v10 = vmul.f32 %v14356_v0, %v14355_v31  ;;  %v2815_v58 = vadd.f32 %v2724_v32, %v2571_v42  ;;  %v14364_v32 = vld [vmem:[#allocation8_spill] sm:$0xff] }
 0x1f3   : > { %v9774_v17 = vsel %vm4887_vm4, %v14350_v1, %v5165_v40  ;;  %v5409_v33 = vrot.slane %v5300_v47, 4  ;;  %v5653_v11 = vrot.slane %v5544_v18, 4  ;;  %v5897_v44 = vrot.slane %v5788_v37, 4  ;;  %v14366_v18 = vld [vmem:[#allocation71_spill] sm:$0xff] }
 0x1f4   : > { %v902_v59 = vadd.f32 %v870_v63, %v802_v26  ;;  %v1006_v38 = vmul.f32 %v14358_v24, %v14357_v56  ;;  %v1074_v41 = vmul.f32 %v14360_v27, %v14359_v21  ;;  %v1149_v6 = vmul.f32 %v14361_v23, %v14351_v48  ;;  %v6746_v26 = vpop.eup %6745 }
 0x1f5   : > { %v3059_v3 = vadd.f32 %v2968_v43, %v2815_v58  ;;  %v14363_v20 = vrot.slane %v14362_v5, 4  ;;  %v14365_v42 = vrot.slane %v14364_v32, 4  ;;  %v14367_v37 = vrot.slane %v14366_v18, 4 }
 0x1f6   : > { %v970_v63 = vadd.f32 %v938_v10, %v902_v59  ;;  %v9805_v43 = vmul.f32 %v14361_v23, %v14368_v55  ;;  %v1260_v58 = vrot.slane %v1149_v6, 1 }
 0x1f7   : > { %v9791_v40 = vsel %vm4887_vm4, %v14363_v20, %v5409_v33  ;;  %v9796_v47 = vsel %vm4887_vm4, %v14365_v42, %v5653_v11  ;;  %v9801_v1 = vsel %vm4887_vm4, %v14367_v37, %v5897_v44  ;;  %v14370_v33 = vld [vmem:[#allocation3_spill] sm:$0xff]  ;;  %v14371_v20 = vld [vmem:[#allocation76_spill] sm:$0xff]  ;;  %v3303_v46 = vadd.f32 %v3212_v14, %v3059_v3  ;;  %v14376_v3 = vld [vmem:[#allocation5_spill] sm:$0xff] }
 0x1f8   : > { %14369 = vst [vmem:[#allocation61_spill] sm:$0xff] %v9805_v43  ;;  %v1394_v5 = vmul.f32 %v14370_v33, %v14353_v8  ;;  %v6250_v32 = vmul.f32 %v6746_v26, %v14371_v20  ;;  %v14372_v11 = vld [vmem:[#allocation27_spill] sm:$0xff]  ;;  %v14374_v44 = vld [vmem:[#allocation4_spill] sm:$0xff]  ;;  %v1038_v37 = vadd.f32 %v1006_v38, %v970_v63  ;;  %v13467_v10 = vrot.slane %v9805_v43, 1 }
 0x1f9   : > { %v9812_v42 = vmul.f32 %v14370_v33, %v14372_v11  ;;  %v1638_v18 = vmul.f32 %v14374_v44, %v14355_v31  ;;  %v9819_v6 = vmul.f32 %v14374_v44, %v14375_v4  ;;  %v3547_v23 = vadd.f32 %v3456_v30, %v3303_v46 }
 0x1fa   : > { %v1504_v59 = vrot.slane %v1394_v5, 1  ;;  %6314 = vst [vmem:[%s6937_s10 + $0x158] sm:$0xff] %v6250_v32  ;;  %v1882_v20 = vmul.f32 %v14376_v3, %v14357_v56  ;;  %v1106_v33 = vadd.f32 %v1074_v41, %v1038_v37  ;;  %v1262_v38 = vsel %vm1224_vm1, %v1260_v58, %v13467_v10  ;;  %v14377_v5 = vld [vmem:[#allocation33_spill] sm:$0xff]  ;;  %v6748_v41 = vpop.eup %6747  ;;  %v14378_v10 = vld [vmem:[#allocation36_spill] sm:$0xff] }
 0x1fb   : > { %14373 = vst [vmem:[#allocation15_spill] sm:$0xff] %v9812_v42  ;;  %v13476_v26 = vrot.slane %v9812_v42, 1  ;;  %v1748_v14 = vrot.slane %v1638_v18, 1  ;;  %v13470_v63 = vrot.slane %v9819_v6, 1  ;;  %v9831_v49 = vmul.f32 %v14376_v3, %v14377_v5 }
 0x1fc   : > { %v3792_v44 = vadd.f32 %v3701_v29, %v3547_v23  ;;  %v1992_v30 = vrot.slane %v1882_v20, 1  ;;  %v2126_v32 = vmul.f32 %v14329_v7, %v14359_v21  ;;  %v1351_v18 = vadd.f32 %v1262_v38, %v1106_v33 }
 0x1fd   : > { %v1506_v46 = vsel %vm1224_vm1, %v1504_v59, %v13476_v26  ;;  %v1750_v58 = vsel %vm1224_vm1, %v1748_v14, %v13470_v63  ;;  %v13472_v37 = vrot.slane %v9831_v49, 1  ;;  %v9844_v43 = vmul.f32 %v14329_v7, %v14378_v10 }
 0x1fe   : > { %v6155_v29 = vadd.f32 1.0, %v6748_v41  ;;  %v4036_v23 = vadd.f32 %v3945_v51, %v3792_v44  ;;  %v2236_v42 = vrot.slane %v2126_v32, 1  ;;  %v2370_v59 = vmul.f32 %v14315_v54, %v14351_v48 }
 0x1ff   : > { %v1595_v20 = vadd.f32 %v1506_v46, %v1351_v18  ;;  %v1994_v33 = vsel %vm1224_vm1, %v1992_v30, %v13472_v37  ;;  %v13471_v38 = vrot.slane %v9844_v43, 1  ;;  %v9854_v14 = vmul.f32 %v14315_v54, %v14368_v55 }
 0x200   : > { %6749 = vrcp.f32 %v6155_v29  ;;  %v4280_v63 = vadd.f32 %v9748_v9, %v4036_v23  ;;  %v2481_v41 = vrot.slane %v2370_v59, 2  ;;  %v2615_v51 = vmul.f32 %v14012_v62, %v14353_v8 }
 0x201   : > { %v1839_v44 = vadd.f32 %v1750_v58, %v1595_v20  ;;  %v2238_v46 = vsel %vm1224_vm1, %v2236_v42, %v13471_v38  ;;  %v13473_v30 = vrot.slane %v9854_v14, 2  ;;  %v9865_v32 = vmul.f32 %v14012_v62, %v14372_v11 }
 0x202   : > { %v4524_v18 = vadd.f32 %v9753_v57, %v4280_v63  ;;  %v2725_v29 = vrot.slane %v2615_v51, 2  ;;  %v2859_v9 = vmul.f32 %v13997_v36, %v14355_v31  ;;  %v9872_v23 = vmul.f32 %v13997_v36, %v14375_v4 }
 0x203   : > { %v2083_v58 = vadd.f32 %v1994_v33, %v1839_v44  ;;  %v2483_v42 = vsel %vm2445_vm2, %v2481_v41, %v13473_v30  ;;  %v13475_v59 = vrot.slane %v9865_v32, 2  ;;  %v3103_v20 = vmul.f32 %v14151_v53, %v14357_v56 }
 0x204   : > { %v4768_v57 = vadd.f32 %v9758_v13, %v4524_v18  ;;  %v2969_v63 = vrot.slane %v2859_v9, 2  ;;  %v13474_v51 = vrot.slane %v9872_v23, 2  ;;  %v9884_v38 = vmul.f32 %v14151_v53, %v14377_v5 }
 0x205   : > { %v2327_v37 = vadd.f32 %v2238_v46, %v2083_v58  ;;  %v2727_v33 = vsel %vm2445_vm2, %v2725_v29, %v13475_v59  ;;  %v3213_v41 = vrot.slane %v3103_v20, 2  ;;  %v3347_v44 = vmul.f32 %v13960_v39, %v14359_v21 }
 0x206   : > { %v5013_v30 = vadd.f32 %v9763_v28, %v4768_v57  ;;  %v2971_v13 = vsel %vm2445_vm2, %v2969_v63, %v13474_v51  ;;  %v13477_v18 = vrot.slane %v9884_v38, 2  ;;  %v9898_v9 = vmul.f32 %v13960_v39, %v14378_v10 }
 0x207   : > { %v2572_v46 = vadd.f32 %v2483_v42, %v2327_v37  ;;  %v3457_v58 = vrot.slane %v3347_v44, 2  ;;  %v3591_v29 = vmul.f32 %v13961_v60, %v14351_v48  ;;  %v9904_v20 = vmul.f32 %v13961_v60, %v14368_v55 }
 0x208   : > { %v5257_v28 = vadd.f32 %v9774_v17, %v5013_v30  ;;  %v3215_v57 = vsel %vm2445_vm2, %v3213_v41, %v13477_v18  ;;  %v13479_v63 = vrot.slane %v9898_v9, 2  ;;  %v3836_v51 = vmul.f32 %v13962_v12, %v14353_v8 }
 0x209   : > { %v2816_v37 = vadd.f32 %v2727_v33, %v2572_v46  ;;  %v3702_v42 = vrot.slane %v3591_v29, 3  ;;  %v13478_v44 = vrot.slane %v9904_v20, 3  ;;  %v9916_v59 = vmul.f32 %v13962_v12, %v14372_v11 }
 0x20a   : > { %v5501_v26 = vadd.f32 %v9791_v40, %v5257_v28  ;;  %v3459_v17 = vsel %vm2445_vm2, %v3457_v58, %v13479_v63  ;;  %v3946_v30 = vrot.slane %v3836_v51, 3  ;;  %v4080_v41 = vmul.f32 %v14280_v2, %v14355_v31 }
 0x20b   : > { %v3060_v18 = vadd.f32 %v2971_v13, %v2816_v37  ;;  %v3704_v33 = vsel %vm3666_vm3, %v3702_v42, %v13478_v44  ;;  %v13482_v46 = vrot.slane %v9916_v59, 3  ;;  %v9930_v29 = vmul.f32 %v14280_v2, %v14375_v4 }
 0x20c   : > { %v5745_v40 = vadd.f32 %v9796_v47, %v5501_v26  ;;  %v4190_v28 = vrot.slane %v4080_v41, 3  ;;  %v4324_v51 = vmul.f32 %v14344_v61, %v14357_v56  ;;  %v9937_v13 = vmul.f32 %v14344_v61, %v14377_v5 }
 0x20d   : > { %v6750_v58 = vpop.eup %6749  ;;  %v3304_v37 = vadd.f32 %v3215_v57, %v3060_v18  ;;  %v3948_v42 = vsel %vm3666_vm3, %v3946_v30, %v13482_v46  ;;  %v13484_v44 = vrot.slane %v9930_v29, 3  ;;  %v4568_v47 = vmul.f32 %v14157_v19, %v14359_v21 }
 0x20e   : > { %v6251_v26 = vmul.f32 %v6750_v58, %v9724_v25  ;;  %v5989_v41 = vadd.f32 %v9801_v1, %v5745_v40  ;;  %v4434_v63 = vrot.slane %v4324_v51, 3  ;;  %v13483_v2 = vrot.slane %v9937_v13, 3 }
 0x20f   : > { %v3548_v61 = vadd.f32 %v3459_v17, %v3304_v37  ;;  %v4192_v18 = vsel %vm3666_vm3, %v4190_v28, %v13484_v44  ;;  %v9953_v57 = vmul.f32 %v14157_v19, %v14378_v10  ;;  %v4678_v30 = vrot.slane %v4568_v47, 3 }
 0x210   : > { %6315 = vst [vmem:[%s6937_s10 + $0x160] sm:$0xff] %v6251_v26  ;;  %v9957_v46 = vadd.f32 %v9359_v45, %v5989_v41  ;;  %v4436_v25 = vsel %vm3666_vm3, %v4434_v63, %v13483_v2  ;;  %v4812_v1 = vmul.f32 %v14027_v15, %v14351_v48  ;;  %v9966_v17 = vmul.f32 %v14027_v15, %v14368_v55 }
 0x211   : > { %v3793_v40 = vadd.f32 %v3704_v33, %v3548_v61  ;;  %v13488_v28 = vrot.slane %v9953_v57, 3  ;;  %v5057_v51 = vmul.f32 %v7436_v52, %v14353_v8  ;;  %v9973_v58 = vmul.f32 %v7436_v52, %v14372_v11 }
 0x212   : > { %14379 = vst [vmem:[#allocation72_spill] sm:$0xff] %v9957_v46  ;;  %v6551_v37 = vmul.f32 -1.442695, %v9957_v46  ;;  %v4923_v63 = vrot.slane %v4812_v1, 4  ;;  %v13487_v47 = vrot.slane %v9966_v17, 4  ;;  %v5301_v48 = vmul.f32 %v7441_v22, %v14355_v31 }
 0x213   : > { %v4037_v26 = vadd.f32 %v3948_v42, %v3793_v40  ;;  %v4680_v61 = vsel %vm3666_vm3, %v4678_v30, %v13488_v28  ;;  %v5167_v33 = vrot.slane %v5057_v51, 4  ;;  %v13486_v41 = vrot.slane %v9973_v58, 4 }
 0x214   : > { %6751 = vpow2.f32 %v6551_v37  ;;  %v4925_v2 = vsel %vm4887_vm4, %v4923_v63, %v13487_v47  ;;  %v9988_v1 = vmul.f32 %v7441_v22, %v14375_v4  ;;  %v5411_v44 = vrot.slane %v5301_v48, 4 }
 0x215   : > { %v4281_v46 = vadd.f32 %v4192_v18, %v4037_v26  ;;  %v5169_v42 = vsel %vm4887_vm4, %v5167_v33, %v13486_v41  ;;  %v5545_v30 = vmul.f32 %v14101_v34, %v14357_v56  ;;  %v9997_v40 = vmul.f32 %v14101_v34, %v14377_v5 }
 0x216   : > { %14380 = vst [vmem:[#allocation16_spill] sm:$0xff] %v9988_v1  ;;  %v13492_v51 = vrot.slane %v9988_v1, 4  ;;  %v5789_v37 = vmul.f32 %v14102_v50, %v14359_v21  ;;  %v10004_v63 = vmul.f32 %v14102_v50, %v14378_v10  ;;  %v803_v18 = vmul.f32 %v14352_v16, %v14368_v55 }
 0x217   : > { %14381 = vst [vmem:[#allocation9_spill] sm:$0xff] %v9997_v40  ;;  %v4525_v48 = vadd.f32 %v4436_v25, %v4281_v46  ;;  %v5655_v26 = vrot.slane %v5545_v30, 4  ;;  %v13497_v33 = vrot.slane %v9997_v40, 4  ;;  %v871_v41 = vmul.f32 %v14354_v35, %v14372_v11 }
 0x218   : > { %14382 = vst [vmem:[#allocation7_spill] sm:$0xff] %v10004_v63  ;;  %v5413_v47 = vsel %vm4887_vm4, %v5411_v44, %v13492_v51  ;;  %v5899_v28 = vrot.slane %v5789_v37, 4  ;;  %v13501_v21 = vrot.slane %v10004_v63, 4  ;;  %v939_v56 = vmul.f32 %v14356_v0, %v14375_v4  ;;  %v14383_v37 = vld [vmem:[#allocation25_spill] sm:$0xff]  ;;  %v14384_v51 = vld [vmem:[#allocation2_spill] sm:$0xff]  ;;  %v14385_v4 = vld [vmem:[#allocation28_spill] sm:$0xff] }
 0x219   : > { %v4769_v31 = vadd.f32 %v4680_v61, %v4525_v48  ;;  %v5657_v55 = vsel %vm4887_vm4, %v5655_v26, %v13497_v33  ;;  %v903_v46 = vadd.f32 %v871_v41, %v803_v18  ;;  %v1007_v25 = vmul.f32 %v14358_v24, %v14377_v5  ;;  %v14386_v61 = vld [vmem:[#allocation3_spill] sm:$0xff]  ;;  %v14388_v41 = vld [vmem:[#allocation4_spill] sm:$0xff]  ;;  %v14389_v33 = vld [vmem:[#allocation34_spill] sm:$0xff] }
 0x21a   : > { %v5901_v30 = vsel %vm4887_vm4, %v5899_v28, %v13501_v21  ;;  %v1075_v44 = vmul.f32 %v14360_v27, %v14378_v10  ;;  %v1151_v11 = vmul.f32 %v14384_v51, %v14383_v37  ;;  %v1396_v48 = vmul.f32 %v14386_v61, %v14385_v4  ;;  %v14387_v26 = vld [vmem:[#allocation31_spill] sm:$0xff]  ;;  %v14390_v28 = vld [vmem:[#allocation38_spill] sm:$0xff] }
 0x21b   : > { %v5014_v40 = vadd.f32 %v4925_v2, %v4769_v31  ;;  %v971_v1 = vadd.f32 %v939_v56, %v903_v46  ;;  %v1640_v18 = vmul.f32 %v14388_v41, %v14387_v26  ;;  %v1884_v5 = vmul.f32 %v14376_v3, %v14389_v33  ;;  %v14391_v2 = vld [vmem:[#allocation61_spill] sm:$0xff]  ;;  %v14393_v46 = vld [vmem:[#allocation15_spill] sm:$0xff] }
 0x21c   : > { %v1263_v63 = vrot.slane %v1151_v11, 1  ;;  %v1507_v24 = vrot.slane %v1396_v48, 1  ;;  %v2128_v21 = vmul.f32 %v14329_v7, %v14390_v28  ;;  %v2372_v10 = vmul.f32 %v14315_v54, %v14383_v37 }
 0x21d   : > { %v5258_v51 = vadd.f32 %v5169_v42, %v5014_v40  ;;  %v1039_v27 = vadd.f32 %v1007_v25, %v971_v1  ;;  %v1751_v0 = vrot.slane %v1640_v18, 1  ;;  %v1995_v61 = vrot.slane %v1884_v5, 1 }
 0x21e   : > { %v14392_v31 = vrot.slane %v14391_v2, 1  ;;  %v14394_v41 = vrot.slane %v14393_v46, 1  ;;  %v2239_v11 = vrot.slane %v2128_v21, 1  ;;  %v2484_v48 = vrot.slane %v2372_v10, 2 }
 0x21f   : > { %v5502_v35 = vadd.f32 %v5413_v47, %v5258_v51  ;;  %v1107_v16 = vadd.f32 %v1075_v44, %v1039_v27  ;;  %v14395_v7 = vrot.slane %v9819_v6, 1  ;;  %v14396_v1 = vrot.slane %v9831_v49, 1 }
 0x220   : > { %v1264_v56 = vsel %vm1224_vm1, %v14392_v31, %v1263_v63  ;;  %v1508_v3 = vsel %vm1224_vm1, %v14394_v41, %v1507_v24  ;;  %v14397_v42 = vrot.slane %v9844_v43, 1  ;;  %v14398_v63 = vrot.slane %v9854_v14, 2 }
 0x221   : > { %v1752_v54 = vsel %vm1224_vm1, %v14395_v7, %v1751_v0  ;;  %v1996_v5 = vsel %vm1224_vm1, %v14396_v1, %v1995_v61  ;;  %v2617_v21 = vmul.f32 %v14012_v62, %v14385_v4  ;;  %v2861_v27 = vmul.f32 %v13997_v36, %v14387_v26  ;;  %v6752_v10 = vpop.eup %6751  ;;  %v14404_v1 = vld [vmem:[#allocation74_spill] sm:$0xff] }
 0x222   : > { %v2240_v40 = vsel %vm1224_vm1, %v14397_v42, %v2239_v11  ;;  %v2485_v24 = vsel %vm2445_vm2, %v14398_v63, %v2484_v48  ;;  %v5746_v7 = vadd.f32 %v5657_v55, %v5502_v35  ;;  %v1352_v0 = vadd.f32 %v1264_v56, %v1107_v16 }
 0x223   : > { %v3105_v49 = vmul.f32 %v14151_v53, %v14389_v33  ;;  %v3349_v43 = vmul.f32 %v13960_v39, %v14390_v28  ;;  %v6156_v6 = vadd.f32 1.0, %v6752_v10  ;;  %v2728_v47 = vrot.slane %v2617_v21, 2 }
 0x224   : > { %v2972_v14 = vrot.slane %v2861_v27, 2  ;;  %v3593_v51 = vmul.f32 %v13961_v60, %v14383_v37  ;;  %v5990_v25 = vadd.f32 %v5901_v30, %v5746_v7  ;;  %v1596_v44 = vadd.f32 %v1508_v3, %v1352_v0 }
 0x225   : > { %v3216_v61 = vrot.slane %v3105_v49, 2  ;;  %v3460_v41 = vrot.slane %v3349_v43, 2  ;;  %6753 = vrcp.f32 %v6156_v6  ;;  %v14399_v35 = vrot.slane %v9865_v32, 2 }
 0x226   : > { %v14400_v55 = vrot.slane %v9872_v23, 2  ;;  %v3705_v2 = vrot.slane %v3593_v51, 3  ;;  %v10074_v31 = vadd.f32 %v9359_v45, %v5990_v25  ;;  %v1840_v56 = vadd.f32 %v1752_v54, %v1596_v44  ;;  %v14405_v54 = vld [vmem:[#allocation75_spill] sm:$0xff] }
 0x227   : > { %v2729_v16 = vsel %vm2445_vm2, %v14399_v35, %v2728_v47  ;;  %v14401_v46 = vrot.slane %v9884_v38, 2  ;;  %v14402_v30 = vrot.slane %v9898_v9, 2  ;;  %v14403_v32 = vrot.slane %v9904_v20, 3 }
 0x228   : > { %v2973_v18 = vsel %vm2445_vm2, %v14400_v55, %v2972_v14  ;;  %v3838_v23 = vmul.f32 %v13962_v12, %v14385_v4  ;;  %v4082_v45 = vmul.f32 %v14404_v1, %v14387_v26  ;;  %v4326_v42 = vmul.f32 %v14405_v54, %v14389_v33  ;;  %v14412_v55 = vld [vmem:[#allocation55_spill] sm:$0xff] }
 0x229   : > { %v3217_v3 = vsel %vm2445_vm2, %v14401_v46, %v3216_v61  ;;  %v3461_v11 = vsel %vm2445_vm2, %v14402_v30, %v3460_v41  ;;  %v3706_v48 = vsel %vm3666_vm3, %v14403_v32, %v3705_v2  ;;  %v6552_v38 = vmul.f32 -1.442695, %v10074_v31  ;;  %v14413_v46 = vld [vmem:[#allocation30_spill] sm:$0xff]  ;;  %v14414_v30 = vld [vmem:[#allocation56_spill] sm:$0xff] }
 0x22a   : > { %v2084_v63 = vadd.f32 %v1996_v5, %v1840_v56  ;;  %v4570_v9 = vmul.f32 %v14157_v19, %v14390_v28  ;;  %v4814_v20 = vmul.f32 %v14027_v15, %v14383_v37  ;;  %v3949_v21 = vrot.slane %v3838_v23, 3  ;;  %v14415_v23 = vld [vmem:[#allocation32_spill] sm:$0xff] }
 0x22b   : > { %v4193_v27 = vrot.slane %v4082_v45, 3  ;;  %v4437_v10 = vrot.slane %v4326_v42, 3  ;;  %v5059_v7 = vmul.f32 %v7436_v52, %v14385_v4  ;;  %6755 = vpow2.f32 %v6552_v38  ;;  %v14416_v45 = vld [vmem:[#allocation57_spill] sm:$0xff] }
 0x22c   : > { %v2328_v0 = vadd.f32 %v2240_v40, %v2084_v63  ;;  %v4681_v49 = vrot.slane %v4570_v9, 3  ;;  %v4926_v43 = vrot.slane %v4814_v20, 4  ;;  %v14406_v6 = vrot.slane %v9916_v59, 3  ;;  %v14417_v63 = vld [vmem:[#allocation35_spill] sm:$0xff] }
 0x22d   : > { %v14407_v47 = vrot.slane %v9930_v29, 3  ;;  %v14408_v37 = vrot.slane %v9937_v13, 3  ;;  %v5170_v25 = vrot.slane %v5059_v7, 4  ;;  %v14409_v40 = vrot.slane %v9953_v57, 3  ;;  %v14418_v9 = vld [vmem:[#allocation59_spill] sm:$0xff] }
 0x22e   : > { %v3950_v5 = vsel %vm3666_vm3, %v14406_v6, %v3949_v21  ;;  %v2573_v44 = vadd.f32 %v2485_v24, %v2328_v0  ;;  %v14410_v59 = vrot.slane %v9966_v17, 4  ;;  %v5303_v29 = vmul.f32 %v7441_v22, %v14387_v26  ;;  %v14419_v21 = vld [vmem:[#allocation39_spill] sm:$0xff]  ;;  %v14421_v0 = vld [vmem:[#allocation16_spill] sm:$0xff]  ;;  %v14423_v6 = vld [vmem:[#allocation2_spill] sm:$0xff] }
 0x22f   : > { %v10104_v14 = vsel %vm3666_vm3, %v14407_v47, %v4193_v27  ;;  %v10109_v51 = vsel %vm3666_vm3, %v14408_v37, %v4437_v10  ;;  %v10114_v61 = vsel %vm3666_vm3, %v14409_v40, %v4681_v49  ;;  %v14411_v13 = vrot.slane %v9973_v58, 4  ;;  %v14420_v27 = vld [vmem:[#allocation62_spill] sm:$0xff]  ;;  %v14424_v37 = vld [vmem:[#allocation9_spill] sm:$0xff]  ;;  %v14426_v40 = vld [vmem:[#allocation7_spill] sm:$0xff] }
 0x230   : > { %v10119_v41 = vsel %vm4887_vm4, %v14410_v59, %v4926_v43  ;;  %v5547_v24 = vmul.f32 %v14101_v34, %v14389_v33  ;;  %v5791_v57 = vmul.f32 %v14102_v50, %v14390_v28  ;;  %v804_v17 = vmul.f32 %v14412_v55, %v14353_v8 }
 0x231   : > { %v10126_v35 = vsel %vm4887_vm4, %v14411_v13, %v5170_v25  ;;  %v2817_v2 = vadd.f32 %v2729_v16, %v2573_v44  ;;  %v5414_v56 = vrot.slane %v5303_v29, 4  ;;  %v872_v32 = vmul.f32 %v14414_v30, %v14413_v46 }
 0x232   : > { %v940_v58 = vmul.f32 %v14416_v45, %v14415_v23  ;;  %v5658_v42 = vrot.slane %v5547_v24, 4  ;;  %v5902_v38 = vrot.slane %v5791_v57, 4  ;;  %v1008_v20 = vmul.f32 %v14418_v9, %v14417_v63  ;;  %v14430_v24 = vld [vmem:[#allocation3_spill] sm:$0xff] }
 0x233   : > { %v1076_v10 = vmul.f32 %v14420_v27, %v14419_v21  ;;  %v3061_v7 = vadd.f32 %v2973_v18, %v2817_v2  ;;  %v14422_v49 = vrot.slane %v14421_v0, 4  ;;  %v904_v43 = vadd.f32 %v872_v32, %v804_v17  ;;  %v14428_v18 = vld [vmem:[#allocation27_spill] sm:$0xff]  ;;  %v6754_v17 = vpop.eup %6753  ;;  %v14431_v0 = vld [vmem:[#allocation29_spill] sm:$0xff] }
 0x234   : > { %v1152_v47 = vmul.f32 %v14423_v6, %v14353_v8  ;;  %v14425_v25 = vrot.slane %v14424_v37, 4  ;;  %v14427_v59 = vrot.slane %v14426_v40, 4  ;;  %v10161_v13 = vmul.f32 %v14423_v6, %v14428_v18  ;;  %v14434_v40 = vld [vmem:[#allocation4_spill] sm:$0xff]  ;;  %v14435_v6 = vld [vmem:[#allocation33_spill] sm:$0xff] }
 0x235   : > { %v10145_v16 = vsel %vm4887_vm4, %v14422_v49, %v5414_v56  ;;  %v1397_v57 = vmul.f32 %v14430_v24, %v14413_v46  ;;  %v3305_v2 = vadd.f32 %v3217_v3, %v3061_v7  ;;  %v972_v56 = vadd.f32 %v940_v58, %v904_v43  ;;  %v14433_v49 = vld [vmem:[#allocation72_spill] sm:$0xff]  ;;  %v14436_v43 = vld [vmem:[#allocation5_spill] sm:$0xff] }
 0x236   : > { %v10152_v44 = vsel %vm4887_vm4, %v14425_v25, %v5658_v42  ;;  %v10157_v29 = vsel %vm4887_vm4, %v14427_v59, %v5902_v38  ;;  %14429 = vst [vmem:[#allocation60_spill] sm:$0xff] %v10161_v13  ;;  %v1265_v32 = vrot.slane %v1152_v47, 1  ;;  %v10167_v42 = vmul.f32 %v14430_v24, %v14431_v0 }
 0x237   : > { %v6252_v37 = vmul.f32 %v6754_v17, %v14433_v49  ;;  %v13514_v38 = vrot.slane %v10161_v13, 1  ;;  %v1509_v25 = vrot.slane %v1397_v57, 1  ;;  %v1641_v59 = vmul.f32 %v14434_v40, %v14415_v23  ;;  %v14437_v57 = vld [vmem:[#allocation36_spill] sm:$0xff]  ;;  %v14439_v13 = vld [vmem:[#allocation37_spill] sm:$0xff] }
 0x238   : > { %14432 = vst [vmem:[#allocation18_spill] sm:$0xff] %v10167_v42  ;;  %v3549_v28 = vadd.f32 %v3461_v11, %v3305_v2  ;;  %v1040_v33 = vadd.f32 %v1008_v20, %v972_v56  ;;  %v13518_v26 = vrot.slane %v10167_v42, 1  ;;  %v10176_v3 = vmul.f32 %v14434_v40, %v14435_v6  ;;  %v6756_v49 = vpop.eup %6755 }
 0x239   : > { %6316 = vst [vmem:[%s6937_s10 + $0x168] sm:$0xff] %v6252_v37  ;;  %v1267_v58 = vsel %vm1224_vm1, %v1265_v32, %v13514_v38  ;;  %v1753_v7 = vrot.slane %v1641_v59, 1  ;;  %v1885_v47 = vmul.f32 %v14436_v43, %v14417_v63  ;;  %v10186_v17 = vmul.f32 %v14436_v43, %v14437_v57  ;;  %v14438_v59 = vld [vmem:[#allocation63_spill] sm:$0xff] }
 0x23a   : > { %v3794_v11 = vadd.f32 %v3706_v48, %v3549_v28  ;;  %v1108_v20 = vadd.f32 %v1076_v10, %v1040_v33  ;;  %v1511_v2 = vsel %vm1224_vm1, %v1509_v25, %v13518_v26  ;;  %v13523_v56 = vrot.slane %v10176_v3, 1  ;;  %v14440_v26 = vld [vmem:[#allocation64_spill] sm:$0xff] }
 0x23b   : > { %v1997_v37 = vrot.slane %v1885_v47, 1  ;;  %v13522_v32 = vrot.slane %v10186_v17, 1  ;;  %v2129_v38 = vmul.f32 %v14438_v59, %v14419_v21  ;;  %v10197_v40 = vmul.f32 %v14438_v59, %v14439_v13 }
 0x23c   : > { %v6157_v43 = vadd.f32 1.0, %v6756_v49  ;;  %v4038_v28 = vadd.f32 %v3950_v5, %v3794_v11  ;;  %v1353_v33 = vadd.f32 %v1267_v58, %v1108_v20  ;;  %v1755_v48 = vsel %vm1224_vm1, %v1753_v7, %v13523_v56 }
 0x23d   : > { %v1999_v10 = vsel %vm1224_vm1, %v1997_v37, %v13522_v32  ;;  %v2241_v25 = vrot.slane %v2129_v38, 1  ;;  %v13521_v47 = vrot.slane %v10197_v40, 1  ;;  %v2373_v42 = vmul.f32 %v14440_v26, %v14353_v8 }
 0x23e   : > { %6757 = vrcp.f32 %v6157_v43  ;;  %v4282_v59 = vadd.f32 %v10104_v14, %v4038_v28  ;;  %v1597_v49 = vadd.f32 %v1511_v2, %v1353_v33  ;;  %v10211_v5 = vmul.f32 %v14440_v26, %v14428_v18 }
 0x23f   : > { %v2243_v58 = vsel %vm1224_vm1, %v2241_v25, %v13521_v47  ;;  %v2486_v7 = vrot.slane %v2373_v42, 2  ;;  %v2618_v38 = vmul.f32 %v14012_v62, %v14413_v46  ;;  %v10220_v11 = vmul.f32 %v14012_v62, %v14431_v0 }
 0x240   : > { %v4526_v43 = vadd.f32 %v10109_v51, %v4282_v59  ;;  %v1841_v14 = vadd.f32 %v1755_v48, %v1597_v49  ;;  %v13526_v20 = vrot.slane %v10211_v5, 2  ;;  %v2862_v2 = vmul.f32 %v13997_v36, %v14415_v23 }
 0x241   : > { %v2730_v37 = vrot.slane %v2618_v38, 2  ;;  %v13525_v28 = vrot.slane %v10220_v11, 2  ;;  %v10229_v42 = vmul.f32 %v13997_v36, %v14435_v6  ;;  %v3106_v33 = vmul.f32 %v14151_v53, %v14417_v63 }
 0x242   : > { %v4770_v25 = vadd.f32 %v10114_v61, %v4526_v43  ;;  %v2085_v47 = vadd.f32 %v1999_v10, %v1841_v14  ;;  %v2488_v51 = vsel %vm2445_vm2, %v2486_v7, %v13526_v20  ;;  %v2974_v59 = vrot.slane %v2862_v2, 2 }
 0x243   : > { %14441 = vst [vmem:[#allocation21_spill] sm:$0xff] %v10229_v42  ;;  %v2732_v48 = vsel %vm2445_vm2, %v2730_v37, %v13525_v28  ;;  %v13524_v49 = vrot.slane %v10229_v42, 2  ;;  %v10243_v38 = vmul.f32 %v14151_v53, %v14437_v57  ;;  %v3218_v32 = vrot.slane %v3106_v33, 2 }
 0x244   : > { %v5015_v56 = vadd.f32 %v10119_v41, %v4770_v25  ;;  %v2329_v61 = vadd.f32 %v2243_v58, %v2085_v47  ;;  %v3350_v10 = vmul.f32 %v13960_v39, %v14419_v21  ;;  %v10250_v7 = vmul.f32 %v13960_v39, %v14439_v13 }
 0x245   : > { %v2976_v43 = vsel %vm2445_vm2, %v2974_v59, %v13524_v49  ;;  %v13530_v14 = vrot.slane %v10243_v38, 2  ;;  %v3594_v2 = vmul.f32 %v13961_v60, %v14353_v8  ;;  %v10260_v41 = vmul.f32 %v13961_v60, %v14428_v18 }
 0x246   : > { %v5259_v47 = vadd.f32 %v10126_v35, %v5015_v56  ;;  %v2574_v58 = vadd.f32 %v2488_v51, %v2329_v61  ;;  %v3462_v37 = vrot.slane %v3350_v10, 2  ;;  %v13529_v33 = vrot.slane %v10250_v7, 2 }
 0x247   : > { %v3220_v25 = vsel %vm2445_vm2, %v3218_v32, %v13530_v14  ;;  %v3707_v59 = vrot.slane %v3594_v2, 3  ;;  %v13528_v49 = vrot.slane %v10260_v41, 3  ;;  %v3839_v28 = vmul.f32 %v13962_v12, %v14413_v46 }
 0x248   : > { %v5503_v20 = vadd.f32 %v10145_v16, %v5259_v47  ;;  %v2818_v42 = vadd.f32 %v2732_v48, %v2574_v58  ;;  %v3464_v35 = vsel %vm2445_vm2, %v3462_v37, %v13529_v33  ;;  %v10276_v56 = vmul.f32 %v13962_v12, %v14431_v0 }
 0x249   : > { %v3709_v32 = vsel %vm3666_vm3, %v3707_v59, %v13528_v49  ;;  %v3951_v51 = vrot.slane %v3839_v28, 3  ;;  %v4083_v61 = vmul.f32 %v14404_v1, %v14415_v23  ;;  %v10285_v16 = vmul.f32 %v14404_v1, %v14435_v6 }
 0x24a   : > { %v5747_v48 = vadd.f32 %v10152_v44, %v5503_v20  ;;  %v3062_v10 = vadd.f32 %v2976_v43, %v2818_v42  ;;  %v13534_v2 = vrot.slane %v10276_v56, 3  ;;  %v4327_v47 = vmul.f32 %v14405_v54, %v14417_v63 }
 0x24b   : > { %v6758_v58 = vpop.eup %6757  ;;  %v4195_v37 = vrot.slane %v4083_v61, 3  ;;  %v13533_v28 = vrot.slane %v10285_v16, 3  ;;  %v10294_v59 = vmul.f32 %v14405_v54, %v14437_v57  ;;  %v4571_v49 = vmul.f32 %v14157_v19, %v14419_v21 }
 0x24c   : > { %v6253_v44 = vmul.f32 %v6758_v58, %v10074_v31  ;;  %v5991_v20 = vadd.f32 %v10157_v29, %v5747_v48  ;;  %v3306_v42 = vadd.f32 %v3220_v25, %v3062_v10  ;;  %v3953_v43 = vsel %vm3666_vm3, %v3951_v51, %v13534_v2  ;;  %v10315_v31 = vld [vmem:[%s13046_s4] ss:$0 sm:$0xff] }
 0x24d   : > { %v4197_v61 = vsel %vm3666_vm3, %v4195_v37, %v13533_v28  ;;  %v4439_v33 = vrot.slane %v4327_v47, 3  ;;  %v13532_v14 = vrot.slane %v10294_v59, 3  ;;  %v10309_v54 = vmul.f32 %v14157_v19, %v14439_v13 }
 0x24e   : > { %6317 = vst [vmem:[%s6937_s10 + $0x170] sm:$0xff] %v6253_v44  ;;  %v10318_v29 = vadd.f32 %v10315_v31, %v5991_v20  ;;  %v3550_v25 = vadd.f32 %v3464_v35, %v3306_v42  ;;  %v4683_v51 = vrot.slane %v4571_v49, 3  ;;  %v4815_v48 = vmul.f32 %v14027_v15, %v14353_v8 }
 0x24f   : > { %v4441_v10 = vsel %vm3666_vm3, %v4439_v33, %v13532_v14  ;;  %v13535_v47 = vrot.slane %v10309_v54, 3  ;;  %v10328_v58 = vmul.f32 %v14027_v15, %v14428_v18  ;;  %v5060_v37 = vmul.f32 %v7436_v52, %v14413_v46 }
 0x250   : > { %14442 = vst [vmem:[#allocation10_spill] sm:$0xff] %v10318_v29  ;;  %v6553_v44 = vmul.f32 -1.442695, %v10318_v29  ;;  %v3795_v35 = vadd.f32 %v3709_v32, %v3550_v25  ;;  %v4928_v49 = vrot.slane %v4815_v48, 4  ;;  %v10335_v8 = vmul.f32 %v7436_v52, %v14431_v0 }
 0x251   : > { %v4685_v33 = vsel %vm3666_vm3, %v4683_v51, %v13535_v47  ;;  %v13537_v20 = vrot.slane %v10328_v58, 4  ;;  %v5172_v42 = vrot.slane %v5060_v37, 4  ;;  %v5304_v14 = vmul.f32 %v7441_v22, %v14415_v23  ;;  %v14454_v23 = vld [vmem:[#allocation60_spill] sm:$0xff] }
 0x252   : > { %6759 = vpow2.f32 %v6553_v44  ;;  %v4039_v28 = vadd.f32 %v3953_v43, %v3795_v35  ;;  %v13538_v2 = vrot.slane %v10335_v8, 4  ;;  %v10346_v32 = vmul.f32 %v7441_v22, %v14435_v6 }
 0x253   : > { %v4930_v25 = vsel %vm4887_vm4, %v4928_v49, %v13537_v20  ;;  %v5416_v48 = vrot.slane %v5304_v14, 4  ;;  %v5548_v51 = vmul.f32 %v14101_v34, %v14417_v63  ;;  %v10355_v37 = vmul.f32 %v14101_v34, %v14437_v57 }
 0x254   : > { %14443 = vst [vmem:[#allocation78_spill] sm:$0xff] %v10346_v32  ;;  %v4283_v44 = vadd.f32 %v4197_v61, %v4039_v28  ;;  %v5174_v43 = vsel %vm4887_vm4, %v5172_v42, %v13538_v2  ;;  %v13541_v35 = vrot.slane %v10346_v32, 4  ;;  %v5792_v47 = vmul.f32 %v14102_v50, %v14419_v21 }
 0x255   : > { %14444 = vst [vmem:[#allocation11_spill] sm:$0xff] %v10355_v37  ;;  %v5660_v29 = vrot.slane %v5548_v51, 4  ;;  %v13542_v14 = vrot.slane %v10355_v37, 4  ;;  %v10366_v49 = vmul.f32 %v14102_v50, %v14439_v13  ;;  %v805_v20 = vmul.f32 %v14412_v55, %v14428_v18  ;;  %v14448_v37 = vld [vmem:[#allocation34_spill] sm:$0xff] }
 0x256   : > { %v4527_v28 = vadd.f32 %v4441_v10, %v4283_v44  ;;  %v5418_v61 = vsel %vm4887_vm4, %v5416_v48, %v13541_v35  ;;  %v5904_v42 = vrot.slane %v5792_v47, 4  ;;  %v873_v2 = vmul.f32 %v14414_v30, %v14431_v0  ;;  %v14446_v48 = vld [vmem:[#allocation2_spill] sm:$0xff] }
 0x257   : > { %14445 = vst [vmem:[#allocation17_spill] sm:$0xff] %v10366_v49  ;;  %v5662_v51 = vsel %vm4887_vm4, %v5660_v29, %v13542_v14  ;;  %v13554_v21 = vrot.slane %v10366_v49, 4  ;;  %v941_v63 = vmul.f32 %v14416_v45, %v14435_v6  ;;  %v1009_v18 = vmul.f32 %v14418_v9, %v14437_v57  ;;  %v14447_v14 = vld [vmem:[#allocation31_spill] sm:$0xff]  ;;  %v14449_v6 = vld [vmem:[#allocation4_spill] sm:$0xff]  ;;  %v14450_v45 = vld [vmem:[#allocation38_spill] sm:$0xff] }
 0x258   : > { %v4771_v10 = vadd.f32 %v4685_v33, %v4527_v28  ;;  %v905_v44 = vadd.f32 %v873_v2, %v805_v20  ;;  %v1077_v47 = vmul.f32 %v14420_v27, %v14439_v13  ;;  %v1154_v35 = vmul.f32 %v14446_v48, %v14385_v4  ;;  %v14451_v57 = vld [vmem:[#allocation5_spill] sm:$0xff]  ;;  %v14452_v13 = vld [vmem:[#allocation40_spill] sm:$0xff]  ;;  %v14453_v27 = vld [vmem:[#allocation63_spill] sm:$0xff] }
 0x259   : > { %v5906_v29 = vsel %vm4887_vm4, %v5904_v42, %v13554_v21  ;;  %v1399_v0 = vmul.f32 %v14430_v24, %v14447_v14  ;;  %v1643_v32 = vmul.f32 %v14449_v6, %v14448_v37  ;;  %v1887_v33 = vmul.f32 %v14451_v57, %v14450_v45  ;;  %v14456_v57 = vld [vmem:[#allocation18_spill] sm:$0xff] }
 0x25a   : > { %v5016_v2 = vadd.f32 %v4930_v25, %v4771_v10  ;;  %v973_v20 = vadd.f32 %v941_v63, %v905_v44  ;;  %v1268_v28 = vrot.slane %v1154_v35, 1  ;;  %v2131_v9 = vmul.f32 %v14453_v27, %v14452_v13 }
 0x25b   : > { %v1512_v48 = vrot.slane %v1399_v0, 1  ;;  %v1756_v30 = vrot.slane %v1643_v32, 1  ;;  %v2000_v49 = vrot.slane %v1887_v33, 1  ;;  %v2375_v42 = vmul.f32 %v14440_v26, %v14385_v4 }
 0x25c   : > { %v5260_v21 = vadd.f32 %v5174_v43, %v5016_v2  ;;  %v1041_v24 = vadd.f32 %v1009_v18, %v973_v20  ;;  %v14455_v55 = vrot.slane %v14454_v23, 1  ;;  %v2244_v46 = vrot.slane %v2131_v9, 1 }
 0x25d   : > { %v14457_v25 = vrot.slane %v14456_v57, 1  ;;  %v14458_v35 = vrot.slane %v10176_v3, 1  ;;  %v14459_v32 = vrot.slane %v10186_v17, 1  ;;  %v2489_v44 = vrot.slane %v2375_v42, 2 }
 0x25e   : > { %v1269_v6 = vsel %vm1224_vm1, %v14455_v55, %v1268_v28  ;;  %v5504_v43 = vadd.f32 %v5418_v61, %v5260_v21  ;;  %v1109_v18 = vadd.f32 %v1077_v47, %v1041_v24  ;;  %v14460_v23 = vrot.slane %v10197_v40, 1 }
 0x25f   : > { %v1513_v63 = vsel %vm1224_vm1, %v14457_v25, %v1512_v48  ;;  %v1757_v0 = vsel %vm1224_vm1, %v14458_v35, %v1756_v30  ;;  %v2001_v10 = vsel %vm1224_vm1, %v14459_v32, %v2000_v49  ;;  %v2620_v9 = vmul.f32 %v14012_v62, %v14447_v14  ;;  %v6760_v57 = vpop.eup %6759  ;;  %v14463_v25 = vld [vmem:[#allocation21_spill] sm:$0xff] }
 0x260   : > { %v2245_v55 = vsel %vm1224_vm1, %v14460_v23, %v2244_v46  ;;  %v14461_v48 = vrot.slane %v10211_v5, 2  ;;  %v2864_v30 = vmul.f32 %v13997_v36, %v14448_v37  ;;  %v3108_v17 = vmul.f32 %v14151_v53, %v14450_v45 }
 0x261   : > { %v3352_v21 = vmul.f32 %v13960_v39, %v14452_v13  ;;  %v6158_v24 = vadd.f32 1.0, %v6760_v57  ;;  %v5748_v40 = vadd.f32 %v5662_v51, %v5504_v43  ;;  %v1354_v46 = vadd.f32 %v1269_v6, %v1109_v18  ;;  %v14468_v57 = vld [vmem:[#allocation75_spill] sm:$0xff] }
 0x262   : > { %v2490_v3 = vsel %vm2445_vm2, %v14461_v48, %v2489_v44  ;;  %v2733_v49 = vrot.slane %v2620_v9, 2  ;;  %v2977_v61 = vrot.slane %v2864_v30, 2  ;;  %v3221_v47 = vrot.slane %v3108_v17, 2 }
 0x263   : > { %v3465_v33 = vrot.slane %v3352_v21, 2  ;;  %v3596_v5 = vmul.f32 %v13961_v60, %v14385_v4  ;;  %6761 = vrcp.f32 %v6158_v24  ;;  %v5992_v2 = vadd.f32 %v5906_v29, %v5748_v40 }
 0x264   : > { %v1598_v20 = vadd.f32 %v1513_v63, %v1354_v46  ;;  %v14462_v28 = vrot.slane %v10220_v11, 2  ;;  %v14464_v35 = vrot.slane %v14463_v25, 2  ;;  %v14465_v6 = vrot.slane %v10243_v38, 2 }
 0x265   : > { %v14466_v44 = vrot.slane %v10250_v7, 2  ;;  %v3710_v18 = vrot.slane %v3596_v5, 3  ;;  %v10441_v29 = vadd.f32 %v10315_v31, %v5992_v2  ;;  %v3841_v11 = vmul.f32 %v13962_v12, %v14447_v14 }
 0x266   : > { %v2734_v42 = vsel %vm2445_vm2, %v14462_v28, %v2733_v49  ;;  %v2978_v32 = vsel %vm2445_vm2, %v14464_v35, %v2977_v61  ;;  %v3222_v51 = vsel %vm2445_vm2, %v14465_v6, %v3221_v47  ;;  %v1842_v63 = vadd.f32 %v1757_v0, %v1598_v20 }
 0x267   : > { %v3466_v43 = vsel %vm2445_vm2, %v14466_v44, %v3465_v33  ;;  %v4085_v23 = vmul.f32 %v14404_v1, %v14448_v37  ;;  %v14467_v9 = vrot.slane %v10260_v41, 3  ;;  %v4329_v7 = vmul.f32 %v14468_v57, %v14450_v45 }
 0x268   : > { %v4573_v48 = vmul.f32 %v14157_v19, %v14452_v13  ;;  %v4817_v30 = vmul.f32 %v14027_v15, %v14385_v4  ;;  %v6554_v0 = vmul.f32 -1.442695, %v10441_v29  ;;  %v2086_v17 = vadd.f32 %v2001_v10, %v1842_v63 }
 0x269   : > { %v3711_v38 = vsel %vm3666_vm3, %v14467_v9, %v3710_v18  ;;  %v3954_v21 = vrot.slane %v3841_v11, 3  ;;  %v4198_v24 = vrot.slane %v4085_v23, 3  ;;  %v4442_v40 = vrot.slane %v4329_v7, 3  ;;  %v14476_v18 = vld [vmem:[#allocation55_spill] sm:$0xff]  ;;  %v14477_v11 = vld [vmem:[#allocation32_spill] sm:$0xff]  ;;  %v14480_v7 = vld [vmem:[#allocation57_spill] sm:$0xff] }
 0x26a   : > { %v4686_v46 = vrot.slane %v4573_v48, 3  ;;  %v4931_v49 = vrot.slane %v4817_v30, 4  ;;  %v5062_v41 = vmul.f32 %v7436_v52, %v14447_v14  ;;  %6763 = vpow2.f32 %v6554_v0  ;;  %v14478_v23 = vld [vmem:[#allocation56_spill] sm:$0xff]  ;;  %v14479_v9 = vld [vmem:[#allocation35_spill] sm:$0xff] }
 0x26b   : > { %v2330_v61 = vadd.f32 %v2245_v55, %v2086_v17  ;;  %v14469_v47 = vrot.slane %v10276_v56, 3  ;;  %v14470_v5 = vrot.slane %v10285_v16, 3  ;;  %v14471_v10 = vrot.slane %v10294_v59, 3 }
 0x26c   : > { %v14472_v20 = vrot.slane %v10309_v54, 3  ;;  %v14473_v55 = vrot.slane %v10328_v58, 4  ;;  %v5175_v25 = vrot.slane %v5062_v41, 4  ;;  %v5306_v35 = vmul.f32 %v7441_v22, %v14448_v37  ;;  %v14475_v58 = vld [vmem:[#allocation30_spill] sm:$0xff]  ;;  %v14499_v37 = vld [vmem:[#allocation36_spill] sm:$0xff] }
 0x26d   : > { %v3955_v33 = vsel %vm3666_vm3, %v14469_v47, %v3954_v21  ;;  %v10465_v4 = vsel %vm3666_vm3, %v14470_v5, %v4198_v24  ;;  %v10470_v2 = vsel %vm3666_vm3, %v14471_v10, %v4442_v40  ;;  %v2575_v16 = vadd.f32 %v2490_v3, %v2330_v61  ;;  %v14481_v40 = vld [vmem:[#allocation39_spill] sm:$0xff]  ;;  %v14484_v41 = vld [vmem:[#allocation62_spill] sm:$0xff] }
 0x26e   : > { %v10475_v28 = vsel %vm3666_vm3, %v14472_v20, %v4686_v46  ;;  %v10480_v56 = vsel %vm4887_vm4, %v14473_v55, %v4931_v49  ;;  %v5550_v59 = vmul.f32 %v14101_v34, %v14450_v45  ;;  %v5794_v6 = vmul.f32 %v14102_v50, %v14452_v13  ;;  %v14482_v46 = vld [vmem:[#allocation59_spill] sm:$0xff]  ;;  %v14483_v49 = vld [vmem:[#allocation42_spill] sm:$0xff]  ;;  %v14492_v13 = vld [vmem:[#allocation29_spill] sm:$0xff] }
 0x26f   : > { %v14474_v54 = vrot.slane %v10335_v8, 4  ;;  %v806_v63 = vmul.f32 %v14476_v18, %v14475_v58  ;;  %v874_v3 = vmul.f32 %v14478_v23, %v14477_v11  ;;  %v942_v48 = vmul.f32 %v14480_v7, %v14479_v9  ;;  %v14485_v47 = vld [vmem:[#allocation2_spill] sm:$0xff] }
 0x270   : > { %v2819_v30 = vadd.f32 %v2734_v42, %v2575_v16  ;;  %v5419_v0 = vrot.slane %v5306_v35, 4  ;;  %v5663_v17 = vrot.slane %v5550_v59, 4  ;;  %v5907_v21 = vrot.slane %v5794_v6, 4  ;;  %v14486_v20 = vld [vmem:[#allocation78_spill] sm:$0xff]  ;;  %v14488_v42 = vld [vmem:[#allocation11_spill] sm:$0xff]  ;;  %v14490_v59 = vld [vmem:[#allocation17_spill] sm:$0xff] }
 0x271   : > { %v10491_v44 = vsel %vm4887_vm4, %v14474_v54, %v5175_v25  ;;  %v906_v24 = vadd.f32 %v874_v3, %v806_v63  ;;  %v1010_v8 = vmul.f32 %v14482_v46, %v14481_v40  ;;  %v1078_v61 = vmul.f32 %v14484_v41, %v14483_v49  ;;  %v6762_v63 = vpop.eup %6761 }
 0x272   : > { %v1155_v5 = vmul.f32 %v14485_v47, %v14475_v58  ;;  %v3063_v10 = vadd.f32 %v2978_v32, %v2819_v30  ;;  %v14487_v55 = vrot.slane %v14486_v20, 4  ;;  %v14489_v16 = vrot.slane %v14488_v42, 4 }
 0x273   : > { %v14491_v6 = vrot.slane %v14490_v59, 4  ;;  %v974_v3 = vadd.f32 %v942_v48, %v906_v24  ;;  %v10522_v32 = vmul.f32 %v14485_v47, %v14492_v13 }
 0x274   : > { %v10508_v25 = vsel %vm4887_vm4, %v14487_v55, %v5419_v0  ;;  %v10513_v35 = vsel %vm4887_vm4, %v14489_v16, %v5663_v17  ;;  %v1270_v30 = vrot.slane %v1155_v5, 1  ;;  %v14494_v0 = vld [vmem:[#allocation3_spill] sm:$0xff]  ;;  %v14495_v55 = vld [vmem:[#allocation10_spill] sm:$0xff]  ;;  %v3307_v45 = vadd.f32 %v3222_v51, %v3063_v10  ;;  %v14496_v17 = vld [vmem:[#allocation33_spill] sm:$0xff] }
 0x275   : > { %v10518_v54 = vsel %vm4887_vm4, %v14491_v6, %v5907_v21  ;;  %14493 = vst [vmem:[#allocation66_spill] sm:$0xff] %v10522_v32  ;;  %v1400_v20 = vmul.f32 %v14494_v0, %v14477_v11  ;;  %v6254_v42 = vmul.f32 %v6762_v63, %v14495_v55  ;;  %v10529_v16 = vmul.f32 %v14494_v0, %v14496_v17  ;;  %v14498_v21 = vld [vmem:[#allocation4_spill] sm:$0xff]  ;;  %v14500_v10 = vld [vmem:[#allocation5_spill] sm:$0xff] }
 0x276   : > { %v1644_v59 = vmul.f32 %v14498_v21, %v14479_v9  ;;  %v1042_v6 = vadd.f32 %v1010_v8, %v974_v3  ;;  %v13566_v48 = vrot.slane %v10522_v32, 1  ;;  %v10536_v5 = vmul.f32 %v14498_v21, %v14499_v37 }
 0x277   : > { %14497 = vst [vmem:[#allocation19_spill] sm:$0xff] %v10529_v16  ;;  %v1514_v24 = vrot.slane %v1400_v20, 1  ;;  %6318 = vst [vmem:[%s6937_s10 + $0x178] sm:$0xff] %v6254_v42  ;;  %v3551_v47 = vadd.f32 %v3466_v43, %v3307_v45  ;;  %v13575_v63 = vrot.slane %v10529_v16, 1  ;;  %v1888_v55 = vmul.f32 %v14500_v10, %v14481_v40  ;;  %v14501_v20 = vld [vmem:[#allocation37_spill] sm:$0xff] }
 0x278   : > { %v1758_v51 = vrot.slane %v1644_v59, 1  ;;  %v1110_v0 = vadd.f32 %v1078_v61, %v1042_v6  ;;  %v1272_v8 = vsel %vm1224_vm1, %v1270_v30, %v13566_v48  ;;  %v13569_v3 = vrot.slane %v10536_v5, 1  ;;  %v6764_v61 = vpop.eup %6763  ;;  %v14502_v48 = vld [vmem:[#allocation41_spill] sm:$0xff] }
 0x279   : > { %v10548_v14 = vmul.f32 %v14500_v10, %v14501_v20  ;;  %v3796_v21 = vadd.f32 %v3711_v38, %v3551_v47  ;;  %v1516_v45 = vsel %vm1224_vm1, %v1514_v24, %v13575_v63  ;;  %v2002_v43 = vrot.slane %v1888_v55, 1 }
 0x27a   : > { %v2132_v42 = vmul.f32 %v14453_v27, %v14483_v49  ;;  %v1355_v59 = vadd.f32 %v1272_v8, %v1110_v0  ;;  %v1760_v30 = vsel %vm1224_vm1, %v1758_v51, %v13569_v3  ;;  %v10561_v32 = vmul.f32 %v14453_v27, %v14502_v48 }
 0x27b   : > { %v13571_v6 = vrot.slane %v10548_v14, 1  ;;  %v6159_v38 = vadd.f32 1.0, %v6764_v61  ;;  %v4040_v47 = vadd.f32 %v3955_v33, %v3796_v21  ;;  %v2376_v24 = vmul.f32 %v14440_v26, %v14475_v58 }
 0x27c   : > { %v2246_v16 = vrot.slane %v2132_v42, 1  ;;  %v1599_v55 = vadd.f32 %v1516_v45, %v1355_v59  ;;  %v13570_v8 = vrot.slane %v10561_v32, 1  ;;  %v10571_v51 = vmul.f32 %v14440_v26, %v14492_v13 }
 0x27d   : > { %v2004_v0 = vsel %vm1224_vm1, %v2002_v43, %v13571_v6  ;;  %6765 = vrcp.f32 %v6159_v38  ;;  %v4284_v3 = vadd.f32 %v10465_v4, %v4040_v47  ;;  %v2491_v61 = vrot.slane %v2376_v24, 2 }
 0x27e   : > { %v2621_v33 = vmul.f32 %v14012_v62, %v14477_v11  ;;  %v1843_v21 = vadd.f32 %v1760_v30, %v1599_v55  ;;  %v2248_v45 = vsel %vm1224_vm1, %v2246_v16, %v13570_v8  ;;  %v13572_v43 = vrot.slane %v10571_v51, 2 }
 0x27f   : > { %v10582_v42 = vmul.f32 %v14012_v62, %v14496_v17  ;;  %v4528_v59 = vadd.f32 %v10470_v2, %v4284_v3  ;;  %v2865_v4 = vmul.f32 %v13997_v36, %v14479_v9  ;;  %v10589_v47 = vmul.f32 %v13997_v36, %v14499_v37 }
 0x280   : > { %v2735_v38 = vrot.slane %v2621_v33, 2  ;;  %v2087_v30 = vadd.f32 %v2004_v0, %v1843_v21  ;;  %v2493_v16 = vsel %vm2445_vm2, %v2491_v61, %v13572_v43  ;;  %v3109_v55 = vmul.f32 %v14151_v53, %v14481_v40 }
 0x281   : > { %v13574_v24 = vrot.slane %v10582_v42, 2  ;;  %v4772_v2 = vadd.f32 %v10475_v28, %v4528_v59  ;;  %v2979_v3 = vrot.slane %v2865_v4, 2  ;;  %v13573_v33 = vrot.slane %v10589_v47, 2 }
 0x282   : > { %v10601_v8 = vmul.f32 %v14151_v53, %v14501_v20  ;;  %v2331_v6 = vadd.f32 %v2248_v45, %v2087_v30  ;;  %v3223_v61 = vrot.slane %v3109_v55, 2  ;;  %v3353_v21 = vmul.f32 %v13960_v39, %v14483_v49 }
 0x283   : > { %v2737_v0 = vsel %vm2445_vm2, %v2735_v38, %v13574_v24  ;;  %v5017_v43 = vadd.f32 %v10480_v56, %v4772_v2  ;;  %v2981_v28 = vsel %vm2445_vm2, %v2979_v3, %v13573_v33  ;;  %v10615_v4 = vmul.f32 %v13960_v39, %v14502_v48 }
 0x284   : > { %v13576_v59 = vrot.slane %v10601_v8, 2  ;;  %v2576_v45 = vadd.f32 %v2493_v16, %v2331_v6  ;;  %v3467_v30 = vrot.slane %v3353_v21, 2  ;;  %v3597_v38 = vmul.f32 %v13961_v60, %v14475_v58 }
 0x285   : > { %v10621_v55 = vmul.f32 %v13961_v60, %v14492_v13  ;;  %v5261_v56 = vadd.f32 %v10491_v44, %v5017_v43  ;;  %v13578_v3 = vrot.slane %v10615_v4, 2  ;;  %v3842_v33 = vmul.f32 %v13962_v12, %v14477_v11 }
 0x286   : > { %v3225_v2 = vsel %vm2445_vm2, %v3223_v61, %v13576_v59  ;;  %v2820_v6 = vadd.f32 %v2737_v0, %v2576_v45  ;;  %v3712_v16 = vrot.slane %v3597_v38, 3  ;;  %v10633_v24 = vmul.f32 %v13962_v12, %v14496_v17 }
 0x287   : > { %v13577_v21 = vrot.slane %v10621_v55, 3  ;;  %v5505_v63 = vadd.f32 %v10508_v25, %v5261_v56  ;;  %v3469_v44 = vsel %vm2445_vm2, %v3467_v30, %v13578_v3  ;;  %v3956_v43 = vrot.slane %v3842_v33, 3 }
 0x288   : > { %v4086_v61 = vmul.f32 %v14404_v1, %v14479_v9  ;;  %v3064_v59 = vadd.f32 %v2981_v28, %v2820_v6  ;;  %v13581_v45 = vrot.slane %v10633_v24, 3  ;;  %v10647_v38 = vmul.f32 %v14404_v1, %v14499_v37 }
 0x289   : > { %v3714_v0 = vsel %vm3666_vm3, %v3712_v16, %v13577_v21  ;;  %v5749_v25 = vadd.f32 %v10513_v35, %v5505_v63  ;;  %v4330_v33 = vmul.f32 %v14468_v57, %v14481_v40  ;;  %v10654_v28 = vmul.f32 %v14468_v57, %v14501_v20 }
 0x28a   : > { %v4200_v56 = vrot.slane %v4086_v61, 3  ;;  %v6766_v30 = vpop.eup %6765  ;;  %v3308_v6 = vadd.f32 %v3225_v2, %v3064_v59  ;;  %v3958_v16 = vsel %vm3666_vm3, %v3956_v43, %v13581_v45  ;;  %v13583_v21 = vrot.slane %v10647_v38, 3 }
 0x28b   : > { %v4574_v35 = vmul.f32 %v14157_v19, %v14483_v49  ;;  %v6255_v63 = vmul.f32 %v6766_v30, %v10441_v29  ;;  %v5993_v61 = vadd.f32 %v10518_v54, %v5749_v25  ;;  %v4444_v3 = vrot.slane %v4330_v33, 3 }
 0x28c   : > { %v13582_v1 = vrot.slane %v10654_v28, 3  ;;  %v3552_v57 = vadd.f32 %v3469_v44, %v3308_v6  ;;  %v4202_v59 = vsel %vm3666_vm3, %v4200_v56, %v13583_v21  ;;  %v10670_v2 = vmul.f32 %v14157_v19, %v14502_v48 }
 0x28d   : > { %v4688_v43 = vrot.slane %v4574_v35, 3  ;;  %6319 = vst [vmem:[%s6937_s10 + $0x180] sm:$0xff] %v6255_v63  ;;  %v10674_v45 = vadd.f32 %v10315_v31, %v5993_v61  ;;  %v4818_v54 = vmul.f32 %v14027_v15, %v14475_v58  ;;  %v10683_v44 = vmul.f32 %v14027_v15, %v14492_v13 }
 0x28e   : > { %v4446_v29 = vsel %vm3666_vm3, %v4444_v3, %v13582_v1  ;;  %v3797_v25 = vadd.f32 %v3714_v0, %v3552_v57  ;;  %v13587_v56 = vrot.slane %v10670_v2, 3  ;;  %v5063_v33 = vmul.f32 %v7436_v52, %v14477_v11 }
 0x28f   : > { %14503 = vst [vmem:[#allocation14_spill] sm:$0xff] %v10674_v45  ;;  %v10690_v30 = vmul.f32 %v7436_v52, %v14496_v17  ;;  %v6555_v6 = vmul.f32 -1.442695, %v10674_v45  ;;  %v4933_v3 = vrot.slane %v4818_v54, 4  ;;  %v13586_v35 = vrot.slane %v10683_v44, 4 }
 0x290   : > { %v5307_v58 = vmul.f32 %v7441_v22, %v14479_v9  ;;  %v4041_v63 = vadd.f32 %v3958_v16, %v3797_v25  ;;  %v4690_v57 = vsel %vm3666_vm3, %v4688_v43, %v13587_v56  ;;  %v5177_v0 = vrot.slane %v5063_v33, 4 }
 0x291   : > { %v13585_v61 = vrot.slane %v10690_v30, 4  ;;  %6767 = vpow2.f32 %v6555_v6  ;;  %v4935_v1 = vsel %vm4887_vm4, %v4933_v3, %v13586_v35  ;;  %v10705_v54 = vmul.f32 %v7441_v22, %v14499_v37 }
 0x292   : > { %v5421_v21 = vrot.slane %v5307_v58, 4  ;;  %v4285_v45 = vadd.f32 %v4202_v59, %v4041_v63  ;;  %v5551_v43 = vmul.f32 %v14101_v34, %v14481_v40  ;;  %v10714_v25 = vmul.f32 %v14101_v34, %v14501_v20 }
 0x293   : > { %14504 = vst [vmem:[#allocation12_spill] sm:$0xff] %v10705_v54  ;;  %v5179_v16 = vsel %vm4887_vm4, %v5177_v0, %v13585_v61  ;;  %v13591_v33 = vrot.slane %v10705_v54, 4  ;;  %v5795_v6 = vmul.f32 %v14102_v50, %v14483_v49  ;;  %v10721_v3 = vmul.f32 %v14102_v50, %v14502_v48 }
 0x294   : > { %14505 = vst [vmem:[#allocation73_spill] sm:$0xff] %v10714_v25  ;;  %v807_v59 = vmul.f32 %v14476_v18, %v14492_v13  ;;  %v4529_v58 = vadd.f32 %v4446_v29, %v4285_v45  ;;  %v5665_v63 = vrot.slane %v5551_v43, 4  ;;  %v13596_v0 = vrot.slane %v10714_v25, 4 }
 0x295   : > { %14506 = vst [vmem:[#allocation68_spill] sm:$0xff] %v10721_v3  ;;  %v875_v61 = vmul.f32 %v14478_v23, %v14496_v17  ;;  %v5423_v35 = vsel %vm4887_vm4, %v5421_v21, %v13591_v33  ;;  %v5909_v56 = vrot.slane %v5795_v6, 4  ;;  %v13600_v49 = vrot.slane %v10721_v3, 4  ;;  %v14507_v6 = vld [vmem:[#allocation31_spill] sm:$0xff]  ;;  %v14508_v33 = vld [vmem:[#allocation2_spill] sm:$0xff] }
 0x296   : > { %v943_v40 = vmul.f32 %v14480_v7, %v14499_v37  ;;  %v4773_v9 = vadd.f32 %v4690_v57, %v4529_v58  ;;  %v5667_v13 = vsel %vm4887_vm4, %v5665_v63, %v13596_v0  ;;  %v1011_v29 = vmul.f32 %v14482_v46, %v14501_v20  ;;  %v14509_v37 = vld [vmem:[#allocation34_spill] sm:$0xff]  ;;  %v14510_v57 = vld [vmem:[#allocation3_spill] sm:$0xff]  ;;  %v14513_v0 = vld [vmem:[#allocation40_spill] sm:$0xff] }
 0x297   : > { %v907_v45 = vadd.f32 %v875_v61, %v807_v59  ;;  %v5911_v43 = vsel %vm4887_vm4, %v5909_v56, %v13600_v49  ;;  %v1079_v21 = vmul.f32 %v14484_v41, %v14502_v48  ;;  %v1157_v17 = vmul.f32 %v14508_v33, %v14507_v6  ;;  %v14511_v63 = vld [vmem:[#allocation38_spill] sm:$0xff]  ;;  %v14512_v61 = vld [vmem:[#allocation4_spill] sm:$0xff]  ;;  %v14514_v56 = vld [vmem:[#allocation43_spill] sm:$0xff] }
 0x298   : > { %v1402_v58 = vmul.f32 %v14510_v57, %v14509_v37  ;;  %v5018_v25 = vadd.f32 %v4935_v1, %v4773_v9  ;;  %v1646_v59 = vmul.f32 %v14512_v61, %v14511_v63  ;;  %v1890_v20 = vmul.f32 %v14500_v10, %v14513_v0  ;;  %v14515_v1 = vld [vmem:[#allocation66_spill] sm:$0xff] }
 0x299   : > { %v975_v54 = vadd.f32 %v943_v40, %v907_v45  ;;  %v1273_v3 = vrot.slane %v1157_v17, 1  ;;  %v2134_v49 = vmul.f32 %v14453_v27, %v14514_v56  ;;  %v2378_v48 = vmul.f32 %v14440_v26, %v14507_v6  ;;  %v14517_v45 = vld [vmem:[#allocation19_spill] sm:$0xff] }
 0x29a   : > { %v1517_v46 = vrot.slane %v1402_v58, 1  ;;  %v5262_v33 = vadd.f32 %v5179_v16, %v5018_v25  ;;  %v1761_v7 = vrot.slane %v1646_v59, 1  ;;  %v2005_v57 = vrot.slane %v1890_v20, 1 }
 0x29b   : > { %v1043_v41 = vadd.f32 %v1011_v29, %v975_v54  ;;  %v14516_v9 = vrot.slane %v14515_v1, 1  ;;  %v14518_v61 = vrot.slane %v14517_v45, 1  ;;  %v2249_v17 = vrot.slane %v2134_v49, 1 }
 0x29c   : > { %v2494_v58 = vrot.slane %v2378_v48, 2  ;;  %v5506_v23 = vadd.f32 %v5423_v35, %v5262_v33  ;;  %v14519_v27 = vrot.slane %v10536_v5, 1  ;;  %v14520_v54 = vrot.slane %v10548_v14, 1 }
 0x29d   : > { %v1274_v40 = vsel %vm1224_vm1, %v14516_v9, %v1273_v3  ;;  %v1518_v10 = vsel %vm1224_vm1, %v14518_v61, %v1517_v46  ;;  %v1111_v18 = vadd.f32 %v1079_v21, %v1043_v41  ;;  %v14521_v16 = vrot.slane %v10561_v32, 1 }
 0x29e   : > { %v1762_v26 = vsel %vm1224_vm1, %v14519_v27, %v1761_v7  ;;  %v2006_v20 = vsel %vm1224_vm1, %v14520_v54, %v2005_v57  ;;  %v14522_v3 = vrot.slane %v10571_v51, 2  ;;  %v2623_v49 = vmul.f32 %v14012_v62, %v14509_v37  ;;  %v6768_v48 = vpop.eup %6767  ;;  %v14528_v54 = vld [vmem:[#allocation74_spill] sm:$0xff] }
 0x29f   : > { %v2250_v25 = vsel %vm1224_vm1, %v14521_v16, %v2249_v17  ;;  %v2867_v41 = vmul.f32 %v13997_v36, %v14511_v63  ;;  %v5750_v27 = vadd.f32 %v5667_v13, %v5506_v23  ;;  %v1356_v7 = vadd.f32 %v1274_v40, %v1111_v18 }
 0x2a0   : > { %v2495_v46 = vsel %vm2445_vm2, %v14522_v3, %v2494_v58  ;;  %v3111_v14 = vmul.f32 %v14151_v53, %v14513_v0  ;;  %v3355_v32 = vmul.f32 %v13960_v39, %v14514_v56  ;;  %v6160_v5 = vadd.f32 1.0, %v6768_v48 }
 0x2a1   : > { %v2738_v35 = vrot.slane %v2623_v49, 2  ;;  %v2982_v51 = vrot.slane %v2867_v41, 2  ;;  %v3599_v33 = vmul.f32 %v13961_v60, %v14507_v6  ;;  %v5994_v29 = vadd.f32 %v5911_v43, %v5750_v27 }
 0x2a2   : > { %v1600_v21 = vadd.f32 %v1518_v10, %v1356_v7  ;;  %v3226_v57 = vrot.slane %v3111_v14, 2  ;;  %v3470_v61 = vrot.slane %v3355_v32, 2  ;;  %6769 = vrcp.f32 %v6160_v5 }
 0x2a3   : > { %v14523_v23 = vrot.slane %v10582_v42, 2  ;;  %v14524_v13 = vrot.slane %v10589_v47, 2  ;;  %v3715_v1 = vrot.slane %v3599_v33, 3  ;;  %v10791_v9 = vadd.f32 %v10315_v31, %v5994_v29 }
 0x2a4   : > { %v1844_v40 = vadd.f32 %v1762_v26, %v1600_v21  ;;  %v14525_v45 = vrot.slane %v10601_v8, 2  ;;  %v14526_v43 = vrot.slane %v10615_v4, 2  ;;  %v14527_v42 = vrot.slane %v10621_v55, 3  ;;  %v14529_v26 = vld [vmem:[#allocation75_spill] sm:$0xff] }
 0x2a5   : > { %v2739_v18 = vsel %vm2445_vm2, %v14523_v23, %v2738_v35  ;;  %v2983_v59 = vsel %vm2445_vm2, %v14524_v13, %v2982_v51  ;;  %v3844_v47 = vmul.f32 %v13962_v12, %v14509_v37  ;;  %v4088_v16 = vmul.f32 %v14528_v54, %v14511_v63 }
 0x2a6   : > { %v3227_v10 = vsel %vm2445_vm2, %v14525_v45, %v3226_v57  ;;  %v3471_v17 = vsel %vm2445_vm2, %v14526_v43, %v3470_v61  ;;  %v3716_v58 = vsel %vm3666_vm3, %v14527_v42, %v3715_v1  ;;  %v4332_v3 = vmul.f32 %v14529_v26, %v14513_v0  ;;  %v14536_v1 = vld [vmem:[#allocation55_spill] sm:$0xff]  ;;  %v14538_v42 = vld [vmem:[#allocation56_spill] sm:$0xff] }
 0x2a7   : > { %v6556_v8 = vmul.f32 -1.442695, %v10791_v9  ;;  %v2088_v49 = vadd.f32 %v2006_v20, %v1844_v40  ;;  %v4576_v4 = vmul.f32 %v14157_v19, %v14514_v56  ;;  %v4820_v55 = vmul.f32 %v14027_v15, %v14507_v6  ;;  %v14537_v43 = vld [vmem:[#allocation35_spill] sm:$0xff] }
 0x2a8   : > { %v3959_v41 = vrot.slane %v3844_v47, 3  ;;  %v4203_v48 = vrot.slane %v4088_v16, 3  ;;  %v4447_v27 = vrot.slane %v4332_v3, 3  ;;  %v5065_v7 = vmul.f32 %v7436_v52, %v14509_v37  ;;  %v14539_v16 = vld [vmem:[#allocation39_spill] sm:$0xff]  ;;  %v14540_v3 = vld [vmem:[#allocation57_spill] sm:$0xff] }
 0x2a9   : > { %6771 = vpow2.f32 %v6556_v8  ;;  %v2332_v14 = vadd.f32 %v2250_v25, %v2088_v49  ;;  %v4691_v32 = vrot.slane %v4576_v4, 3  ;;  %v4936_v5 = vrot.slane %v4820_v55, 4  ;;  %v14541_v4 = vld [vmem:[#allocation42_spill] sm:$0xff]  ;;  %v14542_v55 = vld [vmem:[#allocation59_spill] sm:$0xff]  ;;  %v14559_v37 = vld [vmem:[#allocation37_spill] sm:$0xff] }
 0x2aa   : > { %v14530_v35 = vrot.slane %v10633_v24, 3  ;;  %v14531_v51 = vrot.slane %v10647_v38, 3  ;;  %v14532_v6 = vrot.slane %v10654_v28, 3  ;;  %v5180_v21 = vrot.slane %v5065_v7, 4 }
 0x2ab   : > { %v2577_v57 = vadd.f32 %v2495_v46, %v2332_v14  ;;  %v14533_v25 = vrot.slane %v10670_v2, 3  ;;  %v14534_v24 = vrot.slane %v10683_v44, 4  ;;  %v5309_v38 = vmul.f32 %v7441_v22, %v14511_v63 }
 0x2ac   : > { %v3960_v20 = vsel %vm3666_vm3, %v14530_v35, %v3959_v41  ;;  %v10821_v33 = vsel %vm3666_vm3, %v14531_v51, %v4203_v48  ;;  %v10826_v29 = vsel %vm3666_vm3, %v14532_v6, %v4447_v27  ;;  %v14535_v28 = vrot.slane %v10690_v30, 4  ;;  %v14543_v48 = vld [vmem:[#allocation44_spill] sm:$0xff]  ;;  %v14544_v27 = vld [vmem:[#allocation62_spill] sm:$0xff] }
 0x2ad   : > { %v10831_v61 = vsel %vm3666_vm3, %v14533_v25, %v4691_v32  ;;  %v10836_v23 = vsel %vm4887_vm4, %v14534_v24, %v4936_v5  ;;  %v5553_v46 = vmul.f32 %v14101_v34, %v14513_v0  ;;  %v5797_v2 = vmul.f32 %v14102_v50, %v14514_v56  ;;  %v14545_v32 = vld [vmem:[#allocation12_spill] sm:$0xff]  ;;  %v14547_v51 = vld [vmem:[#allocation2_spill] sm:$0xff] }
 0x2ae   : > { %v10843_v13 = vsel %vm4887_vm4, %v14535_v28, %v5180_v21  ;;  %v808_v44 = vmul.f32 %v14536_v1, %v14477_v11  ;;  %v2821_v40 = vadd.f32 %v2739_v18, %v2577_v57  ;;  %v5424_v45 = vrot.slane %v5309_v38, 4  ;;  %v14548_v21 = vld [vmem:[#allocation73_spill] sm:$0xff]  ;;  %v14550_v24 = vld [vmem:[#allocation68_spill] sm:$0xff] }
 0x2af   : > { %v876_v47 = vmul.f32 %v14538_v42, %v14537_v43  ;;  %v944_v30 = vmul.f32 %v14540_v3, %v14539_v16  ;;  %v5668_v8 = vrot.slane %v5553_v46, 4  ;;  %v5912_v49 = vrot.slane %v5797_v2, 4  ;;  %v14554_v2 = vld [vmem:[#allocation3_spill] sm:$0xff] }
 0x2b0   : > { %v1012_v41 = vmul.f32 %v14542_v55, %v14541_v4  ;;  %v1080_v7 = vmul.f32 %v14544_v27, %v14543_v48  ;;  %v3065_v14 = vadd.f32 %v2983_v59, %v2821_v40  ;;  %v14546_v5 = vrot.slane %v14545_v32, 4  ;;  %v14552_v59 = vld [vmem:[#allocation33_spill] sm:$0xff]  ;;  %v6770_v40 = vpop.eup %6769 }
 0x2b1   : > { %v908_v35 = vadd.f32 %v876_v47, %v808_v44  ;;  %v1158_v6 = vmul.f32 %v14547_v51, %v14477_v11  ;;  %v14549_v57 = vrot.slane %v14548_v21, 4  ;;  %v14551_v38 = vrot.slane %v14550_v24, 4  ;;  %v14557_v21 = vld [vmem:[#allocation14_spill] sm:$0xff] }
 0x2b2   : > { %v10862_v18 = vsel %vm4887_vm4, %v14546_v5, %v5424_v45  ;;  %v10878_v46 = vmul.f32 %v14547_v51, %v14552_v59  ;;  %v1403_v44 = vmul.f32 %v14554_v2, %v14537_v43  ;;  %v3309_v45 = vadd.f32 %v3227_v10, %v3065_v14  ;;  %v14555_v5 = vld [vmem:[#allocation36_spill] sm:$0xff] }
 0x2b3   : > { %v10869_v25 = vsel %vm4887_vm4, %v14549_v57, %v5668_v8  ;;  %v10874_v28 = vsel %vm4887_vm4, %v14551_v38, %v5912_v49  ;;  %v976_v47 = vadd.f32 %v944_v30, %v908_v35  ;;  %v1275_v32 = vrot.slane %v1158_v6, 1  ;;  %v14558_v38 = vld [vmem:[#allocation4_spill] sm:$0xff]  ;;  %v14560_v35 = vld [vmem:[#allocation5_spill] sm:$0xff] }
 0x2b4   : > { %14553 = vst [vmem:[#allocation13_spill] sm:$0xff] %v10878_v46  ;;  %v10884_v8 = vmul.f32 %v14554_v2, %v14555_v5  ;;  %v6256_v57 = vmul.f32 %v6770_v40, %v14557_v21  ;;  %v13614_v49 = vrot.slane %v10878_v46, 1  ;;  %v1519_v24 = vrot.slane %v1403_v44, 1  ;;  %v14561_v44 = vld [vmem:[#allocation41_spill] sm:$0xff] }
 0x2b5   : > { %v1647_v56 = vmul.f32 %v14558_v38, %v14539_v16  ;;  %v3553_v0 = vadd.f32 %v3471_v17, %v3309_v45  ;;  %v1044_v63 = vadd.f32 %v1012_v41, %v976_v47  ;;  %v10893_v10 = vmul.f32 %v14558_v38, %v14559_v37  ;;  %v14563_v46 = vld [vmem:[#allocation45_spill] sm:$0xff] }
 0x2b6   : > { %14556 = vst [vmem:[#allocation20_spill] sm:$0xff] %v10884_v8  ;;  %v13618_v51 = vrot.slane %v10884_v8, 1  ;;  %6320 = vst [vmem:[%s6937_s10 + $0x188] sm:$0xff] %v6256_v57  ;;  %v1277_v30 = vsel %vm1224_vm1, %v1275_v32, %v13614_v49  ;;  %v1891_v6 = vmul.f32 %v14560_v35, %v14541_v4  ;;  %v10903_v40 = vmul.f32 %v14560_v35, %v14561_v44  ;;  %v6772_v21 = vpop.eup %6771 }
 0x2b7   : > { %v1763_v14 = vrot.slane %v1647_v56, 1  ;;  %v3798_v17 = vadd.f32 %v3716_v58, %v3553_v0  ;;  %v1112_v41 = vadd.f32 %v1080_v7, %v1044_v63  ;;  %v13623_v47 = vrot.slane %v10893_v10, 1  ;;  %v14562_v56 = vld [vmem:[#allocation63_spill] sm:$0xff] }
 0x2b8   : > { %v1521_v45 = vsel %vm1224_vm1, %v1519_v24, %v13618_v51  ;;  %v2007_v57 = vrot.slane %v1891_v6, 1  ;;  %v13622_v32 = vrot.slane %v10903_v40, 1  ;;  %v2135_v49 = vmul.f32 %v14562_v56, %v14543_v48  ;;  %v14564_v51 = vld [vmem:[#allocation64_spill] sm:$0xff] }
 0x2b9   : > { %v10914_v38 = vmul.f32 %v14562_v56, %v14563_v46  ;;  %v6161_v35 = vadd.f32 1.0, %v6772_v21  ;;  %v4042_v0 = vadd.f32 %v3960_v20, %v3798_v17  ;;  %v1357_v63 = vadd.f32 %v1277_v30, %v1112_v41 }
 0x2ba   : > { %v1765_v58 = vsel %vm1224_vm1, %v1763_v14, %v13623_v47  ;;  %v2009_v7 = vsel %vm1224_vm1, %v2007_v57, %v13622_v32  ;;  %v2251_v24 = vrot.slane %v2135_v49, 1  ;;  %v2379_v8 = vmul.f32 %v14564_v51, %v14477_v11 }
 0x2bb   : > { %v13621_v6 = vrot.slane %v10914_v38, 1  ;;  %6773 = vrcp.f32 %v6161_v35  ;;  %v4286_v56 = vadd.f32 %v10821_v33, %v4042_v0  ;;  %v1601_v21 = vadd.f32 %v1521_v45, %v1357_v63 }
 0x2bc   : > { %v10928_v20 = vmul.f32 %v14564_v51, %v14552_v59  ;;  %v2496_v14 = vrot.slane %v2379_v8, 2  ;;  %v2624_v49 = vmul.f32 %v14012_v62, %v14537_v43  ;;  %v10937_v17 = vmul.f32 %v14012_v62, %v14555_v5 }
 0x2bd   : > { %v2253_v30 = vsel %vm1224_vm1, %v2251_v24, %v13621_v6  ;;  %v4530_v35 = vadd.f32 %v10826_v29, %v4286_v56  ;;  %v1845_v33 = vadd.f32 %v1765_v58, %v1601_v21  ;;  %v2868_v45 = vmul.f32 %v13997_v36, %v14539_v16 }
 0x2be   : > { %v13626_v41 = vrot.slane %v10928_v20, 2  ;;  %v2740_v57 = vrot.slane %v2624_v49, 2  ;;  %v13625_v0 = vrot.slane %v10937_v17, 2  ;;  %v10946_v8 = vmul.f32 %v13997_v36, %v14559_v37 }
 0x2bf   : > { %v3112_v63 = vmul.f32 %v14151_v53, %v14541_v4  ;;  %v4774_v24 = vadd.f32 %v10831_v61, %v4530_v35  ;;  %v2089_v6 = vadd.f32 %v2009_v7, %v1845_v33  ;;  %v2984_v56 = vrot.slane %v2868_v45, 2 }
 0x2c0   : > { %14565 = vst [vmem:[#allocation69_spill] sm:$0xff] %v10946_v8  ;;  %v2498_v29 = vsel %vm2445_vm2, %v2496_v14, %v13626_v41  ;;  %v2742_v58 = vsel %vm2445_vm2, %v2740_v57, %v13625_v0  ;;  %v13624_v21 = vrot.slane %v10946_v8, 2  ;;  %v10960_v49 = vmul.f32 %v14151_v53, %v14561_v44 }
 0x2c1   : > { %v3228_v32 = vrot.slane %v3112_v63, 2  ;;  %v5019_v47 = vadd.f32 %v10836_v23, %v4774_v24  ;;  %v2333_v61 = vadd.f32 %v2253_v30, %v2089_v6  ;;  %v3356_v7 = vmul.f32 %v13960_v39, %v14543_v48 }
 0x2c2   : > { %v10967_v14 = vmul.f32 %v13960_v39, %v14563_v46  ;;  %v2986_v35 = vsel %vm2445_vm2, %v2984_v56, %v13624_v21  ;;  %v13630_v33 = vrot.slane %v10960_v49, 2  ;;  %v3600_v45 = vmul.f32 %v13961_v60, %v14477_v11 }
 0x2c3   : > { %v10977_v23 = vmul.f32 %v13961_v60, %v14552_v59  ;;  %v5263_v6 = vadd.f32 %v10843_v13, %v5019_v47  ;;  %v2578_v30 = vadd.f32 %v2498_v29, %v2333_v61  ;;  %v3472_v57 = vrot.slane %v3356_v7, 2 }
 0x2c4   : > { %v13629_v63 = vrot.slane %v10967_v14, 2  ;;  %v3230_v24 = vsel %vm2445_vm2, %v3228_v32, %v13630_v33  ;;  %v3717_v56 = vrot.slane %v3600_v45, 3  ;;  %v3845_v0 = vmul.f32 %v13962_v12, %v14537_v43 }
 0x2c5   : > { %v13628_v21 = vrot.slane %v10977_v23, 3  ;;  %v5507_v41 = vadd.f32 %v10862_v18, %v5263_v6  ;;  %v2822_v8 = vadd.f32 %v2742_v58, %v2578_v30  ;;  %v10993_v47 = vmul.f32 %v13962_v12, %v14555_v5 }
 0x2c6   : > { %v3474_v13 = vsel %vm2445_vm2, %v3472_v57, %v13629_v63  ;;  %v3961_v29 = vrot.slane %v3845_v0, 3  ;;  %v4089_v61 = vmul.f32 %v14528_v54, %v14539_v16  ;;  %v11002_v18 = vmul.f32 %v14528_v54, %v14559_v37 }
 0x2c7   : > { %v3719_v32 = vsel %vm3666_vm3, %v3717_v56, %v13628_v21  ;;  %v5751_v58 = vadd.f32 %v10869_v25, %v5507_v41  ;;  %v3066_v7 = vadd.f32 %v2986_v35, %v2822_v8  ;;  %v13637_v45 = vrot.slane %v10993_v47, 3 }
 0x2c8   : > { %v4333_v6 = vmul.f32 %v14529_v26, %v14541_v4  ;;  %v6774_v30 = vpop.eup %6773  ;;  %v4205_v57 = vrot.slane %v4089_v61, 3  ;;  %v13634_v0 = vrot.slane %v11002_v18, 3  ;;  %v11011_v56 = vmul.f32 %v14529_v26, %v14561_v44 }
 0x2c9   : > { %v4577_v21 = vmul.f32 %v14157_v19, %v14543_v48  ;;  %v6257_v25 = vmul.f32 %v6774_v30, %v10791_v9  ;;  %v5995_v41 = vadd.f32 %v10874_v28, %v5751_v58  ;;  %v3310_v8 = vadd.f32 %v3230_v24, %v3066_v7 }
 0x2ca   : > { %v3963_v35 = vsel %vm3666_vm3, %v3961_v29, %v13637_v45  ;;  %v4207_v61 = vsel %vm3666_vm3, %v4205_v57, %v13634_v0  ;;  %v4449_v63 = vrot.slane %v4333_v6, 3  ;;  %v13632_v33 = vrot.slane %v11011_v56, 3 }
 0x2cb   : > { %v11026_v26 = vmul.f32 %v14157_v19, %v14563_v46  ;;  %6321 = vst [vmem:[%s6937_s10 + $0x190] sm:$0xff] %v6257_v25  ;;  %v11030_v9 = vadd.f32 %v10315_v31, %v5995_v41  ;;  %v3554_v28 = vadd.f32 %v3474_v13, %v3310_v8  ;;  %v4693_v24 = vrot.slane %v4577_v21, 3 }
 0x2cc   : > { %v4821_v29 = vmul.f32 %v14027_v15, %v14477_v11  ;;  %v4451_v58 = vsel %vm3666_vm3, %v4449_v63, %v13632_v33  ;;  %v11040_v6 = vmul.f32 %v14027_v15, %v14552_v59  ;;  %v5066_v30 = vmul.f32 %v7436_v52, %v14537_v43 }
 0x2cd   : > { %14566 = vst [vmem:[#allocation22_spill] sm:$0xff] %v11030_v9  ;;  %v13633_v7 = vrot.slane %v11026_v26, 3  ;;  %v6557_v31 = vmul.f32 -1.442695, %v11030_v9  ;;  %v3799_v13 = vadd.f32 %v3719_v32, %v3554_v28  ;;  %v11047_v11 = vmul.f32 %v7436_v52, %v14555_v5 }
 0x2ce   : > { %v4938_v21 = vrot.slane %v4821_v29, 4  ;;  %v13635_v57 = vrot.slane %v11040_v6, 4  ;;  %v5182_v25 = vrot.slane %v5066_v30, 4  ;;  %v5310_v41 = vmul.f32 %v7441_v22, %v14539_v16 }
 0x2cf   : > { %v4695_v63 = vsel %vm3666_vm3, %v4693_v24, %v13633_v7  ;;  %6775 = vpow2.f32 %v6557_v31  ;;  %v4043_v8 = vadd.f32 %v3963_v35, %v3799_v13  ;;  %v13636_v33 = vrot.slane %v11047_v11, 4 }
 0x2d0   : > { %v11058_v32 = vmul.f32 %v7441_v22, %v14559_v37  ;;  %v4940_v28 = vsel %vm4887_vm4, %v4938_v21, %v13635_v57  ;;  %v5426_v29 = vrot.slane %v5310_v41, 4  ;;  %v5554_v24 = vmul.f32 %v14101_v34, %v14541_v4 }
 0x2d1   : > { %v11067_v30 = vmul.f32 %v14101_v34, %v14561_v44  ;;  %v4287_v31 = vadd.f32 %v4207_v61, %v4043_v8  ;;  %v5184_v35 = vsel %vm4887_vm4, %v5182_v25, %v13636_v33  ;;  %v5798_v7 = vmul.f32 %v14102_v50, %v14543_v48 }
 0x2d2   : > { %14567 = vst [vmem:[#allocation77_spill] sm:$0xff] %v11058_v32  ;;  %v13639_v13 = vrot.slane %v11058_v32, 4  ;;  %v5670_v0 = vrot.slane %v5554_v24, 4  ;;  %v11078_v41 = vmul.f32 %v14102_v50, %v14563_v46  ;;  %v809_v57 = vmul.f32 %v14536_v1, %v14552_v59  ;;  %v14573_v32 = vld [vmem:[#allocation40_spill] sm:$0xff] }
 0x2d3   : > { %14568 = vst [vmem:[#allocation70_spill] sm:$0xff] %v11067_v30  ;;  %v13641_v21 = vrot.slane %v11067_v30, 4  ;;  %v4531_v61 = vadd.f32 %v4451_v58, %v4287_v31  ;;  %v5914_v8 = vrot.slane %v5798_v7, 4  ;;  %v877_v33 = vmul.f32 %v14538_v42, %v14555_v5  ;;  %v14579_v42 = vld [vmem:[#allocation13_spill] sm:$0xff] }
 0x2d4   : > { %14569 = vst [vmem:[#allocation67_spill] sm:$0xff] %v11078_v41  ;;  %v5428_v25 = vsel %vm4887_vm4, %v5426_v29, %v13639_v13  ;;  %v13653_v45 = vrot.slane %v11078_v41, 4  ;;  %v945_v9 = vmul.f32 %v14540_v3, %v14559_v37  ;;  %v1013_v59 = vmul.f32 %v14542_v55, %v14561_v44  ;;  %v14570_v29 = vld [vmem:[#allocation34_spill] sm:$0xff]  ;;  %v14574_v37 = vld [vmem:[#allocation4_spill] sm:$0xff]  ;;  %v14575_v3 = vld [vmem:[#allocation43_spill] sm:$0xff] }
 0x2d5   : > { %v5672_v24 = vsel %vm4887_vm4, %v5670_v0, %v13641_v21  ;;  %v4775_v58 = vadd.f32 %v4695_v63, %v4531_v61  ;;  %v909_v31 = vadd.f32 %v877_v33, %v809_v57  ;;  %v1081_v7 = vmul.f32 %v14544_v27, %v14563_v46  ;;  %v14571_v13 = vld [vmem:[#allocation2_spill] sm:$0xff]  ;;  %v14576_v44 = vld [vmem:[#allocation5_spill] sm:$0xff]  ;;  %v14577_v46 = vld [vmem:[#allocation47_spill] sm:$0xff] }
 0x2d6   : > { %v1160_v5 = vmul.f32 %v14571_v13, %v14570_v29  ;;  %v5916_v0 = vsel %vm4887_vm4, %v5914_v8, %v13653_v45  ;;  %v14572_v21 = vld [vmem:[#allocation38_spill] sm:$0xff]  ;;  %v1649_v48 = vmul.f32 %v14574_v37, %v14573_v32  ;;  %v1893_v63 = vmul.f32 %v14576_v44, %v14575_v3  ;;  %v14578_v27 = vld [vmem:[#allocation63_spill] sm:$0xff]  ;;  %v14581_v44 = vld [vmem:[#allocation20_spill] sm:$0xff] }
 0x2d7   : > { %v1405_v30 = vmul.f32 %v14554_v2, %v14572_v21  ;;  %v5020_v33 = vadd.f32 %v4940_v28, %v4775_v58  ;;  %v977_v57 = vadd.f32 %v945_v9, %v909_v31  ;;  %v2137_v55 = vmul.f32 %v14578_v27, %v14577_v46 }
 0x2d8   : > { %v1278_v61 = vrot.slane %v1160_v5, 1  ;;  %v1766_v4 = vrot.slane %v1649_v48, 1  ;;  %v2010_v41 = vrot.slane %v1893_v63, 1  ;;  %v2381_v8 = vmul.f32 %v14564_v51, %v14570_v29 }
 0x2d9   : > { %v1522_v13 = vrot.slane %v1405_v30, 1  ;;  %v5264_v45 = vadd.f32 %v5184_v35, %v5020_v33  ;;  %v1045_v2 = vadd.f32 %v1013_v59, %v977_v57  ;;  %v14580_v16 = vrot.slane %v14579_v42, 1 }
 0x2da   : > { %v2254_v1 = vrot.slane %v2137_v55, 1  ;;  %v14582_v28 = vrot.slane %v14581_v44, 1  ;;  %v14583_v9 = vrot.slane %v10893_v10, 1  ;;  %v14584_v48 = vrot.slane %v10903_v40, 1 }
 0x2db   : > { %v1279_v37 = vsel %vm1224_vm1, %v14580_v16, %v1278_v61  ;;  %v2499_v31 = vrot.slane %v2381_v8, 2  ;;  %v5508_v35 = vadd.f32 %v5428_v25, %v5264_v45  ;;  %v1113_v59 = vadd.f32 %v1081_v7, %v1045_v2 }
 0x2dc   : > { %v1523_v5 = vsel %vm1224_vm1, %v14582_v28, %v1522_v13  ;;  %v1767_v30 = vsel %vm1224_vm1, %v14583_v9, %v1766_v4  ;;  %v2011_v58 = vsel %vm1224_vm1, %v14584_v48, %v2010_v41  ;;  %v14585_v42 = vrot.slane %v10914_v38, 1  ;;  %v6776_v44 = vpop.eup %6775  ;;  %v14588_v28 = vld [vmem:[#allocation69_spill] sm:$0xff] }
 0x2dd   : > { %v2626_v55 = vmul.f32 %v14012_v62, %v14572_v21  ;;  %v14586_v13 = vrot.slane %v10928_v20, 2  ;;  %v2870_v4 = vmul.f32 %v13997_v36, %v14573_v32  ;;  %v3114_v40 = vmul.f32 %v14151_v53, %v14575_v3 }
 0x2de   : > { %v2255_v16 = vsel %vm1224_vm1, %v14585_v42, %v2254_v1  ;;  %v3358_v2 = vmul.f32 %v13960_v39, %v14577_v46  ;;  %v6162_v38 = vadd.f32 1.0, %v6776_v44  ;;  %v5752_v45 = vadd.f32 %v5672_v24, %v5508_v35  ;;  %v14593_v44 = vld [vmem:[#allocation75_spill] sm:$0xff] }
 0x2df   : > { %v2500_v10 = vsel %vm2445_vm2, %v14586_v13, %v2499_v31  ;;  %v1358_v1 = vadd.f32 %v1279_v37, %v1113_v59  ;;  %v2743_v41 = vrot.slane %v2626_v55, 2  ;;  %v2987_v25 = vrot.slane %v2870_v4, 2 }
 0x2e0   : > { %v3231_v7 = vrot.slane %v3114_v40, 2  ;;  %v3475_v63 = vrot.slane %v3358_v2, 2  ;;  %v3602_v20 = vmul.f32 %v13961_v60, %v14570_v29  ;;  %6777 = vrcp.f32 %v6162_v38 }
 0x2e1   : > { %v5996_v33 = vadd.f32 %v5916_v0, %v5752_v45  ;;  %v1602_v57 = vadd.f32 %v1523_v5, %v1358_v1  ;;  %v14587_v61 = vrot.slane %v10937_v17, 2  ;;  %v14589_v9 = vrot.slane %v14588_v28, 2  ;;  %v11155_v0 = vld [vmem:[%s13046_s4] ss:$0 sm:$0xff] }
 0x2e2   : > { %v14590_v37 = vrot.slane %v10960_v49, 2  ;;  %v14591_v31 = vrot.slane %v10967_v14, 2  ;;  %v3720_v59 = vrot.slane %v3602_v20, 3  ;;  %v3847_v42 = vmul.f32 %v13962_v12, %v14572_v21 }
 0x2e3   : > { %v2744_v8 = vsel %vm2445_vm2, %v14587_v61, %v2743_v41  ;;  %v2988_v48 = vsel %vm2445_vm2, %v14589_v9, %v2987_v25  ;;  %v11158_v17 = vadd.f32 %v11155_v0, %v5996_v33  ;;  %v1846_v5 = vadd.f32 %v1767_v30, %v1602_v57 }
 0x2e4   : > { %v3232_v24 = vsel %vm2445_vm2, %v14590_v37, %v3231_v7  ;;  %v3476_v35 = vsel %vm2445_vm2, %v14591_v31, %v3475_v63  ;;  %v4091_v49 = vmul.f32 %v14528_v54, %v14573_v32  ;;  %v14592_v14 = vrot.slane %v10977_v23, 3 }
 0x2e5   : > { %v4335_v13 = vmul.f32 %v14593_v44, %v14575_v3  ;;  %v4579_v4 = vmul.f32 %v14157_v19, %v14577_v46  ;;  %v4823_v40 = vmul.f32 %v14027_v15, %v14570_v29  ;;  %v6558_v30 = vmul.f32 -1.442695, %v11158_v17 }
 0x2e6   : > { %v3721_v55 = vsel %vm3666_vm3, %v14592_v14, %v3720_v59  ;;  %v2090_v2 = vadd.f32 %v2011_v58, %v1846_v5  ;;  %v3964_v38 = vrot.slane %v3847_v42, 3  ;;  %v4208_v45 = vrot.slane %v4091_v49, 3  ;;  %v14601_v42 = vld [vmem:[#allocation39_spill] sm:$0xff]  ;;  %v14602_v49 = vld [vmem:[#allocation56_spill] sm:$0xff]  ;;  %v14603_v14 = vld [vmem:[#allocation42_spill] sm:$0xff] }
 0x2e7   : > { %v4452_v1 = vrot.slane %v4335_v13, 3  ;;  %v4696_v41 = vrot.slane %v4579_v4, 3  ;;  %v4941_v25 = vrot.slane %v4823_v40, 4  ;;  %v5068_v23 = vmul.f32 %v7436_v52, %v14572_v21  ;;  %v14604_v13 = vld [vmem:[#allocation57_spill] sm:$0xff] }
 0x2e8   : > { %6779 = vpow2.f32 %v6558_v30  ;;  %v2334_v7 = vadd.f32 %v2255_v16, %v2090_v2  ;;  %v14594_v63 = vrot.slane %v10993_v47, 3  ;;  %v14595_v33 = vrot.slane %v11002_v18, 3 }
 0x2e9   : > { %v14596_v58 = vrot.slane %v11011_v56, 3  ;;  %v14597_v61 = vrot.slane %v11026_v26, 3  ;;  %v14598_v16 = vrot.slane %v11040_v6, 4  ;;  %v5185_v9 = vrot.slane %v5068_v23, 4  ;;  %v14600_v6 = vld [vmem:[#allocation55_spill] sm:$0xff]  ;;  %v14608_v23 = vld [vmem:[#allocation62_spill] sm:$0xff] }
 0x2ea   : > { %v3965_v20 = vsel %vm3666_vm3, %v14594_v63, %v3964_v38  ;;  %v11182_v29 = vsel %vm3666_vm3, %v14595_v33, %v4208_v45  ;;  %v2579_v18 = vadd.f32 %v2500_v10, %v2334_v7  ;;  %v5312_v37 = vmul.f32 %v7441_v22, %v14573_v32  ;;  %v14609_v63 = vld [vmem:[#allocation2_spill] sm:$0xff]  ;;  %v14623_v32 = vld [vmem:[#allocation41_spill] sm:$0xff] }
 0x2eb   : > { %v11187_v57 = vsel %vm3666_vm3, %v14596_v58, %v4452_v1  ;;  %v11192_v28 = vsel %vm3666_vm3, %v14597_v61, %v4696_v41  ;;  %v11197_v47 = vsel %vm4887_vm4, %v14598_v16, %v4941_v25  ;;  %v5556_v56 = vmul.f32 %v14101_v34, %v14575_v3  ;;  %v14605_v1 = vld [vmem:[#allocation44_spill] sm:$0xff]  ;;  %v14606_v41 = vld [vmem:[#allocation59_spill] sm:$0xff]  ;;  %v14610_v61 = vld [vmem:[#allocation77_spill] sm:$0xff] }
 0x2ec   : > { %v5800_v31 = vmul.f32 %v14102_v50, %v14577_v46  ;;  %v14599_v26 = vrot.slane %v11047_v11, 4  ;;  %v810_v5 = vmul.f32 %v14600_v6, %v14537_v43  ;;  %v878_v10 = vmul.f32 %v14602_v49, %v14601_v42  ;;  %v14607_v25 = vld [vmem:[#allocation48_spill] sm:$0xff] }
 0x2ed   : > { %v946_v4 = vmul.f32 %v14604_v13, %v14603_v14  ;;  %v2823_v40 = vadd.f32 %v2744_v8, %v2579_v18  ;;  %v5429_v30 = vrot.slane %v5312_v37, 4  ;;  %v5673_v2 = vrot.slane %v5556_v56, 4  ;;  %v14612_v8 = vld [vmem:[#allocation70_spill] sm:$0xff]  ;;  %v14614_v56 = vld [vmem:[#allocation67_spill] sm:$0xff]  ;;  %v14616_v46 = vld [vmem:[#allocation36_spill] sm:$0xff] }
 0x2ee   : > { %v11208_v59 = vsel %vm4887_vm4, %v14599_v26, %v5185_v9  ;;  %v5917_v38 = vrot.slane %v5800_v31, 4  ;;  %v910_v45 = vadd.f32 %v878_v10, %v810_v5  ;;  %v1014_v11 = vmul.f32 %v14606_v41, %v14605_v1  ;;  %v6778_v5 = vpop.eup %6777 }
 0x2ef   : > { %v1082_v7 = vmul.f32 %v14608_v23, %v14607_v25  ;;  %v1161_v33 = vmul.f32 %v14609_v63, %v14537_v43  ;;  %v3067_v58 = vadd.f32 %v2988_v48, %v2823_v40  ;;  %v14611_v16 = vrot.slane %v14610_v61, 4 }
 0x2f0   : > { %v14613_v18 = vrot.slane %v14612_v8, 4  ;;  %v14615_v31 = vrot.slane %v14614_v56, 4  ;;  %v978_v10 = vadd.f32 %v946_v4, %v910_v45  ;;  %v11239_v48 = vmul.f32 %v14609_v63, %v14616_v46 }
 0x2f1   : > { %v11225_v9 = vsel %vm4887_vm4, %v14611_v16, %v5429_v30  ;;  %v1280_v40 = vrot.slane %v1161_v33, 1  ;;  %v14618_v30 = vld [vmem:[#allocation3_spill] sm:$0xff]  ;;  %v14619_v16 = vld [vmem:[#allocation22_spill] sm:$0xff]  ;;  %v3311_v3 = vadd.f32 %v3232_v24, %v3067_v58  ;;  %v14624_v58 = vld [vmem:[#allocation5_spill] sm:$0xff] }
 0x2f2   : > { %v11230_v37 = vsel %vm4887_vm4, %v14613_v18, %v5673_v2  ;;  %v11235_v26 = vsel %vm4887_vm4, %v14615_v31, %v5917_v38  ;;  %14617 = vst [vmem:[#allocation23_spill] sm:$0xff] %v11239_v48  ;;  %v1406_v61 = vmul.f32 %v14618_v30, %v14601_v42  ;;  %v6258_v8 = vmul.f32 %v6778_v5, %v14619_v16  ;;  %v14620_v2 = vld [vmem:[#allocation37_spill] sm:$0xff]  ;;  %v14622_v38 = vld [vmem:[#allocation4_spill] sm:$0xff] }
 0x2f3   : > { %v11246_v18 = vmul.f32 %v14618_v30, %v14620_v2  ;;  %v1650_v56 = vmul.f32 %v14622_v38, %v14603_v14  ;;  %v1046_v31 = vadd.f32 %v1014_v11, %v978_v10  ;;  %v13665_v4 = vrot.slane %v11239_v48, 1 }
 0x2f4   : > { %v1524_v45 = vrot.slane %v1406_v61, 1  ;;  %v11253_v33 = vmul.f32 %v14622_v38, %v14623_v32  ;;  %6322 = vst [vmem:[%s6937_s10 + $0x198] sm:$0xff] %v6258_v8  ;;  %v3555_v63 = vadd.f32 %v3476_v35, %v3311_v3  ;;  %v1894_v16 = vmul.f32 %v14624_v58, %v14605_v1  ;;  %v14625_v61 = vld [vmem:[#allocation45_spill] sm:$0xff] }
 0x2f5   : > { %14621 = vst [vmem:[#allocation26_spill] sm:$0xff] %v11246_v18  ;;  %v13674_v5 = vrot.slane %v11246_v18, 1  ;;  %v1768_v24 = vrot.slane %v1650_v56, 1  ;;  %v1114_v30 = vadd.f32 %v1082_v7, %v1046_v31  ;;  %v1282_v11 = vsel %vm1224_vm1, %v1280_v40, %v13665_v4  ;;  %v6780_v7 = vpop.eup %6779  ;;  %v14626_v4 = vld [vmem:[#allocation46_spill] sm:$0xff] }
 0x2f6   : > { %v13668_v10 = vrot.slane %v11253_v33, 1  ;;  %v11265_v21 = vmul.f32 %v14624_v58, %v14625_v61  ;;  %v3800_v38 = vadd.f32 %v3721_v55, %v3555_v63  ;;  %v2012_v35 = vrot.slane %v1894_v16, 1 }
 0x2f7   : > { %v1526_v3 = vsel %vm1224_vm1, %v1524_v45, %v13674_v5  ;;  %v2138_v8 = vmul.f32 %v14578_v27, %v14607_v25  ;;  %v1359_v56 = vadd.f32 %v1282_v11, %v1114_v30  ;;  %v11278_v48 = vmul.f32 %v14578_v27, %v14626_v4 }
 0x2f8   : > { %v1770_v40 = vsel %vm1224_vm1, %v1768_v24, %v13668_v10  ;;  %v13670_v31 = vrot.slane %v11265_v21, 1  ;;  %v6163_v55 = vadd.f32 1.0, %v6780_v7  ;;  %v4044_v63 = vadd.f32 %v3965_v20, %v3800_v38 }
 0x2f9   : > { %v2256_v18 = vrot.slane %v2138_v8, 1  ;;  %v2382_v45 = vmul.f32 %v14564_v51, %v14537_v43  ;;  %v1603_v16 = vadd.f32 %v1526_v3, %v1359_v56  ;;  %v13669_v11 = vrot.slane %v11278_v48, 1 }
 0x2fa   : > { %v2014_v30 = vsel %vm1224_vm1, %v2012_v35, %v13670_v31  ;;  %v11288_v24 = vmul.f32 %v14564_v51, %v14616_v46  ;;  %6781 = vrcp.f32 %v6163_v55  ;;  %v4288_v10 = vadd.f32 %v11182_v29, %v4044_v63 }
 0x2fb   : > { %v2501_v7 = vrot.slane %v2382_v45, 2  ;;  %v2627_v20 = vmul.f32 %v14012_v62, %v14601_v42  ;;  %v1847_v38 = vadd.f32 %v1770_v40, %v1603_v16  ;;  %v2258_v3 = vsel %vm1224_vm1, %v2256_v18, %v13669_v11 }
 0x2fc   : > { %v13671_v35 = vrot.slane %v11288_v24, 2  ;;  %v11299_v8 = vmul.f32 %v14012_v62, %v14620_v2  ;;  %v4532_v56 = vadd.f32 %v11187_v57, %v4288_v10  ;;  %v2871_v29 = vmul.f32 %v13997_v36, %v14603_v14 }
 0x2fd   : > { %v2745_v55 = vrot.slane %v2627_v20, 2  ;;  %v11306_v63 = vmul.f32 %v13997_v36, %v14623_v32  ;;  %v2091_v40 = vadd.f32 %v2014_v30, %v1847_v38  ;;  %v3115_v16 = vmul.f32 %v14151_v53, %v14605_v1 }
 0x2fe   : > { %v2503_v18 = vsel %vm2445_vm2, %v2501_v7, %v13671_v35  ;;  %v13673_v45 = vrot.slane %v11299_v8, 2  ;;  %v4776_v57 = vadd.f32 %v11192_v28, %v4532_v56  ;;  %v2989_v10 = vrot.slane %v2871_v29, 2 }
 0x2ff   : > { %v13672_v20 = vrot.slane %v11306_v63, 2  ;;  %v11318_v11 = vmul.f32 %v14151_v53, %v14625_v61  ;;  %v2335_v31 = vadd.f32 %v2258_v3, %v2091_v40  ;;  %v3233_v7 = vrot.slane %v3115_v16, 2 }
 0x300   : > { %v2747_v30 = vsel %vm2445_vm2, %v2745_v55, %v13673_v45  ;;  %v3359_v38 = vmul.f32 %v13960_v39, %v14607_v25  ;;  %v5021_v35 = vadd.f32 %v11197_v47, %v4776_v57  ;;  %v11332_v29 = vmul.f32 %v13960_v39, %v14626_v4 }
 0x301   : > { %v2991_v28 = vsel %vm2445_vm2, %v2989_v10, %v13672_v20  ;;  %v13675_v56 = vrot.slane %v11318_v11, 2  ;;  %v2580_v3 = vadd.f32 %v2503_v18, %v2335_v31  ;;  %v3603_v55 = vmul.f32 %v13961_v60, %v14537_v43 }
 0x302   : > { %v3477_v40 = vrot.slane %v3359_v38, 2  ;;  %v11338_v16 = vmul.f32 %v13961_v60, %v14616_v46  ;;  %v5265_v47 = vadd.f32 %v11208_v59, %v5021_v35  ;;  %v13677_v10 = vrot.slane %v11332_v29, 2 }
 0x303   : > { %v3235_v57 = vsel %vm2445_vm2, %v3233_v7, %v13675_v56  ;;  %v3848_v20 = vmul.f32 %v13962_v12, %v14601_v42  ;;  %v2824_v31 = vadd.f32 %v2747_v30, %v2580_v3  ;;  %v3722_v18 = vrot.slane %v3603_v55, 3 }
 0x304   : > { %v13676_v38 = vrot.slane %v11338_v16, 3  ;;  %v11350_v45 = vmul.f32 %v13962_v12, %v14620_v2  ;;  %v5509_v5 = vadd.f32 %v11225_v9, %v5265_v47  ;;  %v3479_v59 = vsel %vm2445_vm2, %v3477_v40, %v13677_v10 }
 0x305   : > { %v3966_v35 = vrot.slane %v3848_v20, 3  ;;  %v4092_v7 = vmul.f32 %v14528_v54, %v14603_v14  ;;  %v3068_v56 = vadd.f32 %v2991_v28, %v2824_v31  ;;  %v11364_v55 = vmul.f32 %v14528_v54, %v14623_v32 }
 0x306   : > { %v3724_v30 = vsel %vm3666_vm3, %v3722_v18, %v13676_v38  ;;  %v13680_v3 = vrot.slane %v11350_v45, 3  ;;  %v5753_v9 = vadd.f32 %v11230_v37, %v5509_v5  ;;  %v4336_v20 = vmul.f32 %v14593_v44, %v14605_v1 }
 0x307   : > { %v4210_v47 = vrot.slane %v4092_v7, 3  ;;  %v11371_v28 = vmul.f32 %v14593_v44, %v14625_v61  ;;  %v6782_v40 = vpop.eup %6781  ;;  %v3312_v31 = vadd.f32 %v3235_v57, %v3068_v56  ;;  %v13682_v38 = vrot.slane %v11364_v55, 3 }
 0x308   : > { %v3968_v18 = vsel %vm3666_vm3, %v3966_v35, %v13680_v3  ;;  %v4580_v37 = vmul.f32 %v14157_v19, %v14607_v25  ;;  %v6259_v5 = vmul.f32 %v6782_v40, %v11158_v17  ;;  %v5997_v7 = vadd.f32 %v11235_v26, %v5753_v9 }
 0x309   : > { %v4454_v10 = vrot.slane %v4336_v20, 3  ;;  %v13681_v54 = vrot.slane %v11371_v28, 3  ;;  %v3556_v44 = vadd.f32 %v3479_v59, %v3312_v31  ;;  %v4212_v56 = vsel %vm3666_vm3, %v4210_v47, %v13682_v38 }
 0x30a   : > { %v11387_v57 = vmul.f32 %v14157_v19, %v14626_v4  ;;  %v4698_v35 = vrot.slane %v4580_v37, 3  ;;  %6323 = vst [vmem:[%s6937_s10 + $0x1a0] sm:$0xff] %v6259_v5  ;;  %v11391_v3 = vadd.f32 %v11155_v0, %v5997_v7  ;;  %v4824_v26 = vmul.f32 %v14027_v15, %v14537_v43 }
 0x30b   : > { %v4456_v17 = vsel %vm3666_vm3, %v4454_v10, %v13681_v54  ;;  %v11400_v59 = vmul.f32 %v14027_v15, %v14616_v46  ;;  %v3801_v9 = vadd.f32 %v3724_v30, %v3556_v44  ;;  %v5069_v20 = vmul.f32 %v7436_v52, %v14601_v42 }
 0x30c   : > { %14627 = vst [vmem:[#allocation6_spill] sm:$0xff] %v11391_v3  ;;  %v13686_v47 = vrot.slane %v11387_v57, 3  ;;  %v11407_v40 = vmul.f32 %v7436_v52, %v14620_v2  ;;  %v6559_v31 = vmul.f32 -1.442695, %v11391_v3  ;;  %v4943_v10 = vrot.slane %v4824_v26, 4 }
 0x30d   : > { %v13685_v37 = vrot.slane %v11400_v59, 4  ;;  %v5313_v43 = vmul.f32 %v7441_v22, %v14603_v14  ;;  %v4045_v5 = vadd.f32 %v3968_v18, %v3801_v9  ;;  %v5187_v30 = vrot.slane %v5069_v20, 4 }
 0x30e   : > { %v4700_v44 = vsel %vm3666_vm3, %v4698_v35, %v13686_v47  ;;  %v13684_v7 = vrot.slane %v11407_v40, 4  ;;  %6783 = vpow2.f32 %v6559_v31  ;;  %v11422_v26 = vmul.f32 %v7441_v22, %v14623_v32 }
 0x30f   : > { %v4945_v54 = vsel %vm4887_vm4, %v4943_v10, %v13685_v37  ;;  %v5431_v38 = vrot.slane %v5313_v43, 4  ;;  %v4289_v3 = vadd.f32 %v4212_v56, %v4045_v5  ;;  %v5557_v35 = vmul.f32 %v14101_v34, %v14605_v1 }
 0x310   : > { %14628 = vst [vmem:[#allocation8_spill] sm:$0xff] %v11422_v26  ;;  %v5189_v18 = vsel %vm4887_vm4, %v5187_v30, %v13684_v7  ;;  %v11431_v9 = vmul.f32 %v14101_v34, %v14625_v61  ;;  %v13690_v20 = vrot.slane %v11422_v26, 4  ;;  %v5801_v31 = vmul.f32 %v14102_v50, %v14607_v25 }
 0x311   : > { %v11438_v10 = vmul.f32 %v14102_v50, %v14626_v4  ;;  %v811_v56 = vmul.f32 %v14600_v6, %v14616_v46  ;;  %v4533_v43 = vadd.f32 %v4456_v17, %v4289_v3  ;;  %v5675_v5 = vrot.slane %v5557_v35, 4 }
 0x312   : > { %14629 = vst [vmem:[#allocation71_spill] sm:$0xff] %v11431_v9  ;;  %v13695_v30 = vrot.slane %v11431_v9, 4  ;;  %v879_v7 = vmul.f32 %v14602_v49, %v14620_v2  ;;  %v5433_v37 = vsel %vm4887_vm4, %v5431_v38, %v13690_v20  ;;  %v5919_v47 = vrot.slane %v5801_v31, 4  ;;  %v14631_v31 = vld [vmem:[#allocation38_spill] sm:$0xff] }
 0x313   : > { %14630 = vst [vmem:[#allocation24_spill] sm:$0xff] %v11438_v10  ;;  %v13699_v25 = vrot.slane %v11438_v10, 4  ;;  %v947_v1 = vmul.f32 %v14604_v13, %v14623_v32  ;;  %v4777_v14 = vadd.f32 %v4700_v44, %v4533_v43  ;;  %v1015_v17 = vmul.f32 %v14606_v41, %v14625_v61  ;;  %v14632_v20 = vld [vmem:[#allocation2_spill] sm:$0xff]  ;;  %v14633_v32 = vld [vmem:[#allocation40_spill] sm:$0xff]  ;;  %v14634_v44 = vld [vmem:[#allocation3_spill] sm:$0xff] }
 0x314   : > { %v5677_v46 = vsel %vm4887_vm4, %v5675_v5, %v13695_v30  ;;  %v911_v3 = vadd.f32 %v879_v7, %v811_v56  ;;  %v1083_v38 = vmul.f32 %v14608_v23, %v14626_v4  ;;  %v1163_v2 = vmul.f32 %v14632_v20, %v14631_v31  ;;  %v14635_v5 = vld [vmem:[#allocation43_spill] sm:$0xff]  ;;  %v14636_v7 = vld [vmem:[#allocation4_spill] sm:$0xff] }
 0x315   : > { %v5921_v35 = vsel %vm4887_vm4, %v5919_v47, %v13699_v25  ;;  %v1408_v43 = vmul.f32 %v14634_v44, %v14633_v32  ;;  %v5022_v9 = vadd.f32 %v4945_v54, %v4777_v14  ;;  %v1652_v56 = vmul.f32 %v14636_v7, %v14635_v5  ;;  %v14637_v30 = vld [vmem:[#allocation47_spill] sm:$0xff]  ;;  %v14638_v47 = vld [vmem:[#allocation49_spill] sm:$0xff] }
 0x316   : > { %v979_v26 = vadd.f32 %v947_v1, %v911_v3  ;;  %v1896_v61 = vmul.f32 %v14624_v58, %v14637_v30  ;;  %v1283_v10 = vrot.slane %v1163_v2, 1  ;;  %v2140_v25 = vmul.f32 %v14578_v27, %v14638_v47  ;;  %v14639_v54 = vld [vmem:[#allocation23_spill] sm:$0xff]  ;;  %v14641_v3 = vld [vmem:[#allocation26_spill] sm:$0xff] }
 0x317   : > { %v1527_v41 = vrot.slane %v1408_v43, 1  ;;  %v2384_v4 = vmul.f32 %v14564_v51, %v14631_v31  ;;  %v5266_v20 = vadd.f32 %v5189_v18, %v5022_v9  ;;  %v1771_v13 = vrot.slane %v1652_v56, 1 }
 0x318   : > { %v1047_v23 = vadd.f32 %v1015_v17, %v979_v26  ;;  %v2015_v44 = vrot.slane %v1896_v61, 1  ;;  %v14640_v14 = vrot.slane %v14639_v54, 1  ;;  %v14642_v7 = vrot.slane %v14641_v3, 1 }
 0x319   : > { %v2259_v2 = vrot.slane %v2140_v25, 1  ;;  %v2504_v43 = vrot.slane %v2384_v4, 2  ;;  %v5510_v49 = vadd.f32 %v5433_v37, %v5266_v20  ;;  %v14643_v27 = vrot.slane %v11253_v33, 1 }
 0x31a   : > { %v1284_v1 = vsel %vm1224_vm1, %v14640_v14, %v1283_v10  ;;  %v1528_v58 = vsel %vm1224_vm1, %v14642_v7, %v1527_v41  ;;  %v1115_v6 = vadd.f32 %v1083_v38, %v1047_v23  ;;  %v14644_v26 = vrot.slane %v11265_v21, 1 }
 0x31b   : > { %v1772_v51 = vsel %vm1224_vm1, %v14643_v27, %v1771_v13  ;;  %v14645_v18 = vrot.slane %v11278_v48, 1  ;;  %v14646_v10 = vrot.slane %v11288_v24, 2  ;;  %v2629_v25 = vmul.f32 %v14012_v62, %v14633_v32  ;;  %v6784_v4 = vpop.eup %6783 }
 0x31c   : > { %v2016_v61 = vsel %vm1224_vm1, %v14644_v26, %v2015_v44  ;;  %v2873_v23 = vmul.f32 %v13997_v36, %v14635_v5  ;;  %v5754_v27 = vadd.f32 %v5677_v46, %v5510_v49  ;;  %v1360_v13 = vadd.f32 %v1284_v1, %v1115_v6  ;;  %v14652_v26 = vld [vmem:[#allocation74_spill] sm:$0xff] }
 0x31d   : > { %v2260_v9 = vsel %vm1224_vm1, %v14645_v18, %v2259_v2  ;;  %v2505_v41 = vsel %vm2445_vm2, %v14646_v10, %v2504_v43  ;;  %v3117_v21 = vmul.f32 %v14151_v53, %v14637_v30  ;;  %v3361_v48 = vmul.f32 %v13960_v39, %v14638_v47 }
 0x31e   : > { %v6164_v33 = vadd.f32 1.0, %v6784_v4  ;;  %v2748_v37 = vrot.slane %v2629_v25, 2  ;;  %v2992_v24 = vrot.slane %v2873_v23, 2  ;;  %v3605_v20 = vmul.f32 %v13961_v60, %v14631_v31 }
 0x31f   : > { %v5998_v17 = vadd.f32 %v5921_v35, %v5754_v27  ;;  %v1604_v38 = vadd.f32 %v1528_v58, %v1360_v13  ;;  %v3236_v44 = vrot.slane %v3117_v21, 2  ;;  %v3480_v7 = vrot.slane %v3361_v48, 2 }
 0x320   : > { %6785 = vrcp.f32 %v6164_v33  ;;  %v14647_v49 = vrot.slane %v11299_v8, 2  ;;  %v14648_v46 = vrot.slane %v11306_v63, 2  ;;  %v3725_v54 = vrot.slane %v3605_v20, 3 }
 0x321   : > { %v11508_v14 = vadd.f32 %v11155_v0, %v5998_v17  ;;  %v1848_v1 = vadd.f32 %v1772_v51, %v1604_v38  ;;  %v14649_v3 = vrot.slane %v11318_v11, 2  ;;  %v14650_v35 = vrot.slane %v11332_v29, 2  ;;  %v14653_v51 = vld [vmem:[#allocation75_spill] sm:$0xff] }
 0x322   : > { %v2749_v6 = vsel %vm2445_vm2, %v14647_v49, %v2748_v37  ;;  %v2993_v56 = vsel %vm2445_vm2, %v14648_v46, %v2992_v24  ;;  %v14651_v8 = vrot.slane %v11338_v16, 3  ;;  %v3850_v63 = vmul.f32 %v13962_v12, %v14633_v32 }
 0x323   : > { %v3237_v58 = vsel %vm2445_vm2, %v14649_v3, %v3236_v44  ;;  %v3481_v2 = vsel %vm2445_vm2, %v14650_v35, %v3480_v7  ;;  %v4094_v18 = vmul.f32 %v14652_v26, %v14635_v5  ;;  %v4338_v10 = vmul.f32 %v14653_v51, %v14637_v30  ;;  %v14661_v35 = vld [vmem:[#allocation42_spill] sm:$0xff] }
 0x324   : > { %v3726_v43 = vsel %vm3666_vm3, %v14651_v8, %v3725_v54  ;;  %v6560_v11 = vmul.f32 -1.442695, %v11508_v14  ;;  %v2092_v25 = vadd.f32 %v2016_v61, %v1848_v1  ;;  %v4582_v29 = vmul.f32 %v14157_v19, %v14638_v47  ;;  %v14660_v54 = vld [vmem:[#allocation55_spill] sm:$0xff]  ;;  %v14662_v8 = vld [vmem:[#allocation56_spill] sm:$0xff] }
 0x325   : > { %v4826_v16 = vmul.f32 %v14027_v15, %v14631_v31  ;;  %v3969_v23 = vrot.slane %v3850_v63, 3  ;;  %v4213_v4 = vrot.slane %v4094_v18, 3  ;;  %v4457_v27 = vrot.slane %v4338_v10, 3  ;;  %v14663_v18 = vld [vmem:[#allocation44_spill] sm:$0xff]  ;;  %v14664_v10 = vld [vmem:[#allocation57_spill] sm:$0xff] }
 0x326   : > { %v5071_v13 = vmul.f32 %v7436_v52, %v14633_v32  ;;  %6787 = vpow2.f32 %v6560_v11  ;;  %v2336_v21 = vadd.f32 %v2260_v9, %v2092_v25  ;;  %v4701_v48 = vrot.slane %v4582_v29, 3  ;;  %v14665_v29 = vld [vmem:[#allocation48_spill] sm:$0xff]  ;;  %v14683_v32 = vld [vmem:[#allocation45_spill] sm:$0xff] }
 0x327   : > { %v4946_v33 = vrot.slane %v4826_v16, 4  ;;  %v14654_v37 = vrot.slane %v11350_v45, 3  ;;  %v14655_v24 = vrot.slane %v11364_v55, 3  ;;  %v14656_v31 = vrot.slane %v11371_v28, 3  ;;  %v14666_v16 = vld [vmem:[#allocation59_spill] sm:$0xff] }
 0x328   : > { %v5190_v38 = vrot.slane %v5071_v13, 4  ;;  %v2581_v44 = vadd.f32 %v2505_v41, %v2336_v21  ;;  %v14657_v9 = vrot.slane %v11387_v57, 3  ;;  %v14658_v45 = vrot.slane %v11400_v59, 4 }
 0x329   : > { %v3970_v61 = vsel %vm3666_vm3, %v14654_v37, %v3969_v23  ;;  %v11538_v20 = vsel %vm3666_vm3, %v14655_v24, %v4213_v4  ;;  %v11543_v17 = vsel %vm3666_vm3, %v14656_v31, %v4457_v27  ;;  %v5315_v55 = vmul.f32 %v7441_v22, %v14635_v5  ;;  %v14667_v4 = vld [vmem:[#allocation50_spill] sm:$0xff] }
 0x32a   : > { %v11548_v7 = vsel %vm3666_vm3, %v14657_v9, %v4701_v48  ;;  %v11553_v49 = vsel %vm4887_vm4, %v14658_v45, %v4946_v33  ;;  %v14659_v28 = vrot.slane %v11407_v40, 4  ;;  %v5559_v41 = vmul.f32 %v14101_v34, %v14637_v30  ;;  %v14668_v27 = vld [vmem:[#allocation62_spill] sm:$0xff]  ;;  %v14669_v48 = vld [vmem:[#allocation8_spill] sm:$0xff] }
 0x32b   : > { %v5803_v57 = vmul.f32 %v14102_v50, %v14638_v47  ;;  %v812_v59 = vmul.f32 %v14660_v54, %v14601_v42  ;;  %v2825_v1 = vadd.f32 %v2749_v6, %v2581_v44  ;;  %v5434_v3 = vrot.slane %v5315_v55, 4  ;;  %v14671_v24 = vld [vmem:[#allocation2_spill] sm:$0xff]  ;;  %v14674_v45 = vld [vmem:[#allocation24_spill] sm:$0xff] }
 0x32c   : > { %v11560_v46 = vsel %vm4887_vm4, %v14659_v28, %v5190_v38  ;;  %v880_v63 = vmul.f32 %v14662_v8, %v14661_v35  ;;  %v948_v40 = vmul.f32 %v14664_v10, %v14663_v18  ;;  %v5678_v11 = vrot.slane %v5559_v41, 4  ;;  %v14672_v38 = vld [vmem:[#allocation71_spill] sm:$0xff] }
 0x32d   : > { %v5922_v25 = vrot.slane %v5803_v57, 4  ;;  %v1016_v23 = vmul.f32 %v14666_v16, %v14665_v29  ;;  %v1084_v13 = vmul.f32 %v14668_v27, %v14667_v4  ;;  %v3069_v21 = vadd.f32 %v2993_v56, %v2825_v1  ;;  %v14676_v56 = vld [vmem:[#allocation37_spill] sm:$0xff]  ;;  %v14678_v57 = vld [vmem:[#allocation3_spill] sm:$0xff]  ;;  %v6786_v1 = vpop.eup %6785 }
 0x32e   : > { %v14670_v33 = vrot.slane %v14669_v48, 4  ;;  %v912_v37 = vadd.f32 %v880_v63, %v812_v59  ;;  %v1164_v31 = vmul.f32 %v14671_v24, %v14601_v42  ;;  %v14673_v44 = vrot.slane %v14672_v38, 4  ;;  %v14681_v38 = vld [vmem:[#allocation6_spill] sm:$0xff] }
 0x32f   : > { %v14675_v55 = vrot.slane %v14674_v45, 4  ;;  %v11595_v41 = vmul.f32 %v14671_v24, %v14676_v56  ;;  %v1409_v59 = vmul.f32 %v14678_v57, %v14661_v35 }
 0x330   : > { %v11579_v6 = vsel %vm4887_vm4, %v14670_v33, %v5434_v3  ;;  %v11586_v9 = vsel %vm4887_vm4, %v14673_v44, %v5678_v11  ;;  %v3313_v3 = vadd.f32 %v3237_v58, %v3069_v21  ;;  %v980_v63 = vadd.f32 %v948_v40, %v912_v37  ;;  %v14679_v33 = vld [vmem:[#allocation41_spill] sm:$0xff] }
 0x331   : > { %v11591_v28 = vsel %vm4887_vm4, %v14675_v55, %v5922_v25  ;;  %14677 = vst [vmem:[#allocation76_spill] sm:$0xff] %v11595_v41  ;;  %v1285_v48 = vrot.slane %v1164_v31, 1  ;;  %v11601_v11 = vmul.f32 %v14678_v57, %v14679_v33  ;;  %v6260_v44 = vmul.f32 %v6786_v1, %v14681_v38  ;;  %v14682_v55 = vld [vmem:[#allocation4_spill] sm:$0xff]  ;;  %v14684_v37 = vld [vmem:[#allocation5_spill] sm:$0xff] }
 0x332   : > { %v13713_v25 = vrot.slane %v11595_v41, 1  ;;  %v1529_v45 = vrot.slane %v1409_v59, 1  ;;  %v1653_v47 = vmul.f32 %v14682_v55, %v14663_v18  ;;  %v3557_v30 = vadd.f32 %v3481_v2, %v3313_v3  ;;  %v14685_v59 = vld [vmem:[#allocation46_spill] sm:$0xff]  ;;  %v14687_v41 = vld [vmem:[#allocation51_spill] sm:$0xff] }
 0x333   : > { %14680 = vst [vmem:[#allocation25_spill] sm:$0xff] %v11601_v11  ;;  %v1048_v5 = vadd.f32 %v1016_v23, %v980_v63  ;;  %v13717_v24 = vrot.slane %v11601_v11, 1  ;;  %v11610_v58 = vmul.f32 %v14682_v55, %v14683_v32  ;;  %6324 = vst [vmem:[%s6937_s10 + $0x1a8] sm:$0xff] %v6260_v44  ;;  %v1897_v31 = vmul.f32 %v14684_v37, %v14665_v29  ;;  %v6788_v38 = vpop.eup %6787 }
 0x334   : > { %v1287_v40 = vsel %vm1224_vm1, %v1285_v48, %v13713_v25  ;;  %v1773_v21 = vrot.slane %v1653_v47, 1  ;;  %v11620_v1 = vmul.f32 %v14684_v37, %v14685_v59  ;;  %v3802_v2 = vadd.f32 %v3726_v43, %v3557_v30  ;;  %v14686_v47 = vld [vmem:[#allocation63_spill] sm:$0xff] }
 0x335   : > { %v1116_v23 = vadd.f32 %v1084_v13, %v1048_v5  ;;  %v1531_v3 = vsel %vm1224_vm1, %v1529_v45, %v13717_v24  ;;  %v13722_v63 = vrot.slane %v11610_v58, 1  ;;  %v2017_v44 = vrot.slane %v1897_v31, 1  ;;  %v14688_v24 = vld [vmem:[#allocation64_spill] sm:$0xff] }
 0x336   : > { %v13721_v48 = vrot.slane %v11620_v1, 1  ;;  %v2141_v25 = vmul.f32 %v14686_v47, %v14667_v4  ;;  %v11631_v55 = vmul.f32 %v14686_v47, %v14687_v41  ;;  %v6165_v37 = vadd.f32 1.0, %v6788_v38 }
 0x337   : > { %v4046_v30 = vadd.f32 %v3970_v61, %v3802_v2  ;;  %v1361_v5 = vadd.f32 %v1287_v40, %v1116_v23  ;;  %v1775_v43 = vsel %vm1224_vm1, %v1773_v21, %v13722_v63  ;;  %v2385_v11 = vmul.f32 %v14688_v24, %v14601_v42 }
 0x338   : > { %v2019_v13 = vsel %vm1224_vm1, %v2017_v44, %v13721_v48  ;;  %v2261_v45 = vrot.slane %v2141_v25, 1  ;;  %v13720_v31 = vrot.slane %v11631_v55, 1  ;;  %6789 = vrcp.f32 %v6165_v37 }
 0x339   : > { %v4290_v47 = vadd.f32 %v11538_v20, %v4046_v30  ;;  %v1605_v38 = vadd.f32 %v1531_v3, %v1361_v5  ;;  %v11645_v61 = vmul.f32 %v14688_v24, %v14676_v56  ;;  %v2506_v21 = vrot.slane %v2385_v11, 2 }
 0x33a   : > { %v2263_v40 = vsel %vm1224_vm1, %v2261_v45, %v13720_v31  ;;  %v2630_v25 = vmul.f32 %v14012_v62, %v14661_v35  ;;  %v11654_v2 = vmul.f32 %v14012_v62, %v14679_v33  ;;  %v2874_v3 = vmul.f32 %v13997_v36, %v14663_v18 }
 0x33b   : > { %v4534_v37 = vadd.f32 %v11543_v17, %v4290_v47  ;;  %v1849_v20 = vadd.f32 %v1775_v43, %v1605_v38  ;;  %v13725_v23 = vrot.slane %v11645_v61, 2  ;;  %v11663_v11 = vmul.f32 %v13997_v36, %v14683_v32 }
 0x33c   : > { %v2750_v44 = vrot.slane %v2630_v25, 2  ;;  %v13724_v30 = vrot.slane %v11654_v2, 2  ;;  %v3118_v5 = vmul.f32 %v14151_v53, %v14665_v29  ;;  %v2994_v47 = vrot.slane %v2874_v3, 2 }
 0x33d   : > { %14689 = vst [vmem:[#allocation28_spill] sm:$0xff] %v11663_v11  ;;  %v4778_v45 = vadd.f32 %v11548_v7, %v4534_v37  ;;  %v2093_v31 = vadd.f32 %v2019_v13, %v1849_v20  ;;  %v2508_v17 = vsel %vm2445_vm2, %v2506_v21, %v13725_v23  ;;  %v13723_v38 = vrot.slane %v11663_v11, 2 }
 0x33e   : > { %v2752_v43 = vsel %vm2445_vm2, %v2750_v44, %v13724_v30  ;;  %v11677_v25 = vmul.f32 %v14151_v53, %v14685_v59  ;;  %v3238_v48 = vrot.slane %v3118_v5, 2  ;;  %v3362_v13 = vmul.f32 %v13960_v39, %v14667_v4 }
 0x33f   : > { %v5023_v63 = vadd.f32 %v11553_v49, %v4778_v45  ;;  %v2337_v7 = vadd.f32 %v2263_v40, %v2093_v31  ;;  %v11684_v21 = vmul.f32 %v13960_v39, %v14687_v41  ;;  %v2996_v37 = vsel %vm2445_vm2, %v2994_v47, %v13723_v38 }
 0x340   : > { %v13729_v20 = vrot.slane %v11677_v25, 2  ;;  %v3606_v3 = vmul.f32 %v13961_v60, %v14601_v42  ;;  %v11694_v49 = vmul.f32 %v13961_v60, %v14676_v56  ;;  %v3482_v44 = vrot.slane %v3362_v13, 2 }
 0x341   : > { %v5267_v31 = vadd.f32 %v11560_v46, %v5023_v63  ;;  %v2582_v40 = vadd.f32 %v2508_v17, %v2337_v7  ;;  %v13728_v5 = vrot.slane %v11684_v21, 2  ;;  %v3851_v30 = vmul.f32 %v13962_v12, %v14661_v35 }
 0x342   : > { %v3240_v45 = vsel %vm2445_vm2, %v3238_v48, %v13729_v20  ;;  %v3727_v47 = vrot.slane %v3606_v3, 3  ;;  %v13727_v38 = vrot.slane %v11694_v49, 3  ;;  %v11710_v63 = vmul.f32 %v13962_v12, %v14679_v33 }
 0x343   : > { %v5511_v23 = vadd.f32 %v11579_v6, %v5267_v31  ;;  %v2826_v11 = vadd.f32 %v2752_v43, %v2582_v40  ;;  %v3484_v46 = vsel %vm2445_vm2, %v3482_v44, %v13728_v5  ;;  %v3971_v17 = vrot.slane %v3851_v30, 3 }
 0x344   : > { %v3729_v48 = vsel %vm3666_vm3, %v3727_v47, %v13727_v38  ;;  %v4095_v7 = vmul.f32 %v14652_v26, %v14663_v18  ;;  %v11719_v6 = vmul.f32 %v14652_v26, %v14683_v32  ;;  %v13734_v3 = vrot.slane %v11710_v63, 3 }
 0x345   : > { %v5755_v43 = vadd.f32 %v11586_v9, %v5511_v23  ;;  %v3070_v13 = vadd.f32 %v2996_v37, %v2826_v11  ;;  %v4339_v31 = vmul.f32 %v14653_v51, %v14665_v29  ;;  %v6790_v40 = vpop.eup %6789  ;;  %v11728_v47 = vmul.f32 %v14653_v51, %v14685_v59 }
 0x346   : > { %v4215_v44 = vrot.slane %v4095_v7, 3  ;;  %v13732_v30 = vrot.slane %v11719_v6, 3  ;;  %v4583_v38 = vmul.f32 %v14157_v19, %v14667_v4  ;;  %v6261_v9 = vmul.f32 %v6790_v40, %v11508_v14 }
 0x347   : > { %v5999_v23 = vadd.f32 %v11591_v28, %v5755_v43  ;;  %v3314_v11 = vadd.f32 %v3240_v45, %v3070_v13  ;;  %v3973_v37 = vsel %vm3666_vm3, %v3971_v17, %v13734_v3  ;;  %v4459_v5 = vrot.slane %v4339_v31, 3 }
 0x348   : > { %v4217_v7 = vsel %vm3666_vm3, %v4215_v44, %v13732_v30  ;;  %v13731_v20 = vrot.slane %v11728_v47, 3  ;;  %v11743_v51 = vmul.f32 %v14157_v19, %v14687_v41  ;;  %6325 = vst [vmem:[%s6937_s10 + $0x1b0] sm:$0xff] %v6261_v9  ;;  %v4703_v45 = vrot.slane %v4583_v38, 3 }
 0x349   : > { %v11747_v14 = vadd.f32 %v11155_v0, %v5999_v23  ;;  %v3558_v28 = vadd.f32 %v3484_v46, %v3314_v11  ;;  %v4827_v17 = vmul.f32 %v14027_v15, %v14601_v42  ;;  %v11757_v31 = vmul.f32 %v14027_v15, %v14676_v56 }
 0x34a   : > { %v4461_v43 = vsel %vm3666_vm3, %v4459_v5, %v13731_v20  ;;  %v13733_v13 = vrot.slane %v11743_v51, 3  ;;  %v5072_v40 = vmul.f32 %v7436_v52, %v14661_v35  ;;  %v11764_v42 = vmul.f32 %v7436_v52, %v14679_v33 }
 0x34b   : > { %14690 = vst [vmem:[#allocation61_spill] sm:$0xff] %v11747_v14  ;;  %v6561_v44 = vmul.f32 -1.442695, %v11747_v14  ;;  %v3803_v46 = vadd.f32 %v3729_v48, %v3558_v28  ;;  %v4948_v38 = vrot.slane %v4827_v17, 4  ;;  %v13735_v9 = vrot.slane %v11757_v31, 4 }
 0x34c   : > { %v4705_v5 = vsel %vm3666_vm3, %v4703_v45, %v13733_v13  ;;  %v5192_v23 = vrot.slane %v5072_v40, 4  ;;  %v5316_v11 = vmul.f32 %v7441_v22, %v14663_v18  ;;  %v13736_v30 = vrot.slane %v11764_v42, 4  ;;  %v14703_v18 = vld [vmem:[#allocation76_spill] sm:$0xff] }
 0x34d   : > { %6791 = vpow2.f32 %v6561_v44  ;;  %v4047_v20 = vadd.f32 %v3973_v37, %v3803_v46  ;;  %v11775_v48 = vmul.f32 %v7441_v22, %v14683_v32  ;;  %v4950_v28 = vsel %vm4887_vm4, %v4948_v38, %v13735_v9 }
 0x34e   : > { %v5436_v17 = vrot.slane %v5316_v11, 4  ;;  %v5560_v45 = vmul.f32 %v14101_v34, %v14665_v29  ;;  %v11784_v40 = vmul.f32 %v14101_v34, %v14685_v59  ;;  %v5194_v37 = vsel %vm4887_vm4, %v5192_v23, %v13736_v30  ;;  %v14699_v29 = vld [vmem:[#allocation49_spill] sm:$0xff] }
 0x34f   : > { %14691 = vst [vmem:[#allocation15_spill] sm:$0xff] %v11775_v48  ;;  %v4291_v44 = vadd.f32 %v4217_v7, %v4047_v20  ;;  %v13739_v46 = vrot.slane %v11775_v48, 4  ;;  %v5804_v13 = vmul.f32 %v14102_v50, %v14667_v4  ;;  %v11795_v11 = vmul.f32 %v14102_v50, %v14687_v41  ;;  %v14697_v48 = vld [vmem:[#allocation47_spill] sm:$0xff] }
 0x350   : > { %14692 = vst [vmem:[#allocation16_spill] sm:$0xff] %v11784_v40  ;;  %v5680_v3 = vrot.slane %v5560_v45, 4  ;;  %v13741_v38 = vrot.slane %v11784_v40, 4  ;;  %v813_v9 = vmul.f32 %v14660_v54, %v14676_v56  ;;  %v881_v30 = vmul.f32 %v14662_v8, %v14679_v33 }
 0x351   : > { %14693 = vst [vmem:[#allocation9_spill] sm:$0xff] %v11795_v11  ;;  %v4535_v20 = vadd.f32 %v4461_v43, %v4291_v44  ;;  %v5438_v7 = vsel %vm4887_vm4, %v5436_v17, %v13739_v46  ;;  %v5924_v23 = vrot.slane %v5804_v13, 4  ;;  %v13753_v14 = vrot.slane %v11795_v11, 4  ;;  %v14694_v17 = vld [vmem:[#allocation40_spill] sm:$0xff]  ;;  %v14695_v46 = vld [vmem:[#allocation2_spill] sm:$0xff] }
 0x352   : > { %v5682_v45 = vsel %vm4887_vm4, %v5680_v3, %v13741_v38  ;;  %v949_v4 = vmul.f32 %v14664_v10, %v14683_v32  ;;  %v1017_v56 = vmul.f32 %v14666_v16, %v14685_v59  ;;  %v913_v44 = vadd.f32 %v881_v30, %v813_v9  ;;  %v14696_v38 = vld [vmem:[#allocation43_spill] sm:$0xff]  ;;  %v14698_v32 = vld [vmem:[#allocation4_spill] sm:$0xff]  ;;  %v14700_v59 = vld [vmem:[#allocation5_spill] sm:$0xff] }
 0x353   : > { %v4779_v43 = vadd.f32 %v4705_v5, %v4535_v20  ;;  %v1085_v13 = vmul.f32 %v14668_v27, %v14687_v41  ;;  %v1166_v33 = vmul.f32 %v14695_v46, %v14694_v17  ;;  %v5926_v3 = vsel %vm4887_vm4, %v5924_v23, %v13753_v14  ;;  %v14701_v41 = vld [vmem:[#allocation52_spill] sm:$0xff]  ;;  %v14702_v27 = vld [vmem:[#allocation63_spill] sm:$0xff] }
 0x354   : > { %v1411_v40 = vmul.f32 %v14678_v57, %v14696_v38  ;;  %v1655_v10 = vmul.f32 %v14698_v32, %v14697_v48  ;;  %v1899_v5 = vmul.f32 %v14700_v59, %v14699_v29  ;;  %v981_v9 = vadd.f32 %v949_v4, %v913_v44  ;;  %v14705_v59 = vld [vmem:[#allocation25_spill] sm:$0xff] }
 0x355   : > { %v5024_v30 = vadd.f32 %v4950_v28, %v4779_v43  ;;  %v1288_v20 = vrot.slane %v1166_v33, 1  ;;  %v2143_v16 = vmul.f32 %v14702_v27, %v14701_v41  ;;  %v2387_v23 = vmul.f32 %v14688_v24, %v14694_v17 }
 0x356   : > { %v1532_v46 = vrot.slane %v1411_v40, 1  ;;  %v1776_v8 = vrot.slane %v1655_v10, 1  ;;  %v2020_v11 = vrot.slane %v1899_v5, 1  ;;  %v1049_v57 = vadd.f32 %v1017_v56, %v981_v9 }
 0x357   : > { %v5268_v14 = vadd.f32 %v5194_v37, %v5024_v30  ;;  %v14704_v54 = vrot.slane %v14703_v18, 1  ;;  %v2264_v35 = vrot.slane %v2143_v16, 1  ;;  %v14706_v28 = vrot.slane %v14705_v59, 1 }
 0x358   : > { %v14707_v33 = vrot.slane %v11610_v58, 1  ;;  %v14708_v10 = vrot.slane %v11620_v1, 1  ;;  %v2509_v44 = vrot.slane %v2387_v23, 2  ;;  %v1117_v56 = vadd.f32 %v1085_v13, %v1049_v57 }
 0x359   : > { %v1289_v32 = vsel %vm1224_vm1, %v14704_v54, %v1288_v20  ;;  %v1533_v4 = vsel %vm1224_vm1, %v14706_v28, %v1532_v46  ;;  %v5512_v37 = vadd.f32 %v5438_v7, %v5268_v14  ;;  %v14709_v18 = vrot.slane %v11631_v55, 1  ;;  %v14712_v28 = vld [vmem:[#allocation28_spill] sm:$0xff] }
 0x35a   : > { %v1777_v40 = vsel %vm1224_vm1, %v14707_v33, %v1776_v8  ;;  %v2021_v43 = vsel %vm1224_vm1, %v14708_v10, %v2020_v11  ;;  %v2632_v16 = vmul.f32 %v14012_v62, %v14696_v38  ;;  %v6792_v59 = vpop.eup %6791  ;;  %v14710_v46 = vrot.slane %v11645_v61, 2 }
 0x35b   : > { %v2265_v54 = vsel %vm1224_vm1, %v14709_v18, %v2264_v35  ;;  %v2876_v8 = vmul.f32 %v13997_v36, %v14697_v48  ;;  %v3120_v1 = vmul.f32 %v14151_v53, %v14699_v29  ;;  %v3364_v57 = vmul.f32 %v13960_v39, %v14701_v41 }
 0x35c   : > { %v2510_v58 = vsel %vm2445_vm2, %v14710_v46, %v2509_v44  ;;  %v6166_v55 = vadd.f32 1.0, %v6792_v59  ;;  %v5756_v14 = vadd.f32 %v5682_v45, %v5512_v37  ;;  %v1362_v35 = vadd.f32 %v1289_v32, %v1117_v56  ;;  %v14717_v59 = vld [vmem:[#allocation75_spill] sm:$0xff] }
 0x35d   : > { %v2753_v11 = vrot.slane %v2632_v16, 2  ;;  %v2997_v7 = vrot.slane %v2876_v8, 2  ;;  %v3241_v13 = vrot.slane %v3120_v1, 2  ;;  %v3485_v5 = vrot.slane %v3364_v57, 2 }
 0x35e   : > { %v3608_v61 = vmul.f32 %v13961_v60, %v14694_v17  ;;  %6793 = vrcp.f32 %v6166_v55  ;;  %v6000_v30 = vadd.f32 %v5926_v3, %v5756_v14  ;;  %v1606_v9 = vadd.f32 %v1533_v4, %v1362_v35 }
 0x35f   : > { %v14711_v20 = vrot.slane %v11654_v2, 2  ;;  %v14713_v33 = vrot.slane %v14712_v28, 2  ;;  %v14714_v32 = vrot.slane %v11677_v25, 2  ;;  %v14715_v44 = vrot.slane %v11684_v21, 2 }
 0x360   : > { %v3730_v56 = vrot.slane %v3608_v61, 3  ;;  %v11870_v3 = vadd.f32 %v11155_v0, %v6000_v30  ;;  %v1850_v4 = vadd.f32 %v1777_v40, %v1606_v9  ;;  %v3853_v2 = vmul.f32 %v13962_v12, %v14696_v38 }
 0x361   : > { %v2754_v23 = vsel %vm2445_vm2, %v14711_v20, %v2753_v11  ;;  %v2998_v10 = vsel %vm2445_vm2, %v14713_v33, %v2997_v7  ;;  %v3242_v45 = vsel %vm2445_vm2, %v14714_v32, %v3241_v13  ;;  %v3486_v37 = vsel %vm2445_vm2, %v14715_v44, %v3485_v5  ;;  %v14725_v44 = vld [vmem:[#allocation55_spill] sm:$0xff] }
 0x362   : > { %v4097_v18 = vmul.f32 %v14652_v26, %v14697_v48  ;;  %v14716_v16 = vrot.slane %v11694_v49, 3  ;;  %v4341_v21 = vmul.f32 %v14717_v59, %v14699_v29  ;;  %v4585_v46 = vmul.f32 %v14157_v19, %v14701_v41 }
 0x363   : > { %v4829_v0 = vmul.f32 %v14027_v15, %v14694_v17  ;;  %v6562_v40 = vmul.f32 -1.442695, %v11870_v3  ;;  %v2094_v8 = vadd.f32 %v2021_v43, %v1850_v4  ;;  %v3974_v1 = vrot.slane %v3853_v2, 3  ;;  %v14726_v4 = vld [vmem:[#allocation44_spill] sm:$0xff] }
 0x364   : > { %v3731_v25 = vsel %vm3666_vm3, %v14716_v16, %v3730_v56  ;;  %v4218_v57 = vrot.slane %v4097_v18, 3  ;;  %v4462_v55 = vrot.slane %v4341_v21, 3  ;;  %v4706_v14 = vrot.slane %v4585_v46, 3  ;;  %v14727_v2 = vld [vmem:[#allocation56_spill] sm:$0xff]  ;;  %v14729_v16 = vld [vmem:[#allocation57_spill] sm:$0xff] }
 0x365   : > { %v4951_v35 = vrot.slane %v4829_v0, 4  ;;  %v5074_v49 = vmul.f32 %v7436_v52, %v14696_v38  ;;  %6795 = vpow2.f32 %v6562_v40  ;;  %v2338_v11 = vadd.f32 %v2265_v54, %v2094_v8  ;;  %v14728_v18 = vld [vmem:[#allocation48_spill] sm:$0xff] }
 0x366   : > { %v14718_v7 = vrot.slane %v11710_v63, 3  ;;  %v14719_v5 = vrot.slane %v11719_v6, 3  ;;  %v14720_v43 = vrot.slane %v11728_v47, 3  ;;  %v14721_v30 = vrot.slane %v11743_v51, 3 }
 0x367   : > { %v14722_v54 = vrot.slane %v11757_v31, 4  ;;  %v5195_v20 = vrot.slane %v5074_v49, 4  ;;  %v2583_v6 = vadd.f32 %v2510_v58, %v2338_v11  ;;  %v5318_v28 = vmul.f32 %v7441_v22, %v14697_v48  ;;  %v14724_v31 = vld [vmem:[#allocation42_spill] sm:$0xff] }
 0x368   : > { %v3975_v13 = vsel %vm3666_vm3, %v14718_v7, %v3974_v1  ;;  %v11894_v17 = vsel %vm3666_vm3, %v14719_v5, %v4218_v57  ;;  %v11899_v61 = vsel %vm3666_vm3, %v14720_v43, %v4462_v55  ;;  %v11904_v9 = vsel %vm3666_vm3, %v14721_v30, %v4706_v14  ;;  %v14730_v57 = vld [vmem:[#allocation50_spill] sm:$0xff]  ;;  %v14731_v55 = vld [vmem:[#allocation59_spill] sm:$0xff] }
 0x369   : > { %v11909_v63 = vsel %vm4887_vm4, %v14722_v54, %v4951_v35  ;;  %v5562_v47 = vmul.f32 %v14101_v34, %v14699_v29  ;;  %v5806_v33 = vmul.f32 %v14102_v50, %v14701_v41  ;;  %v14723_v51 = vrot.slane %v11764_v42, 4  ;;  %v14732_v14 = vld [vmem:[#allocation54_spill] sm:$0xff]  ;;  %v14735_v43 = vld [vmem:[#allocation15_spill] sm:$0xff] }
 0x36a   : > { %v814_v56 = vmul.f32 %v14725_v44, %v14724_v31  ;;  %v882_v58 = vmul.f32 %v14727_v2, %v14726_v4  ;;  %v950_v21 = vmul.f32 %v14729_v16, %v14728_v18  ;;  %v2827_v46 = vadd.f32 %v2754_v23, %v2583_v6  ;;  %v14733_v35 = vld [vmem:[#allocation62_spill] sm:$0xff]  ;;  %v14737_v23 = vld [vmem:[#allocation16_spill] sm:$0xff] }
 0x36b   : > { %v11920_v32 = vsel %vm4887_vm4, %v14723_v51, %v5195_v20  ;;  %v5439_v0 = vrot.slane %v5318_v28, 4  ;;  %v5683_v40 = vrot.slane %v5562_v47, 4  ;;  %v5927_v8 = vrot.slane %v5806_v33, 4  ;;  %v14734_v11 = vld [vmem:[#allocation2_spill] sm:$0xff]  ;;  %v14739_v28 = vld [vmem:[#allocation9_spill] sm:$0xff]  ;;  %v6794_v51 = vpop.eup %6793 }
 0x36c   : > { %v914_v1 = vadd.f32 %v882_v58, %v814_v56  ;;  %v1018_v42 = vmul.f32 %v14731_v55, %v14730_v57  ;;  %v1086_v49 = vmul.f32 %v14733_v35, %v14732_v14  ;;  %v1167_v7 = vmul.f32 %v14734_v11, %v14724_v31  ;;  %v14741_v58 = vld [vmem:[#allocation41_spill] sm:$0xff]  ;;  %v14748_v29 = vld [vmem:[#allocation46_spill] sm:$0xff] }
 0x36d   : > { %v3071_v5 = vadd.f32 %v2998_v10, %v2827_v46  ;;  %v14736_v30 = vrot.slane %v14735_v43, 4  ;;  %v14738_v20 = vrot.slane %v14737_v23, 4  ;;  %v14740_v47 = vrot.slane %v14739_v28, 4 }
 0x36e   : > { %v982_v56 = vadd.f32 %v950_v21, %v914_v1  ;;  %v11951_v10 = vmul.f32 %v14734_v11, %v14741_v58  ;;  %v1290_v46 = vrot.slane %v1167_v7, 1 }
 0x36f   : > { %v11937_v54 = vsel %vm4887_vm4, %v14736_v30, %v5439_v0  ;;  %v11942_v6 = vsel %vm4887_vm4, %v14738_v20, %v5683_v40  ;;  %v11947_v33 = vsel %vm4887_vm4, %v14740_v47, %v5927_v8  ;;  %v14743_v0 = vld [vmem:[#allocation3_spill] sm:$0xff]  ;;  %v14744_v30 = vld [vmem:[#allocation61_spill] sm:$0xff]  ;;  %v3315_v41 = vadd.f32 %v3242_v45, %v3071_v5  ;;  %v14747_v8 = vld [vmem:[#allocation4_spill] sm:$0xff] }
 0x370   : > { %14742 = vst [vmem:[#allocation7_spill] sm:$0xff] %v11951_v10  ;;  %v1412_v43 = vmul.f32 %v14743_v0, %v14726_v4  ;;  %v6262_v23 = vmul.f32 %v6794_v51, %v14744_v30  ;;  %v14745_v40 = vld [vmem:[#allocation45_spill] sm:$0xff]  ;;  %v1656_v28 = vmul.f32 %v14747_v8, %v14728_v18  ;;  %v1050_v47 = vadd.f32 %v1018_v42, %v982_v56 }
 0x371   : > { %v11958_v20 = vmul.f32 %v14743_v0, %v14745_v40  ;;  %v13764_v21 = vrot.slane %v11951_v10, 1  ;;  %v11965_v7 = vmul.f32 %v14747_v8, %v14748_v29  ;;  %v3559_v48 = vadd.f32 %v3486_v37, %v3315_v41  ;;  %v14749_v5 = vld [vmem:[#allocation5_spill] sm:$0xff] }
 0x372   : > { %v1534_v1 = vrot.slane %v1412_v43, 1  ;;  %6326 = vst [vmem:[%s6937_s10 + $0x1b8] sm:$0xff] %v6262_v23  ;;  %v1778_v45 = vrot.slane %v1656_v28, 1  ;;  %v1900_v30 = vmul.f32 %v14749_v5, %v14730_v57  ;;  %v1118_v0 = vadd.f32 %v1086_v49, %v1050_v47  ;;  %v14750_v43 = vld [vmem:[#allocation51_spill] sm:$0xff]  ;;  %v6796_v49 = vpop.eup %6795 }
 0x373   : > { %14746 = vst [vmem:[#allocation27_spill] sm:$0xff] %v11958_v20  ;;  %v13773_v51 = vrot.slane %v11958_v20, 1  ;;  %v1292_v42 = vsel %vm1224_vm1, %v1290_v46, %v13764_v21  ;;  %v13767_v56 = vrot.slane %v11965_v7, 1  ;;  %v11977_v11 = vmul.f32 %v14749_v5, %v14750_v43  ;;  %v14751_v21 = vld [vmem:[#allocation53_spill] sm:$0xff] }
 0x374   : > { %v3804_v8 = vadd.f32 %v3731_v25, %v3559_v48  ;;  %v2022_v37 = vrot.slane %v1900_v30, 1  ;;  %v2144_v23 = vmul.f32 %v14702_v27, %v14732_v14  ;;  %v1363_v28 = vadd.f32 %v1292_v42, %v1118_v0 }
 0x375   : > { %v1536_v41 = vsel %vm1224_vm1, %v1534_v1, %v13773_v51  ;;  %v1780_v46 = vsel %vm1224_vm1, %v1778_v45, %v13767_v56  ;;  %v13769_v47 = vrot.slane %v11977_v11, 1  ;;  %v11990_v10 = vmul.f32 %v14702_v27, %v14751_v21 }
 0x376   : > { %v6167_v48 = vadd.f32 1.0, %v6796_v49  ;;  %v4048_v25 = vadd.f32 %v3975_v13, %v3804_v8  ;;  %v2266_v20 = vrot.slane %v2144_v23, 1  ;;  %v2388_v1 = vmul.f32 %v14688_v24, %v14724_v31 }
 0x377   : > { %v1607_v30 = vadd.f32 %v1536_v41, %v1363_v28  ;;  %v2024_v0 = vsel %vm1224_vm1, %v2022_v37, %v13769_v47  ;;  %v13768_v42 = vrot.slane %v11990_v10, 1  ;;  %v12000_v45 = vmul.f32 %v14688_v24, %v14741_v58 }
 0x378   : > { %6797 = vrcp.f32 %v6167_v48  ;;  %v4292_v56 = vadd.f32 %v11894_v17, %v4048_v25  ;;  %v2511_v49 = vrot.slane %v2388_v1, 2  ;;  %v2633_v13 = vmul.f32 %v14012_v62, %v14726_v4 }
 0x379   : > { %v1851_v8 = vadd.f32 %v1780_v46, %v1607_v30  ;;  %v2268_v41 = vsel %vm1224_vm1, %v2266_v20, %v13768_v42  ;;  %v13770_v37 = vrot.slane %v12000_v45, 2  ;;  %v12011_v23 = vmul.f32 %v14012_v62, %v14745_v40 }
 0x37a   : > { %v4536_v28 = vadd.f32 %v11899_v61, %v4292_v56  ;;  %v2755_v48 = vrot.slane %v2633_v13, 2  ;;  %v2877_v17 = vmul.f32 %v13997_v36, %v14728_v18  ;;  %v12018_v25 = vmul.f32 %v13997_v36, %v14748_v29 }
 0x37b   : > { %v2095_v46 = vadd.f32 %v2024_v0, %v1851_v8  ;;  %v2513_v20 = vsel %vm2445_vm2, %v2511_v49, %v13770_v37  ;;  %v13772_v1 = vrot.slane %v12011_v23, 2  ;;  %v3121_v30 = vmul.f32 %v14151_v53, %v14730_v57 }
 0x37c   : > { %v4780_v61 = vadd.f32 %v11904_v9, %v4536_v28  ;;  %v2999_v56 = vrot.slane %v2877_v17, 2  ;;  %v13771_v13 = vrot.slane %v12018_v25, 2  ;;  %v12030_v42 = vmul.f32 %v14151_v53, %v14750_v43 }
 0x37d   : > { %v2339_v47 = vadd.f32 %v2268_v41, %v2095_v46  ;;  %v2757_v0 = vsel %vm2445_vm2, %v2755_v48, %v13772_v1  ;;  %v3243_v49 = vrot.slane %v3121_v30, 2  ;;  %v3365_v8 = vmul.f32 %v13960_v39, %v14732_v14 }
 0x37e   : > { %v5025_v37 = vadd.f32 %v11909_v63, %v4780_v61  ;;  %v3001_v9 = vsel %vm2445_vm2, %v2999_v56, %v13771_v13  ;;  %v13774_v28 = vrot.slane %v12030_v42, 2  ;;  %v12044_v17 = vmul.f32 %v13960_v39, %v14751_v21 }
 0x37f   : > { %v2584_v41 = vadd.f32 %v2513_v20, %v2339_v47  ;;  %v3487_v46 = vrot.slane %v3365_v8, 2  ;;  %v3609_v48 = vmul.f32 %v13961_v60, %v14724_v31  ;;  %v12050_v30 = vmul.f32 %v13961_v60, %v14741_v58 }
 0x380   : > { %v5269_v63 = vadd.f32 %v11920_v32, %v5025_v37  ;;  %v3245_v61 = vsel %vm2445_vm2, %v3243_v49, %v13774_v28  ;;  %v13776_v56 = vrot.slane %v12044_v17, 2  ;;  %v3854_v13 = vmul.f32 %v13962_v12, %v14726_v4 }
 0x381   : > { %v2828_v47 = vadd.f32 %v2757_v0, %v2584_v41  ;;  %v3732_v20 = vrot.slane %v3609_v48, 3  ;;  %v13775_v8 = vrot.slane %v12050_v30, 3  ;;  %v12062_v1 = vmul.f32 %v13962_v12, %v14745_v40 }
 0x382   : > { %v5513_v51 = vadd.f32 %v11937_v54, %v5269_v63  ;;  %v3489_v32 = vsel %vm2445_vm2, %v3487_v46, %v13776_v56  ;;  %v3976_v37 = vrot.slane %v3854_v13, 3  ;;  %v4098_v49 = vmul.f32 %v14652_v26, %v14728_v18 }
 0x383   : > { %v3072_v28 = vadd.f32 %v3001_v9, %v2828_v47  ;;  %v3734_v0 = vsel %vm3666_vm3, %v3732_v20, %v13775_v8  ;;  %v13781_v41 = vrot.slane %v12062_v1, 3  ;;  %v12076_v48 = vmul.f32 %v14652_v26, %v14748_v29 }
 0x384   : > { %v5757_v54 = vadd.f32 %v11942_v6, %v5513_v51  ;;  %v4220_v63 = vrot.slane %v4098_v49, 3  ;;  %v4342_v13 = vmul.f32 %v14717_v59, %v14730_v57  ;;  %v12083_v9 = vmul.f32 %v14717_v59, %v14750_v43 }
 0x385   : > { %v6798_v46 = vpop.eup %6797  ;;  %v3316_v47 = vadd.f32 %v3245_v61, %v3072_v28  ;;  %v3978_v20 = vsel %vm3666_vm3, %v3976_v37, %v13781_v41  ;;  %v13780_v8 = vrot.slane %v12076_v48, 3  ;;  %v4586_v6 = vmul.f32 %v14157_v19, %v14732_v14 }
 0x386   : > { %v6263_v51 = vmul.f32 %v6798_v46, %v11870_v3  ;;  %v6001_v49 = vadd.f32 %v11947_v33, %v5757_v54  ;;  %v4464_v56 = vrot.slane %v4342_v13, 3  ;;  %v13779_v26 = vrot.slane %v12083_v9, 3  ;;  %v12105_v3 = vld [vmem:[%s13046_s4] ss:$0 sm:$0xff] }
 0x387   : > { %v3560_v59 = vadd.f32 %v3489_v32, %v3316_v47  ;;  %v4222_v28 = vsel %vm3666_vm3, %v4220_v63, %v13780_v8  ;;  %v12099_v61 = vmul.f32 %v14157_v19, %v14751_v21  ;;  %v4708_v37 = vrot.slane %v4586_v6, 3 }
 0x388   : > { %6327 = vst [vmem:[%s6937_s10 + $0x1c0] sm:$0xff] %v6263_v51  ;;  %v12108_v33 = vadd.f32 %v12105_v3, %v6001_v49  ;;  %v4466_v32 = vsel %vm3666_vm3, %v4464_v56, %v13779_v26  ;;  %v4830_v54 = vmul.f32 %v14027_v15, %v14724_v31  ;;  %v12117_v63 = vmul.f32 %v14027_v15, %v14741_v58 }
 0x389   : > { %v3805_v13 = vadd.f32 %v3734_v0, %v3560_v59  ;;  %v13786_v46 = vrot.slane %v12099_v61, 3  ;;  %v5075_v47 = vmul.f32 %v7436_v52, %v14726_v4  ;;  %v12124_v6 = vmul.f32 %v7436_v52, %v14745_v40 }
 0x38a   : > { %14752 = vst [vmem:[#allocation72_spill] sm:$0xff] %v12108_v33  ;;  %v6563_v51 = vmul.f32 -1.442695, %v12108_v33  ;;  %v4953_v56 = vrot.slane %v4830_v54, 4  ;;  %v13785_v49 = vrot.slane %v12117_v63, 4  ;;  %v5319_v31 = vmul.f32 %v7441_v22, %v14728_v18 }
 0x38b   : > { %v4049_v26 = vadd.f32 %v3978_v20, %v3805_v13  ;;  %v4710_v59 = vsel %vm3666_vm3, %v4708_v37, %v13786_v46  ;;  %v5197_v0 = vrot.slane %v5075_v47, 4  ;;  %v13784_v8 = vrot.slane %v12124_v6, 4 }
 0x38c   : > { %6799 = vpow2.f32 %v6563_v51  ;;  %v4955_v41 = vsel %vm4887_vm4, %v4953_v56, %v13785_v49  ;;  %v12139_v54 = vmul.f32 %v7441_v22, %v14748_v29  ;;  %v5441_v33 = vrot.slane %v5319_v31, 4 }
 0x38d   : > { %v4293_v4 = vadd.f32 %v4222_v28, %v4049_v26  ;;  %v5199_v20 = vsel %vm4887_vm4, %v5197_v0, %v13784_v8  ;;  %v5563_v37 = vmul.f32 %v14101_v34, %v14730_v57  ;;  %v12148_v13 = vmul.f32 %v14101_v34, %v14750_v43 }
 0x38e   : > { %14753 = vst [vmem:[#allocation60_spill] sm:$0xff] %v12139_v54  ;;  %v13790_v47 = vrot.slane %v12139_v54, 4  ;;  %v5807_v51 = vmul.f32 %v14102_v50, %v14732_v14  ;;  %v12155_v56 = vmul.f32 %v14102_v50, %v14751_v21  ;;  %v815_v26 = vmul.f32 %v14725_v44, %v14741_v58 }
 0x38f   : > { %14754 = vst [vmem:[#allocation18_spill] sm:$0xff] %v12148_v13  ;;  %v4537_v28 = vadd.f32 %v4466_v32, %v4293_v4  ;;  %v5685_v31 = vrot.slane %v5563_v37, 4  ;;  %v13794_v0 = vrot.slane %v12148_v13, 4  ;;  %v883_v8 = vmul.f32 %v14727_v2, %v14745_v40 }
 0x390   : > { %14755 = vst [vmem:[#allocation21_spill] sm:$0xff] %v12155_v56  ;;  %v5443_v49 = vsel %vm4887_vm4, %v5441_v33, %v13790_v47  ;;  %v5929_v46 = vrot.slane %v5807_v51, 4  ;;  %v13798_v14 = vrot.slane %v12155_v56, 4  ;;  %v951_v57 = vmul.f32 %v14729_v16, %v14748_v29  ;;  %v14756_v51 = vld [vmem:[#allocation2_spill] sm:$0xff]  ;;  %v14757_v29 = vld [vmem:[#allocation47_spill] sm:$0xff] }
 0x391   : > { %v4781_v18 = vadd.f32 %v4710_v59, %v4537_v28  ;;  %v5687_v4 = vsel %vm4887_vm4, %v5685_v31, %v13794_v0  ;;  %v915_v58 = vadd.f32 %v883_v8, %v815_v26  ;;  %v1019_v32 = vmul.f32 %v14731_v55, %v14750_v43  ;;  %v14758_v59 = vld [vmem:[#allocation3_spill] sm:$0xff]  ;;  %v14759_v31 = vld [vmem:[#allocation49_spill] sm:$0xff]  ;;  %v14760_v8 = vld [vmem:[#allocation4_spill] sm:$0xff] }
 0x392   : > { %v5931_v37 = vsel %vm4887_vm4, %v5929_v46, %v13798_v14  ;;  %v1087_v33 = vmul.f32 %v14733_v35, %v14751_v21  ;;  %v1169_v47 = vmul.f32 %v14756_v51, %v14696_v38  ;;  %v1414_v28 = vmul.f32 %v14758_v59, %v14757_v29  ;;  %v14761_v0 = vld [vmem:[#allocation52_spill] sm:$0xff]  ;;  %v14762_v46 = vld [vmem:[#allocation58_spill] sm:$0xff] }
 0x393   : > { %v5026_v40 = vadd.f32 %v4955_v41, %v4781_v18  ;;  %v983_v13 = vadd.f32 %v951_v57, %v915_v58  ;;  %v1658_v26 = vmul.f32 %v14760_v8, %v14759_v31  ;;  %v1902_v43 = vmul.f32 %v14749_v5, %v14761_v0  ;;  %v14763_v18 = vld [vmem:[#allocation7_spill] sm:$0xff] }
 0x394   : > { %v1293_v55 = vrot.slane %v1169_v47, 1  ;;  %v1537_v56 = vrot.slane %v1414_v28, 1  ;;  %v2146_v14 = vmul.f32 %v14702_v27, %v14762_v46  ;;  %v2390_v21 = vmul.f32 %v14688_v24, %v14696_v38  ;;  %v14765_v58 = vld [vmem:[#allocation27_spill] sm:$0xff] }
 0x395   : > { %v5270_v35 = vadd.f32 %v5199_v20, %v5026_v40  ;;  %v1051_v51 = vadd.f32 %v1019_v32, %v983_v13  ;;  %v1781_v16 = vrot.slane %v1658_v26, 1  ;;  %v2025_v59 = vrot.slane %v1902_v43, 1 }
 0x396   : > { %v14764_v57 = vrot.slane %v14763_v18, 1  ;;  %v14766_v8 = vrot.slane %v14765_v58, 1  ;;  %v2269_v47 = vrot.slane %v2146_v14, 1  ;;  %v2514_v28 = vrot.slane %v2390_v21, 2 }
 0x397   : > { %v5514_v54 = vadd.f32 %v5443_v49, %v5270_v35  ;;  %v1119_v2 = vadd.f32 %v1087_v33, %v1051_v51  ;;  %v14767_v27 = vrot.slane %v11965_v7, 1  ;;  %v14768_v40 = vrot.slane %v11977_v11, 1 }
 0x398   : > { %v1294_v41 = vsel %vm1224_vm1, %v14764_v57, %v1293_v55  ;;  %v1538_v5 = vsel %vm1224_vm1, %v14766_v8, %v1537_v56  ;;  %v14769_v20 = vrot.slane %v11990_v10, 1  ;;  %v14770_v13 = vrot.slane %v12000_v45, 2 }
 0x399   : > { %v1782_v24 = vsel %vm1224_vm1, %v14767_v27, %v1781_v16  ;;  %v2026_v43 = vsel %vm1224_vm1, %v14768_v40, %v2025_v59  ;;  %v2635_v14 = vmul.f32 %v14012_v62, %v14757_v29  ;;  %v2879_v35 = vmul.f32 %v13997_v36, %v14759_v31  ;;  %v6800_v27 = vpop.eup %6799  ;;  %v14776_v40 = vld [vmem:[#allocation74_spill] sm:$0xff] }
 0x39a   : > { %v2270_v55 = vsel %vm1224_vm1, %v14769_v20, %v2269_v47  ;;  %v2515_v56 = vsel %vm2445_vm2, %v14770_v13, %v2514_v28  ;;  %v5758_v16 = vadd.f32 %v5687_v4, %v5514_v54  ;;  %v1364_v11 = vadd.f32 %v1294_v41, %v1119_v2 }
 0x39b   : > { %v3123_v21 = vmul.f32 %v14151_v53, %v14761_v0  ;;  %v3367_v10 = vmul.f32 %v13960_v39, %v14762_v46  ;;  %v6168_v7 = vadd.f32 1.0, %v6800_v27  ;;  %v2758_v45 = vrot.slane %v2635_v14, 2 }
 0x39c   : > { %v3002_v49 = vrot.slane %v2879_v35, 2  ;;  %v3611_v32 = vmul.f32 %v13961_v60, %v14696_v38  ;;  %v6002_v33 = vadd.f32 %v5931_v37, %v5758_v16  ;;  %v1608_v51 = vadd.f32 %v1538_v5, %v1364_v11 }
 0x39d   : > { %v3246_v59 = vrot.slane %v3123_v21, 2  ;;  %v3490_v8 = vrot.slane %v3367_v10, 2  ;;  %6801 = vrcp.f32 %v6168_v7  ;;  %v14771_v2 = vrot.slane %v12011_v23, 2 }
 0x39e   : > { %v14772_v4 = vrot.slane %v12018_v25, 2  ;;  %v3735_v18 = vrot.slane %v3611_v32, 3  ;;  %v12226_v57 = vadd.f32 %v12105_v3, %v6002_v33  ;;  %v1852_v41 = vadd.f32 %v1782_v24, %v1608_v51  ;;  %v14777_v24 = vld [vmem:[#allocation75_spill] sm:$0xff] }
 0x39f   : > { %v2759_v54 = vsel %vm2445_vm2, %v14771_v2, %v2758_v45  ;;  %v14773_v37 = vrot.slane %v12030_v42, 2  ;;  %v14774_v58 = vrot.slane %v12044_v17, 2  ;;  %v14775_v23 = vrot.slane %v12050_v30, 3  ;;  %v6650_v45 = vld [vmem:[%s12248_s12] sm:$0xff]  }
 0x3a0   : > { %v3003_v26 = vsel %vm2445_vm2, %v14772_v4, %v3002_v49  ;;  %v3856_v25 = vmul.f32 %v13962_v12, %v14757_v29  ;;  %v4100_v20 = vmul.f32 %v14776_v40, %v14759_v31  ;;  %v4344_v42 = vmul.f32 %v14777_v24, %v14761_v0 }
 0x3a1   : > { %v3247_v5 = vsel %vm2445_vm2, %v14773_v37, %v3246_v59  ;;  %v3491_v47 = vsel %vm2445_vm2, %v14774_v58, %v3490_v8  ;;  %v12237_v28 = vsel %vm3666_vm3, %v14775_v23, %v3735_v18  ;;  %v6564_v17 = vmul.f32 -1.442695, %v12226_v57  ;;  %v14784_v23 = vld [vmem:[#allocation44_spill] sm:$0xff] }
 0x3a2   : > { %v2096_v30 = vadd.f32 %v2026_v43, %v1852_v41  ;;  %v4588_v13 = vmul.f32 %v14157_v19, %v14762_v46  ;;  %v4832_v14 = vmul.f32 %v14027_v15, %v14696_v38  ;;  %v3979_v35 = vrot.slane %v3856_v25, 3 }
 0x3a3   : > { %v4223_v27 = vrot.slane %v4100_v20, 3  ;;  %v4467_v16 = vrot.slane %v4344_v42, 3  ;;  %v5077_v11 = vmul.f32 %v7436_v52, %v14757_v29  ;;  %6803 = vpow2.f32 %v6564_v17 }
 0x3a4   : > { %v2340_v21 = vadd.f32 %v2270_v55, %v2096_v30  ;;  %v4711_v10 = vrot.slane %v4588_v13, 3  ;;  %v4956_v7 = vrot.slane %v4832_v14, 4  ;;  %v14778_v49 = vrot.slane %v12062_v1, 3  ;;  %v14786_v30 = vld [vmem:[#allocation56_spill] sm:$0xff] }
 0x3a5   : > { %v14779_v32 = vrot.slane %v12076_v48, 3  ;;  %v14780_v38 = vrot.slane %v12083_v9, 3  ;;  %v5200_v59 = vrot.slane %v5077_v11, 4  ;;  %v14781_v55 = vrot.slane %v12099_v61, 3 }
 0x3a6   : > { %v3980_v43 = vsel %vm3666_vm3, %v14778_v49, %v3979_v35  ;;  %v2585_v8 = vadd.f32 %v2515_v56, %v2340_v21  ;;  %v14782_v1 = vrot.slane %v12117_v63, 4  ;;  %v5321_v48 = vmul.f32 %v7441_v22, %v14759_v31  ;;  %v14787_v35 = vld [vmem:[#allocation60_spill] sm:$0xff]  ;;  %v14790_v21 = vld [vmem:[#allocation57_spill] sm:$0xff] }
 0x3a7   : > { %v12264_v33 = vsel %vm3666_vm3, %v14779_v32, %v4223_v27  ;;  %v12269_v51 = vsel %vm3666_vm3, %v14780_v38, %v4467_v16  ;;  %v12274_v2 = vsel %vm3666_vm3, %v14781_v55, %v4711_v10  ;;  %v14783_v9 = vrot.slane %v12124_v6, 4  ;;  %v14785_v6 = vld [vmem:[#allocation48_spill] sm:$0xff]  ;;  %v14793_v32 = vld [vmem:[#allocation21_spill] sm:$0xff] }
 0x3a8   : > { %v12279_v4 = vsel %vm4887_vm4, %v14782_v1, %v4956_v7  ;;  %v5565_v56 = vmul.f32 %v14101_v34, %v14761_v0  ;;  %v5809_v61 = vmul.f32 %v14102_v50, %v14762_v46  ;;  %v6651_v41 = vunpack.c.l.bf16 %v6650_v45  ;;  %v14791_v7 = vld [vmem:[#allocation18_spill] sm:$0xff] }
 0x3a9   : > { %v12286_v18 = vsel %vm4887_vm4, %v14783_v9, %v5200_v59  ;;  %v2829_v37 = vadd.f32 %v2759_v54, %v2585_v8  ;;  %v5444_v63 = vrot.slane %v5321_v48, 4  ;;  %v6652_v58 = vunpack.c.h.bf16 %v6650_v45  ;;  %v14789_v54 = vld [vmem:[#allocation50_spill] sm:$0xff] }
 0x3aa   : > { %v816_v25 = vmul.f32 %v14725_v44, %v14784_v23  ;;  %v5688_v20 = vrot.slane %v5565_v56, 4  ;;  %v5932_v42 = vrot.slane %v5809_v61, 4  ;;  %v574_v17 = vmul.f32 0.0, %v6651_v41  ;;  %v6802_v55 = vpop.eup %6801  ;;  %v14795_v9 = vld [vmem:[#allocation54_spill] sm:$0xff]  ;;  %v14796_v56 = vld [vmem:[#allocation59_spill] sm:$0xff] }
 0x3ab   : > { %v884_v13 = vmul.f32 %v14786_v30, %v14785_v6  ;;  %v3073_v14 = vadd.f32 %v3003_v26, %v2829_v37  ;;  %v14788_v27 = vrot.slane %v14787_v35, 4  ;;  %v12301_v11 = vmul.f32 0.0, %v6652_v58  ;;  %v14797_v41 = vld [vmem:[#allocation2_spill] sm:$0xff]  ;;  %v14800_v35 = vld [vmem:[#allocation45_spill] sm:$0xff] }
 0x3ac   : > { %v952_v10 = vmul.f32 %v14790_v21, %v14789_v54  ;;  %v14792_v45 = vrot.slane %v14791_v7, 4  ;;  %v14794_v38 = vrot.slane %v14793_v32, 4  ;;  %v673_v26 = vrot.slane %v574_v17, 6 }
 0x3ad   : > { %v12299_v16 = vsel %vm4887_vm4, %v14788_v27, %v5444_v63  ;;  %v916_v8 = vadd.f32 %v884_v13, %v816_v25  ;;  %v3317_v1 = vadd.f32 %v3247_v5, %v3073_v14  ;;  %v13807_v48 = vrot.slane %v12301_v11, 6  ;;  %v14798_v63 = vld [vmem:[#allocation72_spill] sm:$0xff]  ;;  %v14802_v13 = vld [vmem:[#allocation62_spill] sm:$0xff] }
 0x3ae   : > { %v12308_v49 = vsel %vm4887_vm4, %v14792_v45, %v5688_v20  ;;  %v12313_v59 = vsel %vm4887_vm4, %v14794_v38, %v5932_v42  ;;  %v1020_v61 = vmul.f32 %v14796_v56, %v14795_v9  ;;  %v1170_v37 = vmul.f32 %v14797_v41, %v14784_v23  ;;  %v14804_v38 = vld [vmem:[#allocation46_spill] sm:$0xff] }
 0x3af   : > { %v6264_v58 = vmul.f32 %v6802_v55, %v14798_v63  ;;  %v12322_v20 = vsel %vm618_vm0, 0.0, %v673_v26  ;;  %v984_v42 = vadd.f32 %v952_v10, %v916_v8  ;;  %v12326_v17 = vmul.f32 %v14797_v41, %v14800_v35  ;;  %v14803_v10 = vld [vmem:[#allocation3_spill] sm:$0xff]  ;;  %v14808_v41 = vld [vmem:[#allocation53_spill] sm:$0xff] }
 0x3b0   : > { %14799 = vst [vmem:[#allocation30_spill] sm:$0xff] %v12322_v20  ;;  %v3561_v25 = vadd.f32 %v3491_v47, %v3317_v1  ;;  %v12331_v5 = vsel %vm618_vm0, %v673_v26, %v13807_v48  ;;  %v1088_v14 = vmul.f32 %v14802_v13, %v12322_v20  ;;  %v1295_v27 = vrot.slane %v1170_v37, 1  ;;  %v14805_v26 = vld [vmem:[#allocation4_spill] sm:$0xff]  ;;  %v14806_v1 = vld [vmem:[#allocation51_spill] sm:$0xff] }
 0x3b1   : > { %14801 = vst [vmem:[#allocation32_spill] sm:$0xff] %v12331_v5  ;;  %6328 = vst [vmem:[%s6937_s10 + $0x1c8] sm:$0xff] %v6264_v58  ;;  %v1052_v7 = vadd.f32 %v1020_v61, %v984_v42  ;;  %v13815_v45 = vrot.slane %v12326_v17, 1  ;;  %v1415_v32 = vmul.f32 %v14803_v10, %v14785_v6  ;;  %v12341_v8 = vmul.f32 %v14803_v10, %v14804_v38  ;;  %v14807_v61 = vld [vmem:[#allocation5_spill] sm:$0xff]  ;;  %v6804_v58 = vpop.eup %6803 }
 0x3b2   : > { %v3806_v47 = vadd.f32 %v12237_v28, %v3561_v25  ;;  %v1659_v55 = vmul.f32 %v14805_v26, %v14789_v54  ;;  %v12348_v63 = vmul.f32 %v14805_v26, %v14806_v1  ;;  %v1903_v37 = vmul.f32 %v14807_v61, %v14795_v9 }
 0x3b3   : > { %v1120_v42 = vadd.f32 %v1088_v14, %v1052_v7  ;;  %v1297_v48 = vsel %vm1224_vm1, %v1295_v27, %v13815_v45  ;;  %v1539_v0 = vrot.slane %v1415_v32, 1  ;;  %v13814_v13 = vrot.slane %v12341_v8, 1  ;;  %v14809_v32 = vld [vmem:[#allocation63_spill] sm:$0xff] }
 0x3b4   : > { %v6169_v28 = vadd.f32 1.0, %v6804_v58  ;;  %v4050_v25 = vadd.f32 %v3980_v43, %v3806_v47  ;;  %v1783_v10 = vrot.slane %v1659_v55, 1  ;;  %v13813_v31 = vrot.slane %v12348_v63, 1  ;;  %v14810_v58 = vld [vmem:[#allocation64_spill] sm:$0xff] }
 0x3b5   : > { %v1365_v56 = vadd.f32 %v1297_v48, %v1120_v42  ;;  %v1541_v26 = vsel %vm1224_vm1, %v1539_v0, %v13814_v13  ;;  %v12362_v14 = vmul.f32 %v14807_v61, %v14808_v41  ;;  %v2027_v7 = vrot.slane %v1903_v37, 1 }
 0x3b6   : > { %6805 = vrcp.f32 %v6169_v28  ;;  %v4294_v27 = vadd.f32 %v12264_v33, %v4050_v25  ;;  %v1785_v43 = vsel %vm1224_vm1, %v1783_v10, %v13813_v31  ;;  %v2147_v47 = vmul.f32 %v14809_v32, %v12322_v20 }
 0x3b7   : > { %v1609_v48 = vadd.f32 %v1541_v26, %v1365_v56  ;;  %v13817_v55 = vrot.slane %v12362_v14, 1  ;;  %v12373_v0 = vmul.f32 %v14809_v32, %v12331_v5  ;;  %v2391_v37 = vmul.f32 %v14810_v58, %v14784_v23 }
 0x3b8   : > { %v4538_v42 = vadd.f32 %v12269_v51, %v4294_v27  ;;  %v2271_v33 = vrot.slane %v2147_v47, 1  ;;  %v12380_v28 = vmul.f32 %v14810_v58, %v14800_v35  ;;  %v2636_v10 = vmul.f32 %v14012_v62, %v14785_v6 }
 0x3b9   : > { %v1853_v56 = vadd.f32 %v1785_v43, %v1609_v48  ;;  %v2029_v26 = vsel %vm1224_vm1, %v2027_v7, %v13817_v55  ;;  %v13816_v25 = vrot.slane %v12373_v0, 1  ;;  %v2516_v31 = vrot.slane %v2391_v37, 2 }
 0x3ba   : > { %v4782_v13 = vadd.f32 %v12274_v2, %v4538_v42  ;;  %v13818_v51 = vrot.slane %v12380_v28, 2  ;;  %v12392_v27 = vmul.f32 %v14012_v62, %v14804_v38  ;;  %v2760_v47 = vrot.slane %v2636_v10, 2 }
 0x3bb   : > { %v2097_v45 = vadd.f32 %v2029_v26, %v1853_v56  ;;  %v2273_v43 = vsel %vm1224_vm1, %v2271_v33, %v13816_v25  ;;  %v2880_v7 = vmul.f32 %v13997_v36, %v14789_v54  ;;  %v12401_v48 = vmul.f32 %v13997_v36, %v14806_v1 }
 0x3bc   : > { %v5027_v2 = vadd.f32 %v12279_v4, %v4782_v13  ;;  %v2518_v37 = vsel %vm2445_vm2, %v2516_v31, %v13818_v51  ;;  %v13820_v42 = vrot.slane %v12392_v27, 2  ;;  %v3124_v10 = vmul.f32 %v14151_v53, %v14795_v9 }
 0x3bd   : > { %14811 = vst [vmem:[#allocation78_spill] sm:$0xff] %v12401_v48  ;;  %v2341_v56 = vadd.f32 %v2273_v43, %v2097_v45  ;;  %v3004_v33 = vrot.slane %v2880_v7, 2  ;;  %v13819_v26 = vrot.slane %v12401_v48, 2  ;;  %v12413_v25 = vmul.f32 %v14151_v53, %v14808_v41 }
 0x3be   : > { %v5271_v55 = vadd.f32 %v12286_v18, %v5027_v2  ;;  %v2762_v4 = vsel %vm2445_vm2, %v2760_v47, %v13820_v42  ;;  %v3248_v31 = vrot.slane %v3124_v10, 2  ;;  %v3368_v13 = vmul.f32 %v13960_v39, %v12322_v20 }
 0x3bf   : > { %14812 = vst [vmem:[#allocation11_spill] sm:$0xff] %v12413_v25  ;;  %v2586_v51 = vadd.f32 %v2518_v37, %v2341_v56  ;;  %v3006_v45 = vsel %vm2445_vm2, %v3004_v33, %v13819_v26  ;;  %v13821_v43 = vrot.slane %v12413_v25, 2  ;;  %v12427_v7 = vmul.f32 %v13960_v39, %v12331_v5 }
 0x3c0   : > { %v5515_v18 = vadd.f32 %v12299_v16, %v5271_v55  ;;  %v3492_v2 = vrot.slane %v3368_v13, 2  ;;  %v3612_v47 = vmul.f32 %v13961_v60, %v14784_v23  ;;  %v12434_v10 = vmul.f32 %v13961_v60, %v14800_v35 }
 0x3c1   : > { %v2830_v37 = vadd.f32 %v2762_v4, %v2586_v51  ;;  %v3250_v56 = vsel %vm2445_vm2, %v3248_v31, %v13821_v43  ;;  %v13825_v33 = vrot.slane %v12427_v7, 2  ;;  %v3857_v26 = vmul.f32 %v13962_v12, %v14785_v6 }
 0x3c2   : > { %v5759_v16 = vadd.f32 %v12308_v49, %v5515_v18  ;;  %v3737_v55 = vrot.slane %v3612_v47, 3  ;;  %v12446_v42 = vmul.f32 %v13962_v12, %v14804_v38  ;;  %v12450_v4 = vmul.f32 %v14807_v61, %v14762_v46 }
 0x3c3   : > { %v6806_v51 = vpop.eup %6805  ;;  %v3074_v31 = vadd.f32 %v3006_v45, %v2830_v37  ;;  %v3494_v43 = vsel %vm2445_vm2, %v3492_v2, %v13825_v33  ;;  %v4101_v49 = vmul.f32 %v14776_v40, %v14789_v54  ;;  %v3981_v13 = vrot.slane %v3857_v26, 3 }
 0x3c4   : > { %v6265_v18 = vmul.f32 %v6806_v51, %v12226_v57  ;;  %v6003_v47 = vadd.f32 %v12313_v59, %v5759_v16  ;;  %v13826_v25 = vrot.slane %v12446_v42, 3  ;;  %v12462_v61 = vmul.f32 %v14776_v40, %v14806_v1 }
 0x3c5   : > { %v3318_v48 = vadd.f32 %v3250_v56, %v3074_v31  ;;  %v4225_v45 = vrot.slane %v4101_v49, 3  ;;  %v4345_v37 = vmul.f32 %v14777_v24, %v14795_v9  ;;  %v14814_v57 = vrot.slane %v12434_v10, 3 }
 0x3c6   : > { %6329 = vst [vmem:[%s6937_s10 + $0x1d0] sm:$0xff] %v6265_v18  ;;  %v12468_v2 = vadd.f32 %v12105_v3, %v6003_v47  ;;  %v12475_v26 = vmul.f32 %v14777_v24, %v14808_v41  ;;  %v4589_v56 = vmul.f32 %v14157_v19, %v12322_v20  ;;  %v13829_v51 = vrot.slane %v12462_v61, 3 }
 0x3c7   : > { %v3739_v59 = vsel %vm3666_vm3, %v3737_v55, %v14814_v57  ;;  %v3562_v16 = vadd.f32 %v3494_v43, %v3318_v48  ;;  %v4469_v31 = vrot.slane %v4345_v37, 3  ;;  %v12482_v49 = vmul.f32 %v14157_v19, %v12331_v5 }
 0x3c8   : > { %14813 = vst [vmem:[#allocation17_spill] sm:$0xff] %v12468_v2  ;;  %v6565_v18 = vmul.f32 -1.442695, %v12468_v2  ;;  %v3983_v55 = vsel %vm3666_vm3, %v3981_v13, %v13826_v25  ;;  %v13828_v47 = vrot.slane %v12475_v26, 3  ;;  %v4833_v57 = vmul.f32 %v14027_v15, %v14784_v23 }
 0x3c9   : > { %14815 = vst [vmem:[#allocation29_spill] sm:$0xff] %v12482_v49  ;;  %v3807_v33 = vadd.f32 %v3739_v59, %v3562_v16  ;;  %v4227_v48 = vsel %vm3666_vm3, %v4225_v45, %v13829_v51  ;;  %v4713_v43 = vrot.slane %v4589_v56, 3  ;;  %v12496_v37 = vmul.f32 %v14027_v15, %v14800_v35 }
 0x3ca   : > { %6807 = vpow2.f32 %v6565_v18  ;;  %v4471_v13 = vsel %vm3666_vm3, %v4469_v31, %v13828_v47  ;;  %v13834_v25 = vrot.slane %v12482_v49, 3  ;;  %v5078_v23 = vmul.f32 %v7436_v52, %v14785_v6 }
 0x3cb   : > { %v4051_v59 = vadd.f32 %v3983_v55, %v3807_v33  ;;  %v4958_v16 = vrot.slane %v4833_v57, 4  ;;  %v12507_v45 = vmul.f32 %v7436_v52, %v14804_v38  ;;  %v5322_v18 = vmul.f32 %v7441_v22, %v14789_v54 }
 0x3cc   : > { %v5202_v56 = vrot.slane %v5078_v23, 4  ;;  %v12513_v31 = vmul.f32 %v7441_v22, %v14806_v1  ;;  %v5566_v47 = vmul.f32 %v14101_v34, %v14795_v9  ;;  %v12520_v55 = vmul.f32 %v14101_v34, %v14808_v41 }
 0x3cd   : > { %14816 = vst [vmem:[#allocation10_spill] sm:$0xff] %v12507_v45  ;;  %v4295_v51 = vadd.f32 %v4227_v48, %v4051_v59  ;;  %v4715_v57 = vsel %vm3666_vm3, %v4713_v43, %v13834_v25  ;;  %v5446_v23 = vrot.slane %v5322_v18, 4  ;;  %v5810_v54 = vmul.f32 %v14102_v50, %v12322_v20  ;;  %v14826_v25 = vld [vmem:[#allocation3_spill] sm:$0xff]  ;;  %v14827_v20 = vld [vmem:[#allocation62_spill] sm:$0xff] }
 0x3ce   : > { %14817 = vst [vmem:[#allocation31_spill] sm:$0xff] %v12513_v31  ;;  %v2030_v6 = vrot.slane %v12450_v4, 1  ;;  %v14818_v48 = vrot.slane %v12496_v37, 4  ;;  %v12534_v33 = vmul.f32 %v14102_v50, %v12331_v5  ;;  %v14819_v49 = vrot.slane %v12507_v45, 4 }
 0x3cf   : > { %v4539_v9 = vadd.f32 %v4471_v13, %v4295_v51  ;;  %v5690_v18 = vrot.slane %v5566_v47, 4  ;;  %v817_v2 = vmul.f32 %v14725_v44, %v14800_v35  ;;  %v14820_v51 = vrot.slane %v12513_v31, 4 }
 0x3d0   : > { %v4960_v59 = vsel %vm4887_vm4, %v4958_v16, %v14818_v48  ;;  %v5204_v43 = vsel %vm4887_vm4, %v5202_v56, %v14819_v49  ;;  %v5934_v16 = vrot.slane %v5810_v54, 4  ;;  %v885_v48 = vmul.f32 %v14786_v30, %v14804_v38  ;;  %v14824_v54 = vld [vmem:[#allocation59_spill] sm:$0xff]  ;;  %v14829_v38 = vld [vmem:[#allocation4_spill] sm:$0xff] }
 0x3d1   : > { %v4783_v4 = vadd.f32 %v4715_v57, %v4539_v9  ;;  %v5448_v13 = vsel %vm4887_vm4, %v5446_v23, %v14820_v51  ;;  %v14821_v45 = vrot.slane %v12301_v11, 6  ;;  %v953_v47 = vmul.f32 %v14790_v21, %v14806_v1  ;;  %v14823_v9 = vld [vmem:[#allocation2_spill] sm:$0xff]  ;;  %v14825_v51 = vld [vmem:[#allocation49_spill] sm:$0xff] }
 0x3d2   : > { %v1172_v35 = vmul.f32 %v14823_v9, %v14757_v29  ;;  %v917_v57 = vadd.f32 %v885_v48, %v817_v2  ;;  %v1021_v23 = vmul.f32 %v14824_v54, %v14808_v41  ;;  %v1417_v31 = vmul.f32 %v14826_v25, %v14825_v51 }
 0x3d3   : > { %v12551_v49 = vsel %vm618_vm0, %v14821_v45, 0.0  ;;  %v5028_v56 = vadd.f32 %v4960_v59, %v4783_v4  ;;  %v1089_v11 = vmul.f32 %v14827_v20, %v12331_v5  ;;  %v14828_v45 = vld [vmem:[#allocation52_spill] sm:$0xff]  ;;  %v2393_v2 = vmul.f32 %v14810_v58, %v14757_v29 }
 0x3d4   : > { %14822 = vst [vmem:[#allocation66_spill] sm:$0xff] %v12551_v49  ;;  %v1298_v30 = vrot.slane %v1172_v35, 1  ;;  %v1661_v44 = vmul.f32 %v14829_v38, %v14828_v45  ;;  %v2149_v21 = vmul.f32 %v14809_v32, %v12551_v49  ;;  %v985_v9 = vadd.f32 %v953_v47, %v917_v57 }
 0x3d5   : > { %v5272_v1 = vadd.f32 %v5204_v43, %v5028_v56  ;;  %v1542_v59 = vrot.slane %v1417_v31, 1  ;;  %v14830_v4 = vrot.slane %v12520_v55, 4  ;;  %v14831_v25 = vrot.slane %v12534_v33, 4 }
 0x3d6   : > { %v1786_v20 = vrot.slane %v1661_v44, 1  ;;  %v2638_v38 = vmul.f32 %v14012_v62, %v14825_v51  ;;  %v1053_v43 = vadd.f32 %v1021_v23, %v985_v9  ;;  %v14832_v31 = vrot.slane %v12326_v17, 1 }
 0x3d7   : > { %v5692_v48 = vsel %vm4887_vm4, %v5690_v18, %v14830_v4  ;;  %v5936_v35 = vsel %vm4887_vm4, %v5934_v16, %v14831_v25  ;;  %v6808_v5 = vpop.eup %6807  ;;  %v5516_v32 = vadd.f32 %v5448_v13, %v5272_v1  ;;  %v14833_v56 = vrot.slane %v12362_v14, 1 }
 0x3d8   : > { %v1299_v47 = vsel %vm1224_vm1, %v14832_v31, %v1298_v30  ;;  %v6170_v18 = vadd.f32 1.0, %v6808_v5  ;;  %v14834_v4 = vrot.slane %v12341_v8, 1  ;;  %v2274_v44 = vrot.slane %v2149_v21, 1 }
 0x3d9   : > { %v2031_v57 = vsel %vm1224_vm1, %v14833_v56, %v2030_v6  ;;  %v2519_v16 = vrot.slane %v2393_v2, 2  ;;  %v5760_v58 = vadd.f32 %v5692_v48, %v5516_v32  ;;  %v1121_v62 = vadd.f32 %v1089_v11, %v1053_v43  ;;  %v14839_v43 = vld [vmem:[#allocation78_spill] sm:$0xff]  ;;  %v14841_v56 = vld [vmem:[#allocation11_spill] sm:$0xff] }
 0x3da   : > { %v1543_v25 = vsel %vm1224_vm1, %v14834_v4, %v1542_v59  ;;  %v14835_v1 = vrot.slane %v12348_v63, 1  ;;  %v2882_v30 = vmul.f32 %v13997_v36, %v14828_v45  ;;  %6809 = vrcp.f32 %v6170_v18 }
 0x3db   : > { %v2763_v17 = vrot.slane %v2638_v38, 2  ;;  %v3126_v6 = vmul.f32 %v14151_v53, %v14762_v46  ;;  %v3370_v5 = vmul.f32 %v13960_v39, %v12551_v49  ;;  %v6004_v8 = vadd.f32 %v5936_v35, %v5760_v58 }
 0x3dc   : > { %v1787_v13 = vsel %vm1224_vm1, %v14835_v1, %v1786_v20  ;;  %v1366_v21 = vadd.f32 %v1299_v47, %v1121_v62  ;;  %v3007_v14 = vrot.slane %v2882_v30, 2  ;;  %v3614_v32 = vmul.f32 %v13961_v60, %v14757_v29 }
 0x3dd   : > { %v3251_v63 = vrot.slane %v3126_v6, 2  ;;  %v3495_v9 = vrot.slane %v3370_v5, 2  ;;  %v3859_v20 = vmul.f32 %v13962_v12, %v14825_v51  ;;  %v4103_v38 = vmul.f32 %v14776_v40, %v14828_v45 }
 0x3de   : > { %v12602_v23 = vadd.f32 %v12105_v3, %v6004_v8  ;;  %v1610_v11 = vadd.f32 %v1543_v25, %v1366_v21  ;;  %v14836_v59 = vrot.slane %v12373_v0, 1  ;;  %v14837_v58 = vrot.slane %v12380_v28, 2 }
 0x3df   : > { %v14838_v48 = vrot.slane %v12392_v27, 2  ;;  %v14840_v31 = vrot.slane %v14839_v43, 2  ;;  %v14842_v18 = vrot.slane %v14841_v56, 2  ;;  %v3740_v25 = vrot.slane %v3614_v32, 3 }
 0x3e0   : > { %v2275_v62 = vsel %vm1224_vm1, %v14836_v59, %v2274_v44  ;;  %v2520_v2 = vsel %vm2445_vm2, %v14837_v58, %v2519_v16  ;;  %v6566_v0 = vmul.f32 -1.442695, %v12602_v23  ;;  %v1854_v44 = vadd.f32 %v1787_v13, %v1610_v11 }
 0x3e1   : > { %v2764_v35 = vsel %vm2445_vm2, %v14838_v48, %v2763_v17  ;;  %v3008_v47 = vsel %vm2445_vm2, %v14840_v31, %v3007_v14  ;;  %v3252_v4 = vsel %vm2445_vm2, %v14842_v18, %v3251_v63  ;;  %v14843_v28 = vrot.slane %v12427_v7, 2  ;;  %v6674_v63 = vld [vmem:[%s12248_s12 + $0x8] sm:$0xff]  }
 0x3e2   : > { %v4347_v27 = vmul.f32 %v14777_v24, %v14762_v46  ;;  %v3984_v1 = vrot.slane %v3859_v20, 3  ;;  %v4228_v30 = vrot.slane %v4103_v38, 3  ;;  %v4591_v17 = vmul.f32 %v14157_v19, %v12551_v49 }
 0x3e3   : > { %v3496_v16 = vsel %vm2445_vm2, %v14843_v28, %v3495_v9  ;;  %v4835_v6 = vmul.f32 %v14027_v15, %v14757_v29  ;;  %6811 = vpow2.f32 %v6566_v0  ;;  %v2098_v5 = vadd.f32 %v2031_v57, %v1854_v44  ;;  %v14851_v44 = vld [vmem:[#allocation10_spill] sm:$0xff] }
 0x3e4   : > { %v4472_v8 = vrot.slane %v4347_v27, 3  ;;  %v5080_v13 = vmul.f32 %v7436_v52, %v14825_v51  ;;  %v4716_v7 = vrot.slane %v4591_v17, 3  ;;  %v5324_v14 = vmul.f32 %v7441_v22, %v14828_v45  ;;  %v14854_v17 = vld [vmem:[#allocation55_spill] sm:$0xff] }
 0x3e5   : > { %v4961_v21 = vrot.slane %v4835_v6, 4  ;;  %v5568_v32 = vmul.f32 %v14101_v34, %v14762_v46  ;;  %v2342_v9 = vadd.f32 %v2275_v62, %v2098_v5  ;;  %v14844_v20 = vrot.slane %v12434_v10, 3  ;;  %v14848_v10 = vld [vmem:[#allocation29_spill] sm:$0xff] }
 0x3e6   : > { %v5205_v38 = vrot.slane %v5080_v13, 4  ;;  %v5812_v57 = vmul.f32 %v14102_v50, %v12551_v49  ;;  %v14845_v11 = vrot.slane %v12446_v42, 3  ;;  %v14846_v58 = vrot.slane %v12462_v61, 3  ;;  %v14855_v13 = vld [vmem:[#allocation46_spill] sm:$0xff] }
 0x3e7   : > { %v3741_v29 = vsel %vm3666_vm3, %v14844_v20, %v3740_v25  ;;  %v14847_v43 = vrot.slane %v12475_v26, 3  ;;  %v14849_v31 = vrot.slane %v14848_v10, 3  ;;  %v2587_v18 = vadd.f32 %v2520_v2, %v2342_v9  ;;  %v6810_v5 = vpop.eup %6809  ;;  %v14858_v20 = vld [vmem:[#allocation50_spill] sm:$0xff] }
 0x3e8   : > { %v3985_v59 = vsel %vm3666_vm3, %v14845_v11, %v3984_v1  ;;  %v4229_v48 = vsel %vm3666_vm3, %v14846_v58, %v4228_v30  ;;  %v14850_v25 = vrot.slane %v12496_v37, 4  ;;  %v5449_v0 = vrot.slane %v5324_v14, 4  ;;  %v14853_v30 = vld [vmem:[#allocation48_spill] sm:$0xff]  ;;  %v14861_v10 = vld [vmem:[#allocation54_spill] sm:$0xff] }
 0x3e9   : > { %v12650_v62 = vsel %vm3666_vm3, %v14847_v43, %v4472_v8  ;;  %v12655_v56 = vsel %vm3666_vm3, %v14849_v31, %v4716_v7  ;;  %v6655_v61 = vunpack.c.l.bf16 %v6674_v63  ;;  %v14852_v28 = vrot.slane %v14851_v44, 4  ;;  %v14862_v31 = vld [vmem:[#allocation57_spill] sm:$0xff]  ;;  %v14863_v44 = vld [vmem:[#allocation30_spill] sm:$0xff] }
 0x3ea   : > { %v12660_v42 = vsel %vm4887_vm4, %v14850_v25, %v4961_v21  ;;  %v5693_v27 = vrot.slane %v5568_v32, 4  ;;  %v6656_v1 = vunpack.c.h.bf16 %v6674_v63  ;;  %v818_v6 = vmul.f32 %v14854_v17, %v14853_v30  ;;  %v14856_v21 = vld [vmem:[#allocation17_spill] sm:$0xff]  ;;  %v14860_v32 = vld [vmem:[#allocation51_spill] sm:$0xff] }
 0x3eb   : > { %v12665_v26 = vsel %vm4887_vm4, %v14852_v28, %v5205_v38  ;;  %v2831_v2 = vadd.f32 %v2764_v35, %v2587_v18  ;;  %v5937_v8 = vrot.slane %v5812_v57, 4  ;;  %v576_v37 = vmul.f32 0.0, %v6655_v61  ;;  %v14859_v38 = vld [vmem:[#allocation56_spill] sm:$0xff] }
 0x3ec   : > { %v819_v7 = vmul.f32 %v14854_v17, %v14855_v13  ;;  %v6266_v14 = vmul.f32 %v6810_v5, %v14856_v21  ;;  %v12672_v9 = vmul.f32 0.0, %v6656_v1  ;;  %v886_v11 = vmul.f32 %v14859_v38, %v14858_v20 }
 0x3ed   : > { %v887_v63 = vmul.f32 %v14859_v38, %v14860_v32  ;;  %v3075_v58 = vadd.f32 %v3008_v47, %v2831_v2  ;;  %v676_v43 = vrot.slane %v576_v37, 6  ;;  %v954_v35 = vmul.f32 %v14862_v31, %v14861_v10  ;;  %v14864_v47 = vld [vmem:[#allocation32_spill] sm:$0xff]  ;;  %v14865_v2 = vld [vmem:[#allocation2_spill] sm:$0xff] }
 0x3ee   : > { %14857 = vst [vmem:[#allocation19_spill] sm:$0xff] %v12672_v9  ;;  %v955_v57 = vmul.f32 %v14862_v31, %v14808_v41  ;;  %6330 = vst [vmem:[%s6937_s10 + $0x1d8] sm:$0xff] %v6266_v14  ;;  %v13851_v18 = vrot.slane %v12672_v9, 6  ;;  %v918_v25 = vadd.f32 %v886_v11, %v818_v6  ;;  %v1022_v28 = vmul.f32 %v14824_v54, %v14863_v44  ;;  %v14866_v14 = vld [vmem:[#allocation62_spill] sm:$0xff] }
 0x3ef   : > { %v919_v61 = vadd.f32 %v887_v63, %v819_v7  ;;  %v3319_v1 = vadd.f32 %v3252_v4, %v3075_v58  ;;  %v12687_v17 = vsel %vm618_vm0, 0.0, %v676_v43  ;;  %v1023_v5 = vmul.f32 %v14824_v54, %v14864_v47 }
 0x3f0   : > { %v1173_v37 = vmul.f32 %v14865_v2, %v14853_v30  ;;  %v12696_v21 = vsel %vm618_vm0, %v676_v43, %v13851_v18  ;;  %v986_v6 = vadd.f32 %v954_v35, %v918_v25  ;;  %v1090_v38 = vmul.f32 %v14866_v14, %v12687_v17  ;;  %v6812_v58 = vpop.eup %6811  ;;  %v14867_v35 = vld [vmem:[#allocation3_spill] sm:$0xff] }
 0x3f1   : > { %v987_v7 = vadd.f32 %v955_v57, %v919_v61  ;;  %v3563_v4 = vadd.f32 %v3496_v16, %v3319_v1  ;;  %v1091_v11 = vmul.f32 %v14866_v14, %v12696_v21  ;;  %v1174_v54 = vmul.f32 %v14865_v2, %v14855_v13  ;;  %v14868_v1 = vld [vmem:[#allocation31_spill] sm:$0xff] }
 0x3f2   : > { %v1175_v63 = vmul.f32 %v14865_v2, %v14825_v51  ;;  %v1054_v31 = vadd.f32 %v1022_v28, %v986_v6  ;;  %v1300_v43 = vrot.slane %v1173_v37, 1  ;;  %v1418_v57 = vmul.f32 %v14867_v35, %v14858_v20 }
 0x3f3   : > { %v1055_v49 = vadd.f32 %v1023_v5, %v987_v7  ;;  %v6171_v25 = vadd.f32 1.0, %v6812_v58  ;;  %v3808_v61 = vadd.f32 %v3741_v29, %v3563_v4  ;;  %v1301_v18 = vrot.slane %v1174_v54, 1 }
 0x3f4   : > { %v1303_v16 = vrot.slane %v1175_v63, 1  ;;  %v14869_v46 = vrot.slane %v14868_v1, 4  ;;  %v14870_v9 = vrot.slane %v12520_v55, 4  ;;  %v1122_v2 = vadd.f32 %v1090_v38, %v1054_v31  ;;  %v14872_v38 = vld [vmem:[#allocation4_spill] sm:$0xff] }
 0x3f5   : > { %v12716_v28 = vmul.f32 %v14867_v35, %v14860_v32  ;;  %6813 = vrcp.f32 %v6171_v25  ;;  %v4052_v5 = vadd.f32 %v3985_v59, %v3808_v61  ;;  %v14871_v37 = vrot.slane %v12534_v33, 4 }
 0x3f6   : > { %v5450_v14 = vsel %vm4887_vm4, %v14869_v46, %v5449_v0  ;;  %v5694_v50 = vsel %vm4887_vm4, %v14870_v9, %v5693_v27  ;;  %v1302_v6 = vsel %vm1224_vm1, %v1300_v43, %v1301_v18  ;;  %v1123_v7 = vadd.f32 %v1091_v11, %v1055_v49  ;;  %v14873_v49 = vld [vmem:[#allocation5_spill] sm:$0xff] }
 0x3f7   : > { %v12721_v29 = vsel %vm4887_vm4, %v14871_v37, %v5937_v8  ;;  %v1367_v46 = vadd.f32 %v1302_v6, %v1122_v2  ;;  %v1544_v0 = vrot.slane %v1418_v57, 1  ;;  %v1545_v55 = vrot.slane %v12716_v28, 1  ;;  %v14875_v2 = vld [vmem:[#allocation64_spill] sm:$0xff] }
 0x3f8   : > { %v4296_v27 = vadd.f32 %v4229_v48, %v4052_v5  ;;  %v1304_v9 = vsel %vm1224_vm1, %v1301_v18, %v1303_v16  ;;  %v1662_v4 = vmul.f32 %v14872_v38, %v14861_v10  ;;  %v12730_v59 = vmul.f32 %v14872_v38, %v14808_v41  ;;  %v14874_v48 = vld [vmem:[#allocation63_spill] sm:$0xff] }
 0x3f9   : > { %v1546_v33 = vsel %vm1224_vm1, %v1544_v0, %v1545_v55  ;;  %v1906_v8 = vmul.f32 %v14873_v49, %v14863_v44  ;;  %v12739_v11 = vmul.f32 %v14873_v49, %v14864_v47  ;;  %v2150_v18 = vmul.f32 %v14874_v48, %v12687_v17 }
 0x3fa   : > { %v4540_v54 = vadd.f32 %v12650_v62, %v4296_v27  ;;  %v12746_v63 = vmul.f32 %v14867_v35, %v14828_v45  ;;  %v1611_v58 = vadd.f32 %v1546_v33, %v1367_v46  ;;  %v1788_v31 = vrot.slane %v1662_v4, 1 }
 0x3fb   : > { %v12748_v43 = vadd.f32 %v1304_v9, %v1123_v7  ;;  %v13859_v57 = vrot.slane %v12730_v59, 1  ;;  %v2032_v25 = vrot.slane %v1906_v8, 1  ;;  %v13857_v61 = vrot.slane %v12739_v11, 1 }
 0x3fc   : > { %v4784_v16 = vadd.f32 %v12655_v56, %v4540_v54  ;;  %v12755_v1 = vmul.f32 %v14874_v48, %v12696_v21  ;;  %v2276_v62 = vrot.slane %v2150_v18, 1  ;;  %v2394_v35 = vmul.f32 %v14875_v2, %v14853_v30  ;;  %v14876_v56 = vld [vmem:[#allocation65_spill] sm:$0xff] }
 0x3fd   : > { %v1790_v5 = vsel %vm1224_vm1, %v1788_v31, %v13859_v57  ;;  %v2034_v37 = vsel %vm1224_vm1, %v2032_v25, %v13857_v61  ;;  %v12767_v6 = vmul.f32 %v14875_v2, %v14855_v13  ;;  %v2639_v7 = vmul.f32 %v14876_v56, %v14858_v20 }
 0x3fe   : > { %v5029_v46 = vadd.f32 %v12660_v42, %v4784_v16  ;;  %v1855_v0 = vadd.f32 %v1790_v5, %v1611_v58  ;;  %v13856_v27 = vrot.slane %v12755_v1, 1  ;;  %v2521_v9 = vrot.slane %v2394_v35, 2 }
 0x3ff   : > { %v13855_v4 = vrot.slane %v12767_v6, 2  ;;  %v12776_v33 = vmul.f32 %v14876_v56, %v14860_v32  ;;  %v2765_v8 = vrot.slane %v2639_v7, 2  ;;  %v2883_v18 = vmul.f32 %v13997_v36, %v14861_v10 }
 0x400   : > { %v5273_v54 = vadd.f32 %v12665_v26, %v5029_v46  ;;  %v2099_v31 = vadd.f32 %v2034_v37, %v1855_v0  ;;  %v2278_v42 = vsel %vm1224_vm1, %v2276_v62, %v13856_v27  ;;  %v12786_v58 = vmul.f32 %v13997_v36, %v14808_v41 }
 0x401   : > { %v2523_v25 = vsel %vm2445_vm2, %v2521_v9, %v13855_v4  ;;  %v13858_v16 = vrot.slane %v12776_v33, 2  ;;  %v3009_v35 = vrot.slane %v2883_v18, 2  ;;  %v3127_v5 = vmul.f32 %v14151_v53, %v14863_v44 }
 0x402   : > { %v5517_v26 = vadd.f32 %v5450_v14, %v5273_v54  ;;  %v2343_v37 = vadd.f32 %v2278_v42, %v2099_v31  ;;  %v13862_v7 = vrot.slane %v12786_v58, 2  ;;  %v12797_v62 = vmul.f32 %v14151_v53, %v14864_v47  ;;  %v6814_v46 = vpop.eup %6813 }
 0x403   : > { %v2767_v0 = vsel %vm2445_vm2, %v2765_v8, %v13858_v16  ;;  %v3253_v9 = vrot.slane %v3127_v5, 2  ;;  %v3371_v18 = vmul.f32 %v13960_v39, %v12687_v17  ;;  %v12806_v14 = vmul.f32 %v13960_v39, %v12696_v21 }
 0x404   : > { %v6267_v54 = vmul.f32 %v6814_v46, %v12602_v23  ;;  %v5761_v31 = vadd.f32 %v5694_v50, %v5517_v26  ;;  %v2588_v42 = vadd.f32 %v2523_v25, %v2343_v37  ;;  %v3011_v4 = vsel %vm2445_vm2, %v3009_v35, %v13862_v7 }
 0x405   : > { %v13861_v27 = vrot.slane %v12797_v62, 2  ;;  %v3497_v61 = vrot.slane %v3371_v18, 2  ;;  %v13860_v8 = vrot.slane %v12806_v14, 2  ;;  %v3615_v5 = vmul.f32 %v13961_v60, %v14853_v30 }
 0x406   : > { %6331 = vst [vmem:[%s6937_s10 + $0x1e0] sm:$0xff] %v6267_v54  ;;  %v6005_v16 = vadd.f32 %v12721_v29, %v5761_v31  ;;  %v2832_v57 = vadd.f32 %v2767_v0, %v2588_v42  ;;  %v12820_v50 = vmul.f32 %v13961_v60, %v14855_v13  ;;  %v3860_v23 = vmul.f32 %v13962_v12, %v14858_v20 }
 0x407   : > { %v3255_v25 = vsel %vm2445_vm2, %v3253_v9, %v13861_v27  ;;  %v3499_v35 = vsel %vm2445_vm2, %v3497_v61, %v13860_v8  ;;  %v3742_v26 = vrot.slane %v3615_v5, 3  ;;  %v12832_v29 = vmul.f32 %v13962_v12, %v14860_v32 }
 0x408   : > { %v12835_v37 = vadd.f32 %v12105_v3, %v6005_v16  ;;  %v3076_v46 = vadd.f32 %v3011_v4, %v2832_v57  ;;  %v13864_v0 = vrot.slane %v12820_v50, 3  ;;  %v3986_v18 = vrot.slane %v3860_v23, 3 }
 0x409   : > { %v13863_v54 = vrot.slane %v12832_v29, 3  ;;  %v4104_v9 = vmul.f32 %v14776_v40, %v14861_v10  ;;  %v12843_v61 = vmul.f32 %v14776_v40, %v14808_v41  ;;  %v4348_v31 = vmul.f32 %v14777_v24, %v14863_v44 }
 0x40a   : > { %v6567_v42 = vmul.f32 -1.442695, %v12835_v37  ;;  %v1547_v3 = vrot.slane %v12746_v63, 1  ;;  %v3320_v57 = vadd.f32 %v3255_v25, %v3076_v46  ;;  %v12851_v4 = vmul.f32 %v14777_v24, %v14864_v47 }
 0x40b   : > { %v3744_v16 = vsel %vm3666_vm3, %v3742_v26, %v13864_v0  ;;  %v3988_v5 = vsel %vm3666_vm3, %v3986_v18, %v13863_v54  ;;  %v4230_v23 = vrot.slane %v4104_v9, 3  ;;  %v4231_v8 = vrot.slane %v12843_v61, 3 }
 0x40c   : > { %6815 = vpow2.f32 %v6567_v42  ;;  %v3564_v27 = vadd.f32 %v3499_v35, %v3320_v57  ;;  %v4474_v7 = vrot.slane %v4348_v31, 3  ;;  %v4592_v63 = vmul.f32 %v14157_v19, %v12687_v17 }
 0x40d   : > { %v13869_v25 = vrot.slane %v12851_v4, 3  ;;  %v12865_v46 = vmul.f32 %v14157_v19, %v12696_v21  ;;  %v4836_v26 = vmul.f32 %v14027_v15, %v14853_v30  ;;  %v12871_v18 = vmul.f32 %v14027_v15, %v14855_v13 }
 0x40e   : > { %v3809_v9 = vadd.f32 %v3744_v16, %v3564_v27  ;;  %v4232_v35 = vsel %vm3666_vm3, %v4230_v23, %v4231_v8  ;;  %v4718_v31 = vrot.slane %v4592_v63, 3  ;;  %v5081_v42 = vmul.f32 %v7436_v52, %v14858_v20 }
 0x40f   : > { %v13867_v57 = vrot.slane %v12865_v46, 3  ;;  %v4963_v54 = vrot.slane %v4836_v26, 4  ;;  %v13866_v0 = vrot.slane %v12871_v18, 4  ;;  %v12882_v30 = vmul.f32 %v7436_v52, %v14860_v32 }
 0x410   : > { %v1548_v13 = vsel %vm1224_vm1, %v1545_v55, %v1547_v3  ;;  %v4053_v27 = vadd.f32 %v3988_v5, %v3809_v9  ;;  %v5325_v16 = vmul.f32 %v7441_v22, %v14861_v10  ;;  %v12891_v20 = vmul.f32 %v7441_v22, %v14808_v41 }
 0x411   : > { %v4476_v23 = vsel %vm3666_vm3, %v4474_v7, %v13869_v25  ;;  %v5207_v63 = vrot.slane %v5081_v42, 4  ;;  %v13865_v32 = vrot.slane %v12882_v30, 4  ;;  %v5569_v28 = vmul.f32 %v14101_v34, %v14863_v44  ;;  %v14877_v44 = vld [vmem:[#allocation79_spill] sm:$0xff] }
 0x412   : > { %v4297_v26 = vadd.f32 %v4232_v35, %v4053_v27  ;;  %v5451_v55 = vrot.slane %v5325_v16, 4  ;;  %v13868_v3 = vrot.slane %v12891_v20, 4  ;;  %v1612_v10 = vadd.f32 %v1548_v13, %v12748_v43  ;;  %v14878_v43 = vld [vmem:[#allocation19_spill] sm:$0xff] }
 0x413   : > { %v4720_v41 = vsel %vm3666_vm3, %v4718_v31, %v13867_v57  ;;  %v4965_v7 = vsel %vm4887_vm4, %v4963_v54, %v13866_v0  ;;  %v12909_v5 = vmul.f32 %v14101_v34, %v14864_v47  ;;  %v5813_v35 = vmul.f32 %v14877_v44, %v12687_v17  ;;  %v14880_v47 = vld [vmem:[#allocation58_spill] sm:$0xff] }
 0x414   : > { %v4541_v9 = vadd.f32 %v4476_v23, %v4297_v26  ;;  %v12915_v42 = vmul.f32 %v14877_v44, %v12696_v21  ;;  %v14879_v13 = vrot.slane %v14878_v43, 6  ;;  %v5209_v54 = vsel %vm4887_vm4, %v5207_v63, %v13865_v32  ;;  %v14881_v23 = vld [vmem:[#allocation66_spill] sm:$0xff] }
 0x415   : > { %v5695_v27 = vrot.slane %v5569_v28, 4  ;;  %v1664_v16 = vmul.f32 %v14872_v38, %v14880_v47  ;;  %v1908_v17 = vmul.f32 %v14873_v49, %v14881_v23  ;;  %v5453_v21 = vsel %vm4887_vm4, %v5451_v55, %v13868_v3 }
 0x416   : > { %v12920_v31 = vsel %vm618_vm0, %v14879_v13, 0.0  ;;  %v4785_v26 = vadd.f32 %v4720_v41, %v4541_v9  ;;  %v2396_v13 = vmul.f32 %v14875_v2, %v14825_v51  ;;  %v5696_v63 = vrot.slane %v12909_v5, 4 }
 0x417   : > { %v2152_v43 = vmul.f32 %v14874_v48, %v12920_v31  ;;  %v1791_v28 = vrot.slane %v1664_v16, 1  ;;  %v2035_v32 = vrot.slane %v1908_v17, 1  ;;  %v2641_v38 = vmul.f32 %v14876_v56, %v14828_v45 }
 0x418   : > { %v5030_v0 = vadd.f32 %v4965_v7, %v4785_v26  ;;  %v5939_v49 = vrot.slane %v5813_v35, 4  ;;  %v5940_v41 = vrot.slane %v12915_v42, 4  ;;  %v14882_v55 = vrot.slane %v12730_v59, 1 }
 0x419   : > { %v2279_v9 = vrot.slane %v2152_v43, 1  ;;  %v6816_v57 = vpop.eup %6815  ;;  %v14883_v3 = vrot.slane %v12739_v11, 1  ;;  %v2524_v25 = vrot.slane %v2396_v13, 2  ;;  %v2885_v16 = vmul.f32 %v13997_v36, %v14880_v47 }
 0x41a   : > { %v1792_v48 = vsel %vm1224_vm1, %v14882_v55, %v1791_v28  ;;  %v6172_v17 = vadd.f32 1.0, %v6816_v57  ;;  %v5274_v56 = vadd.f32 %v5209_v54, %v5030_v0  ;;  %v5697_v35 = vsel %vm4887_vm4, %v5695_v27, %v5696_v63 }
 0x41b   : > { %v2036_v2 = vsel %vm1224_vm1, %v14883_v3, %v2035_v32  ;;  %v1856_v7 = vadd.f32 %v1792_v48, %v1612_v10  ;;  %v14884_v26 = vrot.slane %v12755_v1, 1  ;;  %v2768_v43 = vrot.slane %v2641_v38, 2 }
 0x41c   : > { %v3129_v11 = vmul.f32 %v14151_v53, %v14881_v23  ;;  %6817 = vrcp.f32 %v6172_v17  ;;  %v5518_v32 = vadd.f32 %v5453_v21, %v5274_v56  ;;  %v5941_v36 = vsel %vm4887_vm4, %v5939_v49, %v5940_v41 }
 0x41d   : > { %v2280_v59 = vsel %vm1224_vm1, %v14884_v26, %v2279_v9  ;;  %v2100_v3 = vadd.f32 %v2036_v2, %v1856_v7  ;;  %v14885_v0 = vrot.slane %v12767_v6, 2  ;;  %v3012_v10 = vrot.slane %v2885_v16, 2 }
 0x41e   : > { %v3373_v1 = vmul.f32 %v13960_v39, %v12920_v31  ;;  %v5762_v54 = vadd.f32 %v5697_v35, %v5518_v32  ;;  %v14886_v13 = vrot.slane %v12776_v33, 2  ;;  %v3256_v21 = vrot.slane %v3129_v11, 2  ;;  %v6832_v33 = vld [vmem:[%s13046_s4] ss:$0 sm:$0xff] }
 0x41f   : > { %v2525_v57 = vsel %vm2445_vm2, %v14885_v0, %v2524_v25  ;;  %v2344_v27 = vadd.f32 %v2280_v59, %v2100_v3  ;;  %v3617_v28 = vmul.f32 %v13961_v60, %v14825_v51  ;;  %v14887_v6 = vrot.slane %v12786_v58, 2 }
 0x420   : > { %v2769_v53 = vsel %vm2445_vm2, %v14886_v13, %v2768_v43  ;;  %v6006_v38 = vadd.f32 %v5941_v36, %v5762_v54  ;;  %v3500_v9 = vrot.slane %v3373_v1, 2  ;;  %v3862_v39 = vmul.f32 %v13962_v12, %v14828_v45 }
 0x421   : > { %v2589_v49 = vadd.f32 %v2525_v57, %v2344_v27  ;;  %v3013_v25 = vsel %vm2445_vm2, %v14887_v6, %v3012_v10  ;;  %v14888_v2 = vrot.slane %v12797_v62, 2  ;;  %v3745_v16 = vrot.slane %v3617_v28, 3 }
 0x422   : > { %v6045_v55 = vadd.f32 %v6832_v33, %v6006_v38  ;;  %v4106_v58 = vmul.f32 %v14776_v40, %v14880_v47  ;;  %v14889_v7 = vrot.slane %v12806_v14, 2  ;;  %v3989_v35 = vrot.slane %v3862_v39, 3 }
 0x423   : > { %v2833_v48 = vadd.f32 %v2769_v53, %v2589_v49  ;;  %v3257_v60 = vsel %vm2445_vm2, %v14888_v2, %v3256_v21  ;;  %v4350_v26 = vmul.f32 %v14777_v24, %v14881_v23  ;;  %v14890_v62 = vrot.slane %v12820_v50, 3 }
 0x424   : > { %v6568_v17 = vmul.f32 -1.442695, %v6045_v55  ;;  %v3501_v12 = vsel %vm2445_vm2, %v14889_v7, %v3500_v9  ;;  %v4233_v11 = vrot.slane %v4106_v58, 3  ;;  %v4594_v40 = vmul.f32 %v14157_v19, %v12920_v31 }
 0x425   : > { %v3077_v56 = vadd.f32 %v3013_v25, %v2833_v48  ;;  %v3746_v43 = vsel %vm3666_vm3, %v14890_v62, %v3745_v16  ;;  %v14891_v14 = vrot.slane %v12832_v29, 3  ;;  %v4477_v0 = vrot.slane %v4350_v26, 3 }
 0x426   : > { %6819 = vpow2.f32 %v6568_v17  ;;  %v4838_v24 = vmul.f32 %v14027_v15, %v14825_v51  ;;  %v4234_v50 = vsel %vm3666_vm3, %v4231_v8, %v4233_v11  ;;  %v4721_v1 = vrot.slane %v4594_v40, 3 }
 0x427   : > { %v3321_v59 = vadd.f32 %v3257_v60, %v3077_v56  ;;  %v3990_v36 = vsel %vm3666_vm3, %v14891_v14, %v3989_v35  ;;  %v5083_v19 = vmul.f32 %v7436_v52, %v14828_v45  ;;  %v14892_v29 = vrot.slane %v12851_v4, 3 }
 0x428   : > { %v4966_v13 = vrot.slane %v4838_v24, 4  ;;  %v5327_v15 = vmul.f32 %v7441_v22, %v14880_v47  ;;  %v5571_v53 = vmul.f32 %v14101_v34, %v14881_v23  ;;  %v14894_v45 = vrot.slane %v12871_v18, 4 }
 0x429   : > { %v3565_v32 = vadd.f32 %v3501_v12, %v3321_v59  ;;  %v6818_v3 = vpop.eup %6817  ;;  %v4478_v27 = vsel %vm3666_vm3, %v14892_v29, %v4477_v0  ;;  %v5210_v8 = vrot.slane %v5083_v19, 4  ;;  %v5815_v28 = vmul.f32 %v14877_v44, %v12920_v31 }
 0x42a   : > { %v6268_v57 = vmul.f32 %v6818_v3, %v12835_v37  ;;  %v14893_v37 = vrot.slane %v12865_v46, 3  ;;  %v4967_v4 = vsel %vm4887_vm4, %v14894_v45, %v4966_v13  ;;  %v5454_v21 = vrot.slane %v5327_v15, 4 }
 0x42b   : > { %v3810_v10 = vadd.f32 %v3746_v43, %v3565_v32  ;;  %v14895_v47 = vrot.slane %v12882_v30, 4  ;;  %v5698_v49 = vrot.slane %v5571_v53, 4  ;;  %v14896_v34 = vrot.slane %v12891_v20, 4 }
 0x42c   : > { %6332 = vst [vmem:[%s6937_s10 + $0x1e8] sm:$0xff] %v6268_v57  ;;  %v4722_v61 = vsel %vm3666_vm3, %v14893_v37, %v4721_v1  ;;  %v5942_v23 = vrot.slane %v5815_v28, 4 }
 0x42d   : > { %v4054_v54 = vadd.f32 %v3990_v36, %v3810_v10  ;;  %v5211_v46 = vsel %vm4887_vm4, %v14895_v47, %v5210_v8  ;;  %v5455_v18 = vsel %vm4887_vm4, %v14896_v34, %v5454_v21  ;;  %v5699_v44 = vsel %vm4887_vm4, %v5696_v63, %v5698_v49 }
 0x42e   : > { %v5943_v30 = vsel %vm4887_vm4, %v5940_v41, %v5942_v23 }
 0x42f   : > { %v4298_v51 = vadd.f32 %v4234_v50, %v4054_v54 }
 0x431   : > { %v4542_v52 = vadd.f32 %v4478_v27, %v4298_v51 }
 0x433   : > { %v4786_v38 = vadd.f32 %v4722_v61, %v4542_v52  ;;  %v6820_v22 = vpop.eup %6819 }
 0x434   : > { %v6173_v6 = vadd.f32 1.0, %v6820_v22 }
 0x435   : > { %v5031_v25 = vadd.f32 %v4967_v4, %v4786_v38 }
 0x436   : > { %6821 = vrcp.f32 %v6173_v6 }
 0x437   : > { %v5275_v9 = vadd.f32 %v5211_v46, %v5031_v25 }
 0x439   : > { %v5519_v31 = vadd.f32 %v5455_v18, %v5275_v9 }
 0x43b   : > { %v5763_v39 = vadd.f32 %v5699_v44, %v5519_v31 }
 0x43d   : > { %v6007_v48 = vadd.f32 %v5943_v30, %v5763_v39 }
 0x43f   : > { %v6046_v2 = vadd.f32 %v6832_v33, %v6007_v48 }
 0x441   : > { %v6569_v60 = vmul.f32 -1.442695, %v6046_v2 }
 0x443   : > { %6823 = vpow2.f32 %v6569_v60  ;;  %v6822_v20 = vpop.eup %6821 }
 0x444   : > { %v6269_v16 = vmul.f32 %v6822_v20, %v6045_v55 }
 0x446   : > { %6333 = vst [vmem:[%s6937_s10 + $0x1f0] sm:$0xff] %v6269_v16 }
 0x450   : > { %v6824_v58 = vpop.eup %6823 }
 0x451   : > { %v6174_v17 = vadd.f32 1.0, %v6824_v58 }
 0x453   : > { %6825 = vrcp.f32 %v6174_v17 }
 0x460   : > { %v6826_v5 = vpop.eup %6825 }
 0x461   : > { %v6270_v56 = vmul.f32 %v6826_v5, %v6046_v2 }
 0x463   : > { %6334 = vst [vmem:[%s6937_s10 + $0x1f8] sm:$0xff] %v6270_v56 }
 0x464 PF: > { %s15_s20 = sadd.s32 1, %s6855_s20   ;;  %s14897_s18 = smov %s6851_s19 }
 0x465   : > { %p12_p5 = scmp.ge.s32.totalorder %s15_s20, 4   ;;  %s14898_s19 = smov %s14900_s21 }
 0x467   :  { %14 = sbr.rel (!%p12_p5) target bundleno = 2 (0x2), region = 82 }

</bundles_post_ra>
